<compile_context>
chip_gen: v7x
topology: tpu7x:2x2x1
jax: 0.10.0
libtpu: 0.0.40
codegen_flags: <defaults>
</compile_context>

<pallas_src>
import functools
from collections import defaultdict

import jax
import jax.numpy as jnp
from jax import lax
from jax.experimental import pallas as pl
from jax.experimental.pallas import tpu as pltpu

BN_EPS = 1e-5
CONV_STRIDES = (2, 1, 2, 1)


def _round_up(x, m):
    return (x + m - 1) // m * m


def _sigmoid_approx(z):
    # EUP-approx reciprocal; used on hidden layers only.
    return pl.reciprocal(1.0 + jnp.exp(-z), approx=True)


# ----------------------------------------------------------------------------
# Fused fc tail:  out = sigmoid(sigmoid(sigmoid(x@w1+b1)@w2+b2)@w3+b3)
# Single pallas_call.  fc1 reduced over a K grid (tk up to 2048) into an f32
# VMEM accumulator; fc2/fc3 (tiny, VMEM-resident weights) run in the finalize.
# ----------------------------------------------------------------------------
def _fc_tail_kernel(x_ref, w1_ref, b1_ref, w2_ref, b2_ref, w3_ref, b3_ref,
                    o_ref, acc_ref):
    k = pl.program_id(0)

    @pl.when(k == 0)
    def _init():
        acc_ref[...] = jnp.zeros_like(acc_ref)

    acc_ref[...] += jnp.dot(x_ref[...], w1_ref[...],
                            preferred_element_type=jnp.float32)

    @pl.when(k == pl.num_programs(0) - 1)
    def _finalize():
        h1 = _sigmoid_approx(acc_ref[...] + b1_ref[...]).astype(jnp.bfloat16)
        z2 = jnp.dot(h1, w2_ref[...],
                     preferred_element_type=jnp.float32) + b2_ref[...]
        h2 = _sigmoid_approx(z2).astype(jnp.bfloat16)
        z3 = jnp.dot(h2, w3_ref[...],
                     preferred_element_type=jnp.float32) + b3_ref[...]
        # Exact sigmoid on the module output (avoid compounding approx error).
        o_ref[...] = (1.0 / (1.0 + jnp.exp(-z3))).astype(o_ref.dtype)


def fused_fc_tail(x, p1, p2, p3):
    """Three chained Linear+sigmoid layers in one kernel.  Returns (M,N3) f32."""
    M, K = x.shape
    N1 = p1["w"].shape[1]
    N2 = p2["w"].shape[1]
    N3 = p3["w"].shape[1]

    Mp = _round_up(M, 8)
    Kp = _round_up(K, 128)
    N1p = _round_up(N1, 128)
    N2p = _round_up(N2, 128)
    N3p = _round_up(N3, 128)           # lane-dense (>=128) output

    tk = 128
    for cand in (2048, 1024, 512, 256, 128):
        if Kp % cand == 0:
            tk = cand
            break

    xp = jnp.pad(x.astype(jnp.bfloat16), ((0, Mp - M), (0, Kp - K)))
    w1 = jnp.pad(p1["w"].astype(jnp.bfloat16), ((0, Kp - K), (0, N1p - N1)))
    b1 = jnp.pad(p1["b"].astype(jnp.float32), (0, N1p - N1)).reshape(1, N1p)
    w2 = jnp.pad(p2["w"].astype(jnp.bfloat16), ((0, N1p - N1), (0, N2p - N2)))
    b2 = jnp.pad(p2["b"].astype(jnp.float32), (0, N2p - N2)).reshape(1, N2p)
    w3 = jnp.pad(p3["w"].astype(jnp.bfloat16), ((0, N2p - N2), (0, N3p - N3)))
    b3 = jnp.pad(p3["b"].astype(jnp.float32), (0, N3p - N3)).reshape(1, N3p)

    grid = (Kp // tk,)
    # TODO(synk): on v7x the single reduction grid keeps one TensorCore idle;
    #             an N-split fc1 + tiny fc2/fc3 kernel would use both cores.
    out = pl.pallas_call(
        _fc_tail_kernel,
        out_shape=jax.ShapeDtypeStruct((Mp, N3p), jnp.float32),
        grid_spec=pltpu.PrefetchScalarGridSpec(
            num_scalar_prefetch=0,
            grid=grid,
            in_specs=[
                pl.BlockSpec((Mp, tk), lambda k: (0, k)),
                pl.BlockSpec((tk, N1p), lambda k: (k, 0)),
                pl.BlockSpec((1, N1p), lambda k: (0, 0)),
                pl.BlockSpec((N1p, N2p), lambda k: (0, 0)),
                pl.BlockSpec((1, N2p), lambda k: (0, 0)),
                pl.BlockSpec((N2p, N3p), lambda k: (0, 0)),
                pl.BlockSpec((1, N3p), lambda k: (0, 0)),
            ],
            out_specs=pl.BlockSpec((Mp, N3p), lambda k: (0, 0)),
            scratch_shapes=[pltpu.VMEM((Mp, N1p), jnp.float32)],
        ),
        compiler_params=pltpu.CompilerParams(
            dimension_semantics=("arbitrary",)),
        cost_estimate=pl.CostEstimate(
            flops=2 * Mp * N1p * Kp + 2 * Mp * N2p * N1p + 2 * Mp * N3p * N2p,
            transcendentals=Mp * (N1p + N2p + N3p),
            bytes_accessed=(2 * Mp * Kp + 2 * Kp * N1p + 2 * N1p * N2p
                            + 2 * N2p * N3p + 4 * Mp * N3p)),
    )(xp, w1, b1, w2, b2, w3, b3)
    return out[:M, :N3]


# ----------------------------------------------------------------------------
# Conv 3x3 (pad 1, stride 1 or 2) + eval-mode BN + sigmoid.
# The padded image lives in VMEM; the conv is a small set of shifted matmuls
# (no im2col), accumulated in a local value (vregs), stored once.
# For stride 2 the input is space-to-depth packed in the wrapper so taps become
# channel-contiguous; contiguous taps are merged into wider-K dots (9 -> 5).
# ----------------------------------------------------------------------------
def _conv3x3_bn_sigmoid_kernel(x_ref, w_ref, b_ref, o_ref, *,
                               groups, trows, wo):
    row0 = pl.multiple_of(pl.program_id(1) * trows, trows)
    acc = None
    for (dh, dw, coff, klen, woff) in groups:
        patch = x_ref[0, pl.ds(row0 + dh, trows), pl.ds(dw, wo),
                      pl.ds(coff, klen)]
        contrib = jnp.dot(patch.reshape(trows * wo, klen),
                          w_ref[pl.ds(woff, klen), :],
                          preferred_element_type=jnp.float32)
        acc = contrib if acc is None else acc + contrib
    z = acc + b_ref[...]
    y = _sigmoid_approx(z)
    o_ref[...] = y[None].astype(o_ref.dtype)


def _pick_trows(Ho, Wo, max_rows):
    best = 1
    for t in range(1, Ho + 1):
        if Ho % t == 0 and t * Wo <= max_rows:
            best = t
    return best


def _build_groups_and_weights(w_f, C, Cout, stride):
    """Group taps by (dh,dw) and merge channel-contiguous runs.

    Returns (groups, w_flat) where groups is a tuple of
    (dh, dw, coff, klen, weight_row_offset) and w_flat is (9*C, Cout) bf16
    with rows laid out group-after-group in coff-ascending tap order.
    """
    if stride == 1:
        taps = [(kh, kw, 0, kh, kw) for kh in range(3) for kw in range(3)]
    else:  # space-to-depth packed: channel offset ((kh%2)*2 + (kw%2)) * C
        taps = [(kh // 2, kw // 2, ((kh % 2) * 2 + (kw % 2)) * C, kh, kw)
                for kh in range(3) for kw in range(3)]
    bydd = defaultdict(list)
    for dh, dw, coff, kh, kw in taps:
        bydd[(dh, dw)].append((coff, kh, kw))

    groups = []
    w_rows = []
    woff = 0
    for (dh, dw) in sorted(bydd):
        entries = sorted(bydd[(dh, dw)])
        run = [entries[0]]
        for e in entries[1:]:
            if e[0] == run[-1][0] + C:
                run.append(e)
            else:
                groups.append((dh, dw, run[0][0], len(run) * C, woff))
                for (_, kh, kw) in run:
                    w_rows.append(w_f[kh, kw])
                woff += len(run) * C
                run = [e]
        groups.append((dh, dw, run[0][0], len(run) * C, woff))
        for (_, kh, kw) in run:
            w_rows.append(w_f[kh, kw])
        woff += len(run) * C

    w_flat = jnp.concatenate(w_rows, axis=0).astype(jnp.bfloat16)
    return tuple(groups), w_flat


def conv_bn_sigmoid(x_nhwc, p, stride):
    B, H, W, C = x_nhwc.shape
    Cout = p["w"].shape[-1]
    Ho = (H + 2 - 3) // stride + 1
    Wo = (W + 2 - 3) // stride + 1
    # TODO(synk): generalize to non (8,128)-aligned spatial/channel sizes.
    assert Wo % 8 == 0 and C % 128 == 0 and Cout % 128 == 0

    # Fold BN (eval mode) into conv weight / bias; bf16 weights for the MXU.
    scale = p["gamma"] / jnp.sqrt(p["var"] + BN_EPS)
    w_f = p["w"] * scale                                   # (3,3,C,Cout)
    bias = ((p["b"] - p["mean"]) * scale + p["beta"]).astype(jnp.float32)
    bias = bias.reshape(1, Cout)

    groups, w_flat = _build_groups_and_weights(w_f, C, Cout, stride)

    xp = jnp.pad(x_nhwc.astype(jnp.bfloat16), ((0, 0), (1, 1), (1, 1), (0, 0)))
    if stride == 1:
        xq = xp
    else:  # stride 2: space-to-depth so every tap is a contiguous window
        Hp, Wp = H + 2, W + 2
        assert Hp % 2 == 0 and Wp % 2 == 0
        xq = xp.reshape(B, Hp // 2, 2, Wp // 2, 2, C)
        xq = xq.transpose(0, 1, 3, 2, 4, 5).reshape(B, Hp // 2, Wp // 2, 4 * C)
    Hq, Wq, Cq = xq.shape[1], xq.shape[2], xq.shape[3]

    # Cap the register accumulator at ~128 KiB of f32 (<= 32 vregs at Cout=128).
    max_rows = max(Wo, (128 * 1024) // (4 * Cout))
    trows = _pick_trows(Ho, Wo, max_rows)
    grid = (B, Ho // trows)

    kernel = functools.partial(_conv3x3_bn_sigmoid_kernel,
                               groups=groups, trows=trows, wo=Wo)
    out = pl.pallas_call(
        kernel,
        out_shape=jax.ShapeDtypeStruct((B, Ho * Wo, Cout), jnp.bfloat16),
        grid_spec=pltpu.PrefetchScalarGridSpec(
            num_scalar_prefetch=0,
            grid=grid,
            in_specs=[
                pl.BlockSpec((1, Hq, Wq, Cq), lambda b, r: (b, 0, 0, 0)),
                pl.BlockSpec((9 * C, Cout), lambda b, r: (0, 0)),
                pl.BlockSpec((1, Cout), lambda b, r: (0, 0)),
            ],
            out_specs=pl.BlockSpec((1, trows * Wo, Cout),
                                   lambda b, r: (b, r, 0)),
        ),
        compiler_params=pltpu.CompilerParams(
            dimension_semantics=("parallel", "parallel")),
        cost_estimate=pl.CostEstimate(
            flops=2 * B * Ho * Wo * 9 * C * Cout,
            transcendentals=B * Ho * Wo * Cout,
            bytes_accessed=(2 * B * Hq * Wq * Cq + 2 * 9 * C * Cout
                            + 2 * B * Ho * Wo * Cout)),
    )(xq, w_flat, bias)
    return out.reshape(B, Ho, Wo, Cout)


# ----------------------------------------------------------------------------
# Full forward (matches GlobalLevel.forward semantics at scaled-down width).
# ----------------------------------------------------------------------------
def prepare_params(params, H4, W4):
    """One-time prep: fold the NCHW-flatten row order into fc1's weight."""
    C = params["conv4"]["w"].shape[-1]
    perm = jnp.arange(C * H4 * W4).reshape(C, H4, W4)
    perm = perm.transpose(1, 2, 0).reshape(-1)
    pk = dict(params)
    pk["fc1"] = dict(params["fc1"])
    pk["fc1"]["w"] = params["fc1"]["w"][perm, :]
    return pk


def global_level_forward(x_nchw, params_k):
    """Pallas forward.  `params_k` must come from prepare_params()."""
    x = jnp.transpose(x_nchw, (0, 2, 3, 1)).astype(jnp.bfloat16)  # NCHW->NHWC
    for i, s in enumerate(CONV_STRIDES):
        x = conv_bn_sigmoid(x, params_k[f"conv{i + 1}"], s)
    B = x.shape[0]
    flat = x.reshape(B, -1)        # NHWC flatten; NCHW order folded into fc1.w
    return fused_fc_tail(flat, params_k["fc1"], params_k["fc2"],
                         params_k["fc3"])


def reference_forward(x_nchw, params):
    """Pure-JAX f32 reference (no Pallas) for correctness checking."""
    x = jnp.transpose(x_nchw, (0, 2, 3, 1))
    for i, s in enumerate(CONV_STRIDES):
        p = params[f"conv{i + 1}"]
        y = lax.conv_general_dilated(
            x, p["w"], (s, s), [(1, 1), (1, 1)],
            dimension_numbers=("NHWC", "HWIO", "NHWC")) + p["b"]
        scale = p["gamma"] / jnp.sqrt(p["var"] + BN_EPS)
        y = (y - p["mean"]) * scale + p["beta"]
        x = jax.nn.sigmoid(y)
    B = x.shape[0]
    flat = jnp.transpose(x, (0, 3, 1, 2)).reshape(B, -1)
    for i in range(3):
        p = params[f"fc{i + 1}"]
        flat = jax.nn.sigmoid(flat @ p["w"] + p["b"])
    return flat


# ----------------------------------------------------------------------------
# Deterministic parameter init (scaled-down synthetic version of the module:
# original uses 512 channels / 32768->1024->512->256; here 128 channels at the
# real 32x32 spatial size and 8192->256->128->64 fc widths).
# ----------------------------------------------------------------------------
def init_params(key, C, H, W):
    params = {}
    fc_in = C * (H // 4) * (W // 4)
    fc_dims = [(fc_in, 256), (256, 128), (128, 64)]
    keys = jax.random.split(key, 17)
    ki = 0
    for i in range(4):
        kw, kb, kg, kbe = keys[ki], keys[ki + 1], keys[ki + 2], keys[ki + 3]
        ki += 4
        params[f"conv{i + 1}"] = {
            "w": jax.random.normal(kw, (3, 3, C, C), jnp.float32) * 0.02,
            "b": jax.random.normal(kb, (C,), jnp.float32) * 0.02,
            "gamma": 1.0 + jax.random.normal(kg, (C,), jnp.float32) * 0.01,
            "beta": jax.random.normal(kbe, (C,), jnp.float32) * 0.01,
            "mean": jax.random.normal(kg, (C,), jnp.float32) * 0.01,
            "var": 1.0 + jax.random.uniform(kbe, (C,), jnp.float32) * 0.05,
        }
    fkeys = jax.random.split(keys[16], 6)
    for i, (din, dout) in enumerate(fc_dims):
        params[f"fc{i + 1}"] = {
            "w": jax.random.normal(fkeys[2 * i], (din, dout), jnp.float32) * 0.02,
            "b": jax.random.normal(fkeys[2 * i + 1], (dout,), jnp.float32) * 0.02,
        }
    return params


if __name__ == "__main__":
    B, C, H, W = 2, 128, 32, 32
    key = jax.random.PRNGKey(0)
    k_x, k_p = jax.random.split(key)
    x = jax.random.normal(k_x, (B, C, H, W), jnp.float32)
    params = init_params(k_p, C, H, W)
    params_k = prepare_params(params, H // 4, W // 4)

    fwd = jax.jit(global_level_forward)
    out = jax.block_until_ready(fwd(x, params_k))

    ref = jax.block_until_ready(jax.jit(reference_forward)(x, params))
    assert out.shape == ref.shape == (B, 64), out.shape
    max_err = float(jnp.max(jnp.abs(out - ref)))
    # bf16 MXU inputs -> looser tolerance than the pure-f32 path.
    assert jnp.allclose(out, ref, rtol=2e-2, atol=2e-2), max_err
    print("KERNEL_OK")
</pallas_src>

<mosaic_0001>
module attributes {stable_mosaic.version = 11 : i64} {
  func.func @_conv3x3_bn_sigmoid_kernel(%arg0: i32, %arg1: i32, %arg2: memref<1x17x17x512xbf16, #tpu.memory_space<vmem>>, %arg3: memref<1152x128xbf16, #tpu.memory_space<vmem>>, %arg4: memref<1x128xf32, #tpu.memory_space<vmem>>, %arg5: memref<1x256x128xbf16, #tpu.memory_space<vmem>>) attributes {dimension_semantics = [#tpu.dimension_semantics<parallel>, #tpu.dimension_semantics<parallel>], iteration_bounds = array<i64: 2, 1>, scalar_prefetch = 0 : i64, scratch_operands = 0 : i64, tpu.core_type = #tpu.core_type<tc>, window_params = [{transform_indices = @transform_0, window_bounds = array<i64: 1, 17, 17, 512>}, {pipeline_mode = #tpu.pipeline_mode<synchronous>, transform_indices = @transform_1, window_bounds = array<i64: 1152, 128>}, {pipeline_mode = #tpu.pipeline_mode<synchronous>, transform_indices = @transform_2, window_bounds = array<i64: 1, 128>}, {transform_indices = @transform_3, window_bounds = array<i64: 1, 256, 128>}]} {
    %c16_i32 = arith.constant 16 : i32
    %0 = arith.muli %arg1, %c16_i32 : i32
    %1 = tpu.assume_multiple %0, 16 : i32
    %c0_i32 = arith.constant 0 : i32
    %2 = arith.addi %1, %c0_i32 : i32
    %c0 = arith.constant 0 : index
    %3 = arith.index_cast %2 : i32 to index
    %c0_0 = arith.constant 0 : index
    %c0_1 = arith.constant 0 : index
    %4 = vector.load %arg2[%c0, %3, %c0_0, %c0_1] : memref<1x17x17x512xbf16, #tpu.memory_space<vmem>>, vector<1x16x16x512xbf16>
    %5 = vector.shape_cast %4 : vector<1x16x16x512xbf16> to vector<16x16x512xbf16>
    %6 = vector.shape_cast %5 : vector<16x16x512xbf16> to vector<256x512xbf16>
    %c0_2 = arith.constant 0 : index
    %c0_3 = arith.constant 0 : index
    %7 = vector.load %arg3[%c0_2, %c0_3] : memref<1152x128xbf16, #tpu.memory_space<vmem>>, vector<512x128xbf16>
    %cst = arith.constant dense<0.000000e+00> : vector<256x128xf32>
    %8 = tpu.matmul %6, %7, %cst {dimension_numbers = #tpu.dot_dimension_numbers<[1], [0], [0], [1], [0, 0, 1, 1], [], []>} : vector<256x512xbf16>, vector<512x128xbf16>, vector<256x128xf32> -> vector<256x128xf32>
    %c0_i32_4 = arith.constant 0 : i32
    %9 = arith.addi %1, %c0_i32_4 : i32
    %c0_5 = arith.constant 0 : index
    %10 = arith.index_cast %9 : i32 to index
    %c1 = arith.constant 1 : index
    %c0_6 = arith.constant 0 : index
    %11 = vector.load %arg2[%c0_5, %10, %c1, %c0_6] : memref<1x17x17x512xbf16, #tpu.memory_space<vmem>>, vector<1x16x16x128xbf16>
    %12 = vector.shape_cast %11 : vector<1x16x16x128xbf16> to vector<16x16x128xbf16>
    %13 = vector.shape_cast %12 : vector<16x16x128xbf16> to vector<256x128xbf16>
    %c512 = arith.constant 512 : index
    %c0_7 = arith.constant 0 : index
    %14 = vector.load %arg3[%c512, %c0_7] : memref<1152x128xbf16, #tpu.memory_space<vmem>>, vector<128x128xbf16>
    %cst_8 = arith.constant dense<0.000000e+00> : vector<256x128xf32>
    %15 = tpu.matmul %13, %14, %cst_8 {dimension_numbers = #tpu.dot_dimension_numbers<[1], [0], [0], [1], [0, 0, 1, 1], [], []>} : vector<256x128xbf16>, vector<128x128xbf16>, vector<256x128xf32> -> vector<256x128xf32>
    %16 = arith.addf %8, %15 : vector<256x128xf32>
    %c0_i32_9 = arith.constant 0 : i32
    %17 = arith.addi %1, %c0_i32_9 : i32
    %c0_10 = arith.constant 0 : index
    %18 = arith.index_cast %17 : i32 to index
    %c1_11 = arith.constant 1 : index
    %c256 = arith.constant 256 : index
    %19 = vector.load %arg2[%c0_10, %18, %c1_11, %c256] : memref<1x17x17x512xbf16, #tpu.memory_space<vmem>>, vector<1x16x16x128xbf16>
    %20 = vector.shape_cast %19 : vector<1x16x16x128xbf16> to vector<16x16x128xbf16>
    %21 = vector.shape_cast %20 : vector<16x16x128xbf16> to vector<256x128xbf16>
    %c640 = arith.constant 640 : index
    %c0_12 = arith.constant 0 : index
    %22 = vector.load %arg3[%c640, %c0_12] : memref<1152x128xbf16, #tpu.memory_space<vmem>>, vector<128x128xbf16>
    %cst_13 = arith.constant dense<0.000000e+00> : vector<256x128xf32>
    %23 = tpu.matmul %21, %22, %cst_13 {dimension_numbers = #tpu.dot_dimension_numbers<[1], [0], [0], [1], [0, 0, 1, 1], [], []>} : vector<256x128xbf16>, vector<128x128xbf16>, vector<256x128xf32> -> vector<256x128xf32>
    %24 = arith.addf %16, %23 : vector<256x128xf32>
    %c1_i32 = arith.constant 1 : i32
    %25 = arith.addi %1, %c1_i32 : i32
    %c0_14 = arith.constant 0 : index
    %26 = arith.index_cast %25 : i32 to index
    %c0_15 = arith.constant 0 : index
    %c0_16 = arith.constant 0 : index
    %27 = vector.load %arg2[%c0_14, %26, %c0_15, %c0_16] : memref<1x17x17x512xbf16, #tpu.memory_space<vmem>>, vector<1x16x16x256xbf16>
    %28 = vector.shape_cast %27 : vector<1x16x16x256xbf16> to vector<16x16x256xbf16>
    %29 = vector.shape_cast %28 : vector<16x16x256xbf16> to vector<256x256xbf16>
    %c768 = arith.constant 768 : index
    %c0_17 = arith.constant 0 : index
    %30 = vector.load %arg3[%c768, %c0_17] : memref<1152x128xbf16, #tpu.memory_space<vmem>>, vector<256x128xbf16>
    %cst_18 = arith.constant dense<0.000000e+00> : vector<256x128xf32>
    %31 = tpu.matmul %29, %30, %cst_18 {dimension_numbers = #tpu.dot_dimension_numbers<[1], [0], [0], [1], [0, 0, 1, 1], [], []>} : vector<256x256xbf16>, vector<256x128xbf16>, vector<256x128xf32> -> vector<256x128xf32>
    %32 = arith.addf %24, %31 : vector<256x128xf32>
    %c1_i32_19 = arith.constant 1 : i32
    %33 = arith.addi %1, %c1_i32_19 : i32
    %c0_20 = arith.constant 0 : index
    %34 = arith.index_cast %33 : i32 to index
    %c1_21 = arith.constant 1 : index
    %c0_22 = arith.constant 0 : index
    %35 = vector.load %arg2[%c0_20, %34, %c1_21, %c0_22] : memref<1x17x17x512xbf16, #tpu.memory_space<vmem>>, vector<1x16x16x128xbf16>
    %36 = vector.shape_cast %35 : vector<1x16x16x128xbf16> to vector<16x16x128xbf16>
    %37 = vector.shape_cast %36 : vector<16x16x128xbf16> to vector<256x128xbf16>
    %c1024 = arith.constant 1024 : index
    %c0_23 = arith.constant 0 : index
    %38 = vector.load %arg3[%c1024, %c0_23] : memref<1152x128xbf16, #tpu.memory_space<vmem>>, vector<128x128xbf16>
    %cst_24 = arith.constant dense<0.000000e+00> : vector<256x128xf32>
    %39 = tpu.matmul %37, %38, %cst_24 {dimension_numbers = #tpu.dot_dimension_numbers<[1], [0], [0], [1], [0, 0, 1, 1], [], []>} : vector<256x128xbf16>, vector<128x128xbf16>, vector<256x128xf32> -> vector<256x128xf32>
    %40 = arith.addf %32, %39 : vector<256x128xf32>
    %c0_25 = arith.constant 0 : index
    %c0_26 = arith.constant 0 : index
    %41 = vector.load %arg4[%c0_25, %c0_26] : memref<1x128xf32, #tpu.memory_space<vmem>>, vector<1x128xf32>
    %42 = vector.broadcast %41 : vector<1x128xf32> to vector<256x128xf32>
    %43 = arith.addf %40, %42 : vector<256x128xf32>
    %cst_27 = arith.constant 0.000000e+00 : f32
    %44 = vector.broadcast %cst_27 : f32 to vector<256x128xf32>
    %45 = arith.subf %44, %43 : vector<256x128xf32>
    %46 = math.exp %45 : vector<256x128xf32>
    %cst_28 = arith.constant 1.000000e+00 : f32
    %47 = vector.broadcast %cst_28 : f32 to vector<256x128xf32>
    %48 = arith.addf %47, %46 : vector<256x128xf32>
    %49 = tpu.reciprocal %48 {approx = true} : vector<256x128xf32> -> vector<256x128xf32>
    %50 = vector.shape_cast %49 : vector<256x128xf32> to vector<1x256x128xf32>
    %51 = arith.truncf %50 : vector<1x256x128xf32> to vector<1x256x128xbf16>
    %c0_29 = arith.constant 0 : index
    %c0_30 = arith.constant 0 : index
    %c0_31 = arith.constant 0 : index
    %52 = vector.load %arg5[%c0_29, %c0_30, %c0_31] : memref<1x256x128xbf16, #tpu.memory_space<vmem>>, vector<1x256x128xbf16>
    tpu.vector_store %arg5[%c0_29, %c0_30, %c0_31], %51 {strides = array<i32>} : memref<1x256x128xbf16, #tpu.memory_space<vmem>>, vector<1x256x128xbf16>,
    return
  }
  func.func @transform_0(%arg0: i32, %arg1: i32) -> (i32, i32, i32, i32) {
    %c0_i32 = arith.constant 0 : i32
    %c0_i32_0 = arith.constant 0 : i32
    %c0_i32_1 = arith.constant 0 : i32
    %c0_i32_2 = arith.constant 0 : i32
    return %arg0, %c0_i32, %c0_i32_0, %c0_i32_1 : i32, i32, i32, i32
  }
  func.func @transform_1(%arg0: i32, %arg1: i32) -> (i32, i32) {
    %c0_i32 = arith.constant 0 : i32
    %c0_i32_0 = arith.constant 0 : i32
    %c0_i32_1 = arith.constant 0 : i32
    return %c0_i32, %c0_i32_0 : i32, i32
  }
  func.func @transform_2(%arg0: i32, %arg1: i32) -> (i32, i32) {
    %c0_i32 = arith.constant 0 : i32
    %c0_i32_0 = arith.constant 0 : i32
    %c0_i32_1 = arith.constant 0 : i32
    return %c0_i32, %c0_i32_0 : i32, i32
  }
  func.func @transform_3(%arg0: i32, %arg1: i32) -> (i32, i32, i32) {
    %c0_i32 = arith.constant 0 : i32
    %c0_i32_0 = arith.constant 0 : i32
    return %arg0, %arg1, %c0_i32 : i32, i32, i32
  }
}

module attributes {stable_mosaic.version = 11 : i64} {
  func.func @_conv3x3_bn_sigmoid_kernel(%arg0: i32, %arg1: i32, %arg2: memref<1x18x18x128xbf16, #tpu.memory_space<vmem>>, %arg3: memref<1152x128xbf16, #tpu.memory_space<vmem>>, %arg4: memref<1x128xf32, #tpu.memory_space<vmem>>, %arg5: memref<1x256x128xbf16, #tpu.memory_space<vmem>>) attributes {dimension_semantics = [#tpu.dimension_semantics<parallel>, #tpu.dimension_semantics<parallel>], iteration_bounds = array<i64: 2, 1>, scalar_prefetch = 0 : i64, scratch_operands = 0 : i64, tpu.core_type = #tpu.core_type<tc>, window_params = [{transform_indices = @transform_0, window_bounds = array<i64: 1, 18, 18, 128>}, {pipeline_mode = #tpu.pipeline_mode<synchronous>, transform_indices = @transform_1, window_bounds = array<i64: 1152, 128>}, {pipeline_mode = #tpu.pipeline_mode<synchronous>, transform_indices = @transform_2, window_bounds = array<i64: 1, 128>}, {transform_indices = @transform_3, window_bounds = array<i64: 1, 256, 128>}]} {
    %c16_i32 = arith.constant 16 : i32
    %0 = arith.muli %arg1, %c16_i32 : i32
    %1 = tpu.assume_multiple %0, 16 : i32
    %c0_i32 = arith.constant 0 : i32
    %2 = arith.addi %1, %c0_i32 : i32
    %c0 = arith.constant 0 : index
    %3 = arith.index_cast %2 : i32 to index
    %c0_0 = arith.constant 0 : index
    %c0_1 = arith.constant 0 : index
    %4 = vector.load %arg2[%c0, %3, %c0_0, %c0_1] : memref<1x18x18x128xbf16, #tpu.memory_space<vmem>>, vector<1x16x16x128xbf16>
    %5 = vector.shape_cast %4 : vector<1x16x16x128xbf16> to vector<16x16x128xbf16>
    %6 = vector.shape_cast %5 : vector<16x16x128xbf16> to vector<256x128xbf16>
    %c0_2 = arith.constant 0 : index
    %c0_3 = arith.constant 0 : index
    %7 = vector.load %arg3[%c0_2, %c0_3] : memref<1152x128xbf16, #tpu.memory_space<vmem>>, vector<128x128xbf16>
    %cst = arith.constant dense<0.000000e+00> : vector<256x128xf32>
    %8 = tpu.matmul %6, %7, %cst {dimension_numbers = #tpu.dot_dimension_numbers<[1], [0], [0], [1], [0, 0, 1, 1], [], []>} : vector<256x128xbf16>, vector<128x128xbf16>, vector<256x128xf32> -> vector<256x128xf32>
    %c0_i32_4 = arith.constant 0 : i32
    %9 = arith.addi %1, %c0_i32_4 : i32
    %c0_5 = arith.constant 0 : index
    %10 = arith.index_cast %9 : i32 to index
    %c1 = arith.constant 1 : index
    %c0_6 = arith.constant 0 : index
    %11 = vector.load %arg2[%c0_5, %10, %c1, %c0_6] : memref<1x18x18x128xbf16, #tpu.memory_space<vmem>>, vector<1x16x16x128xbf16>
    %12 = vector.shape_cast %11 : vector<1x16x16x128xbf16> to vector<16x16x128xbf16>
    %13 = vector.shape_cast %12 : vector<16x16x128xbf16> to vector<256x128xbf16>
    %c128 = arith.constant 128 : index
    %c0_7 = arith.constant 0 : index
    %14 = vector.load %arg3[%c128, %c0_7] : memref<1152x128xbf16, #tpu.memory_space<vmem>>, vector<128x128xbf16>
    %cst_8 = arith.constant dense<0.000000e+00> : vector<256x128xf32>
    %15 = tpu.matmul %13, %14, %cst_8 {dimension_numbers = #tpu.dot_dimension_numbers<[1], [0], [0], [1], [0, 0, 1, 1], [], []>} : vector<256x128xbf16>, vector<128x128xbf16>, vector<256x128xf32> -> vector<256x128xf32>
    %16 = arith.addf %8, %15 : vector<256x128xf32>
    %c0_i32_9 = arith.constant 0 : i32
    %17 = arith.addi %1, %c0_i32_9 : i32
    %c0_10 = arith.constant 0 : index
    %18 = arith.index_cast %17 : i32 to index
    %c2 = arith.constant 2 : index
    %c0_11 = arith.constant 0 : index
    %19 = vector.load %arg2[%c0_10, %18, %c2, %c0_11] : memref<1x18x18x128xbf16, #tpu.memory_space<vmem>>, vector<1x16x16x128xbf16>
    %20 = vector.shape_cast %19 : vector<1x16x16x128xbf16> to vector<16x16x128xbf16>
    %21 = vector.shape_cast %20 : vector<16x16x128xbf16> to vector<256x128xbf16>
    %c256 = arith.constant 256 : index
    %c0_12 = arith.constant 0 : index
    %22 = vector.load %arg3[%c256, %c0_12] : memref<1152x128xbf16, #tpu.memory_space<vmem>>, vector<128x128xbf16>
    %cst_13 = arith.constant dense<0.000000e+00> : vector<256x128xf32>
    %23 = tpu.matmul %21, %22, %cst_13 {dimension_numbers = #tpu.dot_dimension_numbers<[1], [0], [0], [1], [0, 0, 1, 1], [], []>} : vector<256x128xbf16>, vector<128x128xbf16>, vector<256x128xf32> -> vector<256x128xf32>
    %24 = arith.addf %16, %23 : vector<256x128xf32>
    %c1_i32 = arith.constant 1 : i32
    %25 = arith.addi %1, %c1_i32 : i32
    %c0_14 = arith.constant 0 : index
    %26 = arith.index_cast %25 : i32 to index
    %c0_15 = arith.constant 0 : index
    %c0_16 = arith.constant 0 : index
    %27 = vector.load %arg2[%c0_14, %26, %c0_15, %c0_16] : memref<1x18x18x128xbf16, #tpu.memory_space<vmem>>, vector<1x16x16x128xbf16>
    %28 = vector.shape_cast %27 : vector<1x16x16x128xbf16> to vector<16x16x128xbf16>
    %29 = vector.shape_cast %28 : vector<16x16x128xbf16> to vector<256x128xbf16>
    %c384 = arith.constant 384 : index
    %c0_17 = arith.constant 0 : index
    %30 = vector.load %arg3[%c384, %c0_17] : memref<1152x128xbf16, #tpu.memory_space<vmem>>, vector<128x128xbf16>
    %cst_18 = arith.constant dense<0.000000e+00> : vector<256x128xf32>
    %31 = tpu.matmul %29, %30, %cst_18 {dimension_numbers = #tpu.dot_dimension_numbers<[1], [0], [0], [1], [0, 0, 1, 1], [], []>} : vector<256x128xbf16>, vector<128x128xbf16>, vector<256x128xf32> -> vector<256x128xf32>
    %32 = arith.addf %24, %31 : vector<256x128xf32>
    %c1_i32_19 = arith.constant 1 : i32
    %33 = arith.addi %1, %c1_i32_19 : i32
    %c0_20 = arith.constant 0 : index
    %34 = arith.index_cast %33 : i32 to index
    %c1_21 = arith.constant 1 : index
    %c0_22 = arith.constant 0 : index
    %35 = vector.load %arg2[%c0_20, %34, %c1_21, %c0_22] : memref<1x18x18x128xbf16, #tpu.memory_space<vmem>>, vector<1x16x16x128xbf16>
    %36 = vector.shape_cast %35 : vector<1x16x16x128xbf16> to vector<16x16x128xbf16>
    %37 = vector.shape_cast %36 : vector<16x16x128xbf16> to vector<256x128xbf16>
    %c512 = arith.constant 512 : index
    %c0_23 = arith.constant 0 : index
    %38 = vector.load %arg3[%c512, %c0_23] : memref<1152x128xbf16, #tpu.memory_space<vmem>>, vector<128x128xbf16>
    %cst_24 = arith.constant dense<0.000000e+00> : vector<256x128xf32>
    %39 = tpu.matmul %37, %38, %cst_24 {dimension_numbers = #tpu.dot_dimension_numbers<[1], [0], [0], [1], [0, 0, 1, 1], [], []>} : vector<256x128xbf16>, vector<128x128xbf16>, vector<256x128xf32> -> vector<256x128xf32>
    %40 = arith.addf %32, %39 : vector<256x128xf32>
    %c1_i32_25 = arith.constant 1 : i32
    %41 = arith.addi %1, %c1_i32_25 : i32
    %c0_26 = arith.constant 0 : index
    %42 = arith.index_cast %41 : i32 to index
    %c2_27 = arith.constant 2 : index
    %c0_28 = arith.constant 0 : index
    %43 = vector.load %arg2[%c0_26, %42, %c2_27, %c0_28] : memref<1x18x18x128xbf16, #tpu.memory_space<vmem>>, vector<1x16x16x128xbf16>
    %44 = vector.shape_cast %43 : vector<1x16x16x128xbf16> to vector<16x16x128xbf16>
    %45 = vector.shape_cast %44 : vector<16x16x128xbf16> to vector<256x128xbf16>
    %c640 = arith.constant 640 : index
    %c0_29 = arith.constant 0 : index
    %46 = vector.load %arg3[%c640, %c0_29] : memref<1152x128xbf16, #tpu.memory_space<vmem>>, vector<128x128xbf16>
    %cst_30 = arith.constant dense<0.000000e+00> : vector<256x128xf32>
    %47 = tpu.matmul %45, %46, %cst_30 {dimension_numbers = #tpu.dot_dimension_numbers<[1], [0], [0], [1], [0, 0, 1, 1], [], []>} : vector<256x128xbf16>, vector<128x128xbf16>, vector<256x128xf32> -> vector<256x128xf32>
    %48 = arith.addf %40, %47 : vector<256x128xf32>
    %c2_i32 = arith.constant 2 : i32
    %49 = arith.addi %1, %c2_i32 : i32
    %c0_31 = arith.constant 0 : index
    %50 = arith.index_cast %49 : i32 to index
    %c0_32 = arith.constant 0 : index
    %c0_33 = arith.constant 0 : index
    %51 = vector.load %arg2[%c0_31, %50, %c0_32, %c0_33] : memref<1x18x18x128xbf16, #tpu.memory_space<vmem>>, vector<1x16x16x128xbf16>
    %52 = vector.shape_cast %51 : vector<1x16x16x128xbf16> to vector<16x16x128xbf16>
    %53 = vector.shape_cast %52 : vector<16x16x128xbf16> to vector<256x128xbf16>
    %c768 = arith.constant 768 : index
    %c0_34 = arith.constant 0 : index
    %54 = vector.load %arg3[%c768, %c0_34] : memref<1152x128xbf16, #tpu.memory_space<vmem>>, vector<128x128xbf16>
    %cst_35 = arith.constant dense<0.000000e+00> : vector<256x128xf32>
    %55 = tpu.matmul %53, %54, %cst_35 {dimension_numbers = #tpu.dot_dimension_numbers<[1], [0], [0], [1], [0, 0, 1, 1], [], []>} : vector<256x128xbf16>, vector<128x128xbf16>, vector<256x128xf32> -> vector<256x128xf32>
    %56 = arith.addf %48, %55 : vector<256x128xf32>
    %c2_i32_36 = arith.constant 2 : i32
    %57 = arith.addi %1, %c2_i32_36 : i32
    %c0_37 = arith.constant 0 : index
    %58 = arith.index_cast %57 : i32 to index
    %c1_38 = arith.constant 1 : index
    %c0_39 = arith.constant 0 : index
    %59 = vector.load %arg2[%c0_37, %58, %c1_38, %c0_39] : memref<1x18x18x128xbf16, #tpu.memory_space<vmem>>, vector<1x16x16x128xbf16>
    %60 = vector.shape_cast %59 : vector<1x16x16x128xbf16> to vector<16x16x128xbf16>
    %61 = vector.shape_cast %60 : vector<16x16x128xbf16> to vector<256x128xbf16>
    %c896 = arith.constant 896 : index
    %c0_40 = arith.constant 0 : index
    %62 = vector.load %arg3[%c896, %c0_40] : memref<1152x128xbf16, #tpu.memory_space<vmem>>, vector<128x128xbf16>
    %cst_41 = arith.constant dense<0.000000e+00> : vector<256x128xf32>
    %63 = tpu.matmul %61, %62, %cst_41 {dimension_numbers = #tpu.dot_dimension_numbers<[1], [0], [0], [1], [0, 0, 1, 1], [], []>} : vector<256x128xbf16>, vector<128x128xbf16>, vector<256x128xf32> -> vector<256x128xf32>
    %64 = arith.addf %56, %63 : vector<256x128xf32>
    %c2_i32_42 = arith.constant 2 : i32
    %65 = arith.addi %1, %c2_i32_42 : i32
    %c0_43 = arith.constant 0 : index
    %66 = arith.index_cast %65 : i32 to index
    %c2_44 = arith.constant 2 : index
    %c0_45 = arith.constant 0 : index
    %67 = vector.load %arg2[%c0_43, %66, %c2_44, %c0_45] : memref<1x18x18x128xbf16, #tpu.memory_space<vmem>>, vector<1x16x16x128xbf16>
    %68 = vector.shape_cast %67 : vector<1x16x16x128xbf16> to vector<16x16x128xbf16>
    %69 = vector.shape_cast %68 : vector<16x16x128xbf16> to vector<256x128xbf16>
    %c1024 = arith.constant 1024 : index
    %c0_46 = arith.constant 0 : index
    %70 = vector.load %arg3[%c1024, %c0_46] : memref<1152x128xbf16, #tpu.memory_space<vmem>>, vector<128x128xbf16>
    %cst_47 = arith.constant dense<0.000000e+00> : vector<256x128xf32>
    %71 = tpu.matmul %69, %70, %cst_47 {dimension_numbers = #tpu.dot_dimension_numbers<[1], [0], [0], [1], [0, 0, 1, 1], [], []>} : vector<256x128xbf16>, vector<128x128xbf16>, vector<256x128xf32> -> vector<256x128xf32>
    %72 = arith.addf %64, %71 : vector<256x128xf32>
    %c0_48 = arith.constant 0 : index
    %c0_49 = arith.constant 0 : index
    %73 = vector.load %arg4[%c0_48, %c0_49] : memref<1x128xf32, #tpu.memory_space<vmem>>, vector<1x128xf32>
    %74 = vector.broadcast %73 : vector<1x128xf32> to vector<256x128xf32>
    %75 = arith.addf %72, %74 : vector<256x128xf32>
    %cst_50 = arith.constant 0.000000e+00 : f32
    %76 = vector.broadcast %cst_50 : f32 to vector<256x128xf32>
    %77 = arith.subf %76, %75 : vector<256x128xf32>
    %78 = math.exp %77 : vector<256x128xf32>
    %cst_51 = arith.constant 1.000000e+00 : f32
    %79 = vector.broadcast %cst_51 : f32 to vector<256x128xf32>
    %80 = arith.addf %79, %78 : vector<256x128xf32>
    %81 = tpu.reciprocal %80 {approx = true} : vector<256x128xf32> -> vector<256x128xf32>
    %82 = vector.shape_cast %81 : vector<256x128xf32> to vector<1x256x128xf32>
    %83 = arith.truncf %82 : vector<1x256x128xf32> to vector<1x256x128xbf16>
    %c0_52 = arith.constant 0 : index
    %c0_53 = arith.constant 0 : index
    %c0_54 = arith.constant 0 : index
    %84 = vector.load %arg5[%c0_52, %c0_53, %c0_54] : memref<1x256x128xbf16, #tpu.memory_space<vmem>>, vector<1x256x128xbf16>
    tpu.vector_store %arg5[%c0_52, %c0_53, %c0_54], %83 {strides = array<i32>} : memref<1x256x128xbf16, #tpu.memory_space<vmem>>, vector<1x256x128xbf16>,
    return
  }
  func.func @transform_0(%arg0: i32, %arg1: i32) -> (i32, i32, i32, i32) {
    %c0_i32 = arith.constant 0 : i32
    %c0_i32_0 = arith.constant 0 : i32
    %c0_i32_1 = arith.constant 0 : i32
    %c0_i32_2 = arith.constant 0 : i32
    return %arg0, %c0_i32, %c0_i32_0, %c0_i32_1 : i32, i32, i32, i32
  }
  func.func @transform_1(%arg0: i32, %arg1: i32) -> (i32, i32) {
    %c0_i32 = arith.constant 0 : i32
    %c0_i32_0 = arith.constant 0 : i32
    %c0_i32_1 = arith.constant 0 : i32
    return %c0_i32, %c0_i32_0 : i32, i32
  }
  func.func @transform_2(%arg0: i32, %arg1: i32) -> (i32, i32) {
    %c0_i32 = arith.constant 0 : i32
    %c0_i32_0 = arith.constant 0 : i32
    %c0_i32_1 = arith.constant 0 : i32
    return %c0_i32, %c0_i32_0 : i32, i32
  }
  func.func @transform_3(%arg0: i32, %arg1: i32) -> (i32, i32, i32) {
    %c0_i32 = arith.constant 0 : i32
    %c0_i32_0 = arith.constant 0 : i32
    return %arg0, %arg1, %c0_i32 : i32, i32, i32
  }
}

module attributes {stable_mosaic.version = 11 : i64} {
  func.func @_conv3x3_bn_sigmoid_kernel(%arg0: i32, %arg1: i32, %arg2: memref<1x9x9x512xbf16, #tpu.memory_space<vmem>>, %arg3: memref<1152x128xbf16, #tpu.memory_space<vmem>>, %arg4: memref<1x128xf32, #tpu.memory_space<vmem>>, %arg5: memref<1x64x128xbf16, #tpu.memory_space<vmem>>) attributes {dimension_semantics = [#tpu.dimension_semantics<parallel>, #tpu.dimension_semantics<parallel>], iteration_bounds = array<i64: 2, 1>, scalar_prefetch = 0 : i64, scratch_operands = 0 : i64, tpu.core_type = #tpu.core_type<tc>, window_params = [{transform_indices = @transform_0, window_bounds = array<i64: 1, 9, 9, 512>}, {pipeline_mode = #tpu.pipeline_mode<synchronous>, transform_indices = @transform_1, window_bounds = array<i64: 1152, 128>}, {pipeline_mode = #tpu.pipeline_mode<synchronous>, transform_indices = @transform_2, window_bounds = array<i64: 1, 128>}, {transform_indices = @transform_3, window_bounds = array<i64: 1, 64, 128>}]} {
    %c8_i32 = arith.constant 8 : i32
    %0 = arith.muli %arg1, %c8_i32 : i32
    %1 = tpu.assume_multiple %0, 8 : i32
    %c0_i32 = arith.constant 0 : i32
    %2 = arith.addi %1, %c0_i32 : i32
    %c0 = arith.constant 0 : index
    %3 = arith.index_cast %2 : i32 to index
    %c0_0 = arith.constant 0 : index
    %c0_1 = arith.constant 0 : index
    %4 = vector.load %arg2[%c0, %3, %c0_0, %c0_1] : memref<1x9x9x512xbf16, #tpu.memory_space<vmem>>, vector<1x8x8x512xbf16>
    %5 = vector.shape_cast %4 : vector<1x8x8x512xbf16> to vector<8x8x512xbf16>
    %6 = vector.shape_cast %5 : vector<8x8x512xbf16> to vector<64x512xbf16>
    %c0_2 = arith.constant 0 : index
    %c0_3 = arith.constant 0 : index
    %7 = vector.load %arg3[%c0_2, %c0_3] : memref<1152x128xbf16, #tpu.memory_space<vmem>>, vector<512x128xbf16>
    %cst = arith.constant dense<0.000000e+00> : vector<64x128xf32>
    %8 = tpu.matmul %6, %7, %cst {dimension_numbers = #tpu.dot_dimension_numbers<[1], [0], [0], [1], [0, 0, 1, 1], [], []>} : vector<64x512xbf16>, vector<512x128xbf16>, vector<64x128xf32> -> vector<64x128xf32>
    %c0_i32_4 = arith.constant 0 : i32
    %9 = arith.addi %1, %c0_i32_4 : i32
    %c0_5 = arith.constant 0 : index
    %10 = arith.index_cast %9 : i32 to index
    %c1 = arith.constant 1 : index
    %c0_6 = arith.constant 0 : index
    %11 = vector.load %arg2[%c0_5, %10, %c1, %c0_6] : memref<1x9x9x512xbf16, #tpu.memory_space<vmem>>, vector<1x8x8x128xbf16>
    %12 = vector.shape_cast %11 : vector<1x8x8x128xbf16> to vector<8x8x128xbf16>
    %13 = vector.shape_cast %12 : vector<8x8x128xbf16> to vector<64x128xbf16>
    %c512 = arith.constant 512 : index
    %c0_7 = arith.constant 0 : index
    %14 = vector.load %arg3[%c512, %c0_7] : memref<1152x128xbf16, #tpu.memory_space<vmem>>, vector<128x128xbf16>
    %cst_8 = arith.constant dense<0.000000e+00> : vector<64x128xf32>
    %15 = tpu.matmul %13, %14, %cst_8 {dimension_numbers = #tpu.dot_dimension_numbers<[1], [0], [0], [1], [0, 0, 1, 1], [], []>} : vector<64x128xbf16>, vector<128x128xbf16>, vector<64x128xf32> -> vector<64x128xf32>
    %16 = arith.addf %8, %15 : vector<64x128xf32>
    %c0_i32_9 = arith.constant 0 : i32
    %17 = arith.addi %1, %c0_i32_9 : i32
    %c0_10 = arith.constant 0 : index
    %18 = arith.index_cast %17 : i32 to index
    %c1_11 = arith.constant 1 : index
    %c256 = arith.constant 256 : index
    %19 = vector.load %arg2[%c0_10, %18, %c1_11, %c256] : memref<1x9x9x512xbf16, #tpu.memory_space<vmem>>, vector<1x8x8x128xbf16>
    %20 = vector.shape_cast %19 : vector<1x8x8x128xbf16> to vector<8x8x128xbf16>
    %21 = vector.shape_cast %20 : vector<8x8x128xbf16> to vector<64x128xbf16>
    %c640 = arith.constant 640 : index
    %c0_12 = arith.constant 0 : index
    %22 = vector.load %arg3[%c640, %c0_12] : memref<1152x128xbf16, #tpu.memory_space<vmem>>, vector<128x128xbf16>
    %cst_13 = arith.constant dense<0.000000e+00> : vector<64x128xf32>
    %23 = tpu.matmul %21, %22, %cst_13 {dimension_numbers = #tpu.dot_dimension_numbers<[1], [0], [0], [1], [0, 0, 1, 1], [], []>} : vector<64x128xbf16>, vector<128x128xbf16>, vector<64x128xf32> -> vector<64x128xf32>
    %24 = arith.addf %16, %23 : vector<64x128xf32>
    %c1_i32 = arith.constant 1 : i32
    %25 = arith.addi %1, %c1_i32 : i32
    %c0_14 = arith.constant 0 : index
    %26 = arith.index_cast %25 : i32 to index
    %c0_15 = arith.constant 0 : index
    %c0_16 = arith.constant 0 : index
    %27 = vector.load %arg2[%c0_14, %26, %c0_15, %c0_16] : memref<1x9x9x512xbf16, #tpu.memory_space<vmem>>, vector<1x8x8x256xbf16>
    %28 = vector.shape_cast %27 : vector<1x8x8x256xbf16> to vector<8x8x256xbf16>
    %29 = vector.shape_cast %28 : vector<8x8x256xbf16> to vector<64x256xbf16>
    %c768 = arith.constant 768 : index
    %c0_17 = arith.constant 0 : index
    %30 = vector.load %arg3[%c768, %c0_17] : memref<1152x128xbf16, #tpu.memory_space<vmem>>, vector<256x128xbf16>
    %cst_18 = arith.constant dense<0.000000e+00> : vector<64x128xf32>
    %31 = tpu.matmul %29, %30, %cst_18 {dimension_numbers = #tpu.dot_dimension_numbers<[1], [0], [0], [1], [0, 0, 1, 1], [], []>} : vector<64x256xbf16>, vector<256x128xbf16>, vector<64x128xf32> -> vector<64x128xf32>
    %32 = arith.addf %24, %31 : vector<64x128xf32>
    %c1_i32_19 = arith.constant 1 : i32
    %33 = arith.addi %1, %c1_i32_19 : i32
    %c0_20 = arith.constant 0 : index
    %34 = arith.index_cast %33 : i32 to index
    %c1_21 = arith.constant 1 : index
    %c0_22 = arith.constant 0 : index
    %35 = vector.load %arg2[%c0_20, %34, %c1_21, %c0_22] : memref<1x9x9x512xbf16, #tpu.memory_space<vmem>>, vector<1x8x8x128xbf16>
    %36 = vector.shape_cast %35 : vector<1x8x8x128xbf16> to vector<8x8x128xbf16>
    %37 = vector.shape_cast %36 : vector<8x8x128xbf16> to vector<64x128xbf16>
    %c1024 = arith.constant 1024 : index
    %c0_23 = arith.constant 0 : index
    %38 = vector.load %arg3[%c1024, %c0_23] : memref<1152x128xbf16, #tpu.memory_space<vmem>>, vector<128x128xbf16>
    %cst_24 = arith.constant dense<0.000000e+00> : vector<64x128xf32>
    %39 = tpu.matmul %37, %38, %cst_24 {dimension_numbers = #tpu.dot_dimension_numbers<[1], [0], [0], [1], [0, 0, 1, 1], [], []>} : vector<64x128xbf16>, vector<128x128xbf16>, vector<64x128xf32> -> vector<64x128xf32>
    %40 = arith.addf %32, %39 : vector<64x128xf32>
    %c0_25 = arith.constant 0 : index
    %c0_26 = arith.constant 0 : index
    %41 = vector.load %arg4[%c0_25, %c0_26] : memref<1x128xf32, #tpu.memory_space<vmem>>, vector<1x128xf32>
    %42 = vector.broadcast %41 : vector<1x128xf32> to vector<64x128xf32>
    %43 = arith.addf %40, %42 : vector<64x128xf32>
    %cst_27 = arith.constant 0.000000e+00 : f32
    %44 = vector.broadcast %cst_27 : f32 to vector<64x128xf32>
    %45 = arith.subf %44, %43 : vector<64x128xf32>
    %46 = math.exp %45 : vector<64x128xf32>
    %cst_28 = arith.constant 1.000000e+00 : f32
    %47 = vector.broadcast %cst_28 : f32 to vector<64x128xf32>
    %48 = arith.addf %47, %46 : vector<64x128xf32>
    %49 = tpu.reciprocal %48 {approx = true} : vector<64x128xf32> -> vector<64x128xf32>
    %50 = vector.shape_cast %49 : vector<64x128xf32> to vector<1x64x128xf32>
    %51 = arith.truncf %50 : vector<1x64x128xf32> to vector<1x64x128xbf16>
    %c0_29 = arith.constant 0 : index
    %c0_30 = arith.constant 0 : index
    %c0_31 = arith.constant 0 : index
    %52 = vector.load %arg5[%c0_29, %c0_30, %c0_31] : memref<1x64x128xbf16, #tpu.memory_space<vmem>>, vector<1x64x128xbf16>
    tpu.vector_store %arg5[%c0_29, %c0_30, %c0_31], %51 {strides = array<i32>} : memref<1x64x128xbf16, #tpu.memory_space<vmem>>, vector<1x64x128xbf16>,
    return
  }
  func.func @transform_0(%arg0: i32, %arg1: i32) -> (i32, i32, i32, i32) {
    %c0_i32 = arith.constant 0 : i32
    %c0_i32_0 = arith.constant 0 : i32
    %c0_i32_1 = arith.constant 0 : i32
    %c0_i32_2 = arith.constant 0 : i32
    return %arg0, %c0_i32, %c0_i32_0, %c0_i32_1 : i32, i32, i32, i32
  }
  func.func @transform_1(%arg0: i32, %arg1: i32) -> (i32, i32) {
    %c0_i32 = arith.constant 0 : i32
    %c0_i32_0 = arith.constant 0 : i32
    %c0_i32_1 = arith.constant 0 : i32
    return %c0_i32, %c0_i32_0 : i32, i32
  }
  func.func @transform_2(%arg0: i32, %arg1: i32) -> (i32, i32) {
    %c0_i32 = arith.constant 0 : i32
    %c0_i32_0 = arith.constant 0 : i32
    %c0_i32_1 = arith.constant 0 : i32
    return %c0_i32, %c0_i32_0 : i32, i32
  }
  func.func @transform_3(%arg0: i32, %arg1: i32) -> (i32, i32, i32) {
    %c0_i32 = arith.constant 0 : i32
    %c0_i32_0 = arith.constant 0 : i32
    return %arg0, %arg1, %c0_i32 : i32, i32, i32
  }
}

module attributes {stable_mosaic.version = 11 : i64} {
  func.func @_conv3x3_bn_sigmoid_kernel(%arg0: i32, %arg1: i32, %arg2: memref<1x10x10x128xbf16, #tpu.memory_space<vmem>>, %arg3: memref<1152x128xbf16, #tpu.memory_space<vmem>>, %arg4: memref<1x128xf32, #tpu.memory_space<vmem>>, %arg5: memref<1x64x128xbf16, #tpu.memory_space<vmem>>) attributes {dimension_semantics = [#tpu.dimension_semantics<parallel>, #tpu.dimension_semantics<parallel>], iteration_bounds = array<i64: 2, 1>, scalar_prefetch = 0 : i64, scratch_operands = 0 : i64, tpu.core_type = #tpu.core_type<tc>, window_params = [{transform_indices = @transform_0, window_bounds = array<i64: 1, 10, 10, 128>}, {pipeline_mode = #tpu.pipeline_mode<synchronous>, transform_indices = @transform_1, window_bounds = array<i64: 1152, 128>}, {pipeline_mode = #tpu.pipeline_mode<synchronous>, transform_indices = @transform_2, window_bounds = array<i64: 1, 128>}, {transform_indices = @transform_3, window_bounds = array<i64: 1, 64, 128>}]} {
    %c8_i32 = arith.constant 8 : i32
    %0 = arith.muli %arg1, %c8_i32 : i32
    %1 = tpu.assume_multiple %0, 8 : i32
    %c0_i32 = arith.constant 0 : i32
    %2 = arith.addi %1, %c0_i32 : i32
    %c0 = arith.constant 0 : index
    %3 = arith.index_cast %2 : i32 to index
    %c0_0 = arith.constant 0 : index
    %c0_1 = arith.constant 0 : index
    %4 = vector.load %arg2[%c0, %3, %c0_0, %c0_1] : memref<1x10x10x128xbf16, #tpu.memory_space<vmem>>, vector<1x8x8x128xbf16>
    %5 = vector.shape_cast %4 : vector<1x8x8x128xbf16> to vector<8x8x128xbf16>
    %6 = vector.shape_cast %5 : vector<8x8x128xbf16> to vector<64x128xbf16>
    %c0_2 = arith.constant 0 : index
    %c0_3 = arith.constant 0 : index
    %7 = vector.load %arg3[%c0_2, %c0_3] : memref<1152x128xbf16, #tpu.memory_space<vmem>>, vector<128x128xbf16>
    %cst = arith.constant dense<0.000000e+00> : vector<64x128xf32>
    %8 = tpu.matmul %6, %7, %cst {dimension_numbers = #tpu.dot_dimension_numbers<[1], [0], [0], [1], [0, 0, 1, 1], [], []>} : vector<64x128xbf16>, vector<128x128xbf16>, vector<64x128xf32> -> vector<64x128xf32>
    %c0_i32_4 = arith.constant 0 : i32
    %9 = arith.addi %1, %c0_i32_4 : i32
    %c0_5 = arith.constant 0 : index
    %10 = arith.index_cast %9 : i32 to index
    %c1 = arith.constant 1 : index
    %c0_6 = arith.constant 0 : index
    %11 = vector.load %arg2[%c0_5, %10, %c1, %c0_6] : memref<1x10x10x128xbf16, #tpu.memory_space<vmem>>, vector<1x8x8x128xbf16>
    %12 = vector.shape_cast %11 : vector<1x8x8x128xbf16> to vector<8x8x128xbf16>
    %13 = vector.shape_cast %12 : vector<8x8x128xbf16> to vector<64x128xbf16>
    %c128 = arith.constant 128 : index
    %c0_7 = arith.constant 0 : index
    %14 = vector.load %arg3[%c128, %c0_7] : memref<1152x128xbf16, #tpu.memory_space<vmem>>, vector<128x128xbf16>
    %cst_8 = arith.constant dense<0.000000e+00> : vector<64x128xf32>
    %15 = tpu.matmul %13, %14, %cst_8 {dimension_numbers = #tpu.dot_dimension_numbers<[1], [0], [0], [1], [0, 0, 1, 1], [], []>} : vector<64x128xbf16>, vector<128x128xbf16>, vector<64x128xf32> -> vector<64x128xf32>
    %16 = arith.addf %8, %15 : vector<64x128xf32>
    %c0_i32_9 = arith.constant 0 : i32
    %17 = arith.addi %1, %c0_i32_9 : i32
    %c0_10 = arith.constant 0 : index
    %18 = arith.index_cast %17 : i32 to index
    %c2 = arith.constant 2 : index
    %c0_11 = arith.constant 0 : index
    %19 = vector.load %arg2[%c0_10, %18, %c2, %c0_11] : memref<1x10x10x128xbf16, #tpu.memory_space<vmem>>, vector<1x8x8x128xbf16>
    %20 = vector.shape_cast %19 : vector<1x8x8x128xbf16> to vector<8x8x128xbf16>
    %21 = vector.shape_cast %20 : vector<8x8x128xbf16> to vector<64x128xbf16>
    %c256 = arith.constant 256 : index
    %c0_12 = arith.constant 0 : index
    %22 = vector.load %arg3[%c256, %c0_12] : memref<1152x128xbf16, #tpu.memory_space<vmem>>, vector<128x128xbf16>
    %cst_13 = arith.constant dense<0.000000e+00> : vector<64x128xf32>
    %23 = tpu.matmul %21, %22, %cst_13 {dimension_numbers = #tpu.dot_dimension_numbers<[1], [0], [0], [1], [0, 0, 1, 1], [], []>} : vector<64x128xbf16>, vector<128x128xbf16>, vector<64x128xf32> -> vector<64x128xf32>
    %24 = arith.addf %16, %23 : vector<64x128xf32>
    %c1_i32 = arith.constant 1 : i32
    %25 = arith.addi %1, %c1_i32 : i32
    %c0_14 = arith.constant 0 : index
    %26 = arith.index_cast %25 : i32 to index
    %c0_15 = arith.constant 0 : index
    %c0_16 = arith.constant 0 : index
    %27 = vector.load %arg2[%c0_14, %26, %c0_15, %c0_16] : memref<1x10x10x128xbf16, #tpu.memory_space<vmem>>, vector<1x8x8x128xbf16>
    %28 = vector.shape_cast %27 : vector<1x8x8x128xbf16> to vector<8x8x128xbf16>
    %29 = vector.shape_cast %28 : vector<8x8x128xbf16> to vector<64x128xbf16>
    %c384 = arith.constant 384 : index
    %c0_17 = arith.constant 0 : index
    %30 = vector.load %arg3[%c384, %c0_17] : memref<1152x128xbf16, #tpu.memory_space<vmem>>, vector<128x128xbf16>
    %cst_18 = arith.constant dense<0.000000e+00> : vector<64x128xf32>
    %31 = tpu.matmul %29, %30, %cst_18 {dimension_numbers = #tpu.dot_dimension_numbers<[1], [0], [0], [1], [0, 0, 1, 1], [], []>} : vector<64x128xbf16>, vector<128x128xbf16>, vector<64x128xf32> -> vector<64x128xf32>
    %32 = arith.addf %24, %31 : vector<64x128xf32>
    %c1_i32_19 = arith.constant 1 : i32
    %33 = arith.addi %1, %c1_i32_19 : i32
    %c0_20 = arith.constant 0 : index
    %34 = arith.index_cast %33 : i32 to index
    %c1_21 = arith.constant 1 : index
    %c0_22 = arith.constant 0 : index
    %35 = vector.load %arg2[%c0_20, %34, %c1_21, %c0_22] : memref<1x10x10x128xbf16, #tpu.memory_space<vmem>>, vector<1x8x8x128xbf16>
    %36 = vector.shape_cast %35 : vector<1x8x8x128xbf16> to vector<8x8x128xbf16>
    %37 = vector.shape_cast %36 : vector<8x8x128xbf16> to vector<64x128xbf16>
    %c512 = arith.constant 512 : index
    %c0_23 = arith.constant 0 : index
    %38 = vector.load %arg3[%c512, %c0_23] : memref<1152x128xbf16, #tpu.memory_space<vmem>>, vector<128x128xbf16>
    %cst_24 = arith.constant dense<0.000000e+00> : vector<64x128xf32>
    %39 = tpu.matmul %37, %38, %cst_24 {dimension_numbers = #tpu.dot_dimension_numbers<[1], [0], [0], [1], [0, 0, 1, 1], [], []>} : vector<64x128xbf16>, vector<128x128xbf16>, vector<64x128xf32> -> vector<64x128xf32>
    %40 = arith.addf %32, %39 : vector<64x128xf32>
    %c1_i32_25 = arith.constant 1 : i32
    %41 = arith.addi %1, %c1_i32_25 : i32
    %c0_26 = arith.constant 0 : index
    %42 = arith.index_cast %41 : i32 to index
    %c2_27 = arith.constant 2 : index
    %c0_28 = arith.constant 0 : index
    %43 = vector.load %arg2[%c0_26, %42, %c2_27, %c0_28] : memref<1x10x10x128xbf16, #tpu.memory_space<vmem>>, vector<1x8x8x128xbf16>
    %44 = vector.shape_cast %43 : vector<1x8x8x128xbf16> to vector<8x8x128xbf16>
    %45 = vector.shape_cast %44 : vector<8x8x128xbf16> to vector<64x128xbf16>
    %c640 = arith.constant 640 : index
    %c0_29 = arith.constant 0 : index
    %46 = vector.load %arg3[%c640, %c0_29] : memref<1152x128xbf16, #tpu.memory_space<vmem>>, vector<128x128xbf16>
    %cst_30 = arith.constant dense<0.000000e+00> : vector<64x128xf32>
    %47 = tpu.matmul %45, %46, %cst_30 {dimension_numbers = #tpu.dot_dimension_numbers<[1], [0], [0], [1], [0, 0, 1, 1], [], []>} : vector<64x128xbf16>, vector<128x128xbf16>, vector<64x128xf32> -> vector<64x128xf32>
    %48 = arith.addf %40, %47 : vector<64x128xf32>
    %c2_i32 = arith.constant 2 : i32
    %49 = arith.addi %1, %c2_i32 : i32
    %c0_31 = arith.constant 0 : index
    %50 = arith.index_cast %49 : i32 to index
    %c0_32 = arith.constant 0 : index
    %c0_33 = arith.constant 0 : index
    %51 = vector.load %arg2[%c0_31, %50, %c0_32, %c0_33] : memref<1x10x10x128xbf16, #tpu.memory_space<vmem>>, vector<1x8x8x128xbf16>
    %52 = vector.shape_cast %51 : vector<1x8x8x128xbf16> to vector<8x8x128xbf16>
    %53 = vector.shape_cast %52 : vector<8x8x128xbf16> to vector<64x128xbf16>
    %c768 = arith.constant 768 : index
    %c0_34 = arith.constant 0 : index
    %54 = vector.load %arg3[%c768, %c0_34] : memref<1152x128xbf16, #tpu.memory_space<vmem>>, vector<128x128xbf16>
    %cst_35 = arith.constant dense<0.000000e+00> : vector<64x128xf32>
    %55 = tpu.matmul %53, %54, %cst_35 {dimension_numbers = #tpu.dot_dimension_numbers<[1], [0], [0], [1], [0, 0, 1, 1], [], []>} : vector<64x128xbf16>, vector<128x128xbf16>, vector<64x128xf32> -> vector<64x128xf32>
    %56 = arith.addf %48, %55 : vector<64x128xf32>
    %c2_i32_36 = arith.constant 2 : i32
    %57 = arith.addi %1, %c2_i32_36 : i32
    %c0_37 = arith.constant 0 : index
    %58 = arith.index_cast %57 : i32 to index
    %c1_38 = arith.constant 1 : index
    %c0_39 = arith.constant 0 : index
    %59 = vector.load %arg2[%c0_37, %58, %c1_38, %c0_39] : memref<1x10x10x128xbf16, #tpu.memory_space<vmem>>, vector<1x8x8x128xbf16>
    %60 = vector.shape_cast %59 : vector<1x8x8x128xbf16> to vector<8x8x128xbf16>
    %61 = vector.shape_cast %60 : vector<8x8x128xbf16> to vector<64x128xbf16>
    %c896 = arith.constant 896 : index
    %c0_40 = arith.constant 0 : index
    %62 = vector.load %arg3[%c896, %c0_40] : memref<1152x128xbf16, #tpu.memory_space<vmem>>, vector<128x128xbf16>
    %cst_41 = arith.constant dense<0.000000e+00> : vector<64x128xf32>
    %63 = tpu.matmul %61, %62, %cst_41 {dimension_numbers = #tpu.dot_dimension_numbers<[1], [0], [0], [1], [0, 0, 1, 1], [], []>} : vector<64x128xbf16>, vector<128x128xbf16>, vector<64x128xf32> -> vector<64x128xf32>
    %64 = arith.addf %56, %63 : vector<64x128xf32>
    %c2_i32_42 = arith.constant 2 : i32
    %65 = arith.addi %1, %c2_i32_42 : i32
    %c0_43 = arith.constant 0 : index
    %66 = arith.index_cast %65 : i32 to index
    %c2_44 = arith.constant 2 : index
    %c0_45 = arith.constant 0 : index
    %67 = vector.load %arg2[%c0_43, %66, %c2_44, %c0_45] : memref<1x10x10x128xbf16, #tpu.memory_space<vmem>>, vector<1x8x8x128xbf16>
    %68 = vector.shape_cast %67 : vector<1x8x8x128xbf16> to vector<8x8x128xbf16>
    %69 = vector.shape_cast %68 : vector<8x8x128xbf16> to vector<64x128xbf16>
    %c1024 = arith.constant 1024 : index
    %c0_46 = arith.constant 0 : index
    %70 = vector.load %arg3[%c1024, %c0_46] : memref<1152x128xbf16, #tpu.memory_space<vmem>>, vector<128x128xbf16>
    %cst_47 = arith.constant dense<0.000000e+00> : vector<64x128xf32>
    %71 = tpu.matmul %69, %70, %cst_47 {dimension_numbers = #tpu.dot_dimension_numbers<[1], [0], [0], [1], [0, 0, 1, 1], [], []>} : vector<64x128xbf16>, vector<128x128xbf16>, vector<64x128xf32> -> vector<64x128xf32>
    %72 = arith.addf %64, %71 : vector<64x128xf32>
    %c0_48 = arith.constant 0 : index
    %c0_49 = arith.constant 0 : index
    %73 = vector.load %arg4[%c0_48, %c0_49] : memref<1x128xf32, #tpu.memory_space<vmem>>, vector<1x128xf32>
    %74 = vector.broadcast %73 : vector<1x128xf32> to vector<64x128xf32>
    %75 = arith.addf %72, %74 : vector<64x128xf32>
    %cst_50 = arith.constant 0.000000e+00 : f32
    %76 = vector.broadcast %cst_50 : f32 to vector<64x128xf32>
    %77 = arith.subf %76, %75 : vector<64x128xf32>
    %78 = math.exp %77 : vector<64x128xf32>
    %cst_51 = arith.constant 1.000000e+00 : f32
    %79 = vector.broadcast %cst_51 : f32 to vector<64x128xf32>
    %80 = arith.addf %79, %78 : vector<64x128xf32>
    %81 = tpu.reciprocal %80 {approx = true} : vector<64x128xf32> -> vector<64x128xf32>
    %82 = vector.shape_cast %81 : vector<64x128xf32> to vector<1x64x128xf32>
    %83 = arith.truncf %82 : vector<1x64x128xf32> to vector<1x64x128xbf16>
    %c0_52 = arith.constant 0 : index
    %c0_53 = arith.constant 0 : index
    %c0_54 = arith.constant 0 : index
    %84 = vector.load %arg5[%c0_52, %c0_53, %c0_54] : memref<1x64x128xbf16, #tpu.memory_space<vmem>>, vector<1x64x128xbf16>
    tpu.vector_store %arg5[%c0_52, %c0_53, %c0_54], %83 {strides = array<i32>} : memref<1x64x128xbf16, #tpu.memory_space<vmem>>, vector<1x64x128xbf16>,
    return
  }
  func.func @transform_0(%arg0: i32, %arg1: i32) -> (i32, i32, i32, i32) {
    %c0_i32 = arith.constant 0 : i32
    %c0_i32_0 = arith.constant 0 : i32
    %c0_i32_1 = arith.constant 0 : i32
    %c0_i32_2 = arith.constant 0 : i32
    return %arg0, %c0_i32, %c0_i32_0, %c0_i32_1 : i32, i32, i32, i32
  }
  func.func @transform_1(%arg0: i32, %arg1: i32) -> (i32, i32) {
    %c0_i32 = arith.constant 0 : i32
    %c0_i32_0 = arith.constant 0 : i32
    %c0_i32_1 = arith.constant 0 : i32
    return %c0_i32, %c0_i32_0 : i32, i32
  }
  func.func @transform_2(%arg0: i32, %arg1: i32) -> (i32, i32) {
    %c0_i32 = arith.constant 0 : i32
    %c0_i32_0 = arith.constant 0 : i32
    %c0_i32_1 = arith.constant 0 : i32
    return %c0_i32, %c0_i32_0 : i32, i32
  }
  func.func @transform_3(%arg0: i32, %arg1: i32) -> (i32, i32, i32) {
    %c0_i32 = arith.constant 0 : i32
    %c0_i32_0 = arith.constant 0 : i32
    return %arg0, %arg1, %c0_i32 : i32, i32, i32
  }
}

module attributes {stable_mosaic.version = 11 : i64} {
  func.func @_fc_tail_kernel(%arg0: i32, %arg1: memref<8x2048xbf16, #tpu.memory_space<vmem>>, %arg2: memref<2048x256xbf16, #tpu.memory_space<vmem>>, %arg3: memref<1x256xf32, #tpu.memory_space<vmem>>, %arg4: memref<256x128xbf16, #tpu.memory_space<vmem>>, %arg5: memref<1x128xf32, #tpu.memory_space<vmem>>, %arg6: memref<128x128xbf16, #tpu.memory_space<vmem>>, %arg7: memref<1x128xf32, #tpu.memory_space<vmem>>, %arg8: memref<8x128xf32, #tpu.memory_space<vmem>>, %arg9: memref<8x256xf32, #tpu.memory_space<vmem>>) attributes {dimension_semantics = [#tpu.dimension_semantics<arbitrary>], iteration_bounds = array<i64: 4>, scalar_prefetch = 0 : i64, scratch_operands = 1 : i64, tpu.core_type = #tpu.core_type<tc>, window_params = [{transform_indices = @transform_0, window_bounds = array<i64: 8, 2048>}, {transform_indices = @transform_1, window_bounds = array<i64: 2048, 256>}, {pipeline_mode = #tpu.pipeline_mode<synchronous>, transform_indices = @transform_2, window_bounds = array<i64: 1, 256>}, {pipeline_mode = #tpu.pipeline_mode<synchronous>, transform_indices = @transform_3, window_bounds = array<i64: 256, 128>}, {pipeline_mode = #tpu.pipeline_mode<synchronous>, transform_indices = @transform_4, window_bounds = array<i64: 1, 128>}, {pipeline_mode = #tpu.pipeline_mode<synchronous>, transform_indices = @transform_5, window_bounds = array<i64: 128, 128>}, {pipeline_mode = #tpu.pipeline_mode<synchronous>, transform_indices = @transform_6, window_bounds = array<i64: 1, 128>}, {pipeline_mode = #tpu.pipeline_mode<synchronous>, transform_indices = @transform_7, window_bounds = array<i64: 8, 128>}]} {
    %c0_i32 = arith.constant 0 : i32
    %0 = arith.cmpi eq, %arg0, %c0_i32 : i32
    %1 = arith.extui %0 : i1 to i32
    %c0_i32_0 = arith.constant 0 : i32
    %2 = arith.cmpi ne, %1, %c0_i32_0 : i32
    scf.if %2 {
      %cst_9 = arith.constant 0.000000e+00 : f32
      %12 = vector.broadcast %cst_9 : f32 to vector<8x256xf32>
      %c0_10 = arith.constant 0 : index
      %c0_11 = arith.constant 0 : index
      %13 = vector.load %arg9[%c0_10, %c0_11] : memref<8x256xf32, #tpu.memory_space<vmem>>, vector<8x256xf32>
      tpu.vector_store %arg9[%c0_10, %c0_11], %12 {strides = array<i32>} : memref<8x256xf32, #tpu.memory_space<vmem>>, vector<8x256xf32>,
    } else {
    }
    %c0 = arith.constant 0 : index
    %c0_1 = arith.constant 0 : index
    %3 = vector.load %arg9[%c0, %c0_1] : memref<8x256xf32, #tpu.memory_space<vmem>>, vector<8x256xf32>
    %c0_2 = arith.constant 0 : index
    %c0_3 = arith.constant 0 : index
    %4 = vector.load %arg1[%c0_2, %c0_3] : memref<8x2048xbf16, #tpu.memory_space<vmem>>, vector<8x2048xbf16>
    %c0_4 = arith.constant 0 : index
    %c0_5 = arith.constant 0 : index
    %5 = vector.load %arg2[%c0_4, %c0_5] : memref<2048x256xbf16, #tpu.memory_space<vmem>>, vector<2048x256xbf16>
    %cst = arith.constant dense<0.000000e+00> : vector<8x256xf32>
    %6 = tpu.matmul %4, %5, %cst {dimension_numbers = #tpu.dot_dimension_numbers<[1], [0], [0], [1], [0, 0, 1, 1], [], []>} : vector<8x2048xbf16>, vector<2048x256xbf16>, vector<8x256xf32> -> vector<8x256xf32>
    %7 = arith.addf %3, %6 : vector<8x256xf32>
    %c0_6 = arith.constant 0 : index
    %c0_7 = arith.constant 0 : index
    %8 = vector.load %arg9[%c0_6, %c0_7] : memref<8x256xf32, #tpu.memory_space<vmem>>, vector<8x256xf32>
    tpu.vector_store %arg9[%c0_6, %c0_7], %7 {strides = array<i32>} : memref<8x256xf32, #tpu.memory_space<vmem>>, vector<8x256xf32>,
    %c3_i32 = arith.constant 3 : i32
    %9 = arith.cmpi eq, %arg0, %c3_i32 : i32
    %10 = arith.extui %9 : i1 to i32
    %c0_i32_8 = arith.constant 0 : i32
    %11 = arith.cmpi ne, %10, %c0_i32_8 : i32
    scf.if %11 {
      %c0_9 = arith.constant 0 : index
      %c0_10 = arith.constant 0 : index
      %12 = vector.load %arg9[%c0_9, %c0_10] : memref<8x256xf32, #tpu.memory_space<vmem>>, vector<8x256xf32>
      %c0_11 = arith.constant 0 : index
      %c0_12 = arith.constant 0 : index
      %13 = vector.load %arg3[%c0_11, %c0_12] : memref<1x256xf32, #tpu.memory_space<vmem>>, vector<1x256xf32>
      %14 = vector.broadcast %13 : vector<1x256xf32> to vector<8x256xf32>
      %15 = arith.addf %12, %14 : vector<8x256xf32>
      %cst_13 = arith.constant 0.000000e+00 : f32
      %16 = vector.broadcast %cst_13 : f32 to vector<8x256xf32>
      %17 = arith.subf %16, %15 : vector<8x256xf32>
      %18 = math.exp %17 : vector<8x256xf32>
      %cst_14 = arith.constant 1.000000e+00 : f32
      %19 = vector.broadcast %cst_14 : f32 to vector<8x256xf32>
      %20 = arith.addf %19, %18 : vector<8x256xf32>
      %21 = tpu.reciprocal %20 {approx = true} : vector<8x256xf32> -> vector<8x256xf32>
      %22 = arith.truncf %21 : vector<8x256xf32> to vector<8x256xbf16>
      %c0_15 = arith.constant 0 : index
      %c0_16 = arith.constant 0 : index
      %23 = vector.load %arg4[%c0_15, %c0_16] : memref<256x128xbf16, #tpu.memory_space<vmem>>, vector<256x128xbf16>
      %cst_17 = arith.constant dense<0.000000e+00> : vector<8x128xf32>
      %24 = tpu.matmul %22, %23, %cst_17 {dimension_numbers = #tpu.dot_dimension_numbers<[1], [0], [0], [1], [0, 0, 1, 1], [], []>} : vector<8x256xbf16>, vector<256x128xbf16>, vector<8x128xf32> -> vector<8x128xf32>
      %c0_18 = arith.constant 0 : index
      %c0_19 = arith.constant 0 : index
      %25 = vector.load %arg5[%c0_18, %c0_19] : memref<1x128xf32, #tpu.memory_space<vmem>>, vector<1x128xf32>
      %26 = vector.broadcast %25 : vector<1x128xf32> to vector<8x128xf32>
      %27 = arith.addf %24, %26 : vector<8x128xf32>
      %cst_20 = arith.constant 0.000000e+00 : f32
      %28 = vector.broadcast %cst_20 : f32 to vector<8x128xf32>
      %29 = arith.subf %28, %27 : vector<8x128xf32>
      %30 = math.exp %29 : vector<8x128xf32>
      %cst_21 = arith.constant 1.000000e+00 : f32
      %31 = vector.broadcast %cst_21 : f32 to vector<8x128xf32>
      %32 = arith.addf %31, %30 : vector<8x128xf32>
      %33 = tpu.reciprocal %32 {approx = true} : vector<8x128xf32> -> vector<8x128xf32>
      %34 = arith.truncf %33 : vector<8x128xf32> to vector<8x128xbf16>
      %c0_22 = arith.constant 0 : index
      %c0_23 = arith.constant 0 : index
      %35 = vector.load %arg6[%c0_22, %c0_23] : memref<128x128xbf16, #tpu.memory_space<vmem>>, vector<128x128xbf16>
      %cst_24 = arith.constant dense<0.000000e+00> : vector<8x128xf32>
      %36 = tpu.matmul %34, %35, %cst_24 {dimension_numbers = #tpu.dot_dimension_numbers<[1], [0], [0], [1], [0, 0, 1, 1], [], []>} : vector<8x128xbf16>, vector<128x128xbf16>, vector<8x128xf32> -> vector<8x128xf32>
      %c0_25 = arith.constant 0 : index
      %c0_26 = arith.constant 0 : index
      %37 = vector.load %arg7[%c0_25, %c0_26] : memref<1x128xf32, #tpu.memory_space<vmem>>, vector<1x128xf32>
      %38 = vector.broadcast %37 : vector<1x128xf32> to vector<8x128xf32>
      %39 = arith.addf %36, %38 : vector<8x128xf32>
      %cst_27 = arith.constant 0.000000e+00 : f32
      %40 = vector.broadcast %cst_27 : f32 to vector<8x128xf32>
      %41 = arith.subf %40, %39 : vector<8x128xf32>
      %42 = math.exp %41 : vector<8x128xf32>
      %cst_28 = arith.constant 1.000000e+00 : f32
      %43 = vector.broadcast %cst_28 : f32 to vector<8x128xf32>
      %44 = arith.addf %43, %42 : vector<8x128xf32>
      %cst_29 = arith.constant 1.000000e+00 : f32
      %45 = vector.broadcast %cst_29 : f32 to vector<8x128xf32>
      %46 = arith.divf %45, %44 : vector<8x128xf32>
      %c0_30 = arith.constant 0 : index
      %c0_31 = arith.constant 0 : index
      %47 = vector.load %arg8[%c0_30, %c0_31] : memref<8x128xf32, #tpu.memory_space<vmem>>, vector<8x128xf32>
      tpu.vector_store %arg8[%c0_30, %c0_31], %46 {strides = array<i32>} : memref<8x128xf32, #tpu.memory_space<vmem>>, vector<8x128xf32>,
    } else {
    }
    return
  }
  func.func @transform_0(%arg0: i32) -> (i32, i32) {
    %c0_i32 = arith.constant 0 : i32
    %c0_i32_0 = arith.constant 0 : i32
    return %c0_i32, %arg0 : i32, i32
  }
  func.func @transform_1(%arg0: i32) -> (i32, i32) {
    %c0_i32 = arith.constant 0 : i32
    %c0_i32_0 = arith.constant 0 : i32
    return %arg0, %c0_i32 : i32, i32
  }
  func.func @transform_2(%arg0: i32) -> (i32, i32) {
    %c0_i32 = arith.constant 0 : i32
    %c0_i32_0 = arith.constant 0 : i32
    %c0_i32_1 = arith.constant 0 : i32
    return %c0_i32, %c0_i32_0 : i32, i32
  }
  func.func @transform_3(%arg0: i32) -> (i32, i32) {
    %c0_i32 = arith.constant 0 : i32
    %c0_i32_0 = arith.constant 0 : i32
    %c0_i32_1 = arith.constant 0 : i32
    return %c0_i32, %c0_i32_0 : i32, i32
  }
  func.func @transform_4(%arg0: i32) -> (i32, i32) {
    %c0_i32 = arith.constant 0 : i32
    %c0_i32_0 = arith.constant 0 : i32
    %c0_i32_1 = arith.constant 0 : i32
    return %c0_i32, %c0_i32_0 : i32, i32
  }
  func.func @transform_5(%arg0: i32) -> (i32, i32) {
    %c0_i32 = arith.constant 0 : i32
    %c0_i32_0 = arith.constant 0 : i32
    %c0_i32_1 = arith.constant 0 : i32
    return %c0_i32, %c0_i32_0 : i32, i32
  }
  func.func @transform_6(%arg0: i32) -> (i32, i32) {
    %c0_i32 = arith.constant 0 : i32
    %c0_i32_0 = arith.constant 0 : i32
    %c0_i32_1 = arith.constant 0 : i32
    return %c0_i32, %c0_i32_0 : i32, i32
  }
  func.func @transform_7(%arg0: i32) -> (i32, i32) {
    %c0_i32 = arith.constant 0 : i32
    %c0_i32_0 = arith.constant 0 : i32
    %c0_i32_1 = arith.constant 0 : i32
    return %c0_i32, %c0_i32_0 : i32, i32
  }
}

</mosaic_0001>

<bundles_post_ra>
// kernel: global_level_forward.5
= control target key start
LH: loop header
LB: loop body
LE: loop exit
PB: predicated region body
PF: predicated region fallthrough
CT: control target
= control target key end

     0   :  { %s5948_s12 = smov 0   ;;  %s5950_s13 = smov 0   ;;  %s7137_s0 = inlined_call_operand.vmem [shape: bf16[2,17,17,512], index: 0, kind: input, shape index: {}]   ;;  %s7138_s1 = inlined_call_operand.vmem [shape: bf16[1152,128], index: 1, kind: input, shape index: {}]   ;;  %s7139_s2 = inlined_call_operand.vmem [shape: f32[1,128], index: 2, kind: input, shape index: {}]   ;;  %s7140_s3 = inlined_call_operand.vmem [shape: bf16[2,256,128], index: 3, kind: output, shape index: {}]  }
   0x1   :  { %s5952_s14 = smov 0  }
   0x2 LB: > { %s25_s15 = sadd.s32 1, %s5922_s13  ;;  %p4358_p0 = scmp.ge.s32.totalorder %s5926_s14, 1  ;;  %s5926_s14 = sphi %s5952_s14, %s13_s14   ;;  %s5922_s13 = sphi %s5950_s13, %s7144_s13   ;;  %s5918_s12 = sphi %s5948_s12, %s7143_s12  }
   0x3   : > { %p27_p1 = scmp.ge.s32.totalorder %s25_s15, 2  ;;  %p151_p2 = scmp.lt.s32.totalorder %s5926_s14, 3 }
   0x5   : > { %s7146_s15 = smov (%p27_p1, %s25_s15), 0  ;;  %p152_p3 = pnand %p4358_p0, %p151_p2 }
   0x6   : > { %v5574_v0 = vld [vmem:[%s7138_s1 + $0x100] sm:$0xff] (!%p152_p3)   ;;  %p179_p4 = scmp.lt.s32.totalorder (!%p152_p3), %s5918_s12, 1  ;;  %v5575_v1 = vld [vmem:[%s7138_s1 + $0x108] sm:$0xff] (!%p152_p3)   ;;  %v5576_v2 = vld [vmem:[%s7138_s1 + $0x110] sm:$0xff] (!%p152_p3)   ;;  %vm375_vm0 = vsmask.f32 (!%p152_p3), 3328 }
   0x7   : > { %155 = sbr.rel (%p152_p3) target bundleno = 606 (0x25e), region = 32  ;;  %5229 = vmatprep.subr.bf16.mxu0 (!%p152_p3), %v5574_v0  ;;  %5373 = vmatprep.subr.bf16.mxu1 (!%p152_p3), %v5574_v0  ;;  %v5577_v3 = vld [vmem:[%s7138_s1 + $0x118] sm:$0xff] (!%p152_p3)   ;;  %vm376_vm1 = vsmask.f32 (!%p152_p3), 7440  ;;  %v5578_v9 = vld [vmem:[%s7138_s1 + $0x120] sm:$0xff] (!%p152_p3)   ;;  %v5579_v27 = vld [vmem:[%s7138_s1 + $0x128] sm:$0xff] (!%p152_p3)  }
   0x8   : > { %5230 = vmatpush3.bf16.msra.mxu0 (!%p152_p3), %v5574_v0  ;;  %5381 = vmatpush3.bf16.msra.mxu1 (!%p152_p3), %v5574_v0  ;;  %vm6001_vm2 = vmor (!%p152_p3), %vm375_vm0, %vm376_vm1  ;;  %v5580_v58 = vld [vmem:[%s7138_s1 + $0x130] sm:$0xff] (!%p152_p3)  }
   0x9   : > { %5231 = vmatprep.subr.bf16.mxu0 (!%p152_p3), %v5575_v1  ;;  %5374 = vmatprep.subr.bf16.mxu1 (!%p152_p3), %v5575_v1 }
   0xc   : > { %5232 = vmatpush3.bf16.msra.mxu0 (!%p152_p3), %v5575_v1  ;;  %5382 = vmatpush3.bf16.msra.mxu1 (!%p152_p3), %v5575_v1 }
   0xd   : > { %5233 = vmatprep.subr.bf16.mxu0 (!%p152_p3), %v5576_v2  ;;  %5375 = vmatprep.subr.bf16.mxu1 (!%p152_p3), %v5576_v2 }
   0xe   : > { %s7148_s12 = smov (!%p179_p4, %s5918_s12), 1 }
   0xf   : > { %s5549_s22 = smul.u32 816, %s7148_s12  ;;  %s4693_s6 = sshll.u32 %s7148_s12, 7 }
  0x10   : > { %5234 = vmatpush3.bf16.msra.mxu0 %v5576_v2  ;;  %5383 = vmatpush3.bf16.msra.mxu1 %v5576_v2  ;;  %s7080_s8 = scalar_lea.vmem %s7140_s3, %s4693_s6 }
  0x11   : > { %s5981_s25 = scalar_lea.vmem %s7137_s0, %s5549_s22  ;;  %5235 = vmatprep.subr.bf16.mxu0 %v5577_v3  ;;  %5376 = vmatprep.subr.bf16.mxu1 %v5577_v3 }
  0x12   : > { %v327_v4 = vld [vmem:[%s5981_s25] sm:$0xf]  ;;  %v328_v5 = vld [vmem:[%s5981_s25 + $0x10] sm:$0xf] }
  0x13   : > { %v329_v6 = vld [vmem:[%s5981_s25 + $0x20] sm:$0x1]  ;;  %v379_v7 = vshrl.u32 %v327_v4, 16  ;;  %v382_v8 = vshll.u32 %v327_v4, 16  ;;  %v388_v10 = vshll.u32 %v328_v5, 16  ;;  %v392_v11 = vshrl.u32 %v328_v5, 16 }
  0x14   : > { %v398_v12 = vshll.u32 %v329_v6, 16  ;;  %v351_v13 = vld [vmem:[%s5981_s25 + $0x180] sm:$0xf]  ;;  %v352_v16 = vld [vmem:[%s5981_s25 + $0x190] sm:$0xf]  ;;  %5236 = vmatpush3.bf16.msra.mxu0 %v5577_v3  ;;  %5384 = vmatpush3.bf16.msra.mxu1 %v5577_v3 }
  0x15   : > { %v381_v14 = vrot.slane %v379_v7, 4  ;;  %v384_v15 = vrot.slane %v382_v8, 5  ;;  %v353_v17 = vld [vmem:[%s5981_s25 + $0x1a0] sm:$0x1]  ;;  %v390_v18 = vrot.slane %v388_v10, 5  ;;  %v394_v19 = vrot.slane %v392_v11, 4  ;;  %5237 = vmatprep.subr.bf16.mxu0 %v5578_v9  ;;  %5377 = vmatprep.subr.bf16.mxu1 %v5578_v9 }
  0x16   : > { %v400_v20 = vrot.slane %v398_v12, 5  ;;  %v571_v21 = vshrl.u32 %v351_v13, 16  ;;  %v330_v22 = vld [vmem:[%s5981_s25 + $0x30] sm:$0xf]  ;;  %v574_v24 = vshll.u32 %v351_v13, 16  ;;  %v580_v25 = vshll.u32 %v352_v16, 16 }
  0x17   : > { %v385_v23 = vor.u32 %v384_v15, %v381_v14  ;;  %v584_v26 = vshrl.u32 %v352_v16, 16  ;;  %v395_v29 = vor.u32 %v394_v19, %v390_v18  ;;  %v590_v31 = vshll.u32 %v353_v17, 16  ;;  %v331_v32 = vld [vmem:[%s5981_s25 + $0x40] sm:$0xf]  ;;  %v332_v38 = vld [vmem:[%s5981_s25 + $0x50] sm:$0x1] }
  0x18   : > { %v573_v30 = vrot.slane %v571_v21, 4  ;;  %v403_v33 = vshrl.u32 %v330_v22, 16  ;;  %v576_v35 = vrot.slane %v574_v24, 5  ;;  %v582_v36 = vrot.slane %v580_v25, 5  ;;  %v354_v43 = vld [vmem:[%s5981_s25 + $0x1b0] sm:$0xf]  ;;  %5238 = vmatpush3.bf16.msra.mxu0 %v5578_v9  ;;  %5385 = vmatpush3.bf16.msra.mxu1 %v5578_v9 }
  0x19   : > { %v386_v34 = vrot.slane %v385_v23, 4  ;;  %v586_v37 = vrot.slane %v584_v26, 4  ;;  %v396_v39 = vrot.slane %v395_v29, 4  ;;  %v592_v40 = vrot.slane %v590_v31, 5  ;;  %v355_v48 = vld [vmem:[%s5981_s25 + $0x1c0] sm:$0xf]  ;;  %5239 = vmatprep.subr.bf16.mxu0 %v5579_v27  ;;  %5378 = vmatprep.subr.bf16.mxu1 %v5579_v27 }
  0x1a   : > { %v405_v41 = vrot.slane %v403_v33, 4  ;;  %v406_v42 = vshll.u32 %v330_v22, 16  ;;  %v577_v45 = vor.u32 %v576_v35, %v573_v30  ;;  %v412_v47 = vshll.u32 %v331_v32, 16  ;;  %v356_v53 = vld [vmem:[%s5981_s25 + $0x1d0] sm:$0x1]  ;;  %v5581_v11 = vld [vmem:[%s7138_s1 + $0x138] sm:$0xff]  }
  0x1b   : > { %v391_v44 = vsel %vm6001_vm2, %v386_v34, %v390_v18  ;;  %v587_v46 = vor.u32 %v586_v37, %v582_v36  ;;  %v401_v49 = vsel %vm6001_vm2, %v396_v39, %v400_v20  ;;  %v416_v51 = vshrl.u32 %v331_v32, 16  ;;  %v5582_v17 = vld [vmem:[%s7138_s1 + $0x40] sm:$0xff]   ;;  %v334_v23 = vld [vmem:[%s5981_s25 + $0x70] sm:$0xf] }
  0x1c   : > { %v408_v50 = vrot.slane %v406_v42, 5  ;;  %v422_v52 = vshll.u32 %v332_v38, 16  ;;  %v4362_v54 = vcombine.low %v391_v44, %v401_v49  ;;  %v578_v55 = vrot.slane %v577_v45, 4  ;;  %5240 = vmatpush3.bf16.msra.mxu0 %v5579_v27  ;;  %5386 = vmatpush3.bf16.msra.mxu1 %v5579_v27  ;;  %v5583_v18 = vld [vmem:[%s7138_s1 + $0xc0] sm:$0xff]   ;;  %v5586_v49 = vld [vmem:[%s7138_s1 + $0x48] sm:$0xff]  }
  0x1d   : > { %v588_v56 = vrot.slane %v587_v46, 4  ;;  %v414_v57 = vrot.slane %v412_v47, 5  ;;  %v418_v60 = vrot.slane %v416_v51, 4  ;;  %v595_v62 = vshrl.u32 %v354_v43, 16  ;;  %5241 = vmatprep.subr.bf16.mxu0 %v5580_v58  ;;  %5379 = vmatprep.subr.bf16.mxu1 %v5580_v58  ;;  %v333_v22 = vld [vmem:[%s5981_s25 + $0x60] sm:$0xf] }
  0x1e   : > { %v409_v59 = vor.u32 %v408_v50, %v405_v41  ;;  %v424_v61 = vrot.slane %v422_v52, 5  ;;  %5245 = vmatprep.mubr.bf16.mxu0 %v4362_v54  ;;  %v583_v63 = vsel %vm6001_vm2, %v578_v55, %v582_v36  ;;  %v598_v1 = vshll.u32 %v354_v43, 16  ;;  %v335_v24 = vld [vmem:[%s5981_s25 + $0x80] sm:$0x1]  ;;  %v358_v36 = vld [vmem:[%s5981_s25 + $0x1f0] sm:$0xf] }
  0x1f   : > { %v593_v0 = vsel %vm6001_vm2, %v588_v56, %v592_v40  ;;  %v604_v2 = vshll.u32 %v355_v48, 16  ;;  %v419_v5 = vor.u32 %v418_v60, %v414_v57  ;;  %v597_v6 = vrot.slane %v595_v62, 4  ;;  %v5584_v33 = vld [vmem:[%s7138_s1] sm:$0xff]   ;;  %v336_v47 = vld [vmem:[%s5981_s25 + $0x90] sm:$0xf]  ;;  %v5587_v50 = vld [vmem:[%s7138_s1 + $0xc8] sm:$0xff]  }
  0x20   : > { %v4370_v3 = vcombine.low %v583_v63, %v593_v0  ;;  %v410_v4 = vrot.slane %v409_v59, 4  ;;  %v600_v7 = vrot.slane %v598_v1, 5  ;;  %v608_v9 = vshrl.u32 %v355_v48, 16  ;;  %5242 = vmatpush3.bf16.msra.mxu0 %v5580_v58  ;;  %5387 = vmatpush3.bf16.msra.mxu1 %v5580_v58  ;;  %v357_v35 = vld [vmem:[%s5981_s25 + $0x1e0] sm:$0xf]  ;;  %v5588_v55 = vld [vmem:[%s7138_s1 + $0x8] sm:$0xff]  }
  0x21   : > { %v606_v8 = vrot.slane %v604_v2, 5  ;;  %v614_v10 = vshll.u32 %v356_v53, 16  ;;  %v420_v12 = vrot.slane %v419_v5, 4  ;;  %5243 = vmatprep.subr.bf16.mxu0 %v5581_v11  ;;  %5380 = vmatprep.subr.bf16.mxu1 %v5581_v11  ;;  %v427_v25 = vshrl.u32 %v333_v22, 16  ;;  %v359_v41 = vld [vmem:[%s5981_s25 + $0x200] sm:$0x1] }
  0x22   : > { %5261 = vmatprep.mubr.bf16.mxu1 %v4370_v3  ;;  %v601_v13 = vor.u32 %v600_v7, %v597_v6  ;;  %v610_v14 = vrot.slane %v608_v9, 4  ;;  %v415_v15 = vsel %vm6001_vm2, %v410_v4, %v414_v57  ;;  %v430_v26 = vshll.u32 %v333_v22, 16  ;;  %v5585_v43 = vld [vmem:[%s7138_s1 + $0x80] sm:$0xff]   ;;  %v5589_v56 = vld [vmem:[%s7138_s1 + $0x88] sm:$0xff]   ;;  %v360_v2 = vld [vmem:[%s5981_s25 + $0x210] sm:$0xf] }
  0x23   : > { %v425_v16 = vsel %vm6001_vm2, %v420_v12, %v424_v61  ;;  %v616_v21 = vrot.slane %v614_v10, 5  ;;  %v436_v27 = vshll.u32 %v334_v23, 16  ;;  %v440_v29 = vshrl.u32 %v334_v23, 16  ;;  %v337_v54 = vld [vmem:[%s5981_s25 + $0xa0] sm:$0xf]  ;;  %v5590_v3 = vld [vmem:[%s7138_s1 + $0x50] sm:$0xff]  }
  0x24   : > { %v602_v19 = vrot.slane %v601_v13, 4  ;;  %v611_v20 = vor.u32 %v610_v14, %v606_v8  ;;  %v4363_v30 = vcombine.low %v415_v15, %v425_v16  ;;  %v446_v34 = vshll.u32 %v335_v24, 16  ;;  %5244 = vmatpush3.bf16.msra.mxu0 %v5581_v11  ;;  %5388 = vmatpush3.bf16.msra.mxu1 %v5581_v11  ;;  %v338_v61 = vld [vmem:[%s5981_s25 + $0xb0] sm:$0x1] }
  0x25   : > { %v429_v37 = vrot.slane %v427_v25, 4  ;;  %v432_v38 = vrot.slane %v430_v26, 5  ;;  %v438_v39 = vrot.slane %v436_v27, 5  ;;  %v442_v40 = vrot.slane %v440_v29, 4  ;;  %4845 = vmatprep.subr.bf16.mxu1 %v5582_v17  ;;  %4957 = vmatprep.subr.bf16.mxu0 %v5583_v18  ;;  %v5591_v9 = vld [vmem:[%s7138_s1 + $0xd0] sm:$0xff]  }
  0x26   : > { %v607_v31 = vsel %vm6001_vm2, %v602_v19, %v606_v8  ;;  %v612_v32 = vrot.slane %v611_v20, 4  ;;  %v448_v44 = vrot.slane %v446_v34, 5  ;;  %v619_v45 = vshrl.u32 %v357_v35, 16  ;;  %v361_v8 = vld [vmem:[%s5981_s25 + $0x220] sm:$0xf]  ;;  %v5592_v19 = vld [vmem:[%s7138_s1 + $0x10] sm:$0xff]  }
  0x27   : > { %v622_v46 = vshll.u32 %v357_v35, 16  ;;  %v433_v51 = vor.u32 %v432_v38, %v429_v37  ;;  %v443_v52 = vor.u32 %v442_v40, %v438_v39  ;;  %v628_v53 = vshll.u32 %v358_v36, 16  ;;  %5246 = vmatmul.mubr.bf16.vlgmr.msra.gmra.mrb[0].mxu0 %v4363_v30  ;;  %v362_v18 = vld [vmem:[%s5981_s25 + $0x230] sm:$0x1]  ;;  %v5594_v38 = vld [vmem:[%s7138_s1 + $0x58] sm:$0xff]  }
  0x28   : > { %v617_v42 = vsel %vm6001_vm2, %v612_v32, %v616_v21  ;;  %v621_v57 = vrot.slane %v619_v45, 4  ;;  %v632_v59 = vshrl.u32 %v358_v36, 16  ;;  %v638_v60 = vshll.u32 %v359_v41, 16  ;;  %4958 = vmatpush3.bf16.msra.mxu0 %v5585_v43  ;;  %v5593_v20 = vld [vmem:[%s7138_s1 + $0x90] sm:$0xff]   ;;  %v5595_v45 = vld [vmem:[%s7138_s1 + $0xd8] sm:$0xff]  }
  0x29   : > { %v4371_v48 = vcombine.low %v607_v31, %v617_v42  ;;  %v624_v58 = vrot.slane %v622_v46, 5  ;;  %v434_v62 = vrot.slane %v433_v51, 4  ;;  %v444_v63 = vrot.slane %v443_v52, 4  ;;  %4959 = vmatprep.subr.bf16.mxu0 %v5587_v50  ;;  %v5597_v50 = vld [vmem:[%s7138_s1 + $0x98] sm:$0xff]  }
  0x2a   : > { %v630_v0 = vrot.slane %v628_v53, 5  ;;  %v451_v1 = vshrl.u32 %v336_v47, 16  ;;  %v634_v5 = vrot.slane %v632_v59, 4  ;;  %v640_v6 = vrot.slane %v638_v60, 5  ;;  %v5598_v53 = vld [vmem:[%s7138_s1 + $0x60] sm:$0xff]  }
  0x2b   : > { %5262 = vmatmul.mubr.bf16.vlgmr.msra.gmra.mrb[0].mxu1 %v4371_v48  ;;  %v625_v4 = vor.u32 %v624_v58, %v621_v57  ;;  %v454_v7 = vshll.u32 %v336_v47, 16  ;;  %v439_v10 = vsel %vm6001_vm2, %v434_v62, %v438_v39  ;;  %v449_v11 = vsel %vm6001_vm2, %v444_v63, %v448_v44  ;;  %v341_v57 = vld [vmem:[%s5981_s25 + $0xe0] sm:$0x1] }
  0x2c   : > { %4846 = vmatpush3.bf16.msra.mxu1 %v5584_v33  ;;  %v453_v12 = vrot.slane %v451_v1, 4  ;;  %v460_v13 = vshll.u32 %v337_v54, 16  ;;  %v4364_v14 = vcombine.low %v439_v10, %v449_v11  ;;  %v635_v16 = vor.u32 %v634_v5, %v630_v0  ;;  %4960 = vmatpush3.bf16.msra.mxu0 %v5589_v56  ;;  %v340_v56 = vld [vmem:[%s5981_s25 + $0xd0] sm:$0xf]  ;;  %v363_v62 = vld [vmem:[%s5981_s25 + $0x240] sm:$0xf] }
  0x2d   : > { %4847 = vmatprep.subr.bf16.mxu1 %v5586_v49  ;;  %v626_v15 = vrot.slane %v625_v4, 4  ;;  %v456_v17 = vrot.slane %v454_v7, 5  ;;  %v464_v22 = vshrl.u32 %v337_v54, 16  ;;  %v470_v23 = vshll.u32 %v338_v61, 16  ;;  %4961 = vmatprep.subr.bf16.mxu0 %v5591_v9  ;;  %v5596_v49 = vld [vmem:[%s7138_s1 + $0x18] sm:$0xff]   ;;  %v5599_v9 = vld [vmem:[%s7138_s1 + $0xe0] sm:$0xff]  }
  0x2e   : > { %v462_v21 = vrot.slane %v460_v13, 5  ;;  %v643_v24 = vshrl.u32 %v360_v2, 16  ;;  %v636_v26 = vrot.slane %v635_v16, 4  ;;  %v646_v29 = vshll.u32 %v360_v2, 16  ;;  %5249 = vmatprep.mubr.bf16.mxu0 %v4364_v14  ;;  %v342_v14 = vld [vmem:[%s5981_s25 + $0xf0] sm:$0xf] }
  0x2f   : > { %v631_v25 = vsel %vm6001_vm2, %v626_v15, %v630_v0  ;;  %v457_v27 = vor.u32 %v456_v17, %v453_v12  ;;  %v466_v30 = vrot.slane %v464_v22, 4  ;;  %v472_v31 = vrot.slane %v470_v23, 5  ;;  %v5600_v15 = vld [vmem:[%s7138_s1 + $0x20] sm:$0xff]  }
  0x30   : > { %4848 = vmatpush3.bf16.msra.mxu1 %v5588_v55  ;;  %v645_v32 = vrot.slane %v643_v24, 4  ;;  %v652_v33 = vshll.u32 %v361_v8, 16  ;;  %v641_v34 = vsel %vm6001_vm2, %v636_v26, %v640_v6  ;;  %v648_v36 = vrot.slane %v646_v29, 5  ;;  %4962 = vmatpush3.bf16.msra.mxu0 %v5593_v20  ;;  %v339_v55 = vld [vmem:[%s5981_s25 + $0xc0] sm:$0xf] }
  0x31   : > { %4849 = vmatprep.subr.bf16.mxu1 %v5590_v3  ;;  %v458_v35 = vrot.slane %v457_v27, 4  ;;  %v656_v37 = vshrl.u32 %v361_v8, 16  ;;  %v4372_v39 = vcombine.low %v631_v25, %v641_v34  ;;  %v467_v40 = vor.u32 %v466_v30, %v462_v21  ;;  %4963 = vmatprep.subr.bf16.mxu0 %v5595_v45  ;;  %v364_v3 = vld [vmem:[%s5981_s25 + $0x250] sm:$0xf]  ;;  %v365_v6 = vld [vmem:[%s5981_s25 + $0x260] sm:$0x1] }
  0x32   : > { %v654_v41 = vrot.slane %v652_v33, 5  ;;  %v662_v42 = vshll.u32 %v362_v18, 16  ;;  %v649_v43 = vor.u32 %v648_v36, %v645_v32  ;;  %v475_v61 = vshrl.u32 %v339_v55, 16  ;;  %v343_v24 = vld [vmem:[%s5981_s25 + $0x100] sm:$0xf] }
  0x33   : > { %v658_v44 = vrot.slane %v656_v37, 4  ;;  %5265 = vmatprep.mubr.bf16.mxu1 %v4372_v39  ;;  %v463_v46 = vsel %vm6001_vm2, %v458_v35, %v462_v21  ;;  %v468_v47 = vrot.slane %v467_v40, 4  ;;  %v478_v63 = vshll.u32 %v339_v55, 16  ;;  %v344_v27 = vld [vmem:[%s5981_s25 + $0x110] sm:$0x1]  ;;  %v5601_v32 = vld [vmem:[%s7138_s1 + $0xa0] sm:$0xff]  }
  0x34   : > { %4850 = vmatpush3.bf16.msra.mxu1 %v5592_v19  ;;  %v664_v48 = vrot.slane %v662_v42, 5  ;;  %v650_v51 = vrot.slane %v649_v43, 4  ;;  %4964 = vmatpush3.bf16.msra.mxu0 %v5597_v50  ;;  %v484_v0 = vshll.u32 %v340_v56, 16  ;;  %v488_v1 = vshrl.u32 %v340_v56, 16  ;;  %v367_v37 = vld [vmem:[%s5981_s25 + $0x280] sm:$0xf] }
  0x35   : > { %4851 = vmatprep.subr.bf16.mxu1 %v5594_v38  ;;  %v659_v52 = vor.u32 %v658_v44, %v654_v41  ;;  %v473_v54 = vsel %vm6001_vm2, %v468_v47, %v472_v31  ;;  %v494_v2 = vshll.u32 %v341_v57, 16  ;;  %v477_v5 = vrot.slane %v475_v61, 4  ;;  %4965 = vmatprep.subr.bf16.mxu0 %v5599_v9  ;;  %v366_v31 = vld [vmem:[%s5981_s25 + $0x270] sm:$0xf] }
  0x36   : > { %v4365_v58 = vcombine.low %v463_v46, %v473_v54  ;;  %v655_v59 = vsel %vm6001_vm2, %v650_v51, %v654_v41  ;;  %v667_v7 = vshrl.u32 %v363_v62, 16  ;;  %v670_v8 = vshll.u32 %v363_v62, 16  ;;  %v5602_v46 = vld [vmem:[%s7138_s1 + $0x68] sm:$0xff]   ;;  %v368_v51 = vld [vmem:[%s5981_s25 + $0x290] sm:$0x1] }
  0x37   : > { %v660_v60 = vrot.slane %v659_v52, 4  ;;  %v480_v11 = vrot.slane %v478_v63, 5  ;;  %v486_v12 = vrot.slane %v484_v0, 5  ;;  %v490_v13 = vrot.slane %v488_v1, 4  ;;  %v5603_v52 = vld [vmem:[%s7138_s1 + $0xe8] sm:$0xff]  }
  0x38   : > { %4852 = vmatpush3.bf16.msra.mxu1 %v5596_v49  ;;  %5250 = vmatmul.mubr.bf16.gmra.mrb[4].mxu0 %v4365_v58  ;;  %v496_v16 = vrot.slane %v494_v2, 5  ;;  %v669_v17 = vrot.slane %v667_v7, 4  ;;  %v672_v18 = vrot.slane %v670_v8, 5  ;;  %v676_v19 = vshll.u32 %v364_v3, 16  ;;  %v5604_v8 = vld [vmem:[%s7138_s1 + $0x28] sm:$0xff]  }
  0x39   : > { %4853 = vmatprep.subr.bf16.mxu1 %v5598_v53  ;;  %v665_v4 = vsel %vm6001_vm2, %v660_v60, %v664_v48  ;;  %v481_v20 = vor.u32 %v480_v11, %v477_v5  ;;  %v491_v21 = vor.u32 %v490_v13, %v486_v12  ;;  %v680_v22 = vshrl.u32 %v364_v3, 16  ;;  %4966 = vmatpush3.bf16.msra.mxu0 %v5601_v32  ;;  %v5605_v13 = vld [vmem:[%s7138_s1 + $0xa8] sm:$0xff]   ;;  %v371_v32 = vld [vmem:[%s5981_s25 + $0x2c0] sm:$0x1] }
  0x3a   : > { %v4373_v10 = vcombine.low %v655_v59, %v665_v4  ;;  %v686_v23 = vshll.u32 %v365_v6, 16  ;;  %v673_v25 = vor.u32 %v672_v18, %v669_v17  ;;  %v678_v26 = vrot.slane %v676_v19, 5  ;;  %4967 = vmatprep.subr.bf16.mxu0 %v5603_v52  ;;  %v347_v18 = vld [vmem:[%s5981_s25 + $0x140] sm:$0x1]  ;;  %v350_v52 = vld [vmem:[%s5981_s25 + $0x170] sm:$0x1] }
  0x3b   : > { %v499_v29 = vshrl.u32 %v342_v14, 16  ;;  %v502_v30 = vshll.u32 %v342_v14, 16  ;;  %v482_v33 = vrot.slane %v481_v20, 4  ;;  %v492_v34 = vrot.slane %v491_v21, 4  ;;  %v345_v14 = vld [vmem:[%s5981_s25 + $0x120] sm:$0xf] }
  0x3c   : > { %5266 = vmatmul.mubr.bf16.gmra.mrb[4].mxu1 %v4373_v10  ;;  %v682_v35 = vrot.slane %v680_v22, 4  ;;  %v688_v36 = vrot.slane %v686_v23, 5  ;;  %v674_v38 = vrot.slane %v673_v25, 4  ;;  %v508_v41 = vshll.u32 %v343_v24, 16  ;;  %v5606_v21 = vld [vmem:[%s7138_s1 + $0x70] sm:$0xff]  }
  0x3d   : > { %4854 = vmatpush3.bf16.msra.mxu1 %v5600_v15  ;;  %v501_v39 = vrot.slane %v499_v29, 4  ;;  %v504_v40 = vrot.slane %v502_v30, 5  ;;  %v487_v42 = vsel %vm6001_vm2, %v482_v33, %v486_v12  ;;  %v497_v43 = vsel %vm6001_vm2, %v492_v34, %v496_v16  ;;  %v346_v15 = vld [vmem:[%s5981_s25 + $0x130] sm:$0xf]  ;;  %4968 = vmatpush3.bf16.msra.mxu0 %v5605_v13 }
  0x3e   : > { %v683_v44 = vor.u32 %v682_v35, %v678_v26  ;;  %v512_v45 = vshrl.u32 %v343_v24, 16  ;;  %v4366_v47 = vcombine.low %v487_v42, %v497_v43  ;;  %v679_v48 = vsel %vm6001_vm2, %v674_v38, %v678_v26  ;;  %4855 = vmatprep.subr.bf16.mxu1 %v5602_v46  ;;  %v369_v26 = vld [vmem:[%s5981_s25 + $0x2a0] sm:$0xf]  ;;  %v5607_v38 = vld [vmem:[%s7138_s1 + $0xf0] sm:$0xff]  }
  0x3f   : > { %v505_v49 = vor.u32 %v504_v40, %v501_v39  ;;  %v510_v50 = vrot.slane %v508_v41, 5  ;;  %v518_v55 = vshll.u32 %v344_v27, 16  ;;  %v691_v56 = vshrl.u32 %v366_v31, 16  ;;  %4969 = vmatprep.subr.bf16.mxu0 %v5607_v38 }
  0x40   : > { %v684_v53 = vrot.slane %v683_v44, 4  ;;  %v514_v54 = vrot.slane %v512_v45, 4  ;;  %5253 = vmatprep.mubr.bf16.mxu0 %v4366_v47  ;;  %v694_v58 = vshll.u32 %v366_v31, 16  ;;  %v700_v59 = vshll.u32 %v367_v37, 16  ;;  %v370_v31 = vld [vmem:[%s5981_s25 + $0x2b0] sm:$0xf] }
  0x41   : > { %v506_v57 = vrot.slane %v505_v49, 4  ;;  %v704_v60 = vshrl.u32 %v367_v37, 16  ;;  %v520_v63 = vrot.slane %v518_v55, 5  ;;  %v693_v0 = vrot.slane %v691_v56, 4  ;;  %4856 = vmatpush3.bf16.msra.mxu1 %v5604_v8  ;;  %v348_v37 = vld [vmem:[%s5981_s25 + $0x150] sm:$0xf] }
  0x42   : > { %v689_v61 = vsel %vm6001_vm2, %v684_v53, %v688_v36  ;;  %v515_v62 = vor.u32 %v514_v54, %v510_v50  ;;  %v696_v2 = vrot.slane %v694_v58, 5  ;;  %v702_v3 = vrot.slane %v700_v59, 5  ;;  %4857 = vmatprep.subr.bf16.mxu1 %v5606_v21  ;;  %v349_v47 = vld [vmem:[%s5981_s25 + $0x160] sm:$0xf]  ;;  %v372_v58 = vld [vmem:[%s5981_s25 + $0x2d0] sm:$0xf] }
  0x43   : > { %v4374_v1 = vcombine.low %v679_v48, %v689_v61  ;;  %v511_v4 = vsel %vm6001_vm2, %v506_v57, %v510_v50  ;;  %v706_v6 = vrot.slane %v704_v60, 4  ;;  %v710_v7 = vshll.u32 %v368_v51, 16  ;;  %v5608_v48 = vld [vmem:[%s7138_s1 + $0x30] sm:$0xff]  }
  0x44   : > { %v516_v5 = vrot.slane %v515_v62, 4  ;;  %v697_v9 = vor.u32 %v696_v2, %v693_v0  ;;  %v523_v19 = vshrl.u32 %v345_v14, 16  ;;  %v526_v20 = vshll.u32 %v345_v14, 16  ;;  %v374_v8 = vld [vmem:[%s5981_s25 + $0x2f0] sm:$0x1] }
  0x45   : > { %5269 = vmatprep.mubr.bf16.mxu1 %v4374_v1  ;;  %v707_v11 = vor.u32 %v706_v6, %v702_v3  ;;  %v712_v12 = vrot.slane %v710_v7, 5  ;;  %v532_v23 = vshll.u32 %v346_v15, 16  ;;  %v536_v24 = vshrl.u32 %v346_v15, 16  ;;  %4858 = vmatpush3.bf16.msra.mxu1 %v5608_v48 }
  0x46   : > { %v521_v10 = vsel %vm6001_vm2, %v516_v5, %v520_v63  ;;  %v698_v17 = vrot.slane %v697_v9, 4  ;;  %v542_v25 = vshll.u32 %v347_v18, 16  ;;  %v525_v29 = vrot.slane %v523_v19, 4  ;;  %v373_v63 = vld [vmem:[%s5981_s25 + $0x2e0] sm:$0xf]  ;;  %v5609_v9 = vld [vmem:[%s7138_s1 + $0xb0] sm:$0xff]  }
  0x47   : > { %v4367_v16 = vcombine.low %v511_v4, %v521_v10  ;;  %v708_v22 = vrot.slane %v707_v11, 4  ;;  %v528_v30 = vrot.slane %v526_v20, 5  ;;  %v534_v34 = vrot.slane %v532_v23, 5  ;;  %4970 = vmatpush3.bf16.msra.mxu0 %v5609_v9  ;;  %v5646_v9 = vld [vmem:[%s5981_s25 + $0xcc] ss:$16 sps:$4 sm:$0xff]  }
  0x48   : > { %v703_v27 = vsel %vm6001_vm2, %v698_v17, %v702_v3  ;;  %v538_v35 = vrot.slane %v536_v24, 4  ;;  %v544_v36 = vrot.slane %v542_v25, 5  ;;  %v715_v41 = vshrl.u32 %v369_v26, 16 }
  0x49   : > { %5254 = vmatmul.mubr.bf16.gmra.mrb[8].mxu0 %v4367_v16  ;;  %v713_v33 = vsel %vm6001_vm2, %v708_v22, %v712_v12  ;;  %v529_v40 = vor.u32 %v528_v30, %v525_v29  ;;  %v718_v42 = vshll.u32 %v369_v26, 16  ;;  %v724_v44 = vshll.u32 %v370_v31, 16  ;;  %v5610_v26 = vld [vmem:[%s7138_s1 + $0x78] sm:$0xff]  }
  0x4a   : > { %v4375_v39 = vcombine.low %v703_v27, %v713_v33  ;;  %v539_v43 = vor.u32 %v538_v35, %v534_v34  ;;  %v728_v45 = vshrl.u32 %v370_v31, 16  ;;  %v734_v46 = vshll.u32 %v371_v32, 16  ;;  %v5611_v31 = vld [vmem:[%s7138_s1 + $0xf8] sm:$0xff]   ;;  %4859 = vmatprep.subr.bf16.mxu1 %v5610_v26 }
  0x4b   : > { %v530_v49 = vrot.slane %v529_v40, 4  ;;  %v717_v50 = vrot.slane %v715_v41, 4  ;;  %v720_v51 = vrot.slane %v718_v42, 5  ;;  %v547_v53 = vshrl.u32 %v348_v37, 16  ;;  %v5612_v35 = vld [vmem:[%s7138_s1 + $0x38] sm:$0xff]   ;;  %4971 = vmatprep.subr.bf16.mxu0 %v5611_v31 }
  0x4c   : > { %5270 = vmatmul.mubr.bf16.gmra.mrb[8].mxu1 %v4375_v39  ;;  %v540_v54 = vrot.slane %v539_v43, 4  ;;  %v726_v55 = vrot.slane %v724_v44, 5  ;;  %v730_v56 = vrot.slane %v728_v45, 4  ;;  %v736_v57 = vrot.slane %v734_v46, 5  ;;  %v5619_v44 = vld [vmem:[%s5981_s25 + $0xc] ss:$16 sps:$4 sm:$0xff]  }
  0x4d   : > { %v535_v59 = vsel %vm6001_vm2, %v530_v49, %v534_v34  ;;  %v721_v60 = vor.u32 %v720_v51, %v717_v50  ;;  %v549_v61 = vrot.slane %v547_v53, 4  ;;  %v550_v62 = vshll.u32 %v348_v37, 16  ;;  %v5613_v37 = vld [vmem:[%s7138_s1 + $0xb8] sm:$0xff]   ;;  %4860 = vmatpush3.bf16.msra.mxu1 %v5612_v35  ;;  %v5620_v45 = vld [vmem:[%s7138_s1 + $0x1c0] sm:$0xff]  }
  0x4e   : > { %v545_v0 = vsel %vm6001_vm2, %v540_v54, %v544_v36  ;;  %v731_v1 = vor.u32 %v730_v56, %v726_v55  ;;  %v556_v2 = vshll.u32 %v349_v47, 16  ;;  %v560_v3 = vshrl.u32 %v349_v47, 16  ;;  %4972 = vmatpush3.bf16.msra.mxu0 %v5613_v37  ;;  %v5616_v47 = vld [vmem:[%s5981_s25 + $0x4] ss:$16 sps:$4 sm:$0xff]   ;;  %5093 = vmatprep.subr.bf16.mxu1 %v5620_v45  ;;  %v5617_v50 = vld [vmem:[%s5981_s25 + $0x8] ss:$16 sps:$4 sm:$0xff]  }
  0x4f   : > { %v4368_v4 = vcombine.low %v535_v59, %v545_v0  ;;  %v722_v5 = vrot.slane %v721_v60, 4  ;;  %v552_v6 = vrot.slane %v550_v62, 5  ;;  %v566_v7 = vshll.u32 %v350_v52, 16  ;;  %v5622_v49 = vld [vmem:[%s7138_s1 + $0x140] sm:$0xff]   ;;  %v5625_v51 = vld [vmem:[%s5981_s25 + $0x3c] ss:$16 sps:$4 sm:$0xff]  }
  0x50   : > { %v732_v10 = vrot.slane %v731_v1, 4  ;;  %v558_v11 = vrot.slane %v556_v2, 5  ;;  %v562_v12 = vrot.slane %v560_v3, 4  ;;  %v739_v13 = vshrl.u32 %v372_v58, 16  ;;  %5277 = vmatprep.subr.bf16.mxu0 %v5622_v49  ;;  %v5614_v52 = vld [vmem:[%s5981_s25] ss:$16 sps:$4 sm:$0xff]  }
  0x51   : > { %5257 = vmatprep.mubr.bf16.mxu0 %v4368_v4  ;;  %v727_v14 = vsel %vm6001_vm2, %v722_v5, %v726_v55  ;;  %v553_v15 = vor.u32 %v552_v6, %v549_v61  ;;  %v568_v16 = vrot.slane %v566_v7, 5  ;;  %v742_v17 = vshll.u32 %v372_v58, 16  ;;  %v5621_v53 = vld [vmem:[%s7138_s1 + $0x180] sm:$0xff]   ;;  %v5635_v55 = vld [vmem:[%s7138_s1 + $0x1c8] sm:$0xff]   ;;  %v5651_v0 = vld [vmem:[%s7138_s1 + $0x190] sm:$0xff]  }
  0x52   : > { %v737_v18 = vsel %vm6001_vm2, %v732_v10, %v736_v57  ;;  %v563_v19 = vor.u32 %v562_v12, %v558_v11  ;;  %v741_v20 = vrot.slane %v739_v13, 4  ;;  %v748_v21 = vshll.u32 %v373_v63, 16  ;;  %v6227_v54 = vld [vmem:[%s5981_s25 + $0x34] ss:$16 sps:$4 sm:$0xff]   ;;  %v5637_v56 = vld [vmem:[%s7138_s1 + $0x148] sm:$0xff]   ;;  %v5665_v5 = vld [vmem:[%s7138_s1 + $0x1d8] sm:$0xff]  }
  0x53   : > { %v4376_v22 = vcombine.low %v727_v14, %v737_v18  ;;  %v554_v23 = vrot.slane %v553_v15, 4  ;;  %v744_v24 = vrot.slane %v742_v17, 5  ;;  %v752_v25 = vshrl.u32 %v373_v63, 16  ;;  %v5628_v57 = vld [vmem:[%s5981_s25 + $0x38] ss:$16 sps:$4 sm:$0xff]   ;;  %v5650_v63 = vld [vmem:[%s7138_s1 + $0x1d0] sm:$0xff]  }
  0x54   : > { %v564_v27 = vrot.slane %v563_v19, 4  ;;  %v750_v29 = vrot.slane %v748_v21, 5  ;;  %v758_v30 = vshll.u32 %v374_v8, 16  ;;  %v5631_v58 = vld [vmem:[%s5981_s25 + $0x6c] ss:$16 sps:$4 sm:$0xff]   ;;  %v5652_v1 = vld [vmem:[%s7138_s1 + $0x150] sm:$0xff]  }
  0x55   : > { %5273 = vmatprep.mubr.bf16.mxu1 %v4376_v22  ;;  %v559_v32 = vsel %vm6001_vm2, %v554_v23, %v558_v11  ;;  %v745_v33 = vor.u32 %v744_v24, %v741_v20  ;;  %v754_v34 = vrot.slane %v752_v25, 4  ;;  %v5636_v59 = vld [vmem:[%s7138_s1 + $0x188] sm:$0xff]   ;;  %v6242_v60 = vld [vmem:[%s5981_s25 + $0x30] ss:$16 sps:$4 sm:$0xff]   ;;  %v6245_v61 = vld [vmem:[%s5981_s25 + $0x64] ss:$16 sps:$4 sm:$0xff]  }
  0x56   : > { %v569_v36 = vsel %vm6001_vm2, %v564_v27, %v568_v16  ;;  %v760_v41 = vrot.slane %v758_v30, 5  ;;  %v5634_v62 = vld [vmem:[%s5981_s25 + $0x68] ss:$16 sps:$4 sm:$0xff]   ;;  %v5640_v2 = vld [vmem:[%s5981_s25 + $0x9c] ss:$16 sps:$4 sm:$0xff]   ;;  %v5679_v13 = vld [vmem:[%s7138_s1 + $0x1e0] sm:$0xff]  }
  0x57   : > { %v4369_v38 = vcombine.low %v559_v32, %v569_v36  ;;  %v746_v39 = vrot.slane %v745_v33, 4  ;;  %v755_v40 = vor.u32 %v754_v34, %v750_v29  ;;  %v6261_v3 = vld [vmem:[%s5981_s25 + $0x60] ss:$16 sps:$4 sm:$0xff]   ;;  %v6264_v4 = vld [vmem:[%s5981_s25 + $0x94] ss:$16 sps:$4 sm:$0xff]   ;;  %v5666_v6 = vld [vmem:[%s7138_s1 + $0x198] sm:$0xff]  }
  0x58   : > { %v5643_v7 = vld [vmem:[%s5981_s25 + $0x98] ss:$16 sps:$4 sm:$0xff]   ;;  %v5642_v10 = vld [vmem:[%s5981_s25 + $0x90] ss:$16 sps:$4 sm:$0xff]   ;;  %v5644_v11 = vld [vmem:[%s5981_s25 + $0xc4] ss:$16 sps:$4 sm:$0xff]  }
  0x59   : > { %5258 = vmatmul.mubr.bf16.gmra.mrb[12].mxu0 %v4369_v38  ;;  %v751_v42 = vsel %vm6001_vm2, %v746_v39, %v750_v29  ;;  %v756_v43 = vrot.slane %v755_v40, 4  ;;  %v5667_v8 = vld [vmem:[%s7138_s1 + $0x158] sm:$0xff]   ;;  %v5680_v14 = vld [vmem:[%s7138_s1 + $0x1a0] sm:$0xff]   ;;  %v5694_v20 = vld [vmem:[%s7138_s1 + $0x1e8] sm:$0xff]  }
  0x5a   : > { %1756 = vmatprep.mubr.bf16.mxu0 %v5619_v44  ;;  %v5649_v12 = vld [vmem:[%s5981_s25 + $0xc8] ss:$16 sps:$4 sm:$0xff]   ;;  %v5681_v15 = vld [vmem:[%s7138_s1 + $0x160] sm:$0xff]   ;;  %v5655_v16 = vld [vmem:[%s5981_s25 + $0xfc] ss:$16 sps:$4 sm:$0xff]  }
  0x5b   : > { %v761_v46 = vsel %vm6001_vm2, %v756_v43, %v760_v41  ;;  %v5648_v17 = vld [vmem:[%s5981_s25 + $0xc0] ss:$16 sps:$4 sm:$0xff]   ;;  %v5653_v18 = vld [vmem:[%s5981_s25 + $0xf4] ss:$16 sps:$4 sm:$0xff]   ;;  %v5658_v19 = vld [vmem:[%s5981_s25 + $0xf8] ss:$16 sps:$4 sm:$0xff]  }
  0x5c   : > { %v4377_v48 = vcombine.low %v751_v42, %v761_v46  ;;  %v5695_v21 = vld [vmem:[%s7138_s1 + $0x1a8] sm:$0xff]   ;;  %v5657_v24 = vld [vmem:[%s5981_s25 + $0xf0] ss:$16 sps:$4 sm:$0xff]   ;;  %v5659_v25 = vld [vmem:[%s5981_s25 + $0x124] ss:$16 sps:$4 sm:$0xff]  }
  0x5d   : > { %v5696_v22 = vld [vmem:[%s7138_s1 + $0x168] sm:$0xff]   ;;  %v5709_v27 = vld [vmem:[%s7138_s1 + $0x1f0] sm:$0xff]   ;;  %v229_v33 = vld [vmem:[%s5981_s25 + $0x160] sm:$0xff] }
  0x5e   : > { %5274 = vmatmul.mubr.bf16.gmra.mrb[12].mxu1 %v4377_v48  ;;  %v5661_v23 = vld [vmem:[%s5981_s25 + $0x12c] ss:$16 sps:$4 sm:$0xff]   ;;  %v5664_v26 = vld [vmem:[%s5981_s25 + $0x128] ss:$16 sps:$4 sm:$0xff]   ;;  %v5710_v29 = vld [vmem:[%s7138_s1 + $0x1b0] sm:$0xff]  }
  0x5f   : > { %1595 = vmatprep.mubr.bf16.mxu1 %v5616_v47  ;;  %v5711_v30 = vld [vmem:[%s7138_s1 + $0x170] sm:$0xff]   ;;  %v5669_v31 = vld [vmem:[%s5981_s25 + $0x15c] ss:$16 sps:$4 sm:$0xff]   ;;  %v5672_v37 = vld [vmem:[%s5981_s25 + $0x158] ss:$16 sps:$4 sm:$0xff]  }
  0x60   : > { %v227_v32 = vld [vmem:[%s5981_s25 + $0x150] sm:$0xff]  ;;  %v5675_v38 = vld [vmem:[%s5981_s25 + $0x18c] ss:$16 sps:$4 sm:$0xff]   ;;  %v5678_v43 = vld [vmem:[%s5981_s25 + $0x188] ss:$16 sps:$4 sm:$0xff]  }
  0x61   : > { %1757 = vmatmul.mubr.bf16.vlgmr.msra.gmra.mrb[16].mxu0 %v5617_v50  ;;  %v6320_v34 = vcombine.low %v227_v32, %v229_v33  ;;  %v5663_v35 = vld [vmem:[%s5981_s25 + $0x120] ss:$16 sps:$4 sm:$0xff]   ;;  %v6323_v36 = vcombine.high %v227_v32, %v229_v33  ;;  %v5724_v39 = vld [vmem:[%s7138_s1 + $0x1f8] sm:$0xff]   ;;  %v5673_v42 = vld [vmem:[%s5981_s25 + $0x184] ss:$16 sps:$4 sm:$0xff]  }
  0x62   : > { %5278 = vmatpush3.bf16.msra.mxu0 %v5622_v49  ;;  %1764 = vmatprep.mubr.bf16.mxu0 %v5625_v51  ;;  %v5725_v40 = vld [vmem:[%s7138_s1 + $0x1b8] sm:$0xff]   ;;  %v6344_v45 = vld [vmem:[%s7138_s1 + $0x200] sm:$0xff]  }
  0x63   : > { %5279 = vmatprep.subr.bf16.mxu0 %v5637_v56  ;;  %v5726_v41 = vld [vmem:[%s7138_s1 + $0x178] sm:$0xff]   ;;  %v5677_v46 = vld [vmem:[%s5981_s25 + $0x180] ss:$16 sps:$4 sm:$0xff]   ;;  %v5682_v47 = vld [vmem:[%s5981_s25 + $0x1b4] ss:$16 sps:$4 sm:$0xff]  }
  0x64   : > { %v5684_v44 = vld [vmem:[%s5981_s25 + $0x1bc] ss:$16 sps:$4 sm:$0xff]   ;;  %v5687_v48 = vld [vmem:[%s5981_s25 + $0x1b8] ss:$16 sps:$4 sm:$0xff]   ;;  %v5686_v50 = vld [vmem:[%s5981_s25 + $0x1b0] ss:$16 sps:$4 sm:$0xff]  }
  0x65   : > { %v5690_v49 = vld [vmem:[%s5981_s25 + $0x1ec] ss:$16 sps:$4 sm:$0xff]   ;;  %v5688_v51 = vld [vmem:[%s5981_s25 + $0x1e4] ss:$16 sps:$4 sm:$0xff]  }
  0x66   : > { %1596 = vmatmul.mubr.bf16.vlgmr.msra.gmra.mrb[16].mxu1 %v5614_v52  ;;  %5280 = vmatpush3.bf16.msra.mxu0 %v5637_v56  ;;  %v5693_v52 = vld [vmem:[%s5981_s25 + $0x1e8] ss:$16 sps:$4 sm:$0xff]   ;;  %v5697_v56 = vld [vmem:[%s5981_s25 + $0x214] ss:$16 sps:$4 sm:$0xff]  }
  0x67   : > { %5094 = vmatpush3.bf16.msra.mxu1 %v5621_v53  ;;  %1603 = vmatprep.mubr.bf16.mxu1 %v6227_v54  ;;  %v5699_v53 = vld [vmem:[%s5981_s25 + $0x21c] ss:$16 sps:$4 sm:$0xff]  }
  0x68   : > { %5095 = vmatprep.subr.bf16.mxu1 %v5635_v55  ;;  %5281 = vmatprep.subr.bf16.mxu0 %v5652_v1  ;;  %v5692_v55 = vld [vmem:[%s5981_s25 + $0x1e0] ss:$16 sps:$4 sm:$0xff]  }
  0x69   : > { %1765 = vmatmul.mubr.bf16.gmra.mrb[20].mxu0 %v5628_v57  ;;  %v5702_v57 = vld [vmem:[%s5981_s25 + $0x218] ss:$16 sps:$4 sm:$0xff]  }
  0x6a   : > { %1772 = vmatprep.mubr.bf16.mxu0 %v5631_v58  ;;  %5282 = vmatpush3.bf16.msra.mxu0 %v5652_v1  ;;  %v5705_v58 = vld [vmem:[%s5981_s25 + $0x24c] ss:$16 sps:$4 sm:$0xff]   ;;  %v5701_v1 = vld [vmem:[%s5981_s25 + $0x210] ss:$16 sps:$4 sm:$0xff]  }
  0x6b   : > { %5096 = vmatpush3.bf16.msra.mxu1 %v5636_v59  ;;  %5283 = vmatprep.subr.bf16.mxu0 %v5667_v8  ;;  %v1885_v59 = vld [vmem:[%s5981_s25 + $0x8] sm:$0xf] }
  0x6c   : > { %5097 = vmatprep.subr.bf16.mxu1 %v5650_v63  ;;  %v1888_v63 = vld [vmem:[%s5981_s25 + $0x38] sm:$0xf] }
  0x6e   : > { %1604 = vmatmul.mubr.bf16.gmra.mrb[20].mxu1 %v6242_v60  ;;  %5284 = vmatpush3.bf16.msra.mxu0 %v5667_v8  ;;  %v5703_v8 = vld [vmem:[%s5981_s25 + $0x244] ss:$16 sps:$4 sm:$0xff]  }
  0x6f   : > { %1611 = vmatprep.mubr.bf16.mxu1 %v6245_v61  ;;  %5098 = vmatpush3.bf16.msra.mxu1 %v5651_v0  ;;  %v1889_v0 = vld [vmem:[%s5981_s25 + $0x48] sm:$0xf] }
  0x70   : > { %5099 = vmatprep.subr.bf16.mxu1 %v5665_v5  ;;  %5285 = vmatprep.subr.bf16.mxu0 %v5681_v15  ;;  %v1937_v5 = vshll.u32 %v1885_v59, 16 }
  0x71   : > { %1773 = vmatmul.mubr.bf16.gmra.mrb[24].mxu0 %v5634_v62  ;;  %v1886_v62 = vld [vmem:[%s5981_s25 + $0x18] sm:$0xf] }
  0x72   : > { %1780 = vmatprep.mubr.bf16.mxu0 %v5640_v2  ;;  %5286 = vmatpush3.bf16.msra.mxu0 %v5681_v15  ;;  %v1934_v2 = vshrl.u32 %v1885_v59, 16  ;;  %v1971_v15 = vshrl.u32 %v1889_v0, 16 }
  0x73   : > { %5100 = vmatpush3.bf16.msra.mxu1 %v5666_v6  ;;  %5287 = vmatprep.subr.bf16.mxu0 %v5696_v22  ;;  %v1891_v6 = vld [vmem:[%s5981_s25 + $0x68] sm:$0xf] }
  0x74   : > { %5101 = vmatprep.subr.bf16.mxu1 %v5679_v13  ;;  %v1961_v13 = vshll.u32 %v1888_v63, 16  ;;  %v1973_v33 = vrot.slane %v1971_v15, 4  ;;  %v1898_v15 = vld [vmem:[%s5981_s25 + $0xd8] sm:$0xf] }
  0x76   : > { %1612 = vmatmul.mubr.bf16.gmra.mrb[24].mxu1 %v6261_v3  ;;  %5288 = vmatpush3.bf16.msra.mxu0 %v5696_v22  ;;  %v1936_v22 = vrot.slane %v1934_v2, 4 }
  0x77   : > { %1619 = vmatprep.mubr.bf16.mxu1 %v6264_v4  ;;  %5102 = vmatpush3.bf16.msra.mxu1 %v5680_v14  ;;  %v1967_v14 = vshll.u32 %v1889_v0, 16 }
  0x78   : > { %5103 = vmatprep.subr.bf16.mxu1 %v5694_v20  ;;  %5289 = vmatprep.subr.bf16.mxu0 %v5711_v30 }
  0x79   : > { %1781 = vmatmul.mubr.bf16.gmra.mrb[28].mxu0 %v5643_v7  ;;  %v1892_v7 = vld [vmem:[%s5981_s25 + $0x78] sm:$0xf]  ;;  %v6374_v32 = vrot.slane %v1967_v14, 5 }
  0x7a   : > { %1788 = vmatprep.mubr.bf16.mxu0 %v5646_v9  ;;  %5290 = vmatpush3.bf16.msra.mxu0 %v5711_v30  ;;  %v1887_v9 = vld [vmem:[%s5981_s25 + $0x28] sm:$0x1]  ;;  %v1995_v20 = vshrl.u32 %v1892_v7, 16  ;;  %v1894_v30 = vld [vmem:[%s5981_s25 + $0x98] sm:$0xf] }
  0x7b   : > { %5104 = vmatpush3.bf16.msra.mxu1 %v5695_v21  ;;  %5291 = vmatprep.subr.bf16.mxu0 %v5726_v41  ;;  %v5714_v21 = vld [vmem:[%s5981_s25 + $0x27c] ss:$16 sps:$4 sm:$0xff]  }
  0x7c   : > { %5105 = vmatprep.subr.bf16.mxu1 %v5709_v27  ;;  %v1890_v27 = vld [vmem:[%s5981_s25 + $0x58] sm:$0x1] }
  0x7e   : > { %1620 = vmatmul.mubr.bf16.gmra.mrb[28].mxu1 %v5642_v10  ;;  %5292 = vmatpush3.bf16.msra.mxu0 %v5726_v41  ;;  %v1943_v10 = vshll.u32 %v1886_v62, 16  ;;  %v1895_v41 = vld [vmem:[%s5981_s25 + $0xa8] sm:$0xf] }
  0x7f   : > { %1627 = vmatprep.mubr.bf16.mxu1 %v5644_v11  ;;  %5106 = vmatpush3.bf16.msra.mxu1 %v5710_v29  ;;  %v1947_v11 = vshrl.u32 %v1886_v62, 16 }
  0x80   : > { %5107 = vmatprep.subr.bf16.mxu1 %v5724_v39  ;;  %5325 = vmatprep.subr.bf16.mxu0 %v6344_v45 }
  0x81   : > { %1789 = vmatmul.mubr.bf16.gmra.mrb[32].mxu0 %v5649_v12  ;;  %v1958_v12 = vshrl.u32 %v1888_v63, 16 }
  0x82   : > { %1796 = vmatprep.mubr.bf16.mxu0 %v5655_v16  ;;  %v5708_v16 = vld [vmem:[%s5981_s25 + $0x248] ss:$16 sps:$4 sm:$0xff]  }
  0x83   : > { %5108 = vmatpush3.bf16.msra.mxu1 %v5725_v40  ;;  %v1960_v29 = vrot.slane %v1958_v12, 4  ;;  %v1997_v40 = vrot.slane %v1995_v20, 4 }
  0x86   : > { %1628 = vmatmul.mubr.bf16.gmra.mrb[32].mxu1 %v5648_v17  ;;  %v1982_v17 = vshrl.u32 %v1891_v6, 16 }
  0x87   : > { %1635 = vmatprep.mubr.bf16.mxu1 %v5653_v18  ;;  %v1985_v18 = vshll.u32 %v1891_v6, 16 }
  0x89   : > { %1797 = vmatmul.mubr.bf16.gmra.mrb[36].mxu0 %v5658_v19  ;;  %v1991_v19 = vshll.u32 %v1892_v7, 16 }
  0x8a   : > { %1804 = vmatprep.mubr.bf16.mxu0 %v5661_v23  ;;  %v1939_v23 = vrot.slane %v1937_v5, 5  ;;  %v1896_v5 = vld [vmem:[%s5981_s25 + $0xb8] sm:$0x1] }
  0x8b   : > { %v6377_v39 = vrot.slane %v1991_v19, 5  ;;  %v2025_v20 = vshll.u32 %v1896_v5, 16 }
  0x8d   : > { %v1998_v62 = vor.u32 %v1997_v40, %v6377_v39 }
  0x8e   : > { %1636 = vmatmul.mubr.bf16.gmra.mrb[36].mxu1 %v5657_v24  ;;  %v1953_v24 = vshll.u32 %v1887_v9, 16 }
  0x8f   : > { %1643 = vmatprep.mubr.bf16.mxu1 %v5659_v25  ;;  %v6370_v25 = vrot.slane %v1943_v10, 5 }
  0x91   : > { %1805 = vmatmul.mubr.bf16.gmra.mrb[40].mxu0 %v5664_v26  ;;  %v1949_v26 = vrot.slane %v1947_v11, 4 }
  0x92   : > { %1812 = vmatprep.mubr.bf16.mxu0 %v5669_v31  ;;  %v1963_v31 = vrot.slane %v1961_v13, 5 }
  0x96   : > { %1644 = vmatmul.mubr.bf16.gmra.mrb[40].mxu1 %v5663_v35  ;;  %v1893_v35 = vld [vmem:[%s5981_s25 + $0x88] sm:$0x1] }
  0x97   : > { %1651 = vmatprep.mubr.bf16.mxu1 %v6323_v36 }
  0x99   : > { %1813 = vmatmul.mubr.bf16.gmra.mrb[44].mxu0 %v5672_v37  ;;  %v1984_v37 = vrot.slane %v1982_v17, 4 }
  0x9a   : > { %1820 = vmatprep.mubr.bf16.mxu0 %v5675_v38  ;;  %v1987_v38 = vrot.slane %v1985_v18, 5  ;;  %v1999_v18 = vrot.slane %v1998_v62, 4  ;;  %v1906_v62 = vld [vmem:[%s5981_s25 + $0x158] sm:$0xf] }
  0x9c   : > { %v1988_v59 = vor.u32 %v1987_v38, %v1984_v37  ;;  %v1901_v38 = vld [vmem:[%s5981_s25 + $0x108] sm:$0xf] }
  0x9e   : > { %1652 = vmatmul.mubr.bf16.gmra.mrb[44].mxu1 %v6320_v34  ;;  %v1989_v17 = vrot.slane %v1988_v59, 4  ;;  %v1904_v59 = vld [vmem:[%s5981_s25 + $0x138] sm:$0xf] }
  0x9f   : > { %1659 = vmatprep.mubr.bf16.mxu1 %v5673_v42  ;;  %v2006_v42 = vshrl.u32 %v1894_v30, 16 }
  0xa0   : > { %v1994_v40 = vsel %vm6001_vm2, %v1989_v17, %v6377_v39  ;;  %v1910_v17 = vld [vmem:[%s5981_s25 + $0x198] sm:$0xf] }
  0xa1   : > { %1821 = vmatmul.mubr.bf16.gmra.mrb[48].mxu0 %v5678_v43  ;;  %v2009_v43 = vshll.u32 %v1894_v30, 16  ;;  %v2008_v63 = vrot.slane %v2006_v42, 4  ;;  %v5718_v30 = vld [vmem:[%s5981_s25 + $0x2a4] ss:$16 sps:$4 sm:$0xff]   ;;  %v2027_v42 = vrot.slane %v2025_v20, 5 }
  0xa2   : > { %1828 = vmatprep.mubr.bf16.mxu0 %v5684_v44  ;;  %v5707_v44 = vld [vmem:[%s5981_s25 + $0x240] ss:$16 sps:$4 sm:$0xff]  }
  0xa3   : > { %v2011_v0 = vrot.slane %v2009_v43, 5  ;;  %v5723_v43 = vld [vmem:[%s5981_s25 + $0x2a8] ss:$16 sps:$4 sm:$0xff]  }
  0xa5   : > { %v2012_v19 = vor.u32 %v2011_v0, %v2008_v63  ;;  %v5727_v63 = vld [vmem:[%s5981_s25 + $0x2d4] ss:$16 sps:$4 sm:$0xff]  }
  0xa6   : > { %1660 = vmatmul.mubr.bf16.gmra.mrb[48].mxu1 %v5677_v46  ;;  %v1940_v46 = vor.u32 %v1939_v23, %v1936_v22 }
  0xa7   : > { %1667 = vmatprep.mubr.bf16.mxu1 %v5682_v47  ;;  %v1950_v47 = vor.u32 %v1949_v26, %v6370_v25  ;;  %v2039_v26 = vshll.u32 %v1898_v15, 16 }
  0xa9   : > { %1829 = vmatmul.mubr.bf16.gmra.mrb[52].mxu0 %v5687_v48  ;;  %v1964_v48 = vor.u32 %v1963_v31, %v1960_v29  ;;  %v1951_v2 = vrot.slane %v1950_v47, 4  ;;  %v1900_v29 = vld [vmem:[%s5981_s25 + $0xf8] sm:$0xf] }
  0xaa   : > { %1836 = vmatprep.mubr.bf16.mxu0 %v5690_v49  ;;  %v1977_v49 = vshll.u32 %v1890_v27, 16  ;;  %v2043_v27 = vshrl.u32 %v1898_v15, 16  ;;  %v2057_v47 = vshll.u32 %v1900_v29, 16  ;;  %v2087_v15 = vshll.u32 %v1904_v59, 16 }
  0xab   : > { %v1965_v9 = vrot.slane %v1964_v48, 4  ;;  %v5729_v48 = vld [vmem:[%s5981_s25 + $0x2dc] ss:$16 sps:$4 sm:$0xff]  }
  0xac   : > { %v1979_v10 = vrot.slane %v1977_v49, 5  ;;  %v2045_v39 = vrot.slane %v2043_v27, 4  ;;  %v2059_v5 = vrot.slane %v2057_v47, 5 }
  0xae   : > { %1668 = vmatmul.mubr.bf16.gmra.mrb[52].mxu1 %v5686_v50  ;;  %v2015_v50 = vshll.u32 %v1895_v41, 16 }
  0xaf   : > { %1675 = vmatprep.mubr.bf16.mxu1 %v5688_v51  ;;  %v2019_v51 = vshrl.u32 %v1895_v41, 16 }
  0xb0   : > { %v6389_v11 = vrot.slane %v2015_v50, 5  ;;  %v6415_v50 = vrot.slane %v2039_v26, 5 }
  0xb1   : > { %1837 = vmatmul.mubr.bf16.gmra.mrb[56].mxu0 %v5693_v52  ;;  %v1897_v52 = vld [vmem:[%s5981_s25 + $0xc8] sm:$0xf]  ;;  %v2021_v12 = vrot.slane %v2019_v51, 4  ;;  %v2063_v51 = vshll.u32 %v1901_v38, 16 }
  0xb2   : > { %1844 = vmatprep.mubr.bf16.mxu0 %v5699_v53  ;;  %v5712_v53 = vld [vmem:[%s5981_s25 + $0x274] ss:$16 sps:$4 sm:$0xff]   ;;  %v2030_v6 = vshrl.u32 %v1897_v52, 16  ;;  %v2033_v7 = vshll.u32 %v1897_v52, 16  ;;  %v5722_v52 = vld [vmem:[%s5981_s25 + $0x2a0] ss:$16 sps:$4 sm:$0xff]  }
  0xb4   : > { %v2032_v22 = vrot.slane %v2030_v6, 4  ;;  %v2035_v23 = vrot.slane %v2033_v7, 5  ;;  %v1907_v6 = vld [vmem:[%s5981_s25 + $0x168] sm:$0xf] }
  0xb5   : > { %v2111_v20 = vshll.u32 %v1907_v6, 16 }
  0xb6   : > { %1676 = vmatmul.mubr.bf16.gmra.mrb[56].mxu1 %v5692_v55  ;;  %v1955_v55 = vrot.slane %v1953_v24, 5  ;;  %v2022_v24 = vor.u32 %v2021_v12, %v6389_v11  ;;  %v1909_v12 = vld [vmem:[%s5981_s25 + $0x188] sm:$0xf] }
  0xb7   : > { %1683 = vmatprep.mubr.bf16.mxu1 %v5697_v56  ;;  %v1974_v56 = vor.u32 %v1973_v33, %v6374_v32  ;;  %v2126_v26 = vshrl.u32 %v1909_v12, 16  ;;  %v2129_v27 = vshll.u32 %v1909_v12, 16 }
  0xb8   : > { %v1956_v33 = vsel %vm6001_vm2, %v1951_v2, %v1955_v55  ;;  %v2023_v49 = vrot.slane %v2022_v24, 4 }
  0xb9   : > { %1845 = vmatmul.mubr.bf16.gmra.mrb[60].mxu0 %v5702_v57  ;;  %v2001_v57 = vshll.u32 %v1893_v35, 16  ;;  %v1975_v13 = vrot.slane %v1974_v56, 4  ;;  %v1970_v35 = vsel %vm6001_vm2, %v1965_v9, %v6374_v32  ;;  %v2054_v32 = vshrl.u32 %v1900_v29, 16  ;;  %v1902_v9 = vld [vmem:[%s5981_s25 + $0x118] sm:$0x1] }
  0xba   : > { %1852 = vmatprep.mubr.bf16.mxu0 %v5705_v58  ;;  %v5717_v58 = vld [vmem:[%s5981_s25 + $0x278] ss:$16 sps:$4 sm:$0xff]   ;;  %v2028_v7 = vsel %vm6001_vm2, %v2023_v49, %v2027_v42  ;;  %v2073_v24 = vshll.u32 %v1902_v9, 16  ;;  %v5731_v42 = vld [vmem:[%s5981_s25 + $0x2d0] ss:$16 sps:$4 sm:$0xff]  }
  0xbb   : > { %v2003_v14 = vrot.slane %v2001_v57, 5  ;;  %v1980_v37 = vsel %vm6001_vm2, %v1975_v13, %v1979_v10  ;;  %v2056_v2 = vrot.slane %v2054_v32, 4  ;;  %v6438_v10 = vrot.slane %v2063_v51, 5 }
  0xbc   : > { %v6418_v55 = vcombine.low %v1970_v35, %v1980_v37  ;;  %v2139_v35 = vshrl.u32 %v1910_v17, 16  ;;  %v6455_v32 = vrot.slane %v2111_v20, 5  ;;  %v2128_v51 = vrot.slane %v2126_v26, 4  ;;  %v1915_v20 = vld [vmem:[%s5981_s25 + $0x1e8] sm:$0xf] }
  0xbd   : > { %v2004_v41 = vsel %vm6001_vm2, %v1999_v18, %v2003_v14  ;;  %v2102_v18 = vshrl.u32 %v1906_v62, 16  ;;  %v2060_v49 = vor.u32 %v2059_v5, %v2056_v2 }
  0xbe   : > { %1684 = vmatmul.mubr.bf16.gmra.mrb[60].mxu1 %v5701_v1  ;;  %v1941_v1 = vrot.slane %v1940_v46, 4  ;;  %v6420_v56 = vcombine.low %v1994_v40, %v2004_v41  ;;  %v6450_v40 = vrot.slane %v2087_v15, 5 }
  0xbf   : > { %1691 = vmatprep.mubr.bf16.mxu1 %v5703_v8  ;;  %v5720_v8 = vld [vmem:[%s5981_s25 + $0x2ac] ss:$16 sps:$4 sm:$0xff]  }
  0xc0   : > { %v1946_v31 = vsel %vm6001_vm2, %v1941_v1, %v6370_v25  ;;  %v2013_v25 = vrot.slane %v2012_v19, 4  ;;  %v2105_v19 = vshll.u32 %v1906_v62, 16 }
  0xc1   : > { %1853 = vmatmul.mubr.bf16.gmra.mrb[64].mxu0 %v5708_v16  ;;  %v5716_v16 = vld [vmem:[%s5981_s25 + $0x270] ss:$16 sps:$4 sm:$0xff]  }
  0xc2   : > { %1860 = vmatprep.mubr.bf16.mxu0 %v5714_v21  ;;  %v1899_v21 = vld [vmem:[%s5981_s25 + $0xe8] sm:$0x1]  ;;  %v2018_v57 = vsel %vm6001_vm2, %v2013_v25, %v6389_v11  ;;  %v2067_v11 = vshrl.u32 %v1901_v38, 16  ;;  %v1912_v25 = vld [vmem:[%s5981_s25 + $0x1b8] sm:$0xf] }
  0xc3   : > { %v2049_v46 = vshll.u32 %v1899_v21, 16  ;;  %v2115_v21 = vshrl.u32 %v1907_v6, 16  ;;  %v2150_v62 = vshrl.u32 %v1912_v25, 16 }
  0xc5   : > { %v6431_v1 = vrot.slane %v2049_v46, 5  ;;  %v2107_v46 = vrot.slane %v2105_v19, 5  ;;  %v2117_v47 = vrot.slane %v2115_v21, 4  ;;  %v5734_v21 = vld [vmem:[%s7138_s1 + $0x208] sm:$0xff]  }
  0xc6   : > { %1692 = vmatmul.mubr.bf16.gmra.mrb[64].mxu1 %v5707_v44  ;;  %v2036_v44 = vor.u32 %v2035_v23, %v2032_v22  ;;  %v5732_v22 = vld [vmem:[%s5981_s25 + $0x2d8] ss:$16 sps:$4 sm:$0xff]   ;;  %v6443_v23 = vcombine.low %v2018_v57, %v2028_v7  ;;  %v6462_v7 = vrot.slane %v2073_v24, 5 }
  0xc7   : > { %1699 = vmatprep.mubr.bf16.mxu1 %v5712_v53  ;;  %v4482_v53 = vcombine.low %v1946_v31, %v1956_v33  ;;  %v1905_v31 = vld [vmem:[%s5981_s25 + $0x148] sm:$0x1]  ;;  %v2135_v33 = vshll.u32 %v1910_v17, 16  ;;  %v2118_v5 = vor.u32 %v2117_v47, %v6455_v32  ;;  %v2152_v17 = vrot.slane %v2150_v62, 4 }
  0xc8   : > { %v6429_v0 = vrot.slane %v2036_v44, 4  ;;  %v2104_v44 = vrot.slane %v2102_v18, 4 }
  0xc9   : > { %1861 = vmatmul.mubr.bf16.gmra.mrb[68].mxu0 %v5717_v58  ;;  %v1903_v58 = vld [vmem:[%s5981_s25 + $0x128] sm:$0xf]  ;;  %v6458_v57 = vrot.slane %v2135_v33, 5  ;;  %v2119_v33 = vrot.slane %v2118_v5, 4 }
  0xca   : > { %1868 = vmatprep.mubr.bf16.mxu0 %v5720_v8  ;;  %v2046_v8 = vor.u32 %v2045_v39, %v6415_v50  ;;  %v2078_v13 = vshrl.u32 %v1903_v58, 16  ;;  %v2081_v14 = vshll.u32 %v1903_v58, 16  ;;  %v2042_v29 = vsel %vm6001_vm2, %v6429_v0, %v6415_v50  ;;  %v1911_v39 = vld [vmem:[%s5981_s25 + $0x1a8] sm:$0x1] }
  0xcb   : > { %v2141_v58 = vrot.slane %v2139_v35, 4  ;;  %v2108_v2 = vor.u32 %v2107_v46, %v2104_v44 }
  0xcc   : > { %v2080_v37 = vrot.slane %v2078_v13, 4  ;;  %v2083_v38 = vrot.slane %v2081_v14, 5  ;;  %v2145_v14 = vshll.u32 %v1911_v39, 16  ;;  %v1918_v39 = vld [vmem:[%s5981_s25 + $0x218] sm:$0xf] }
  0xce   : > { %1700 = vmatmul.mubr.bf16.gmra.mrb[68].mxu1 %v5716_v16  ;;  %v2091_v16 = vshrl.u32 %v1904_v59, 16  ;;  %v1913_v59 = vld [vmem:[%s5981_s25 + $0x1c8] sm:$0xf]  ;;  %v2084_v9 = vor.u32 %v2083_v38, %v2080_v37  ;;  %v1916_v37 = vld [vmem:[%s5981_s25 + $0x1f8] sm:$0xf]  ;;  %v2147_v38 = vrot.slane %v2145_v14, 5 }
  0xcf   : > { %1707 = vmatprep.mubr.bf16.mxu1 %v5718_v30  ;;  %v2069_v30 = vrot.slane %v2067_v11, 4  ;;  %v2097_v11 = vshll.u32 %v1905_v31, 16  ;;  %v2159_v15 = vshll.u32 %v1913_v59, 16  ;;  %v2163_v19 = vshrl.u32 %v1913_v59, 16  ;;  %v1922_v14 = vld [vmem:[%s5981_s25 + $0x258] sm:$0xf] }
  0xd0   : > { %v2093_v41 = vrot.slane %v2091_v16, 4  ;;  %v2142_v16 = vor.u32 %v2141_v58, %v6458_v57  ;;  %v2085_v26 = vrot.slane %v2084_v9, 4  ;;  %v2109_v31 = vrot.slane %v2108_v2, 4 }
  0xd1   : > { %1869 = vmatmul.mubr.bf16.gmra.mrb[72].mxu0 %v5723_v43  ;;  %v1908_v43 = vld [vmem:[%s5981_s25 + $0x178] sm:$0x1]  ;;  %v2070_v6 = vor.u32 %v2069_v30, %v6438_v10  ;;  %v6482_v44 = vrot.slane %v2159_v15, 5  ;;  %v2165_v46 = vrot.slane %v2163_v19, 4  ;;  %v2183_v47 = vshll.u32 %v1916_v37, 16 }
  0xd2   : > { %1876 = vmatprep.mubr.bf16.mxu0 %v5729_v48  ;;  %v2047_v48 = vrot.slane %v2046_v8, 4  ;;  %v2094_v8 = vor.u32 %v2093_v41, %v6450_v40  ;;  %v2121_v12 = vshll.u32 %v1908_v43, 16  ;;  %v2174_v41 = vshrl.u32 %v1915_v20, 16  ;;  %v1925_v19 = vld [vmem:[%s5981_s25 + $0x288] sm:$0xf] }
  0xd3   : > { %v2071_v24 = vrot.slane %v2070_v6, 4  ;;  %v2090_v50 = vsel %vm6001_vm2, %v2085_v26, %v6450_v40  ;;  %v5736_v40 = vld [vmem:[%s7138_s1 + $0x218] sm:$0xff]   ;;  %v2166_v6 = vor.u32 %v2165_v46, %v6482_v44  ;;  %v2255_v46 = vshll.u32 %v1925_v19, 16 }
  0xd4   : > { %v2095_v30 = vrot.slane %v2094_v8, 4  ;;  %v2123_v35 = vrot.slane %v2121_v12, 5  ;;  %v2176_v58 = vrot.slane %v2174_v41, 4  ;;  %v2198_v8 = vshrl.u32 %v1918_v39, 16 }
  0xd6   : > { %1708 = vmatmul.mubr.bf16.gmra.mrb[72].mxu1 %v5722_v52  ;;  %v2131_v52 = vrot.slane %v2129_v27, 5  ;;  %v2099_v27 = vrot.slane %v2097_v11, 5  ;;  %v1919_v11 = vld [vmem:[%s5981_s25 + $0x228] sm:$0xf]  ;;  %v6550_v26 = vrot.slane %v2198_v8, 4 }
  0xd7   : > { %1715 = vmatprep.mubr.bf16.mxu1 %v5727_v63  ;;  %v2153_v63 = vshll.u32 %v1912_v25, 16  ;;  %v2177_v25 = vshll.u32 %v1915_v20, 16  ;;  %v6542_v20 = vrot.slane %v2166_v6, 4  ;;  %v5740_v6 = vld [vmem:[%s7138_s1 + $0x230] sm:$0xff]  }
  0xd8   : > { %v2132_v13 = vor.u32 %v2131_v52, %v2128_v51  ;;  %v2100_v0 = vsel %vm6001_vm2, %v2095_v30, %v2099_v27  ;;  %v2124_v51 = vsel %vm6001_vm2, %v2119_v33, %v2123_v35  ;;  %v1927_v27 = vld [vmem:[%s5981_s25 + $0x2a8] sm:$0xf]  ;;  %v2231_v33 = vshll.u32 %v1922_v14, 16 }
  0xd9   : > { %1877 = vmatmul.mubr.bf16.gmra.mrb[76].mxu0 %v5732_v22  ;;  %v2155_v18 = vrot.slane %v2153_v63, 5  ;;  %v2052_v22 = vsel %vm6001_vm2, %v2047_v48, %v6431_v1  ;;  %v2143_v1 = vrot.slane %v2142_v16, 4  ;;  %v2187_v48 = vshrl.u32 %v1916_v37, 16  ;;  %v1928_v37 = vld [vmem:[%s5981_s25 + $0x2b8] sm:$0xf] }
  0xda   : > { %5293 = vmatprep.mubr.bf16.mxu0 %v4482_v53  ;;  %v6466_v53 = vrot.slane %v2060_v49, 4  ;;  %v2076_v49 = vsel %vm6001_vm2, %v2071_v24, %v6462_v7  ;;  %v2179_v59 = vrot.slane %v2177_v25, 5  ;;  %v4488_v2 = vcombine.low %v2090_v50, %v2100_v0 }
  0xdb   : > { %v2156_v43 = vor.u32 %v2155_v18, %v2152_v17  ;;  %v2148_v62 = vsel %vm6001_vm2, %v2143_v1, %v2147_v38  ;;  %v2189_v7 = vrot.slane %v2187_v48, 4  ;;  %v2211_v17 = vshrl.u32 %v1919_v11, 16  ;;  %v1924_v18 = vld [vmem:[%s5981_s25 + $0x278] sm:$0xf] }
  0xdc   : > { %v2235_v35 = vshrl.u32 %v1922_v14, 16  ;;  %v2246_v41 = vshrl.u32 %v1924_v18, 16  ;;  %v2249_v25 = vshll.u32 %v1924_v18, 16  ;;  %v1920_v1 = vld [vmem:[%s5981_s25 + $0x238] sm:$0x1]  ;;  %v2279_v48 = vshll.u32 %v1928_v37, 16 }
  0xdd   : > { %v6520_v63 = vrot.slane %v2156_v43, 4  ;;  %v2213_v43 = vrot.slane %v2211_v17, 4  ;;  %v6564_v0 = vrot.slane %v2231_v33, 5 }
  0xde   : > { %1716 = vmatmul.mubr.bf16.gmra.mrb[76].mxu1 %v5731_v42  ;;  %v1914_v42 = vld [vmem:[%s5981_s25 + $0x1d8] sm:$0x1] }
  0xdf   : > { %2994 = vmatprep.mubr.bf16.mxu1 %v6227_v54  ;;  %v2133_v54 = vrot.slane %v2132_v13, 4  ;;  %v2169_v52 = vshll.u32 %v1914_v42, 16  ;;  %v2201_v13 = vshll.u32 %v1918_v39, 16  ;;  %v2162_v16 = vsel %vm6001_vm2, %v6520_v63, %v6482_v44 }
  0xe0   : > { %v2217_v39 = vshll.u32 %v1920_v1, 16 }
  0xe1   : > { %5294 = vmatmul.mubr.bf16.vlgmr.msra.gmra.mrb[0].mxu0 %v6418_v55  ;;  %v4486_v55 = vcombine.low %v2042_v29, %v2052_v22  ;;  %v1917_v29 = vld [vmem:[%s5981_s25 + $0x208] sm:$0x1]  ;;  %v6530_v12 = vrot.slane %v2169_v52, 5  ;;  %v2203_v38 = vrot.slane %v2201_v13, 5  ;;  %v2251_v52 = vrot.slane %v2249_v25, 5 }
  0xe2   : > { %5326 = vmatpush3.bf16.msra.mxu0 %v6344_v45  ;;  %5297 = vmatprep.mubr.bf16.mxu0 %v6420_v56  ;;  %v2066_v45 = vsel %vm6001_vm2, %v6466_v53, %v6438_v10  ;;  %v5735_v56 = vld [vmem:[%s7138_s1 + $0x210] sm:$0xff]   ;;  %v2114_v10 = vsel %vm6001_vm2, %v2109_v31, %v6455_v32  ;;  %v2138_v32 = vsel %vm6001_vm2, %v2133_v54, %v6458_v57  ;;  %v2193_v9 = vshll.u32 %v1917_v29, 16 }
  0xe3   : > { %5327 = vmatprep.subr.bf16.mxu0 %v5734_v21  ;;  %v4487_v57 = vcombine.low %v2066_v45, %v2076_v49  ;;  %v6528_v5 = vcombine.low %v2114_v10, %v2124_v51  ;;  %v2180_v53 = vor.u32 %v2179_v59, %v2176_v58  ;;  %v6534_v15 = vcombine.low %v2138_v32, %v2148_v62  ;;  %v5738_v45 = vld [vmem:[%s7138_s1 + $0x228] sm:$0xff]  }
  0xe4   : > { %v6548_v24 = vrot.slane %v2193_v9, 5  ;;  %v2237_v10 = vrot.slane %v2235_v35, 4  ;;  %v2248_v51 = vrot.slane %v2246_v41, 4  ;;  %v2172_v58 = vsel %vm6001_vm2, %v6542_v20, %v6530_v12  ;;  %v5744_v35 = vld [vmem:[%s7138_s1 + $0x238] sm:$0xff]  }
  0xe5   : > { %v6554_v54 = vrot.slane %v2180_v53, 4  ;;  %v2204_v59 = vor.u32 %v2203_v38, %v6550_v26  ;;  %v6575_v32 = vrot.slane %v2255_v46, 5  ;;  %v6594_v17 = vrot.slane %v2217_v39, 5  ;;  %v1932_v46 = vld [vmem:[%s5981_s25 + $0x2f8] sm:$0x1] }
  0xe6   : > { %2995 = vmatmul.mubr.bf16.vlgmr.msra.gmra.mrb[80].mxu1 %v6242_v60  ;;  %5328 = vmatpush3.bf16.msra.mxu0 %v5734_v21  ;;  %v6524_v60 = vrot.slane %v2183_v47, 5  ;;  %v5737_v21 = vld [vmem:[%s7138_s1 + $0x220] sm:$0xff]   ;;  %v2273_v47 = vshll.u32 %v1927_v27, 16  ;;  %v2238_v53 = vor.u32 %v2237_v10, %v6564_v0  ;;  %v2252_v18 = vor.u32 %v2251_v52, %v2248_v51  ;;  %v4586_v10 = vld [vmem:[%s5981_s25 + $0x30] sm:$0xf] }
  0xe7   : > { %3002 = vmatprep.mubr.bf16.mxu1 %v6245_v61  ;;  %5329 = vmatprep.subr.bf16.mxu0 %v5735_v56  ;;  %v1921_v61 = vld [vmem:[%s5981_s25 + $0x248] sm:$0xf]  ;;  %v4491_v25 = vcombine.low %v2162_v16, %v2172_v58  ;;  %v4587_v52 = vld [vmem:[%s5981_s25 + $0x40] sm:$0xf] }
  0xe8   : > { %v2190_v22 = vor.u32 %v2189_v7, %v6524_v60  ;;  %v2222_v30 = vshrl.u32 %v1921_v61, 16  ;;  %v2225_v31 = vshll.u32 %v1921_v61, 16  ;;  %v2275_v9 = vrot.slane %v2273_v47, 5  ;;  %v1929_v61 = vld [vmem:[%s5981_s25 + $0x2c8] sm:$0x1] }
  0xe9   : > { %5298 = vmatmul.mubr.bf16.gmra.mrb[4].mxu0 %v6443_v23  ;;  %v2207_v23 = vshll.u32 %v1919_v11, 16  ;;  %v6580_v11 = vrot.slane %v2279_v48, 5  ;;  %v2186_v14 = vsel %vm6001_vm2, %v6554_v54, %v6524_v60  ;;  %v2205_v60 = vrot.slane %v2204_v59, 4 }
  0xea   : > { %5301 = vmatprep.mubr.bf16.mxu0 %v4486_v55  ;;  %5330 = vmatpush3.bf16.msra.mxu0 %v5735_v56  ;;  %v2259_v55 = vshrl.u32 %v1925_v19, 16  ;;  %v2270_v56 = vshrl.u32 %v1927_v27, 16  ;;  %v2224_v49 = vrot.slane %v2222_v30, 4  ;;  %v2227_v50 = vrot.slane %v2225_v31, 5  ;;  %v5897_v19 = vld [vmem:[%s5981_s25 + $0x90] ss:$16 sps:$4 sm:$0xff]  }
  0xeb   : > { %5331 = vmatprep.subr.bf16.mxu0 %v5736_v40  ;;  %v6558_v42 = vrot.slane %v2207_v23, 5  ;;  %v6566_v29 = vrot.slane %v2190_v22, 4  ;;  %v1931_v22 = vld [vmem:[%s5981_s25 + $0x2e8] sm:$0xf]  ;;  %v5898_v30 = vld [vmem:[%s5981_s25 + $0xc4] ss:$16 sps:$4 sm:$0xff]  }
  0xec   : > { %v2261_v62 = vrot.slane %v2259_v55, 4  ;;  %v2272_v7 = vrot.slane %v2270_v56, 4  ;;  %v2228_v12 = vor.u32 %v2227_v50, %v2224_v49  ;;  %v2289_v33 = vshll.u32 %v1929_v61, 16  ;;  %v4590_v61 = vld [vmem:[%s5981_s25 + $0x70] sm:$0xf] }
  0xed   : > { %v2196_v23 = vsel %vm6001_vm2, %v6566_v29, %v6548_v24  ;;  %v2239_v38 = vrot.slane %v2238_v53, 4  ;;  %v2253_v1 = vrot.slane %v2252_v18, 4  ;;  %v2303_v55 = vshll.u32 %v1931_v22, 16 }
  0xee   : > { %3003 = vmatmul.mubr.bf16.gmra.mrb[84].mxu1 %v6261_v3  ;;  %5332 = vmatpush3.bf16.msra.mxu0 %v5736_v40  ;;  %v2283_v3 = vshrl.u32 %v1928_v37, 16  ;;  %v1926_v40 = vld [vmem:[%s5981_s25 + $0x298] sm:$0x1]  ;;  %v2262_v20 = vor.u32 %v2261_v62, %v6575_v32  ;;  %v2276_v31 = vor.u32 %v2275_v9, %v2272_v7  ;;  %v2229_v54 = vrot.slane %v2228_v12, 4  ;;  %v5899_v62 = vld [vmem:[%s5981_s25 + $0xc0] ss:$16 sps:$4 sm:$0xff]  }
  0xef   : > { %3010 = vmatprep.mubr.bf16.mxu1 %v6264_v4  ;;  %5333 = vmatprep.subr.bf16.mxu0 %v5737_v21  ;;  %v1923_v4 = vld [vmem:[%s5981_s25 + $0x268] sm:$0x1]  ;;  %v4492_v49 = vcombine.low %v2186_v14, %v2196_v23  ;;  %v2291_v50 = vrot.slane %v2289_v33, 5  ;;  %v2258_v58 = vsel %vm6001_vm2, %v2253_v1, %v6575_v32  ;;  %v3204_v7 = vshrl.u32 %v4586_v10, 16  ;;  %v4596_v33 = vld [vmem:[%s5981_s25 + $0xd0] sm:$0xf] }
  0xf0   : > { %v2285_v8 = vrot.slane %v2283_v3, 4  ;;  %v2241_v13 = vshll.u32 %v1923_v4, 16  ;;  %v2263_v56 = vrot.slane %v2262_v20, 4  ;;  %v2277_v63 = vrot.slane %v2276_v31, 4 }
  0xf1   : > { %5302 = vmatmul.mubr.bf16.gmra.mrb[8].mxu0 %v4487_v57  ;;  %v1930_v57 = vld [vmem:[%s5981_s25 + $0x2d8] sm:$0xf]  ;;  %v2234_v39 = vsel %vm6001_vm2, %v2229_v54, %v6564_v0  ;;  %v3207_v9 = vshll.u32 %v4586_v10, 16  ;;  %v3217_v12 = vshrl.u32 %v4587_v52, 16  ;;  %v3241_v54 = vshrl.u32 %v4590_v61, 16 }
  0xf2   : > { %5305 = vmatprep.mubr.bf16.mxu0 %v4488_v2  ;;  %5334 = vmatpush3.bf16.msra.mxu0 %v5737_v21  ;;  %v2214_v2 = vor.u32 %v2213_v43, %v6558_v42  ;;  %v2265_v21 = vshll.u32 %v1926_v40, 16  ;;  %v2294_v26 = vshrl.u32 %v1930_v57, 16  ;;  %v2297_v27 = vshll.u32 %v1930_v57, 16 }
  0xf3   : > { %5335 = vmatprep.subr.bf16.mxu0 %v5738_v45  ;;  %v2286_v24 = vor.u32 %v2285_v8, %v6580_v11  ;;  %v2243_v41 = vrot.slane %v2241_v13, 5  ;;  %v2313_v40 = vshll.u32 %v1932_v46, 16  ;;  %v5900_v8 = vld [vmem:[%s5981_s25 + $0xf4] ss:$16 sps:$4 sm:$0xff]   ;;  %v2282_v32 = vsel %vm6001_vm2, %v2277_v63, %v6580_v11  ;;  %v4589_v13 = vld [vmem:[%s5981_s25 + $0x60] sm:$0xf] }
  0xf4   : > { %v2215_v37 = vrot.slane %v2214_v2, 4  ;;  %v2267_v47 = vrot.slane %v2265_v21, 5  ;;  %v2299_v3 = vrot.slane %v2297_v27, 5  ;;  %v3213_v2 = vshll.u32 %v4587_v52, 16  ;;  %v4592_v11 = vld [vmem:[%s5981_s25 + $0x90] sm:$0xf] }
  0xf5   : > { %v2287_v16 = vrot.slane %v2286_v24, 4  ;;  %v2244_v4 = vsel %vm6001_vm2, %v2239_v38, %v2243_v41  ;;  %v6652_v18 = vrot.slane %v2313_v40, 5  ;;  %v4595_v27 = vld [vmem:[%s5981_s25 + $0xc0] sm:$0xf]  ;;  %v3228_v31 = vshrl.u32 %v4589_v13, 16 }
  0xf6   : > { %3011 = vmatmul.mubr.bf16.gmra.mrb[88].mxu1 %v5897_v19  ;;  %5336 = vmatpush3.bf16.msra.mxu0 %v5738_v45  ;;  %v2307_v45 = vshrl.u32 %v1931_v22, 16  ;;  %v2220_v29 = vsel %vm6001_vm2, %v2215_v37, %v6594_v17  ;;  %v2268_v0 = vsel %vm6001_vm2, %v2263_v56, %v2267_v47  ;;  %v4494_v14 = vcombine.low %v2234_v39, %v2244_v4  ;;  %v4593_v19 = vld [vmem:[%s5981_s25 + $0xa0] sm:$0xf]  ;;  %v4594_v4 = vld [vmem:[%s5981_s25 + $0xb0] sm:$0x1] }
  0xf7   : > { %3018 = vmatprep.mubr.bf16.mxu1 %v5898_v30  ;;  %5337 = vmatprep.subr.bf16.mxu0 %v5740_v6  ;;  %v2292_v57 = vsel %vm6001_vm2, %v2287_v16, %v2291_v50  ;;  %v6649_v23 = vcombine.low %v2258_v58, %v2268_v0  ;;  %v3206_v22 = vrot.slane %v3204_v7, 4  ;;  %v6661_v30 = vrot.slane %v3213_v2, 5  ;;  %v4591_v50 = vld [vmem:[%s5981_s25 + $0x80] sm:$0x1] }
  0xf8   : > { %v2309_v59 = vrot.slane %v2307_v45, 4  ;;  %v6656_v20 = vcombine.low %v2282_v32, %v2292_v57  ;;  %v3231_v24 = vshll.u32 %v4589_v13, 16  ;;  %v3237_v37 = vshll.u32 %v4590_v61, 16  ;;  %v5901_v45 = vld [vmem:[%s5981_s25 + $0xf0] ss:$16 sps:$4 sm:$0xff]  }
  0xf9   : > { %5306 = vmatmul.mubr.bf16.gmra.mrb[12].mxu0 %v6528_v5  ;;  %v2296_v5 = vrot.slane %v2294_v26, 4  ;;  %v3209_v26 = vrot.slane %v3207_v9, 5  ;;  %v3252_v38 = vshrl.u32 %v4592_v11, 16  ;;  %v3255_v41 = vshll.u32 %v4592_v11, 16  ;;  %v4598_v57 = vld [vmem:[%s5981_s25 + $0xf0] sm:$0xf] }
  0xfa   : > { %5309 = vmatprep.mubr.bf16.mxu0 %v6534_v15  ;;  %5338 = vmatpush3.bf16.msra.mxu0 %v5740_v6  ;;  %v2210_v15 = vsel %vm6001_vm2, %v2205_v60, %v6558_v42  ;;  %v6636_v42 = vrot.slane %v2303_v55, 5  ;;  %v3219_v60 = vrot.slane %v3217_v12, 4  ;;  %v3265_v1 = vshrl.u32 %v4593_v19, 16  ;;  %v4599_v2 = vld [vmem:[%s5981_s25 + $0x100] sm:$0xf] }
  0xfb   : > { %5339 = vmatprep.subr.bf16.mxu0 %v5744_v35  ;;  %v2300_v6 = vor.u32 %v2299_v3, %v2296_v5  ;;  %v4493_v53 = vcombine.low %v2210_v15, %v2220_v29  ;;  %v3276_v46 = vshrl.u32 %v4595_v27, 16  ;;  %v3279_v55 = vshll.u32 %v4595_v27, 16 }
  0xfc   : > { %v2310_v17 = vor.u32 %v2309_v59, %v6636_v42  ;;  %v3210_v47 = vor.u32 %v3209_v26, %v3206_v22  ;;  %v3285_v5 = vshll.u32 %v4596_v33, 16  ;;  %v3289_v3 = vshrl.u32 %v4596_v33, 16 }
  0xfd   : > { %v6658_v21 = vrot.slane %v2300_v6, 4  ;;  %v3220_v63 = vor.u32 %v3219_v60, %v6661_v30  ;;  %v3230_v10 = vrot.slane %v3228_v31, 4  ;;  %v3233_v15 = vrot.slane %v3231_v24, 5  ;;  %v5903_v31 = vld [vmem:[%s5981_s25 + $0x120] ss:$16 sps:$4 sm:$0xff]  }
  0xfe   : > { %v6610_v43 = vpop.f32.mrb[0].mxu1  ;;  %3019 = vmatmul.mubr.bf16.gmra.mrb[92].mxu1 %v5899_v62  ;;  %5340 = vmatpush3.bf16.msra.mxu0 %v5744_v35  ;;  %v4588_v35 = vld [vmem:[%s5981_s25 + $0x50] sm:$0x1]  ;;  %v2311_v56 = vrot.slane %v2310_v17, 4  ;;  %v6669_v29 = vrot.slane %v3237_v37, 5  ;;  %v3243_v39 = vrot.slane %v3241_v54, 4 }
  0xff   : > { %v6614_v48 = vpop.f32.mrb[1].mxu1  ;;  %3026 = vmatprep.mubr.bf16.mxu1 %v5900_v8  ;;  %v3223_v16 = vshll.u32 %v4588_v35, 16  ;;  %v3254_v52 = vrot.slane %v3252_v38, 4  ;;  %v3257_v58 = vrot.slane %v3255_v41, 5  ;;  %v3267_v40 = vrot.slane %v3265_v1, 4 }
 0x100   : > { %v6616_v44 = vpop.f32.mrb[2].mxu1  ;;  %v4597_v62 = vld [vmem:[%s5981_s25 + $0xe0] sm:$0x1]  ;;  %v3278_v0 = vrot.slane %v3276_v46, 4  ;;  %v3281_v6 = vrot.slane %v3279_v55, 5  ;;  %v2306_v7 = vsel %vm6001_vm2, %v6658_v21, %v6636_v42  ;;  %v2316_v9 = vsel %vm6001_vm2, %v2311_v56, %v6652_v18 }
 0x101   : > { %v6630_v51 = vpop.f32.mrb[3].mxu1  ;;  %5310 = vmatmul.mubr.bf16.gmra.mrb[80].mxu0 %v4491_v25  ;;  %v3261_v25 = vshll.u32 %v4593_v19, 16  ;;  %v6682_v8 = vrot.slane %v3285_v5, 5  ;;  %v3291_v32 = vrot.slane %v3289_v3, 4  ;;  %v3221_v13 = vrot.slane %v3220_v63, 4 }
 0x102   : > { %5313 = vmatprep.mubr.bf16.mxu0 %v4492_v49  ;;  %v5902_v49 = vld [vmem:[%s5981_s25 + $0x124] ss:$16 sps:$4 sm:$0xff]   ;;  %v3225_v61 = vrot.slane %v3223_v16, 5  ;;  %v3234_v11 = vor.u32 %v3233_v15, %v3230_v10  ;;  %v3244_v42 = vor.u32 %v3243_v39, %v6669_v29  ;;  %v3258_v19 = vor.u32 %v3257_v58, %v3254_v52  ;;  %v4601_v46 = vld [vmem:[%s5981_s25 + $0x120] sm:$0xf] }
 0x103   : > { %v6672_v59 = vrot.slane %v3261_v25, 5  ;;  %v3271_v21 = vshll.u32 %v4594_v4, 16  ;;  %v3282_v26 = vor.u32 %v3281_v6, %v3278_v0  ;;  %v3300_v27 = vshrl.u32 %v4598_v57, 16  ;;  %v4602_v5 = vld [vmem:[%s5981_s25 + $0x130] sm:$0xf] }
 0x104   : > { %v3303_v60 = vshll.u32 %v4598_v57, 16  ;;  %v4497_v24 = vcombine.low %v2306_v7, %v2316_v9  ;;  %v3292_v35 = vor.u32 %v3291_v32, %v6682_v8  ;;  %v3295_v37 = vshll.u32 %v4597_v62, 16  ;;  %v4600_v10 = vld [vmem:[%s5981_s25 + $0x110] sm:$0x1] }
 0x105   : > { %v3268_v22 = vor.u32 %v3267_v40, %v6672_v59  ;;  %v3309_v54 = vshll.u32 %v4599_v2, 16  ;;  %v3226_v41 = vsel %vm6001_vm2, %v3221_v13, %v3225_v61  ;;  %v3313_v1 = vshrl.u32 %v4599_v2, 16  ;;  %v4605_v2 = vld [vmem:[%s5981_s25 + $0x160] sm:$0xf] }
 0x106   : > { %3027 = vmatmul.mubr.bf16.gmra.mrb[96].mxu1 %v5901_v45  ;;  %v3235_v55 = vrot.slane %v3234_v11, 4  ;;  %v3245_v45 = vrot.slane %v3244_v42, 4  ;;  %v3259_v56 = vrot.slane %v3258_v19, 4  ;;  %v3302_v63 = vrot.slane %v3300_v27, 4  ;;  %v5743_v42 = vld [vmem:[%s5981_s25 + $0x180] ss:$16 sps:$4 sm:$0xff]  }
 0x107   : > { %3034 = vmatprep.mubr.bf16.mxu1 %v5902_v49  ;;  %v3269_v3 = vrot.slane %v3268_v22, 4  ;;  %v3283_v49 = vrot.slane %v3282_v26, 4  ;;  %v3293_v16 = vrot.slane %v3292_v35, 4  ;;  %v6710_v15 = vrot.slane %v3309_v54, 5  ;;  %v4603_v19 = vld [vmem:[%s5981_s25 + $0x140] sm:$0x1] }
 0x108   : > { %v3324_v39 = vshrl.u32 %v4601_v46, 16  ;;  %v3315_v4 = vrot.slane %v3313_v1, 4  ;;  %v3327_v52 = vshll.u32 %v4601_v46, 16  ;;  %v3333_v58 = vshll.u32 %v4602_v5, 16 }
 0x109   : > { %5314 = vmatmul.mubr.bf16.gmra.mrb[84].mxu0 %v4493_v53  ;;  %v3211_v53 = vrot.slane %v3210_v47, 4  ;;  %v3273_v47 = vrot.slane %v3271_v21, 5  ;;  %v3337_v40 = vshrl.u32 %v4602_v5, 16  ;;  %v3240_v0 = vsel %vm6001_vm2, %v3235_v55, %v6669_v29 }
 0x10a   : > { %5317 = vmatprep.mubr.bf16.mxu0 %v4494_v14  ;;  %v3247_v14 = vshll.u32 %v4591_v50, 16  ;;  %v3297_v50 = vrot.slane %v3295_v37, 5  ;;  %v3264_v6 = vsel %vm6001_vm2, %v3259_v56, %v6672_v59  ;;  %v3288_v9 = vsel %vm6001_vm2, %v3283_v49, %v6682_v8  ;;  %v4606_v56 = vld [vmem:[%s5981_s25 + $0x170] sm:$0x1] }
 0x10b   : > { %v3216_v38 = vsel %vm6001_vm2, %v3211_v53, %v6661_v30  ;;  %v3305_v30 = vrot.slane %v3303_v60, 5  ;;  %v3274_v7 = vsel %vm6001_vm2, %v3269_v3, %v3273_v47  ;;  %v3319_v57 = vshll.u32 %v4600_v10, 16  ;;  %v4607_v60 = vld [vmem:[%s5981_s25 + $0x180] sm:$0xf] }
 0x10c   : > { %v3249_v25 = vrot.slane %v3247_v14, 5  ;;  %v4634_v62 = vcombine.low %v3216_v38, %v3226_v41  ;;  %v3298_v29 = vsel %vm6001_vm2, %v3293_v16, %v3297_v50  ;;  %v3326_v53 = vrot.slane %v3324_v39, 4  ;;  %v4610_v41 = vld [vmem:[%s5981_s25 + $0x1b0] sm:$0xf] }
 0x10d   : > { %v3306_v32 = vor.u32 %v3305_v30, %v3302_v63  ;;  %v3316_v61 = vor.u32 %v3315_v4, %v6710_v15  ;;  %v3329_v14 = vrot.slane %v3327_v52, 5  ;;  %v6731_v11 = vrot.slane %v3333_v58, 5  ;;  %v4609_v4 = vld [vmem:[%s5981_s25 + $0x1a0] sm:$0x1] }
 0x10e   : > { %3035 = vmatmul.mubr.bf16.gmra.mrb[100].mxu1 %v5903_v31  ;;  %v3339_v8 = vrot.slane %v3337_v40, 4  ;;  %v3361_v21 = vshrl.u32 %v4605_v2, 16  ;;  %v4636_v26 = vcombine.low %v3264_v6, %v3274_v7  ;;  %v3321_v27 = vrot.slane %v3319_v57, 5  ;;  %v4608_v31 = vld [vmem:[%s5981_s25 + $0x190] sm:$0xf] }
 0x10f   : > { %v6686_v12 = vpop.f32.mrb[4].mxu1  ;;  %3042 = vmatprep.mubr.bf16.mxu1 %v6323_v36  ;;  %v5741_v36 = vld [vmem:[%s5981_s25 + $0x184] ss:$16 sps:$4 sm:$0xff]   ;;  %v6737_v35 = vcombine.low %v3288_v9, %v3298_v29  ;;  %v3307_v37 = vrot.slane %v3306_v32, 4  ;;  %v3317_v1 = vrot.slane %v3316_v61, 4  ;;  %v3330_v46 = vor.u32 %v3329_v14, %v3326_v53 }
 0x110   : > { %v6688_v17 = vpop.f32.mrb[5].mxu1  ;;  %v3340_v55 = vor.u32 %v3339_v8, %v6731_v11  ;;  %v3363_v5 = vrot.slane %v3361_v21, 4  ;;  %v3375_v3 = vshll.u32 %v4607_v60, 16  ;;  %v3381_v49 = vshll.u32 %v4608_v31, 16  ;;  %v4613_v6 = vld [vmem:[%s5981_s25 + $0x1e0] sm:$0xf] }
 0x111   : > { %v6691_v18 = vpop.f32.mrb[6].mxu1  ;;  %5318 = vmatmul.mubr.bf16.gmra.mrb[88].mxu0 %v6649_v23  ;;  %v4604_v23 = vld [vmem:[%s5981_s25 + $0x150] sm:$0xf]  ;;  %v3385_v63 = vshrl.u32 %v4608_v31, 16  ;;  %v3396_v30 = vshrl.u32 %v4610_v41, 16  ;;  %v3399_v16 = vshll.u32 %v4610_v41, 16  ;;  %v3312_v10 = vsel %vm6001_vm2, %v3307_v37, %v6710_v15 }
 0x112   : > { %v6695_v33 = vpop.f32.mrb[7].mxu1  ;;  %5321 = vmatprep.mubr.bf16.mxu0 %v6656_v20  ;;  %v3250_v20 = vsel %vm6001_vm2, %v3245_v45, %v3249_v25  ;;  %v3348_v59 = vshrl.u32 %v4604_v23, 16  ;;  %v3351_v13 = vshll.u32 %v4604_v23, 16  ;;  %v5745_v25 = vld [vmem:[%s5981_s25 + $0x1b4] ss:$16 sps:$4 sm:$0xff]   ;;  %v3322_v23 = vsel %vm6001_vm2, %v3317_v1, %v3321_v27 }
 0x113   : > { %v4635_v22 = vcombine.low %v3240_v0, %v3250_v20  ;;  %v4611_v45 = vld [vmem:[%s5981_s25 + $0x1c0] sm:$0xf]  ;;  %v3367_v20 = vshll.u32 %v4606_v56, 16  ;;  %v6764_v9 = vrot.slane %v3340_v55, 4  ;;  %v4614_v29 = vld [vmem:[%s5981_s25 + $0x1f0] sm:$0xf]  ;;  %v4638_v27 = vcombine.low %v3312_v10, %v3322_v23 }
 0x114   : > { %v3350_v54 = vrot.slane %v3348_v59, 4  ;;  %v3353_v38 = vrot.slane %v3351_v13, 5  ;;  %v3405_v52 = vshll.u32 %v4611_v45, 16  ;;  %v3409_v58 = vshrl.u32 %v4611_v45, 16  ;;  %v5747_v7 = vld [vmem:[%s5981_s25 + $0x1b0] ss:$16 sps:$4 sm:$0xff]  }
 0x115   : > { %v6770_v59 = vrot.slane %v3381_v49, 5  ;;  %v3387_v13 = vrot.slane %v3385_v63, 4  ;;  %v3398_v61 = vrot.slane %v3396_v30, 4  ;;  %v3401_v14 = vrot.slane %v3399_v16, 5  ;;  %v5748_v8 = vld [vmem:[%s5981_s25 + $0x1e4] ss:$16 sps:$4 sm:$0xff]  }
 0x116   : > { %3043 = vmatmul.mubr.bf16.gmra.mrb[104].mxu1 %v6320_v34  ;;  %v3357_v34 = vshll.u32 %v4605_v2, 16  ;;  %v3354_v39 = vor.u32 %v3353_v38, %v3350_v54  ;;  %v3377_v2 = vrot.slane %v3375_v3, 5  ;;  %v3411_v21 = vrot.slane %v3409_v58, 4  ;;  %v4612_v31 = vld [vmem:[%s5981_s25 + $0x1d0] sm:$0x1] }
 0x117   : > { %3050 = vmatprep.mubr.bf16.mxu1 %v5741_v36  ;;  %v3372_v36 = vshrl.u32 %v4607_v60, 16  ;;  %v3369_v60 = vrot.slane %v3367_v20, 5  ;;  %v3420_v37 = vshrl.u32 %v4613_v6, 16  ;;  %v3429_v41 = vshll.u32 %v4614_v29, 16  ;;  %v4616_v1 = vld [vmem:[%s5981_s25 + $0x210] sm:$0xf] }
 0x118   : > { %v6744_v47 = vrot.slane %v3357_v34, 5  ;;  %v6773_v34 = vrot.slane %v3405_v52, 5  ;;  %v3388_v55 = vor.u32 %v3387_v13, %v6770_v59  ;;  %v3444_v63 = vshrl.u32 %v4616_v1, 16  ;;  %v5750_v52 = vld [vmem:[%s5981_s25 + $0x1e0] ss:$16 sps:$4 sm:$0xff]  }
 0x119   : > { %5322 = vmatmul.mubr.bf16.gmra.mrb[92].mxu0 %v4497_v24  ;;  %v3343_v24 = vshll.u32 %v4603_v19, 16  ;;  %v3374_v57 = vrot.slane %v3372_v36, 4  ;;  %v3391_v19 = vshll.u32 %v4609_v4, 16  ;;  %v4617_v36 = vld [vmem:[%s5981_s25 + $0x220] sm:$0xf]  ;;  %v3422_v3 = vrot.slane %v3420_v37, 4 }
 0x11a   : > { %5341 = vmatprep.mubr.bf16.mxu0 %v4634_v62  ;;  %v6756_v62 = vrot.slane %v3330_v46, 4  ;;  %v3364_v32 = vor.u32 %v3363_v5, %v6744_v47  ;;  %v3412_v5 = vor.u32 %v3411_v21, %v6773_v34  ;;  %v3447_v30 = vshll.u32 %v4616_v1, 16  ;;  %v5751_v20 = vld [vmem:[%s5981_s25 + $0x214] ss:$16 sps:$4 sm:$0xff]   ;;  %v4620_v13 = vld [vmem:[%s5981_s25 + $0x250] sm:$0xf] }
 0x11b   : > { %v6758_v0 = vrot.slane %v3343_v24, 5  ;;  %v3378_v38 = vor.u32 %v3377_v2, %v3374_v57  ;;  %v3402_v24 = vor.u32 %v3401_v14, %v3398_v61  ;;  %v6789_v56 = vrot.slane %v3391_v19, 5  ;;  %v4618_v21 = vld [vmem:[%s5981_s25 + $0x230] sm:$0x1] }
 0x11c   : > { %v3365_v54 = vrot.slane %v3364_v32, 4  ;;  %v6796_v4 = vrot.slane %v3429_v41, 5  ;;  %v3389_v58 = vrot.slane %v3388_v55, 4  ;;  %v3446_v2 = vrot.slane %v3444_v63, 4 }
 0x11d   : > { %v3346_v46 = vsel %vm6001_vm2, %v6764_v9, %v6758_v0  ;;  %v3379_v10 = vrot.slane %v3378_v38, 4  ;;  %v3403_v23 = vrot.slane %v3402_v24, 4  ;;  %v3457_v0 = vshrl.u32 %v4617_v36, 16  ;;  %v4619_v9 = vld [vmem:[%s5981_s25 + $0x240] sm:$0xf] }
 0x11e   : > { %3051 = vmatmul.mubr.bf16.gmra.mrb[108].mxu1 %v5743_v42  ;;  %v3355_v42 = vrot.slane %v3354_v39, 4  ;;  %v3370_v16 = vsel %vm6001_vm2, %v3365_v54, %v3369_v60  ;;  %v4615_v39 = vld [vmem:[%s5981_s25 + $0x200] sm:$0x1]  ;;  %v3468_v37 = vshrl.u32 %v4619_v9, 16  ;;  %v3481_v54 = vshrl.u32 %v4620_v13, 16 }
 0x11f   : > { %v6746_v50 = vpop.f32.mrb[8].mxu1  ;;  %3058 = vmatprep.mubr.bf16.mxu1 %v5745_v25  ;;  %v3433_v25 = vshrl.u32 %v4614_v29, 16  ;;  %v3439_v57 = vshll.u32 %v4615_v39, 16  ;;  %v3449_v29 = vrot.slane %v3447_v30, 5  ;;  %v3408_v19 = vsel %vm6001_vm2, %v3403_v23, %v6773_v34  ;;  %v4623_v38 = vld [vmem:[%s5981_s25 + $0x280] sm:$0xf] }
 0x120   : > { %v6752_v40 = vpop.f32.mrb[9].mxu1  ;;  %v3360_v45 = vsel %vm6001_vm2, %v3355_v42, %v6744_v47  ;;  %v3394_v42 = vsel %vm6001_vm2, %v3389_v58, %v6789_v56  ;;  %v3459_v60 = vrot.slane %v3457_v0, 4  ;;  %v3463_v55 = vshll.u32 %v4618_v21, 16  ;;  %v4621_v24 = vld [vmem:[%s5981_s25 + $0x260] sm:$0x1] }
 0x121   : > { %v6762_v15 = vpop.f32.mrb[10].mxu1  ;;  %5342 = vmatmul.mubr.bf16.vlgmr.msra.gmra.mrb[0].mxu0 %v4635_v22  ;;  %v3423_v22 = vshll.u32 %v4613_v6, 16  ;;  %v3435_v47 = vrot.slane %v3433_v25, 4  ;;  %v3413_v6 = vrot.slane %v3412_v5, 4  ;;  %v4640_v14 = vcombine.low %v3360_v45, %v3370_v16 }
 0x122   : > { %v6768_v53 = vpop.f32.mrb[11].mxu1  ;;  %5345 = vmatprep.mubr.bf16.mxu0 %v4636_v26  ;;  %v3336_v26 = vsel %vm6001_vm2, %v6756_v62, %v6731_v11  ;;  %v3415_v11 = vshll.u32 %v4612_v31, 16  ;;  %v3453_v62 = vshll.u32 %v4617_v36, 16  ;;  %v4622_v31 = vld [vmem:[%s5981_s25 + $0x270] sm:$0xf]  ;;  %v3441_v25 = vrot.slane %v3439_v57, 5 }
 0x123   : > { %v3425_v49 = vrot.slane %v3423_v22, 5  ;;  %v4639_v61 = vcombine.low %v3336_v26, %v3346_v46  ;;  %v3477_v22 = vshll.u32 %v4620_v13, 16  ;;  %v3450_v1 = vor.u32 %v3449_v29, %v3446_v2  ;;  %v5753_v26 = vld [vmem:[%s5981_s25 + $0x210] ss:$16 sps:$4 sm:$0xff]  }
 0x124   : > { %v3492_v45 = vshrl.u32 %v4622_v31, 16  ;;  %v3495_v56 = vshll.u32 %v4622_v31, 16  ;;  %v3505_v63 = vshrl.u32 %v4623_v38, 16  ;;  %v3470_v16 = vrot.slane %v3468_v37, 4 }
 0x125   : > { %v3426_v32 = vor.u32 %v3425_v49, %v3422_v3  ;;  %v4624_v3 = vld [vmem:[%s5981_s25 + $0x290] sm:$0x1]  ;;  %v3501_v49 = vshll.u32 %v4623_v38, 16  ;;  %v6829_v39 = vrot.slane %v3477_v22, 5  ;;  %v6836_v0 = vrot.slane %v3450_v1, 4 }
 0x126   : > { %3059 = vmatmul.mubr.bf16.gmra.mrb[112].mxu1 %v5747_v7  ;;  %v3417_v7 = vrot.slane %v3415_v11, 5  ;;  %v5754_v11 = vld [vmem:[%s5981_s25 + $0x244] ss:$16 sps:$4 sm:$0xff]   ;;  %v3465_v57 = vrot.slane %v3463_v55, 5  ;;  %v3494_v2 = vrot.slane %v3492_v45, 4  ;;  %v3497_v29 = vrot.slane %v3495_v56, 5 }
 0x127   : > { %3066 = vmatprep.mubr.bf16.mxu1 %v5748_v8  ;;  %v3436_v8 = vor.u32 %v3435_v47, %v6796_v4  ;;  %v3427_v34 = vrot.slane %v3426_v32, 4  ;;  %v3483_v47 = vrot.slane %v3481_v54, 4  ;;  %v4628_v54 = vld [vmem:[%s5981_s25 + $0x2d0] sm:$0xf]  ;;  %v4629_v1 = vld [vmem:[%s5981_s25 + $0x2e0] sm:$0xf] }
 0x128   : > { %v3418_v41 = vsel %vm6001_vm2, %v3413_v6, %v3417_v7  ;;  %v4626_v6 = vld [vmem:[%s5981_s25 + $0x2b0] sm:$0xf] }
 0x129   : > { %5346 = vmatmul.mubr.bf16.gmra.mrb[4].mxu0 %v6737_v35  ;;  %v3384_v35 = vsel %vm6001_vm2, %v3379_v10, %v6770_v59  ;;  %v3471_v59 = vshll.u32 %v4619_v9, 16  ;;  %v3437_v46 = vrot.slane %v3436_v8, 4  ;;  %v4642_v23 = vcombine.low %v3408_v19, %v3418_v41 }
 0x12a   : > { %5349 = vmatprep.mubr.bf16.mxu0 %v4638_v27  ;;  %v6814_v27 = vrot.slane %v3453_v62, 5  ;;  %v4641_v58 = vcombine.low %v3384_v35, %v3394_v42  ;;  %v3432_v62 = vsel %vm6001_vm2, %v3427_v34, %v6796_v4  ;;  %v6844_v35 = vrot.slane %v3501_v49, 5 }
 0x12b   : > { %v3473_v10 = vrot.slane %v3471_v59, 5  ;;  %v3442_v32 = vsel %vm6001_vm2, %v3437_v46, %v3441_v25  ;;  %v3507_v4 = vrot.slane %v3505_v63, 4  ;;  %v3484_v21 = vor.u32 %v3483_v47, %v6829_v39  ;;  %v5756_v46 = vld [vmem:[%s5981_s25 + $0x240] ss:$16 sps:$4 sm:$0xff]  }
 0x12c   : > { %v3460_v36 = vor.u32 %v3459_v60, %v6814_v27  ;;  %v3511_v60 = vshll.u32 %v4624_v3, 16  ;;  %v4643_v37 = vcombine.low %v3432_v62, %v3442_v32  ;;  %v3456_v59 = vsel %vm6001_vm2, %v6836_v0, %v6814_v27 }
 0x12d   : > { %v3474_v19 = vor.u32 %v3473_v10, %v3470_v16  ;;  %v3498_v41 = vor.u32 %v3497_v29, %v3494_v2  ;;  %v3525_v25 = vshll.u32 %v4626_v6, 16  ;;  %v3508_v45 = vor.u32 %v3507_v4, %v6844_v35  ;;  %v5757_v10 = vld [vmem:[%s5981_s25 + $0x274] ss:$16 sps:$4 sm:$0xff]  }
 0x12e   : > { %3067 = vmatmul.mubr.bf16.gmra.mrb[116].mxu1 %v5750_v52  ;;  %v3529_v56 = vshrl.u32 %v4626_v6, 16  ;;  %v3513_v3 = vrot.slane %v3511_v60, 5  ;;  %v3540_v49 = vshrl.u32 %v4628_v54, 16  ;;  %v3543_v47 = vshll.u32 %v4628_v54, 16 }
 0x12f   : > { %3074 = vmatprep.mubr.bf16.mxu1 %v5751_v20  ;;  %v4625_v20 = vld [vmem:[%s5981_s25 + $0x2a0] sm:$0xf]  ;;  %v3553_v62 = vshrl.u32 %v4629_v1, 16  ;;  %v6860_v6 = vrot.slane %v3525_v25, 5  ;;  %v4632_v25 = vld [vmem:[%s5981_s25 + $0x310] sm:$0xf] }
 0x130   : > { %v3516_v22 = vshrl.u32 %v4625_v20, 16  ;;  %v3519_v34 = vshll.u32 %v4625_v20, 16  ;;  %v3542_v60 = vrot.slane %v3540_v49, 4  ;;  %v3545_v54 = vrot.slane %v3543_v47, 5  ;;  %v5759_v49 = vld [vmem:[%s5981_s25 + $0x270] ss:$16 sps:$4 sm:$0xff]  }
 0x131   : > { %v6822_v5 = vpop.f32.mrb[12].mxu1  ;;  %5350 = vmatmul.mubr.bf16.gmra.mrb[8].mxu0 %v4639_v61  ;;  %v3461_v61 = vrot.slane %v3460_v36, 4  ;;  %v3485_v36 = vrot.slane %v3484_v21, 4  ;;  %v5760_v47 = vld [vmem:[%s5981_s25 + $0x2a4] ss:$16 sps:$4 sm:$0xff]  }
 0x132   : > { %v6827_v30 = vpop.f32.mrb[13].mxu1  ;;  %5353 = vmatprep.mubr.bf16.mxu0 %v4640_v14  ;;  %v3487_v14 = vshll.u32 %v4621_v24, 16  ;;  %v3518_v32 = vrot.slane %v3516_v22, 4 }
 0x133   : > { %v6831_v52 = vpop.f32.mrb[14].mxu1  ;;  %v3466_v55 = vsel %vm6001_vm2, %v3461_v61, %v3465_v57  ;;  %v3521_v57 = vrot.slane %v3519_v34, 5  ;;  %v4627_v61 = vld [vmem:[%s5981_s25 + $0x2c0] sm:$0x1]  ;;  %v3555_v34 = vrot.slane %v3553_v62, 4 }
 0x134   : > { %v6840_v7 = vpop.f32.mrb[15].mxu1  ;;  %v4973_v9 = vpop.f32.mrb[16].mxu0  ;;  %v6856_v24 = vrot.slane %v3487_v14, 5  ;;  %v3531_v14 = vrot.slane %v3529_v56, 4 }
 0x135   : > { %v4974_v13 = vpop.f32.mrb[17].mxu0 }
 0x136   : > { %3075 = vmatmul.mubr.bf16.gmra.mrb[120].mxu1 %v5753_v26  ;;  %v4975_v8 = vadd.f32 %v4974_v13, %v4973_v9  ;;  %v4976_v42 = vpop.f32.mrb[18].mxu0  ;;  %v3499_v9 = vrot.slane %v3498_v41, 4  ;;  %v3509_v13 = vrot.slane %v3508_v45, 4  ;;  %v3532_v56 = vor.u32 %v3531_v14, %v6860_v6 }
 0x137   : > { %v4977_v31 = vpop.f32.mrb[19].mxu0  ;;  %3082 = vmatprep.mubr.bf16.mxu1 %v5754_v11  ;;  %v3475_v11 = vrot.slane %v3474_v19, 4  ;;  %v4644_v19 = vcombine.low %v3456_v59, %v3466_v55  ;;  %v3490_v59 = vsel %vm6001_vm2, %v3485_v36, %v6856_v24  ;;  %v3573_v36 = vshll.u32 %v4632_v25, 16 }
 0x138   : > { %v4978_v38 = vadd.f32 %v4977_v31, %v4976_v42  ;;  %v4631_v31 = vld [vmem:[%s5981_s25 + $0x300] sm:$0xf]  ;;  %v3514_v45 = vsel %vm6001_vm2, %v3509_v13, %v3513_v3  ;;  %v3533_v13 = vrot.slane %v3532_v56, 4 }
 0x139   : > { %v4861_v26 = vpop.f32.mrb[16].mxu1  ;;  %5354 = vmatmul.mubr.bf16.gmra.mrb[12].mxu0 %v4641_v58  ;;  %v3549_v58 = vshll.u32 %v4629_v1, 16  ;;  %v3480_v21 = vsel %vm6001_vm2, %v3475_v11, %v6829_v39  ;;  %v4630_v39 = vld [vmem:[%s5981_s25 + $0x2f0] sm:$0x1]  ;;  %v3567_v24 = vshll.u32 %v4631_v31, 16 }
 0x13a   : > { %v4862_v27 = vpop.f32.mrb[17].mxu1  ;;  %5357 = vmatprep.mubr.bf16.mxu0 %v4642_v23  ;;  %v4645_v3 = vcombine.low %v3480_v21, %v3490_v59 }
 0x13b   : > { %v4863_v63 = vadd.f32 %v4862_v27, %v4861_v26  ;;  %v4864_v16 = vpop.f32.mrb[18].mxu1  ;;  %v6871_v41 = vrot.slane %v3549_v58, 5  ;;  %v3522_v26 = vor.u32 %v3521_v57, %v3518_v32  ;;  %v3564_v27 = vshrl.u32 %v4631_v31, 16 }
 0x13c   : > { %v4865_v0 = vpop.f32.mrb[19].mxu1  ;;  %v4979_v20 = vpop.f32.mrb[20].mxu0  ;;  %v3575_v31 = vrot.slane %v3573_v36, 5 }
 0x13d   : > { %v6862_v23 = vadd.f32 %v4975_v8, %v4863_v63  ;;  %v4866_v2 = vadd.f32 %v4865_v0, %v4864_v16  ;;  %v4980_v29 = vpop.f32.mrb[21].mxu0  ;;  %v3577_v63 = vshrl.u32 %v4632_v25, 16  ;;  %v3556_v58 = vor.u32 %v3555_v34, %v6871_v41 }
 0x13e   : > { %3083 = vmatmul.mubr.bf16.gmra.mrb[124].mxu1 %v5756_v46  ;;  %v4981_v4 = vadd.f32 %v4980_v29, %v4979_v20  ;;  %v4982_v42 = vpop.f32.mrb[22].mxu0  ;;  %v3535_v46 = vshll.u32 %v4627_v61, 16  ;;  %v3566_v61 = vrot.slane %v3564_v27, 4 }
 0x13f   : > { %v6869_v22 = vadd.f32 %v4978_v38, %v4866_v2  ;;  %v4983_v8 = vpop.f32.mrb[23].mxu0  ;;  %3090 = vmatprep.mubr.bf16.mxu1 %v5757_v10  ;;  %v3504_v38 = vsel %vm6001_vm2, %v3499_v9, %v6844_v35  ;;  %v3559_v35 = vshll.u32 %v4630_v39, 16  ;;  %v3523_v9 = vrot.slane %v3522_v26, 4 }
 0x140   : > { %v4984_v1 = vadd.f32 %v4983_v8, %v4982_v42  ;;  %v4646_v20 = vcombine.low %v3504_v38, %v3514_v45  ;;  %v3537_v32 = vrot.slane %v3535_v46, 5  ;;  %v3579_v8 = vrot.slane %v3577_v63, 4 }
 0x141   : > { %v4867_v55 = vpop.f32.mrb[20].mxu1  ;;  %5358 = vmatmul.mubr.bf16.gmra.mrb[80].mxu0 %v4643_v37  ;;  %v3546_v37 = vor.u32 %v3545_v54, %v3542_v60  ;;  %v3569_v60 = vrot.slane %v3567_v24, 5  ;;  %v3561_v25 = vrot.slane %v3559_v35, 5  ;;  %v3528_v38 = vsel %vm6001_vm2, %v3523_v9, %v6860_v6 }
 0x142   : > { %v4868_v11 = vpop.f32.mrb[21].mxu1  ;;  %5361 = vmatprep.mubr.bf16.mxu0 %v4644_v19  ;;  %v4633_v19 = vld [vmem:[%s5981_s25 + $0x320] sm:$0x1]  ;;  %v3580_v56 = vor.u32 %v3579_v8, %v3575_v31 }
 0x143   : > { %v4869_v16 = vadd.f32 %v4868_v11, %v4867_v55  ;;  %v4870_v10 = vpop.f32.mrb[22].mxu1  ;;  %v3547_v34 = vrot.slane %v3546_v37, 4  ;;  %v3583_v46 = vshll.u32 %v4633_v19, 16  ;;  %v5762_v55 = vld [vmem:[%s5981_s25 + $0x2a0] ss:$16 sps:$4 sm:$0xff]   ;;  %v3570_v45 = vor.u32 %v3569_v60, %v3566_v61 }
 0x144   : > { %v4871_v62 = vpop.f32.mrb[23].mxu1  ;;  %v4985_v0 = vpop.f32.mrb[24].mxu0  ;;  %v5766_v60 = vld [vmem:[%s5981_s25 + $0x304] ss:$16 sps:$4 sm:$0xff]  }
 0x145   : > { %v6887_v57 = vadd.f32 %v4981_v4, %v4869_v16  ;;  %v4872_v2 = vadd.f32 %v4871_v62, %v4870_v10  ;;  %v4986_v29 = vpop.f32.mrb[25].mxu0  ;;  %v3557_v4 = vrot.slane %v3556_v58, 4  ;;  %v3552_v24 = vsel %vm6001_vm2, %v3547_v34, %v6871_v41 }
 0x146   : > { %3091 = vmatmul.mubr.bf16.gmra.mrb[128].mxu1 %v5759_v49  ;;  %v4987_v14 = vadd.f32 %v4986_v29, %v4985_v0  ;;  %v4988_v42 = vpop.f32.mrb[26].mxu0  ;;  %v5763_v49 = vld [vmem:[%s5981_s25 + $0x2d4] ss:$16 sps:$4 sm:$0xff]   ;;  %v3585_v58 = vrot.slane %v3583_v46, 5 }
 0x147   : > { %v6890_v54 = vadd.f32 %v4984_v1, %v4872_v2  ;;  %v4989_v21 = vpop.f32.mrb[27].mxu0  ;;  %3098 = vmatprep.mubr.bf16.mxu1 %v5760_v47  ;;  %v3538_v1 = vsel %vm6001_vm2, %v3533_v13, %v3537_v32  ;;  %v3562_v36 = vsel %vm6001_vm2, %v3557_v4, %v3561_v25  ;;  %v5765_v13 = vld [vmem:[%s5981_s25 + $0x2d0] ss:$16 sps:$4 sm:$0xff]  }
 0x148   : > { %v4990_v59 = vadd.f32 %v4989_v21, %v4988_v42  ;;  %v4647_v37 = vcombine.low %v3528_v38, %v3538_v1  ;;  %v4648_v0 = vcombine.low %v3552_v24, %v3562_v36  ;;  %v5768_v1 = vld [vmem:[%s5981_s25 + $0x300] ss:$16 sps:$4 sm:$0xff]  }
 0x149   : > { %v4873_v26 = vpop.f32.mrb[24].mxu1  ;;  %5362 = vmatmul.mubr.bf16.gmra.mrb[84].mxu0 %v4645_v3  ;;  %v3571_v3 = vrot.slane %v3570_v45, 4 }
 0x14a   : > { %v4874_v39 = vpop.f32.mrb[25].mxu1  ;;  %5365 = vmatprep.mubr.bf16.mxu0 %v4646_v20  ;;  %v3581_v20 = vrot.slane %v3580_v56, 4 }
 0x14b   : > { %v4875_v27 = vadd.f32 %v4874_v39, %v4873_v26  ;;  %v4876_v11 = vpop.f32.mrb[26].mxu1  ;;  %v3576_v61 = vsel %vm6001_vm2, %v3571_v3, %v3575_v31 }
 0x14c   : > { %v4877_v63 = vpop.f32.mrb[27].mxu1  ;;  %v4991_v16 = vpop.f32.mrb[28].mxu0 }
 0x14d   : > { %v6904_v10 = vadd.f32 %v4987_v14, %v4875_v27  ;;  %v4878_v6 = vadd.f32 %v4877_v63, %v4876_v11  ;;  %v4992_v47 = vpop.f32.mrb[29].mxu0  ;;  %v3586_v14 = vsel %vm6001_vm2, %v3581_v20, %v3585_v58 }
 0x14e   : > { %3099 = vmatmul.mubr.bf16.gmra.mrb[132].mxu1 %v5762_v55  ;;  %v4993_v35 = vadd.f32 %v4992_v47, %v4991_v16  ;;  %v4994_v62 = vpop.f32.mrb[30].mxu0 }
 0x14f   : > { %v6906_v41 = vadd.f32 %v4990_v59, %v4878_v6  ;;  %v4995_v9 = vpop.f32.mrb[31].mxu0  ;;  %3106 = vmatprep.mubr.bf16.mxu1 %v5763_v49  ;;  %v4649_v59 = vcombine.low %v3576_v61, %v3586_v14 }
 0x150   : > { %v4996_v32 = vadd.f32 %v4995_v9, %v4994_v62 }
 0x151   : > { %v4879_v2 = vpop.f32.mrb[28].mxu1  ;;  %5366 = vmatmul.mubr.bf16.gmra.mrb[88].mxu0 %v4647_v37 }
 0x152   : > { %v4880_v29 = vpop.f32.mrb[29].mxu1  ;;  %5369 = vmatprep.mubr.bf16.mxu0 %v4648_v0 }
 0x153   : > { %v4881_v42 = vadd.f32 %v4880_v29, %v4879_v2  ;;  %v4882_v19 = vpop.f32.mrb[30].mxu1 }
 0x154   : > { %v4883_v8 = vpop.f32.mrb[31].mxu1  ;;  %v4997_v21 = vpop.f32.mrb[32].mxu0 }
 0x155   : > { %v6914_v34 = vadd.f32 %v4993_v35, %v4881_v42  ;;  %v4884_v4 = vadd.f32 %v4883_v8, %v4882_v19  ;;  %v4998_v25 = vpop.f32.mrb[33].mxu0 }
 0x156   : > { %3107 = vmatmul.mubr.bf16.gmra.mrb[136].mxu1 %v5765_v13  ;;  %v4999_v26 = vadd.f32 %v4998_v25, %v4997_v21  ;;  %v5000_v46 = vpop.f32.mrb[34].mxu0 }
 0x157   : > { %v6916_v39 = vadd.f32 %v4996_v32, %v4884_v4  ;;  %v5001_v31 = vpop.f32.mrb[35].mxu0  ;;  %3114 = vmatprep.mubr.bf16.mxu1 %v5766_v60 }
 0x158   : > { %v5002_v28 = vadd.f32 %v5001_v31, %v5000_v46 }
 0x159   : > { %v4885_v55 = vpop.f32.mrb[32].mxu1  ;;  %5370 = vmatmul.mubr.bf16.gmra.mrb[92].mxu0 %v4649_v59 }
 0x15a   : > { %v4886_v38 = vpop.f32.mrb[33].mxu1 }
 0x15b   : > { %v4887_v45 = vadd.f32 %v4886_v38, %v4885_v55  ;;  %v4888_v56 = vpop.f32.mrb[34].mxu1 }
 0x15c   : > { %v4889_v27 = vpop.f32.mrb[35].mxu1  ;;  %v5003_v11 = vpop.f32.mrb[36].mxu0 }
 0x15d   : > { %v6919_v49 = vadd.f32 %v4999_v26, %v4887_v45  ;;  %v4890_v24 = vadd.f32 %v4889_v27, %v4888_v56  ;;  %v5004_v36 = vpop.f32.mrb[37].mxu0 }
 0x15e   : > { %3115 = vmatmul.mubr.bf16.gmra.mrb[140].mxu1 %v5768_v1  ;;  %v5005_v63 = vadd.f32 %v5004_v36, %v5003_v11  ;;  %v5006_v16 = vpop.f32.mrb[38].mxu0 }
 0x15f   : > { %v6921_v6 = vadd.f32 %v5002_v28, %v4890_v24  ;;  %v5007_v47 = vpop.f32.mrb[39].mxu0 }
 0x160   : > { %v5008_v37 = vadd.f32 %v5007_v47, %v5006_v16 }
 0x161   : > { %v4891_v58 = vpop.f32.mrb[36].mxu1 }
 0x162   : > { %v4892_v35 = vpop.f32.mrb[37].mxu1 }
 0x163   : > { %v4893_v62 = vadd.f32 %v4892_v35, %v4891_v58  ;;  %v4894_v0 = vpop.f32.mrb[38].mxu1 }
 0x164   : > { %v4895_v3 = vpop.f32.mrb[39].mxu1  ;;  %v5009_v20 = vpop.f32.mrb[40].mxu0 }
 0x165   : > { %v6923_v9 = vadd.f32 %v5005_v63, %v4893_v62  ;;  %v4896_v32 = vadd.f32 %v4895_v3, %v4894_v0  ;;  %v5010_v2 = vpop.f32.mrb[41].mxu0 }
 0x166   : > { %v5011_v29 = vadd.f32 %v5010_v2, %v5009_v20  ;;  %v5012_v13 = vpop.f32.mrb[42].mxu0 }
 0x167   : > { %v6925_v61 = vadd.f32 %v5008_v37, %v4896_v32  ;;  %v5013_v14 = vpop.f32.mrb[43].mxu0 }
 0x168   : > { %v5014_v42 = vadd.f32 %v5013_v14, %v5012_v13 }
 0x169   : > { %v4897_v19 = vpop.f32.mrb[40].mxu1 }
 0x16a   : > { %v4898_v60 = vpop.f32.mrb[41].mxu1 }
 0x16b   : > { %v4899_v8 = vadd.f32 %v4898_v60, %v4897_v19  ;;  %v4900_v21 = vpop.f32.mrb[42].mxu1 }
 0x16c   : > { %v4901_v4 = vpop.f32.mrb[43].mxu1  ;;  %v5015_v25 = vpop.f32.mrb[44].mxu0 }
 0x16d   : > { %v6927_v59 = vadd.f32 %v5011_v29, %v4899_v8  ;;  %v4902_v26 = vadd.f32 %v4901_v4, %v4900_v21  ;;  %v5016_v46 = vpop.f32.mrb[45].mxu0 }
 0x16e   : > { %v5017_v31 = vadd.f32 %v5016_v46, %v5015_v25  ;;  %v5018_v28 = vpop.f32.mrb[46].mxu0 }
 0x16f   : > { %v6929_v55 = vadd.f32 %v5014_v42, %v4902_v26  ;;  %v5019_v38 = vpop.f32.mrb[47].mxu0 }
 0x170   : > { %v5020_v1 = vadd.f32 %v5019_v38, %v5018_v28 }
 0x171   : > { %v4903_v45 = vpop.f32.mrb[44].mxu1 }
 0x172   : > { %v4904_v56 = vpop.f32.mrb[45].mxu1 }
 0x173   : > { %v4905_v27 = vadd.f32 %v4904_v56, %v4903_v45  ;;  %v4906_v11 = vpop.f32.mrb[46].mxu1 }
 0x174   : > { %v4907_v24 = vpop.f32.mrb[47].mxu1  ;;  %v5021_v36 = vpop.f32.mrb[48].mxu0 }
 0x175   : > { %v6931_v63 = vadd.f32 %v5017_v31, %v4905_v27  ;;  %v4908_v16 = vadd.f32 %v4907_v24, %v4906_v11  ;;  %v5022_v47 = vpop.f32.mrb[49].mxu0 }
 0x176   : > { %v5023_v37 = vadd.f32 %v5022_v47, %v5021_v36  ;;  %v5024_v58 = vpop.f32.mrb[50].mxu0 }
 0x177   : > { %v6933_v35 = vadd.f32 %v5020_v1, %v4908_v16  ;;  %v5025_v62 = vpop.f32.mrb[51].mxu0 }
 0x178   : > { %v5026_v0 = vadd.f32 %v5025_v62, %v5024_v58 }
 0x179   : > { %v4909_v3 = vpop.f32.mrb[48].mxu1 }
 0x17a   : > { %v4910_v20 = vpop.f32.mrb[49].mxu1 }
 0x17b   : > { %v4911_v32 = vadd.f32 %v4910_v20, %v4909_v3  ;;  %v4912_v2 = vpop.f32.mrb[50].mxu1 }
 0x17c   : > { %v4913_v29 = vpop.f32.mrb[51].mxu1  ;;  %v5027_v13 = vpop.f32.mrb[52].mxu0 }
 0x17d   : > { %v1662_v14 = vadd.f32 %v4911_v32, %v6614_v48  ;;  %v4914_v42 = vadd.f32 %v4913_v29, %v4912_v2  ;;  %v5028_v19 = vpop.f32.mrb[53].mxu0 }
 0x17e   : > { %v5029_v60 = vadd.f32 %v5028_v19, %v5027_v13  ;;  %v5030_v8 = vpop.f32.mrb[54].mxu0 }
 0x17f   : > { %v1665_v21 = vadd.f32 %v4914_v42, %v6630_v51  ;;  %v6937_v4 = vadd.f32 %v5023_v37, %v1662_v14  ;;  %v5031_v25 = vpop.f32.mrb[55].mxu0 }
 0x180   : > { %v5032_v26 = vadd.f32 %v5031_v25, %v5030_v8 }
 0x181   : > { %v6939_v46 = vadd.f32 %v5026_v0, %v1665_v21  ;;  %v4915_v31 = vpop.f32.mrb[52].mxu1 }
 0x182   : > { %v4916_v28 = vpop.f32.mrb[53].mxu1 }
 0x183   : > { %v4917_v38 = vadd.f32 %v4916_v28, %v4915_v31  ;;  %v4918_v1 = vpop.f32.mrb[54].mxu1 }
 0x184   : > { %v4919_v45 = vpop.f32.mrb[55].mxu1  ;;  %v5033_v56 = vpop.f32.mrb[56].mxu0 }
 0x185   : > { %v1670_v48 = vadd.f32 %v6610_v43, %v4917_v38  ;;  %v4920_v27 = vadd.f32 %v4919_v45, %v4918_v1  ;;  %v5034_v11 = vpop.f32.mrb[57].mxu0 }
 0x186   : > { %v5035_v24 = vadd.f32 %v5034_v11, %v5033_v56  ;;  %v5036_v36 = vpop.f32.mrb[58].mxu0 }
 0x187   : > { %v1673_v51 = vadd.f32 %v6616_v44, %v4920_v27  ;;  %v6943_v16 = vadd.f32 %v5029_v60, %v1670_v48  ;;  %v5037_v47 = vpop.f32.mrb[59].mxu0 }
 0x188   : > { %v5038_v37 = vadd.f32 %v5037_v47, %v5036_v36 }
 0x189   : > { %v6945_v58 = vadd.f32 %v5032_v26, %v1673_v51  ;;  %v4921_v62 = vpop.f32.mrb[56].mxu1 }
 0x18a   : > { %v4922_v0 = vpop.f32.mrb[57].mxu1 }
 0x18b   : > { %v4923_v3 = vadd.f32 %v4922_v0, %v4921_v62  ;;  %v4924_v20 = vpop.f32.mrb[58].mxu1 }
 0x18c   : > { %v4925_v32 = vpop.f32.mrb[59].mxu1  ;;  %v5039_v2 = vpop.f32.mrb[60].mxu0 }
 0x18d   : > { %v1678_v43 = vadd.f32 %v4923_v3, %v6688_v17  ;;  %v4926_v29 = vadd.f32 %v4925_v32, %v4924_v20  ;;  %v5040_v13 = vpop.f32.mrb[61].mxu0 }
 0x18e   : > { %v5041_v14 = vadd.f32 %v5040_v13, %v5039_v2  ;;  %v5042_v42 = vpop.f32.mrb[62].mxu0 }
 0x18f   : > { %v1681_v44 = vadd.f32 %v4926_v29, %v6695_v33  ;;  %v6949_v19 = vadd.f32 %v5035_v24, %v1678_v43  ;;  %v5043_v60 = vpop.f32.mrb[63].mxu0 }
 0x190   : > { %v5044_v8 = vadd.f32 %v5043_v60, %v5042_v42 }
 0x191   : > { %v6951_v21 = vadd.f32 %v5038_v37, %v1681_v44  ;;  %v4927_v25 = vpop.f32.mrb[60].mxu1 }
 0x192   : > { %v4928_v26 = vpop.f32.mrb[61].mxu1 }
 0x193   : > { %v4929_v31 = vadd.f32 %v4928_v26, %v4927_v25  ;;  %v4930_v28 = vpop.f32.mrb[62].mxu1 }
 0x194   : > { %v4931_v38 = vpop.f32.mrb[63].mxu1  ;;  %v5045_v1 = vpop.f32.mrb[64].mxu0 }
 0x195   : > { %v1686_v17 = vadd.f32 %v6686_v12, %v4929_v31  ;;  %v4932_v45 = vadd.f32 %v4931_v38, %v4930_v28  ;;  %v5046_v56 = vpop.f32.mrb[65].mxu0 }
 0x196   : > { %v5047_v48 = vadd.f32 %v5046_v56, %v5045_v1  ;;  %v5048_v27 = vpop.f32.mrb[66].mxu0 }
 0x197   : > { %v1689_v33 = vadd.f32 %v6691_v18, %v4932_v45  ;;  %v6955_v11 = vadd.f32 %v5041_v14, %v1686_v17  ;;  %v5049_v24 = vpop.f32.mrb[67].mxu0 }
 0x198   : > { %v5050_v36 = vadd.f32 %v5049_v24, %v5048_v27 }
 0x199   : > { %v6957_v51 = vadd.f32 %v5044_v8, %v1689_v33  ;;  %v4933_v47 = vpop.f32.mrb[64].mxu1 }
 0x19a   : > { %v4934_v37 = vpop.f32.mrb[65].mxu1 }
 0x19b   : > { %v4935_v62 = vadd.f32 %v4934_v37, %v4933_v47  ;;  %v4936_v0 = vpop.f32.mrb[66].mxu1 }
 0x19c   : > { %v4937_v3 = vpop.f32.mrb[67].mxu1  ;;  %v5051_v20 = vpop.f32.mrb[68].mxu0 }
 0x19d   : > { %v1694_v12 = vadd.f32 %v4935_v62, %v6752_v40  ;;  %v4938_v32 = vadd.f32 %v4937_v3, %v4936_v0  ;;  %v5052_v2 = vpop.f32.mrb[69].mxu0 }
 0x19e   : > { %v5053_v43 = vadd.f32 %v5052_v2, %v5051_v20  ;;  %v5054_v29 = vpop.f32.mrb[70].mxu0 }
 0x19f   : > { %v1697_v18 = vadd.f32 %v4938_v32, %v6768_v53  ;;  %v6961_v13 = vadd.f32 %v5047_v48, %v1694_v12  ;;  %v5055_v14 = vpop.f32.mrb[71].mxu0 }
 0x1a0   : > { %v5056_v42 = vadd.f32 %v5055_v14, %v5054_v29 }
 0x1a1   : > { %v6963_v44 = vadd.f32 %v5050_v36, %v1697_v18  ;;  %v4939_v60 = vpop.f32.mrb[68].mxu1 }
 0x1a2   : > { %v4940_v8 = vpop.f32.mrb[69].mxu1 }
 0x1a3   : > { %v4941_v25 = vadd.f32 %v4940_v8, %v4939_v60  ;;  %v4942_v26 = vpop.f32.mrb[70].mxu1 }
 0x1a4   : > { %v4943_v31 = vpop.f32.mrb[71].mxu1  ;;  %v5057_v28 = vpop.f32.mrb[72].mxu0 }
 0x1a5   : > { %v1702_v40 = vadd.f32 %v6746_v50, %v4941_v25  ;;  %v4944_v38 = vadd.f32 %v4943_v31, %v4942_v26  ;;  %v5058_v1 = vpop.f32.mrb[73].mxu0 }
 0x1a6   : > { %v5059_v17 = vadd.f32 %v5058_v1, %v5057_v28  ;;  %v5060_v45 = vpop.f32.mrb[74].mxu0 }
 0x1a7   : > { %v1705_v53 = vadd.f32 %v6762_v15, %v4944_v38  ;;  %v6967_v56 = vadd.f32 %v5053_v43, %v1702_v40  ;;  %v5061_v48 = vpop.f32.mrb[75].mxu0 }
 0x1a8   : > { %v5062_v27 = vadd.f32 %v5061_v48, %v5060_v45 }
 0x1a9   : > { %v6969_v33 = vadd.f32 %v5056_v42, %v1705_v53  ;;  %v4945_v24 = vpop.f32.mrb[72].mxu1 }
 0x1aa   : > { %v4946_v36 = vpop.f32.mrb[73].mxu1 }
 0x1ab   : > { %v4947_v47 = vadd.f32 %v4946_v36, %v4945_v24  ;;  %v4948_v37 = vpop.f32.mrb[74].mxu1 }
 0x1ac   : > { %v4949_v62 = vpop.f32.mrb[75].mxu1  ;;  %v5063_v0 = vpop.f32.mrb[76].mxu0 }
 0x1ad   : > { %v1710_v50 = vadd.f32 %v4947_v47, %v6827_v30  ;;  %v4950_v3 = vadd.f32 %v4949_v62, %v4948_v37  ;;  %v5064_v20 = vpop.f32.mrb[77].mxu0 }
 0x1ae   : > { %v5065_v12 = vadd.f32 %v5064_v20, %v5063_v0  ;;  %v5066_v32 = vpop.f32.mrb[78].mxu0 }
 0x1af   : > { %v1713_v15 = vadd.f32 %v4950_v3, %v6840_v7  ;;  %v6973_v2 = vadd.f32 %v5059_v17, %v1710_v50  ;;  %v5067_v43 = vpop.f32.mrb[79].mxu0 }
 0x1b0   : > { %v5068_v29 = vadd.f32 %v5067_v43, %v5066_v32 }
 0x1b1   : > { %v6975_v18 = vadd.f32 %v5062_v27, %v1713_v15  ;;  %v4951_v14 = vpop.f32.mrb[76].mxu1 }
 0x1b2   : > { %v4952_v42 = vpop.f32.mrb[77].mxu1 }
 0x1b3   : > { %v4953_v60 = vadd.f32 %v4952_v42, %v4951_v14  ;;  %v4954_v8 = vpop.f32.mrb[78].mxu1 }
 0x1b4   : > { %v4955_v25 = vpop.f32.mrb[79].mxu1 }
 0x1b5   : > { %v1718_v26 = vadd.f32 %v6822_v5, %v4953_v60  ;;  %v4956_v30 = vadd.f32 %v4955_v25, %v4954_v8 }
 0x1b7   : > { %v1721_v31 = vadd.f32 %v6831_v52, %v4956_v30  ;;  %v6979_v28 = vadd.f32 %v5065_v12, %v1718_v26 }
 0x1b9   : > { %v6981_v40 = vadd.f32 %v5068_v29, %v1721_v31  ;;  %v5109_v7 = vpop.f32.mrb[80].mxu1 }
 0x1ba   : > { %v5110_v38 = vpop.f32.mrb[81].mxu1 }
 0x1bb   : > { %v5111_v1 = vadd.f32 %v5110_v38, %v5109_v7  ;;  %v5112_v17 = vpop.f32.mrb[82].mxu1 }
 0x1bc   : > { %v5113_v45 = vpop.f32.mrb[83].mxu1 }
 0x1bd   : > { %v5114_v53 = vadd.f32 %v5113_v45, %v5112_v17  ;;  %v5393_v48 = vadd.f32 %v6862_v23, %v5111_v1 }
 0x1bf   : > { %v6985_v27 = vadd.f32 %v6869_v22, %v5114_v53 }
 0x1c1   : > { %v5115_v24 = vpop.f32.mrb[84].mxu1 }
 0x1c2   : > { %v5116_v5 = vpop.f32.mrb[85].mxu1 }
 0x1c3   : > { %v5117_v36 = vadd.f32 %v5116_v5, %v5115_v24  ;;  %v5118_v47 = vpop.f32.mrb[86].mxu1 }
 0x1c4   : > { %v5119_v52 = vpop.f32.mrb[87].mxu1 }
 0x1c5   : > { %v5120_v37 = vadd.f32 %v5119_v52, %v5118_v47  ;;  %v5390_v62 = vadd.f32 %v6887_v57, %v5117_v36 }
 0x1c7   : > { %v5396_v0 = vadd.f32 %v6890_v54, %v5120_v37 }
 0x1c9   : > { %v5121_v50 = vpop.f32.mrb[88].mxu1 }
 0x1ca   : > { %v5122_v3 = vpop.f32.mrb[89].mxu1 }
 0x1cb   : > { %v5123_v20 = vadd.f32 %v5122_v3, %v5121_v50  ;;  %v5124_v12 = vpop.f32.mrb[90].mxu1 }
 0x1cc   : > { %v5125_v32 = vpop.f32.mrb[91].mxu1 }
 0x1cd   : > { %v5126_v15 = vadd.f32 %v5125_v32, %v5124_v12  ;;  %v6990_v23 = vadd.f32 %v6904_v10, %v5123_v20 }
 0x1cf   : > { %v6993_v22 = vadd.f32 %v6906_v41, %v5126_v15 }
 0x1d1   : > { %v5127_v43 = vpop.f32.mrb[92].mxu1 }
 0x1d2   : > { %v5128_v29 = vpop.f32.mrb[93].mxu1 }
 0x1d3   : > { %v5129_v14 = vadd.f32 %v5128_v29, %v5127_v43  ;;  %v5130_v42 = vpop.f32.mrb[94].mxu1 }
 0x1d4   : > { %v5131_v60 = vpop.f32.mrb[95].mxu1 }
 0x1d5   : > { %v5132_v57 = vadd.f32 %v5131_v60, %v5130_v42  ;;  %v5402_v54 = vadd.f32 %v6914_v34, %v5129_v14 }
 0x1d7   : > { %v6997_v8 = vadd.f32 %v6916_v39, %v5132_v57 }
 0x1d9   : > { %v5133_v25 = vpop.f32.mrb[96].mxu1 }
 0x1da   : > { %v5134_v26 = vpop.f32.mrb[97].mxu1 }
 0x1db   : > { %v5135_v30 = vadd.f32 %v5134_v26, %v5133_v25  ;;  %v5136_v31 = vpop.f32.mrb[98].mxu1 }
 0x1dc   : > { %v5137_v10 = vpop.f32.mrb[99].mxu1 }
 0x1dd   : > { %v5138_v7 = vadd.f32 %v5137_v10, %v5136_v31  ;;  %v7000_v41 = vadd.f32 %v6919_v49, %v5135_v30 }
 0x1df   : > { %v7003_v38 = vadd.f32 %v6921_v6, %v5138_v7 }
 0x1e1   : > { %v5139_v1 = vpop.f32.mrb[100].mxu1 }
 0x1e2   : > { %v5140_v17 = vpop.f32.mrb[101].mxu1 }
 0x1e3   : > { %v5141_v45 = vadd.f32 %v5140_v17, %v5139_v1  ;;  %v5142_v53 = vpop.f32.mrb[102].mxu1 }
 0x1e4   : > { %v5143_v34 = vpop.f32.mrb[103].mxu1 }
 0x1e5   : > { %v5144_v24 = vadd.f32 %v5143_v34, %v5142_v53  ;;  %v7006_v39 = vadd.f32 %v6923_v9, %v5141_v45 }
 0x1e7   : > { %v7009_v5 = vadd.f32 %v6925_v61, %v5144_v24  ;;  %v7020_v61 = vld [vmem:[%s7139_s2] ss:$0 sm:$0xff] }
 0x1e9   : > { %v5145_v36 = vpop.f32.mrb[104].mxu1 }
 0x1ea   : > { %v5146_v47 = vpop.f32.mrb[105].mxu1 }
 0x1eb   : > { %v5147_v52 = vadd.f32 %v5146_v47, %v5145_v36  ;;  %v5148_v49 = vpop.f32.mrb[106].mxu1 }
 0x1ec   : > { %v5149_v37 = vpop.f32.mrb[107].mxu1 }
 0x1ed   : > { %v5150_v50 = vadd.f32 %v5149_v37, %v5148_v49  ;;  %v7012_v6 = vadd.f32 %v6927_v59, %v5147_v52 }
 0x1ef   : > { %v7015_v3 = vadd.f32 %v6929_v55, %v5150_v50 }
 0x1f1   : > { %v5151_v20 = vpop.f32.mrb[108].mxu1 }
 0x1f2   : > { %v5152_v12 = vpop.f32.mrb[109].mxu1 }
 0x1f3   : > { %v5153_v32 = vadd.f32 %v5152_v12, %v5151_v20  ;;  %v5154_v9 = vpop.f32.mrb[110].mxu1 }
 0x1f4   : > { %v5155_v15 = vpop.f32.mrb[111].mxu1  ;;  %v5343_v43 = vpop.f32.mrb[0].mxu0 }
 0x1f5   : > { %v5156_v29 = vadd.f32 %v5155_v15, %v5154_v9  ;;  %v5391_v14 = vadd.f32 %v5390_v62, %v5343_v43  ;;  %v3749_v42 = vpop.f32.mrb[1].mxu0  ;;  %v7023_v59 = vadd.f32 %v6931_v63, %v5153_v32 }
 0x1f6   : > { %v5394_v60 = vadd.f32 %v5393_v48, %v3749_v42  ;;  %v5344_v55 = vpop.f32.mrb[2].mxu0 }
 0x1f7   : > { %v3917_v57 = vadd.f32 %v5391_v14, %v7020_v61  ;;  %v5397_v25 = vadd.f32 %v5396_v0, %v5344_v55  ;;  %v3752_v26 = vpop.f32.mrb[3].mxu0  ;;  %v7027_v30 = vadd.f32 %v6933_v35, %v5156_v29 }
 0x1f8   : > { %v3915_v31 = vadd.f32 %v5394_v60, %v7020_v61  ;;  %v5400_v10 = vadd.f32 %v6985_v27, %v3752_v26 }
 0x1f9   : > { %v5157_v7 = vpop.f32.mrb[112].mxu1  ;;  %v3949_v1 = vsub.f32 0.0, %v3917_v57  ;;  %v3918_v62 = vadd.f32 %v5397_v25, %v7020_v61 }
 0x1fa   : > { %v5158_v17 = vpop.f32.mrb[113].mxu1  ;;  %v3947_v63 = vsub.f32 0.0, %v3915_v31  ;;  %v3916_v48 = vadd.f32 %v5400_v10, %v7020_v61 }
 0x1fb   : > { %v3983_v45 = vmul.f32 1.442695, %v3949_v1  ;;  %v5159_v53 = vadd.f32 %v5158_v17, %v5157_v7  ;;  %v5160_v34 = vpop.f32.mrb[114].mxu1  ;;  %v3950_v0 = vsub.f32 0.0, %v3918_v62 }
 0x1fc   : > { %v3979_v24 = vmul.f32 1.442695, %v3947_v63  ;;  %v5161_v36 = vpop.f32.mrb[115].mxu1  ;;  %v3948_v35 = vsub.f32 0.0, %v3916_v48  ;;  %v5347_v47 = vpop.f32.mrb[4].mxu0 }
 0x1fd   : > { %5769 = vpow2.f32 %v3983_v45  ;;  %v3985_v52 = vmul.f32 1.442695, %v3950_v0  ;;  %v5162_v49 = vadd.f32 %v5161_v36, %v5160_v34  ;;  %v5403_v27 = vadd.f32 %v5402_v54, %v5347_v47  ;;  %v3765_v37 = vpop.f32.mrb[5].mxu0 }
 0x1fe   : > { %5771 = vpow2.f32 %v3979_v24  ;;  %v3981_v50 = vmul.f32 1.442695, %v3948_v35  ;;  %v5406_v20 = vadd.f32 %v6990_v23, %v3765_v37  ;;  %v5348_v12 = vpop.f32.mrb[6].mxu0  ;;  %v7035_v32 = vadd.f32 %v5159_v53, %v6937_v4 }
 0x1ff   : > { %5773 = vpow2.f32 %v3985_v52  ;;  %v3921_v9 = vadd.f32 %v5403_v27, %v7020_v61  ;;  %v5409_v15 = vadd.f32 %v6997_v8, %v5348_v12  ;;  %v3768_v43 = vpop.f32.mrb[7].mxu0  ;;  %v7040_v29 = vadd.f32 %v5162_v49, %v6939_v46 }
 0x200   : > { %5775 = vpow2.f32 %v3981_v50  ;;  %v3919_v54 = vadd.f32 %v5406_v20, %v7020_v61  ;;  %v5412_v14 = vadd.f32 %v6993_v22, %v3768_v43 }
 0x201   : > { %v5163_v42 = vpop.f32.mrb[116].mxu1  ;;  %v3953_v23 = vsub.f32 0.0, %v3921_v9  ;;  %v3922_v60 = vadd.f32 %v5409_v15, %v7020_v61 }
 0x202   : > { %v5164_v4 = vpop.f32.mrb[117].mxu1  ;;  %v3951_v55 = vsub.f32 0.0, %v3919_v54  ;;  %v3920_v57 = vadd.f32 %v5412_v14, %v7020_v61 }
 0x203   : > { %v3991_v25 = vmul.f32 1.442695, %v3953_v23  ;;  %v5165_v26 = vadd.f32 %v5164_v4, %v5163_v42  ;;  %v5166_v8 = vpop.f32.mrb[118].mxu1  ;;  %v3954_v31 = vsub.f32 0.0, %v3922_v60 }
 0x204   : > { %v3987_v10 = vmul.f32 1.442695, %v3951_v55  ;;  %v5167_v46 = vpop.f32.mrb[119].mxu1  ;;  %v3952_v7 = vsub.f32 0.0, %v3920_v57  ;;  %v5351_v1 = vpop.f32.mrb[8].mxu0 }
 0x205   : > { %5777 = vpow2.f32 %v3991_v25  ;;  %v3993_v62 = vmul.f32 1.442695, %v3954_v31  ;;  %v5168_v17 = vadd.f32 %v5167_v46, %v5166_v8  ;;  %v5415_v22 = vadd.f32 %v7006_v39, %v5351_v1  ;;  %v3781_v63 = vpop.f32.mrb[9].mxu0 }
 0x206   : > { %5779 = vpow2.f32 %v3987_v10  ;;  %v3989_v48 = vmul.f32 1.442695, %v3952_v7  ;;  %v5418_v45 = vadd.f32 %v7000_v41, %v3781_v63  ;;  %v5352_v53 = vpop.f32.mrb[10].mxu0  ;;  %v7049_v34 = vadd.f32 %v5165_v26, %v6943_v16 }
 0x207   : > { %v5770_v0 = vpop.eup %5769  ;;  %5781 = vpow2.f32 %v3993_v62  ;;  %v3925_v24 = vadd.f32 %v5415_v22, %v7020_v61  ;;  %v5421_v36 = vadd.f32 %v7009_v5, %v5352_v53  ;;  %v3784_v35 = vpop.f32.mrb[11].mxu0  ;;  %v7054_v47 = vadd.f32 %v5168_v17, %v6945_v58 }
 0x208   : > { %v5772_v39 = vpop.eup %5771  ;;  %v4045_v52 = vadd.f32 1.0, %v5770_v0  ;;  %5783 = vpow2.f32 %v3989_v48  ;;  %v3923_v49 = vadd.f32 %v5418_v45, %v7020_v61  ;;  %v5424_v41 = vadd.f32 %v7003_v38, %v3784_v35 }
 0x209   : > { %v5774_v27 = vpop.eup %5773  ;;  %v4043_v16 = vadd.f32 1.0, %v5772_v39  ;;  %v5169_v37 = vpop.f32.mrb[120].mxu1  ;;  %v3957_v50 = vsub.f32 0.0, %v3925_v24  ;;  %v3926_v20 = vadd.f32 %v5421_v36, %v7020_v61 }
 0x20a   : > { %v5776_v12 = vpop.eup %5775  ;;  %5785 = vrcp.f32 %v4045_v52  ;;  %v4046_v5 = vadd.f32 1.0, %v5774_v27  ;;  %v5170_v9 = vpop.f32.mrb[121].mxu1  ;;  %v3955_v15 = vsub.f32 0.0, %v3923_v49  ;;  %v3924_v58 = vadd.f32 %v5424_v41, %v7020_v61 }
 0x20b   : > { %5787 = vrcp.f32 %v4043_v16  ;;  %v4044_v43 = vadd.f32 1.0, %v5776_v12  ;;  %v3999_v54 = vmul.f32 1.442695, %v3957_v50  ;;  %v5171_v14 = vadd.f32 %v5170_v9, %v5169_v37  ;;  %v5172_v42 = vpop.f32.mrb[122].mxu1 }
 0x20c   : > { %5789 = vrcp.f32 %v4046_v5  ;;  %v3995_v38 = vmul.f32 1.442695, %v3955_v15  ;;  %v3958_v23 = vsub.f32 0.0, %v3926_v20  ;;  %v5173_v60 = vpop.f32.mrb[123].mxu1  ;;  %v3956_v4 = vsub.f32 0.0, %v3924_v58  ;;  %v5355_v55 = vpop.f32.mrb[12].mxu0 }
 0x20d   : > { %5791 = vrcp.f32 %v4044_v43  ;;  %v5174_v57 = vadd.f32 %v5173_v60, %v5172_v42  ;;  %v5427_v25 = vadd.f32 %v7023_v59, %v5355_v55  ;;  %v3797_v26 = vpop.f32.mrb[13].mxu0  ;;  %v7062_v8 = vadd.f32 %v5171_v14, %v6949_v19 }
 0x20e   : > { %5793 = vpow2.f32 %v3999_v54  ;;  %v4001_v31 = vmul.f32 1.442695, %v3958_v23  ;;  %v3997_v10 = vmul.f32 1.442695, %v3956_v4  ;;  %v5430_v46 = vadd.f32 %v7012_v6, %v3797_v26  ;;  %v5356_v7 = vpop.f32.mrb[14].mxu0 }
 0x20f   : > { %v5778_v1 = vpop.eup %5777  ;;  %5795 = vpow2.f32 %v3995_v38  ;;  %v3929_v62 = vadd.f32 %v5427_v25, %v7020_v61  ;;  %v5433_v17 = vadd.f32 %v7027_v30, %v5356_v7  ;;  %v3800_v22 = vpop.f32.mrb[15].mxu0  ;;  %v7068_v63 = vadd.f32 %v5174_v57, %v6951_v21 }
 0x210   : > { %v5780_v59 = vpop.eup %5779  ;;  %v4049_v48 = vadd.f32 1.0, %v5778_v1  ;;  %5797 = vpow2.f32 %v4001_v31  ;;  %v3927_v19 = vadd.f32 %v5430_v46, %v7020_v61  ;;  %v5436_v45 = vadd.f32 %v7015_v3, %v3800_v22 }
 0x211   : > { %v5782_v6 = vpop.eup %5781  ;;  %v4047_v53 = vadd.f32 1.0, %v5780_v59  ;;  %5799 = vpow2.f32 %v3997_v10  ;;  %v5175_v0 = vpop.f32.mrb[124].mxu1  ;;  %v3961_v24 = vsub.f32 0.0, %v3929_v62  ;;  %v3930_v36 = vadd.f32 %v5433_v17, %v7020_v61 }
 0x212   : > { %v5784_v30 = vpop.eup %5783  ;;  %5801 = vrcp.f32 %v4049_v48  ;;  %v4050_v35 = vadd.f32 1.0, %v5782_v6  ;;  %v5176_v21 = vpop.f32.mrb[125].mxu1  ;;  %v3959_v39 = vsub.f32 0.0, %v3927_v19  ;;  %v3928_v52 = vadd.f32 %v5436_v45, %v7020_v61 }
 0x213   : > { %5803 = vrcp.f32 %v4047_v53  ;;  %v4048_v49 = vadd.f32 1.0, %v5784_v30  ;;  %v4007_v41 = vmul.f32 1.442695, %v3961_v24  ;;  %v5177_v27 = vadd.f32 %v5176_v21, %v5175_v0  ;;  %v5178_v3 = vpop.f32.mrb[126].mxu1 }
 0x214   : > { %v5786_v16 = vpop.eup %5785  ;;  %5805 = vrcp.f32 %v4050_v35  ;;  %v4003_v37 = vmul.f32 1.442695, %v3959_v39  ;;  %v3962_v50 = vsub.f32 0.0, %v3930_v36  ;;  %v5179_v20 = vpop.f32.mrb[127].mxu1  ;;  %v3960_v12 = vsub.f32 0.0, %v3928_v52 }
 0x215   : > { %v5359_v5 = vpop.f32.mrb[80].mxu0  ;;  %v5788_v9 = vpop.eup %5787  ;;  %5807 = vrcp.f32 %v4048_v49  ;;  %v5180_v15 = vadd.f32 %v5179_v20, %v5178_v3  ;;  %v5455_v54 = vadd.f32 %v5177_v27, %v6955_v11 }
 0x216   : > { %v5440_v58 = vadd.f32 %v7049_v34, %v5359_v5  ;;  %v3813_v43 = vpop.f32.mrb[81].mxu0  ;;  %v5790_v14 = vpop.eup %5789  ;;  %5809 = vpow2.f32 %v4007_v41  ;;  %v4009_v42 = vmul.f32 1.442695, %v3962_v50  ;;  %v4005_v38 = vmul.f32 1.442695, %v3960_v12 }
 0x217   : > { %v5444_v23 = vadd.f32 %v7035_v32, %v3813_v43  ;;  %v5360_v60 = vpop.f32.mrb[82].mxu0  ;;  %v5792_v4 = vpop.eup %5791  ;;  %v4734_v55 = vpack.c.bf16 %v5790_v14, %v5786_v16  ;;  %5811 = vpow2.f32 %v4003_v37  ;;  %v5463_v19 = vadd.f32 %v5180_v15, %v6957_v51 }
 0x218   : > { %v3933_v34 = vadd.f32 %v5440_v58, %v7020_v61  ;;  %v5448_v11 = vadd.f32 %v7054_v47, %v5360_v60  ;;  %v3816_v57 = vpop.f32.mrb[83].mxu0  ;;  %v5794_v25 = vpop.eup %5793  ;;  %v4729_v26 = vpack.c.bf16 %v5792_v4, %v5788_v9  ;;  %5813 = vpow2.f32 %v4009_v42 }
 0x219   : > { %v3931_v31 = vadd.f32 %v5444_v23, %v7020_v61  ;;  %v5452_v10 = vadd.f32 %v7040_v29, %v3816_v57  ;;  %v5796_v46 = vpop.eup %5795  ;;  %4806 = vst [vmem:[%s7080_s8 + $0x8] sm:$0xff] %v4734_v55   ;;  %v4053_v32 = vadd.f32 1.0, %v5794_v25  ;;  %5815 = vpow2.f32 %v4005_v38  ;;  %v5181_v7 = vpop.f32.mrb[128].mxu1 }
 0x21a   : > { %v3965_v1 = vsub.f32 0.0, %v3933_v34  ;;  %v3934_v62 = vadd.f32 %v5448_v11, %v7020_v61  ;;  %v5798_v17 = vpop.eup %5797  ;;  %4730 = vst [vmem:[%s7080_s8] sm:$0xff] %v4729_v26   ;;  %v4051_v22 = vadd.f32 1.0, %v5796_v46  ;;  %v5182_v47 = vpop.f32.mrb[129].mxu1 }
 0x21b   : > { %v3963_v59 = vsub.f32 0.0, %v3931_v31  ;;  %v3932_v48 = vadd.f32 %v5452_v10, %v7020_v61  ;;  %v5800_v45 = vpop.eup %5799  ;;  %5817 = vrcp.f32 %v4053_v32  ;;  %v4054_v29 = vadd.f32 1.0, %v5798_v17  ;;  %v5184_v0 = vpop.f32.mrb[130].mxu1 }
 0x21c   : > { %v4015_v6 = vmul.f32 1.442695, %v3965_v1  ;;  %v5183_v53 = vadd.f32 %v5182_v47, %v5181_v7  ;;  %v5802_v24 = vpop.eup %5801  ;;  %5819 = vrcp.f32 %v4051_v22  ;;  %v4052_v36 = vadd.f32 1.0, %v5800_v45  ;;  %v5185_v21 = vpop.f32.mrb[131].mxu1 }
 0x21d   : > { %v4011_v30 = vmul.f32 1.442695, %v3963_v59  ;;  %v3966_v35 = vsub.f32 0.0, %v3934_v62  ;;  %v5363_v39 = vpop.f32.mrb[84].mxu0  ;;  %v5804_v52 = vpop.eup %5803  ;;  %5821 = vrcp.f32 %v4054_v29  ;;  %v5186_v49 = vadd.f32 %v5185_v21, %v5184_v0 }
 0x21e   : > { %v3964_v41 = vsub.f32 0.0, %v3932_v48  ;;  %v5456_v27 = vadd.f32 %v5455_v54, %v5363_v39  ;;  %v3829_v3 = vpop.f32.mrb[85].mxu0  ;;  %v5806_v51 = vpop.eup %5805  ;;  %5823 = vrcp.f32 %v4052_v36  ;;  %v5475_v20 = vadd.f32 %v5183_v53, %v6961_v13 }
 0x21f   : > { %v4017_v16 = vmul.f32 1.442695, %v3966_v35  ;;  %v5460_v37 = vadd.f32 %v7062_v8, %v3829_v3  ;;  %v5364_v50 = vpop.f32.mrb[86].mxu0  ;;  %v5808_v12 = vpop.eup %5807  ;;  %v4744_v5 = vpack.c.bf16 %v5806_v51, %v5802_v24  ;;  %5825 = vpow2.f32 %v4015_v6 }
 0x220   : > { %v4013_v9 = vmul.f32 1.442695, %v3964_v41  ;;  %v3937_v15 = vadd.f32 %v5456_v27, %v7020_v61  ;;  %v3832_v58 = vpop.f32.mrb[87].mxu0  ;;  %v5810_v43 = vpop.eup %5809  ;;  %v4739_v54 = vpack.c.bf16 %v5808_v12, %v5804_v52  ;;  %5827 = vpow2.f32 %v4011_v30 }
 0x221   : > { %v3935_v14 = vadd.f32 %v5460_v37, %v7020_v61  ;;  %v5464_v42 = vadd.f32 %v5463_v19, %v5364_v50  ;;  %v5812_v38 = vpop.eup %5811  ;;  %4808 = vst [vmem:[%s7080_s8 + $0x18] sm:$0xff] %v4744_v5   ;;  %v4057_v8 = vadd.f32 1.0, %v5810_v43  ;;  %5829 = vpow2.f32 %v4017_v16  ;;  %v5187_v23 = vpop.f32.mrb[132].mxu1 }
 0x222   : > { %v3969_v13 = vsub.f32 0.0, %v3937_v15  ;;  %v5468_v60 = vadd.f32 %v7068_v63, %v3832_v58  ;;  %v5814_v4 = vpop.eup %5813  ;;  %4807 = vst [vmem:[%s7080_s8 + $0x10] sm:$0xff] %v4739_v54   ;;  %v4055_v55 = vadd.f32 1.0, %v5812_v38  ;;  %5831 = vpow2.f32 %v4013_v9  ;;  %v5188_v34 = vpop.f32.mrb[133].mxu1 }
 0x223   : > { %v3967_v11 = vsub.f32 0.0, %v3935_v14  ;;  %v3938_v57 = vadd.f32 %v5464_v42, %v7020_v61  ;;  %v5816_v25 = vpop.eup %5815  ;;  %5833 = vrcp.f32 %v4057_v8  ;;  %v4058_v26 = vadd.f32 1.0, %v5814_v4  ;;  %v5190_v46 = vpop.f32.mrb[134].mxu1 }
 0x224   : > { %v4023_v31 = vmul.f32 1.442695, %v3969_v13  ;;  %v5189_v10 = vadd.f32 %v5188_v34, %v5187_v23  ;;  %5835 = vrcp.f32 %v4055_v55  ;;  %v4056_v32 = vadd.f32 1.0, %v5816_v25  ;;  %v5191_v62 = vpop.f32.mrb[135].mxu1  ;;  %v5367_v63 = vpop.f32.mrb[88].mxu0 }
 0x225   : > { %v4019_v7 = vmul.f32 1.442695, %v3967_v11  ;;  %v3970_v1 = vsub.f32 0.0, %v3938_v57  ;;  %v5818_v17 = vpop.eup %5817  ;;  %5837 = vrcp.f32 %v4058_v26  ;;  %v5192_v22 = vadd.f32 %v5191_v62, %v5190_v46  ;;  %v3845_v48 = vpop.f32.mrb[89].mxu0 }
 0x226   : > { %v3936_v47 = vadd.f32 %v5468_v60, %v7020_v61  ;;  %v5471_v59 = vadd.f32 %v5189_v10, %v6967_v56  ;;  %v5820_v19 = vpop.eup %5819  ;;  %5839 = vrcp.f32 %v4056_v32  ;;  %v5476_v29 = vadd.f32 %v5475_v20, %v3845_v48  ;;  %v5368_v6 = vpop.f32.mrb[90].mxu0 }
 0x227   : > { %v4025_v45 = vmul.f32 1.442695, %v3970_v1  ;;  %v5483_v53 = vadd.f32 %v5186_v49, %v6963_v44  ;;  %v5822_v0 = vpop.eup %5821  ;;  %5841 = vpow2.f32 %v4023_v31  ;;  %v5479_v30 = vadd.f32 %v5192_v22, %v6969_v33  ;;  %v3848_v35 = vpop.f32.mrb[91].mxu0 }
 0x228   : > { %v3968_v24 = vsub.f32 0.0, %v3936_v47  ;;  %v5472_v36 = vadd.f32 %v5471_v59, %v5367_v63  ;;  %v5824_v21 = vpop.eup %5823  ;;  %v4754_v39 = vpack.c.bf16 %v5822_v0, %v5818_v17  ;;  %5843 = vpow2.f32 %v4019_v7 }
 0x229   : > { %v3939_v56 = vadd.f32 %v5476_v29, %v7020_v61  ;;  %v5484_v52 = vadd.f32 %v5483_v53, %v3848_v35  ;;  %v5826_v41 = vpop.eup %5825  ;;  %v4749_v27 = vpack.c.bf16 %v5824_v21, %v5820_v19  ;;  %5845 = vpow2.f32 %v4025_v45  ;;  %v5193_v44 = vpop.f32.mrb[136].mxu1 }
 0x22a   : > { %v4021_v3 = vmul.f32 1.442695, %v3968_v24  ;;  %v3941_v49 = vadd.f32 %v5472_v36, %v7020_v61  ;;  %v5828_v51 = vpop.eup %5827  ;;  %4810 = vst [vmem:[%s7080_s8 + $0x28] sm:$0xff] %v4754_v39   ;;  %v4061_v16 = vadd.f32 1.0, %v5826_v41  ;;  %v5194_v37 = vpop.f32.mrb[137].mxu1  ;;  %v5480_v50 = vadd.f32 %v5479_v30, %v5368_v6 }
 0x22b   : > { %v3971_v33 = vsub.f32 0.0, %v3939_v56  ;;  %v3940_v20 = vadd.f32 %v5484_v52, %v7020_v61  ;;  %v5830_v12 = vpop.eup %5829  ;;  %4809 = vst [vmem:[%s7080_s8 + $0x20] sm:$0xff] %v4749_v27   ;;  %v4059_v5 = vadd.f32 1.0, %v5828_v51  ;;  %v5195_v15 = vadd.f32 %v5194_v37, %v5193_v44  ;;  %v5196_v58 = vpop.f32.mrb[138].mxu1 }
 0x22c   : > { %5847 = vpow2.f32 %v4021_v3  ;;  %v3973_v9 = vsub.f32 0.0, %v3941_v49  ;;  %v5832_v43 = vpop.eup %5831  ;;  %v4062_v54 = vadd.f32 1.0, %v5830_v12  ;;  %v3942_v42 = vadd.f32 %v5480_v50, %v7020_v61  ;;  %v5197_v38 = vpop.f32.mrb[139].mxu1 }
 0x22d   : > { %5849 = vrcp.f32 %v4061_v16  ;;  %v4027_v14 = vmul.f32 1.442695, %v3971_v33  ;;  %v5371_v8 = vpop.f32.mrb[92].mxu0  ;;  %v5834_v23 = vpop.eup %5833  ;;  %v4060_v13 = vadd.f32 1.0, %v5832_v43  ;;  %v5198_v4 = vadd.f32 %v5197_v38, %v5196_v58 }
 0x22e   : > { %5851 = vrcp.f32 %v4059_v5  ;;  %v4031_v60 = vmul.f32 1.442695, %v3973_v9  ;;  %v3861_v55 = vpop.f32.mrb[93].mxu0  ;;  %v5836_v34 = vpop.eup %5835  ;;  %v3974_v11 = vsub.f32 0.0, %v3942_v42  ;;  %v3972_v57 = vsub.f32 0.0, %v3940_v20 }
 0x22f   : > { %5853 = vrcp.f32 %v4062_v54  ;;  %v5491_v25 = vadd.f32 %v5195_v15, %v6973_v2  ;;  %v5372_v26 = vpop.f32.mrb[94].mxu0  ;;  %v5838_v31 = vpop.eup %5837  ;;  %v5499_v46 = vadd.f32 %v5198_v4, %v6975_v18 }
 0x230   : > { %5855 = vrcp.f32 %v4060_v13  ;;  %v3864_v10 = vpop.f32.mrb[95].mxu0  ;;  %v5840_v32 = vpop.eup %5839  ;;  %v4764_v7 = vpack.c.bf16 %v5838_v31, %v5834_v23  ;;  %v4033_v1 = vmul.f32 1.442695, %v3974_v11  ;;  %v4029_v62 = vmul.f32 1.442695, %v3972_v57 }
 0x231   : > { %5857 = vpow2.f32 %v4031_v60  ;;  %v5842_v63 = vpop.eup %5841  ;;  %v4759_v17 = vpack.c.bf16 %v5840_v32, %v5836_v34  ;;  %v5199_v22 = vpop.f32.mrb[140].mxu1  ;;  %v5492_v47 = vadd.f32 %v5491_v25, %v3861_v55  ;;  %v5500_v59 = vadd.f32 %v5499_v46, %v3864_v10 }
 0x232   : > { %5859 = vpow2.f32 %v4027_v14  ;;  %v5844_v2 = vpop.eup %5843  ;;  %4812 = vst [vmem:[%s7080_s8 + $0x38] sm:$0xff] %v4764_v7   ;;  %v4065_v48 = vadd.f32 1.0, %v5842_v63  ;;  %v5200_v19 = vpop.f32.mrb[141].mxu1 }
 0x233   : > { %5861 = vpow2.f32 %v4033_v1  ;;  %v5846_v45 = vpop.eup %5845  ;;  %4811 = vst [vmem:[%s7080_s8 + $0x30] sm:$0xff] %v4759_v17   ;;  %v4063_v18 = vadd.f32 1.0, %v5844_v2  ;;  %v5201_v29 = vadd.f32 %v5200_v19, %v5199_v22  ;;  %v3943_v6 = vadd.f32 %v5492_v47, %v7020_v61  ;;  %v5202_v53 = vpop.f32.mrb[142].mxu1 }
 0x234   : > { %5863 = vpow2.f32 %v4029_v62  ;;  %v4066_v0 = vadd.f32 1.0, %v5846_v45  ;;  %v5203_v24 = vpop.f32.mrb[143].mxu1  ;;  %v3944_v36 = vadd.f32 %v5500_v59, %v7020_v61 }
 0x235   : > { %5865 = vrcp.f32 %v4065_v48  ;;  %v5487_v35 = vadd.f32 %v5201_v29, %v6979_v28  ;;  %v3975_v21 = vsub.f32 0.0, %v3943_v6  ;;  %v5204_v39 = vadd.f32 %v5203_v24, %v5202_v53 }
 0x236   : > { %v5848_v30 = vpop.eup %5847  ;;  %5867 = vrcp.f32 %v4066_v0  ;;  %v3976_v41 = vsub.f32 0.0, %v3944_v36 }
 0x237   : > { %v5850_v56 = vpop.eup %5849  ;;  %v4064_v52 = vadd.f32 1.0, %v5848_v30  ;;  %5869 = vrcp.f32 %v4063_v18  ;;  %v5488_v3 = vadd.f32 %v5487_v35, %v5371_v8  ;;  %v4035_v44 = vmul.f32 1.442695, %v3975_v21 }
 0x238   : > { %v5852_v27 = vpop.eup %5851  ;;  %v5495_v49 = vadd.f32 %v5204_v39, %v6981_v40  ;;  %v4037_v16 = vmul.f32 1.442695, %v3976_v41 }
 0x239   : > { %v5854_v51 = vpop.eup %5853  ;;  %5871 = vrcp.f32 %v4064_v52  ;;  %v3945_v28 = vadd.f32 %v5488_v3, %v7020_v61 }
 0x23a   : > { %v5856_v37 = vpop.eup %5855  ;;  %v4774_v33 = vpack.c.bf16 %v5854_v51, %v5850_v56  ;;  %5873 = vpow2.f32 %v4035_v44  ;;  %v5496_v50 = vadd.f32 %v5495_v49, %v5372_v26 }
 0x23b   : > { %v5858_v20 = vpop.eup %5857  ;;  %v4769_v12 = vpack.c.bf16 %v5856_v37, %v5852_v27  ;;  %5875 = vpow2.f32 %v4037_v16  ;;  %v3977_v15 = vsub.f32 0.0, %v3945_v28 }
 0x23c   : > { %v5860_v5 = vpop.eup %5859  ;;  %4814 = vst [vmem:[%s7080_s8 + $0x48] sm:$0xff] %v4774_v33   ;;  %v4069_v9 = vadd.f32 1.0, %v5858_v20  ;;  %v3946_v58 = vadd.f32 %v5496_v50, %v7020_v61 }
 0x23d   : > { %v5862_v40 = vpop.eup %5861  ;;  %4813 = vst [vmem:[%s7080_s8 + $0x40] sm:$0xff] %v4769_v12   ;;  %v4067_v43 = vadd.f32 1.0, %v5860_v5  ;;  %v4039_v42 = vmul.f32 1.442695, %v3977_v15 }
 0x23e   : > { %v5864_v54 = vpop.eup %5863  ;;  %5877 = vrcp.f32 %v4069_v9  ;;  %v4070_v14 = vadd.f32 1.0, %v5862_v40  ;;  %v3978_v38 = vsub.f32 0.0, %v3946_v58 }
 0x23f   : > { %5879 = vrcp.f32 %v4067_v43  ;;  %v4068_v8 = vadd.f32 1.0, %v5864_v54  ;;  %v5866_v23 = vpop.eup %5865 }
 0x240   : > { %5881 = vrcp.f32 %v4070_v14  ;;  %v4041_v13 = vmul.f32 1.442695, %v3978_v38  ;;  %v5868_v60 = vpop.eup %5867 }
 0x241   : > { %5883 = vrcp.f32 %v4068_v8  ;;  %v5870_v4 = vpop.eup %5869  ;;  %v4784_v55 = vpack.c.bf16 %v5868_v60, %v5866_v23 }
 0x242   : > { %5885 = vpow2.f32 %v4039_v42 }
 0x243   : > { %v5872_v61 = vpop.eup %5871  ;;  %5887 = vpow2.f32 %v4041_v13  ;;  %4816 = vst [vmem:[%s7080_s8 + $0x58] sm:$0xff] %v4784_v55  }
 0x244   : > { %v5874_v34 = vpop.eup %5873  ;;  %v4779_v11 = vpack.c.bf16 %v5872_v61, %v5870_v4 }
 0x245   : > { %v5876_v57 = vpop.eup %5875  ;;  %v4071_v25 = vadd.f32 1.0, %v5874_v34 }
 0x246   : > { %4815 = vst [vmem:[%s7080_s8 + $0x50] sm:$0xff] %v4779_v11   ;;  %v4072_v26 = vadd.f32 1.0, %v5876_v57 }
 0x247   : > { %5889 = vrcp.f32 %v4071_v25 }
 0x248   : > { %v5878_v31 = vpop.eup %5877  ;;  %5891 = vrcp.f32 %v4072_v26 }
 0x249   : > { %v5880_v10 = vpop.eup %5879 }
 0x24a   : > { %v5882_v46 = vpop.eup %5881 }
 0x24b   : > { %v5884_v32 = vpop.eup %5883  ;;  %v4794_v7 = vpack.c.bf16 %v5882_v46, %v5878_v31 }
 0x24c   : > { %v5886_v1 = vpop.eup %5885  ;;  %v4789_v62 = vpack.c.bf16 %v5884_v32, %v5880_v10 }
 0x24d   : > { %v5888_v63 = vpop.eup %5887  ;;  %4818 = vst [vmem:[%s7080_s8 + $0x68] sm:$0xff] %v4794_v7   ;;  %v4073_v17 = vadd.f32 1.0, %v5886_v1 }
 0x24e   : > { %4817 = vst [vmem:[%s7080_s8 + $0x60] sm:$0xff] %v4789_v62   ;;  %v4074_v22 = vadd.f32 1.0, %v5888_v63 }
 0x24f   : > { %5893 = vrcp.f32 %v4073_v17 }
 0x250   : > { %5895 = vrcp.f32 %v4074_v22 }
 0x251   : > { %v5890_v47 = vpop.eup %5889 }
 0x252   : > { %v5892_v59 = vpop.eup %5891 }
 0x253   : > { %v4799_v2 = vpack.c.bf16 %v5892_v59, %v5890_v47 }
 0x255   : > { %4819 = vst [vmem:[%s7080_s8 + $0x70] sm:$0xff] %v4799_v2  }
 0x259   : > { %v5894_v48 = vpop.eup %5893 }
 0x25a   : > { %v5896_v19 = vpop.eup %5895 }
 0x25b   : > { %v4804_v45 = vpack.c.bf16 %v5896_v19, %v5894_v48 }
 0x25d   : > { %4820 = vst [vmem:[%s7080_s8 + $0x78] sm:$0xff] %v4804_v45  }
 0x25e PF: > { %s13_s14 = sadd.s32 1, %s5926_s14   ;;  %s7143_s12 = smov %s5922_s13 }
 0x25f   : > { %p10_p5 = scmp.ge.s32.totalorder %s13_s14, 4   ;;  %s7144_s13 = smov %s7146_s15 }
 0x261   :  { %12 = sbr.rel (!%p10_p5) target bundleno = 2 (0x2), region = 64 }

// kernel: global_level_forward.6
= control target key start
LH: loop header
LB: loop body
LE: loop exit
PB: predicated region body
PF: predicated region fallthrough
CT: control target
= control target key end

     0   :  { %s7390_s12 = smov 0   ;;  %s7392_s13 = smov 0   ;;  %s9255_s0 = inlined_call_operand.vmem [shape: bf16[2,18,18,128], index: 0, kind: input, shape index: {}]   ;;  %s9256_s1 = inlined_call_operand.vmem [shape: bf16[1152,128], index: 1, kind: input, shape index: {}]   ;;  %s9257_s2 = inlined_call_operand.vmem [shape: f32[1,128], index: 2, kind: input, shape index: {}]   ;;  %s9258_s3 = inlined_call_operand.vmem [shape: bf16[2,256,128], index: 3, kind: output, shape index: {}]  }
   0x1   :  { %s7394_s14 = smov 0  }
   0x2 LB: > { %s25_s15 = sadd.s32 1, %s7364_s13  ;;  %p5460_p0 = scmp.ge.s32.totalorder %s7368_s14, 1  ;;  %s7368_s14 = sphi %s7394_s14, %s13_s14   ;;  %s7364_s13 = sphi %s7392_s13, %s9326_s13   ;;  %s7360_s12 = sphi %s7390_s12, %s9325_s12  }
   0x3   : > { %p27_p1 = scmp.ge.s32.totalorder %s25_s15, 2  ;;  %p151_p2 = scmp.lt.s32.totalorder %s7368_s14, 3 }
   0x5   : > { %s9328_s15 = smov (%p27_p1, %s25_s15), 0  ;;  %p152_p3 = pnand %p5460_p0, %p151_p2 }
   0x7   : > { %155 = sbr.rel (%p152_p3) target bundleno = 620 (0x26c), region = 32 }
   0xe   : > { %v7028_v0 = vld [vmem:[%s9256_s1 + $0x40] sm:$0xff]   ;;  %p179_p4 = scmp.lt.s32.totalorder %s7360_s12, 1  ;;  %v7030_v2 = vld [vmem:[%s9256_s1 + $0x48] sm:$0xff]   ;;  %v7032_v4 = vld [vmem:[%s9256_s1 + $0x50] sm:$0xff]   ;;  %vm263_vm0 = vsmask.f32 3328 }
   0xf   : > { %v7029_v1 = vld [vmem:[%s9256_s1 + $0x100] sm:$0xff]   ;;  %6299 = vmatprep.subr.bf16.mxu1 %v7028_v0  ;;  %v7031_v3 = vld [vmem:[%s9256_s1 + $0x108] sm:$0xff]   ;;  %v7033_v5 = vld [vmem:[%s9256_s1 + $0x110] sm:$0xff]   ;;  %vm264_vm1 = vsmask.f32 7440  ;;  %vm1292_vm3 = vcmask 1042432  }
  0x10   : > { %6491 = vmatprep.subr.bf16.mxu0 %v7029_v1  ;;  %6300 = vmatpush3.bf16.msra.mxu1 %v7028_v0  ;;  %s9330_s12 = smov (!%p179_p4, %s7360_s12), 1  ;;  %v7034_v6 = vld [vmem:[%s9256_s1 + $0x58] sm:$0xff]   ;;  %v7036_v8 = vld [vmem:[%s9256_s1 + $0x60] sm:$0xff]   ;;  %v7038_v10 = vld [vmem:[%s9256_s1 + $0x68] sm:$0xff]   ;;  %vm1293_vm4 = vcmask 1046532  }
  0x11   : > { %6492 = vmatpush3.bf16.msra.mxu0 %v7029_v1  ;;  %6301 = vmatprep.subr.bf16.mxu1 %v7030_v2  ;;  %v7035_v7 = vld [vmem:[%s9256_s1 + $0x118] sm:$0xff]   ;;  %s7003_s5 = smul.u32 216, %s9330_s12  ;;  %v7037_v9 = vld [vmem:[%s9256_s1 + $0x120] sm:$0xff]   ;;  %v7039_v11 = vld [vmem:[%s9256_s1 + $0x128] sm:$0xff]   ;;  %s5955_s26 = sshll.u32 %s9330_s12, 7 }
  0x12   : > { %6493 = vmatprep.subr.bf16.mxu0 %v7031_v3  ;;  %v7040_v25 = vld [vmem:[%s9256_s1 + $0x70] sm:$0xff]   ;;  %v7042_v36 = vld [vmem:[%s9256_s1 + $0x78] sm:$0xff]   ;;  %vm7476_vm2 = vmor %vm263_vm0, %vm264_vm1  ;;  %s9212_s29 = scalar_lea.vmem %s9258_s3, %s5955_s26 }
  0x13   : > { %s7444_s16 = scalar_lea.vmem %s9255_s0, %s7003_s5  ;;  %v7041_v30 = vld [vmem:[%s9256_s1 + $0x130] sm:$0xff]   ;;  %v7043_v51 = vld [vmem:[%s9256_s1 + $0x138] sm:$0xff]   ;;  %vm7722_vm5 = vmor %vm1292_vm3, %vm1293_vm4 }
  0x14   : > { %6302 = vmatpush3.bf16.msra.mxu1 %v7030_v2  ;;  %v199_v12 = vld [vmem:[%s7444_s16] sm:$0xf]  ;;  %v200_v13 = vld [vmem:[%s7444_s16 + $0x4] sm:$0xf]  ;;  %v247_v14 = vld [vmem:[%s7444_s16 + $0x8] sm:$0x1] }
  0x15   : > { %6494 = vmatpush3.bf16.msra.mxu0 %v7031_v3  ;;  %6303 = vmatprep.subr.bf16.mxu1 %v7032_v4  ;;  %v267_v15 = vshrl.u32 %v199_v12, 16  ;;  %v270_v16 = vshll.u32 %v199_v12, 16  ;;  %v276_v17 = vshll.u32 %v200_v13, 16  ;;  %v280_v18 = vshrl.u32 %v200_v13, 16  ;;  %v5608_v20 = vld [vmem:[%s7444_s16 + $0xc] sm:$0xf] }
  0x16   : > { %6495 = vmatprep.subr.bf16.mxu0 %v7033_v5  ;;  %v286_v19 = vshll.u32 %v247_v14, 16  ;;  %v7457_v23 = vld [vmem:[%s7444_s16 + $0x10] sm:$0xf]  ;;  %v7460_v24 = vld [vmem:[%s7444_s16 + $0x14] sm:$0x1]  ;;  %v2166_v29 = vshrl.u32 %v5608_v20, 16 }
  0x17   : > { %v269_v21 = vrot.slane %v267_v15, 4  ;;  %v272_v22 = vrot.slane %v270_v16, 5  ;;  %v278_v26 = vrot.slane %v276_v17, 5  ;;  %v282_v27 = vrot.slane %v280_v18, 4  ;;  %v201_v35 = vld [vmem:[%s7444_s16 + $0xc] sm:$0xf] }
  0x18   : > { %6304 = vmatpush3.bf16.msra.mxu1 %v7032_v4  ;;  %v288_v28 = vrot.slane %v286_v19, 5  ;;  %v2169_v32 = vshll.u32 %v5608_v20, 16  ;;  %v2175_v33 = vshll.u32 %v7457_v23, 16  ;;  %v2179_v34 = vshrl.u32 %v7457_v23, 16  ;;  %v202_v42 = vld [vmem:[%s7444_s16 + $0x10] sm:$0xf] }
  0x19   : > { %6496 = vmatpush3.bf16.msra.mxu0 %v7033_v5  ;;  %6305 = vmatprep.subr.bf16.mxu1 %v7034_v6  ;;  %v273_v31 = vor.u32 %v272_v22, %v269_v21  ;;  %v283_v38 = vor.u32 %v282_v27, %v278_v26  ;;  %v2168_v39 = vrot.slane %v2166_v29, 4  ;;  %v2185_v40 = vshll.u32 %v7460_v24, 16  ;;  %v248_v55 = vld [vmem:[%s7444_s16 + $0x14] sm:$0x1]  ;;  %v5611_v57 = vld [vmem:[%s7444_s16 + $0x18] sm:$0xf] }
  0x1a   : > { %6497 = vmatprep.subr.bf16.mxu0 %v7035_v7  ;;  %v2939_v41 = vrot.slane %v7460_v24, 5  ;;  %v2171_v44 = vrot.slane %v2169_v32, 5  ;;  %v2177_v45 = vrot.slane %v2175_v33, 5  ;;  %v2181_v46 = vrot.slane %v2179_v34, 4  ;;  %v7493_v62 = vld [vmem:[%s7444_s16 + $0x1c] sm:$0xf] }
  0x1b   : > { %v274_v43 = vrot.slane %v273_v31, 4  ;;  %v284_v47 = vrot.slane %v283_v38, 4  ;;  %v2187_v48 = vrot.slane %v2185_v40, 5  ;;  %v291_v49 = vshrl.u32 %v201_v35, 16  ;;  %v7044_v3 = vld [vmem:[%s9256_s1] sm:$0xff]  }
  0x1c   : > { %6306 = vmatpush3.bf16.msra.mxu1 %v7034_v6  ;;  %v294_v50 = vshll.u32 %v201_v35, 16  ;;  %v2172_v53 = vor.u32 %v2171_v44, %v2168_v39  ;;  %v2182_v54 = vor.u32 %v2181_v46, %v2177_v45  ;;  %v300_v56 = vshll.u32 %v202_v42, 16  ;;  %v7501_v4 = vld [vmem:[%s9256_s1 + $0x140] sm:$0xff]   ;;  %v203_v21 = vld [vmem:[%s7444_s16 + $0x18] sm:$0xf]  ;;  %v7047_v46 = vld [vmem:[%s9256_s1 + $0x8] sm:$0xff]  }
  0x1d   : > { %6498 = vmatpush3.bf16.msra.mxu0 %v7035_v7  ;;  %6307 = vmatprep.subr.bf16.mxu1 %v7036_v8  ;;  %v279_v52 = vsel %vm7476_vm2, %v274_v43, %v278_v26  ;;  %v289_v58 = vsel %vm7476_vm2, %v284_v47, %v288_v28  ;;  %v293_v59 = vrot.slane %v291_v49, 4  ;;  %v304_v61 = vshrl.u32 %v202_v42, 16  ;;  %v204_v28 = vld [vmem:[%s7444_s16 + $0x1c] sm:$0xf]  ;;  %v249_v33 = vld [vmem:[%s7444_s16 + $0x20] sm:$0x1] }
  0x1e   : > { %6499 = vmatprep.subr.bf16.mxu0 %v7037_v9  ;;  %v296_v60 = vrot.slane %v294_v50, 5  ;;  %v5464_v63 = vcombine.low %v279_v52, %v289_v58  ;;  %v2173_v0 = vrot.slane %v2172_v53, 4  ;;  %v2183_v1 = vrot.slane %v2182_v54, 4  ;;  %v5614_v39 = vld [vmem:[%s7444_s16 + $0x24] sm:$0xf] }
  0x1f   : > { %v302_v2 = vrot.slane %v300_v56, 5  ;;  %v306_v6 = vrot.slane %v304_v61, 4  ;;  %v310_v7 = vshll.u32 %v248_v55, 16  ;;  %v2193_v12 = vshll.u32 %v5611_v57, 16  ;;  %v205_v52 = vld [vmem:[%s7444_s16 + $0x24] sm:$0xf] }
  0x20   : > { %6308 = vmatpush3.bf16.msra.mxu1 %v7036_v8  ;;  %v297_v5 = vor.u32 %v296_v60, %v293_v59  ;;  %v7504_v8 = vld [vmem:[%s7444_s16 + $0x20] sm:$0x1]  ;;  %6315 = vmatprep.mubr.bf16.mxu1 %v5464_v63  ;;  %v2199_v19 = vshll.u32 %v7493_v62, 16  ;;  %v2203_v20 = vshrl.u32 %v7493_v62, 16  ;;  %v2943_v27 = vrot.slane %v7493_v62, 5  ;;  %v7046_v63 = vld [vmem:[%s9256_s1 + $0x148] sm:$0xff]  }
  0x21   : > { %6500 = vmatpush3.bf16.msra.mxu0 %v7037_v9  ;;  %6309 = vmatprep.subr.bf16.mxu1 %v7038_v10  ;;  %v2178_v9 = vsel %vm7476_vm2, %v2173_v0, %v2177_v45  ;;  %v307_v15 = vor.u32 %v306_v6, %v302_v2  ;;  %v312_v16 = vrot.slane %v310_v7, 5  ;;  %v2195_v18 = vrot.slane %v2193_v12, 5  ;;  %v7529_v45 = vld [vmem:[%s7444_s16 + $0x28] sm:$0xf] }
  0x22   : > { %6501 = vmatprep.subr.bf16.mxu0 %v7039_v11  ;;  %v298_v14 = vrot.slane %v297_v5, 4  ;;  %v2209_v26 = vshll.u32 %v7504_v8, 16  ;;  %v2205_v31 = vrot.slane %v2203_v20, 4  ;;  %v2946_v32 = vrot.slane %v7504_v8, 5  ;;  %v206_v5 = vld [vmem:[%s7444_s16 + $0x28] sm:$0xf] }
  0x23   : > { %v315_v38 = vshrl.u32 %v203_v21, 16  ;;  %v318_v44 = vshll.u32 %v203_v21, 16  ;;  %v328_v49 = vshrl.u32 %v204_v28, 16  ;;  %v334_v50 = vshll.u32 %v249_v33, 16  ;;  %v7560_v33 = vld [vmem:[%s7444_s16 + $0x34] sm:$0xf] }
  0x24   : > { %6310 = vmatpush3.bf16.msra.mxu1 %v7038_v10  ;;  %v2188_v10 = vsel %vm7476_vm2, %v2183_v1, %v2187_v48  ;;  %v303_v22 = vsel %vm7476_vm2, %v298_v14, %v302_v2  ;;  %v2211_v35 = vrot.slane %v2209_v26, 5  ;;  %v324_v48 = vshll.u32 %v204_v28, 16 }
  0x25   : > { %6502 = vmatpush3.bf16.msra.mxu0 %v7039_v11  ;;  %6311 = vmatprep.subr.bf16.mxu1 %v7040_v25  ;;  %v2190_v11 = vshrl.u32 %v5611_v57, 16  ;;  %v5656_v13 = vcombine.low %v2178_v9, %v2188_v10  ;;  %v317_v47 = vrot.slane %v315_v38, 4  ;;  %v320_v55 = vrot.slane %v318_v44, 5 }
  0x26   : > { %6503 = vmatprep.subr.bf16.mxu0 %v7041_v30  ;;  %v2214_v56 = vshrl.u32 %v5614_v39, 16  ;;  %v326_v57 = vrot.slane %v324_v48, 5  ;;  %v330_v58 = vrot.slane %v328_v49, 4  ;;  %v336_v59 = vrot.slane %v334_v50, 5  ;;  %v7049_v48 = vld [vmem:[%s9256_s1 + $0x158] sm:$0xff]  }
  0x27   : > { %v2192_v17 = vrot.slane %v2190_v11, 4  ;;  %6507 = vmatprep.mubr.bf16.mxu0 %v5656_v13  ;;  %v2217_v60 = vshll.u32 %v5614_v39, 16  ;;  %v321_v0 = vor.u32 %v320_v55, %v317_v47  ;;  %v2223_v2 = vshll.u32 %v7529_v45, 16  ;;  %v250_v11 = vld [vmem:[%s7444_s16 + $0x2c] sm:$0x1] }
  0x28   : > { %6312 = vmatpush3.bf16.msra.mxu1 %v7040_v25  ;;  %v308_v25 = vrot.slane %v307_v15, 4  ;;  %v2216_v1 = vrot.slane %v2214_v56, 4  ;;  %v331_v7 = vor.u32 %v330_v58, %v326_v57  ;;  %v2227_v10 = vshrl.u32 %v7529_v45, 16 }
  0x29   : > { %6504 = vmatpush3.bf16.msra.mxu0 %v7041_v30  ;;  %6313 = vmatprep.subr.bf16.mxu1 %v7042_v36  ;;  %v2196_v29 = vor.u32 %v2195_v18, %v2192_v17  ;;  %v2201_v30 = vrot.slane %v2199_v19, 5  ;;  %v2219_v9 = vrot.slane %v2217_v60, 5  ;;  %v322_v12 = vrot.slane %v321_v0, 4  ;;  %v7056_v60 = vld [vmem:[%s9256_s1 + $0x20] sm:$0xff]  }
  0x2a   : > { %6505 = vmatprep.subr.bf16.mxu0 %v7043_v51  ;;  %v313_v34 = vsel %vm7476_vm2, %v308_v25, %v312_v16  ;;  %v2225_v13 = vrot.slane %v2223_v2, 5  ;;  %v339_v15 = vshrl.u32 %v205_v52, 16  ;;  %v5617_v16 = vld [vmem:[%s7444_s16 + $0x30] sm:$0xf]  ;;  %v332_v17 = vrot.slane %v331_v7, 4 }
  0x2b   : > { %v5465_v40 = vcombine.low %v303_v22, %v313_v34  ;;  %v2197_v42 = vrot.slane %v2196_v29, 4  ;;  %v2206_v43 = vor.u32 %v2205_v31, %v2201_v30  ;;  %v2220_v18 = vor.u32 %v2219_v9, %v2216_v1  ;;  %v7053_v34 = vld [vmem:[%s9256_s1 + $0x18] sm:$0xff]  }
  0x2c   : > { %6314 = vmatpush3.bf16.msra.mxu1 %v7042_v36  ;;  %v7525_v36 = vrot.slane %v2943_v27, 4  ;;  %v2229_v19 = vrot.slane %v2227_v10, 4  ;;  %v342_v20 = vshll.u32 %v205_v52, 16  ;;  %v327_v21 = vsel %vm7476_vm2, %v322_v12, %v326_v57  ;;  %v251_v2 = vld [vmem:[%s7444_s16 + $0x38] sm:$0x1] }
  0x2d   : > { %6506 = vmatpush3.bf16.msra.mxu0 %v7043_v51  ;;  %6347 = vmatprep.subr.bf16.mxu1 %v7044_v3  ;;  %v7535_v51 = vld [vmem:[%s7444_s16 + $0x2c] sm:$0x1]  ;;  %v2202_v53 = vsel %vm7476_vm2, %v2197_v42, %v2201_v30  ;;  %v2207_v54 = vrot.slane %v2206_v43, 4  ;;  %v341_v25 = vrot.slane %v339_v15, 4  ;;  %v348_v26 = vshll.u32 %v206_v5, 16 }
  0x2e   : > { %6539 = vmatprep.subr.bf16.mxu0 %v7501_v4  ;;  %v2233_v14 = vshll.u32 %v7535_v51, 16  ;;  %v337_v28 = vsel %vm7476_vm2, %v332_v17, %v336_v59  ;;  %v2221_v29 = vrot.slane %v2220_v18, 4  ;;  %v2230_v30 = vor.u32 %v2229_v19, %v2225_v13  ;;  %v208_v59 = vld [vmem:[%s7444_s16 + $0x34] sm:$0xf]  ;;  %v5620_v9 = vld [vmem:[%s7444_s16 + $0x3c] sm:$0xf] }
  0x2f   : > { %6316 = vmatmul.mubr.bf16.vlgmr.msra.gmra.mrb[0].mxu1 %v5465_v40  ;;  %v2212_v61 = vsel %vm7476_vm2, %v2207_v54, %v2211_v35  ;;  %v344_v31 = vrot.slane %v342_v20, 5  ;;  %v5466_v35 = vcombine.low %v327_v21, %v337_v28  ;;  %v350_v38 = vrot.slane %v348_v26, 5  ;;  %v207_v54 = vld [vmem:[%s7444_s16 + $0x30] sm:$0xf]  ;;  %v7594_v19 = vld [vmem:[%s7444_s16 + $0x40] sm:$0xf] }
  0x30   : > { %6348 = vmatpush3.bf16.msra.mxu1 %v7044_v3  ;;  %v7050_v3 = vld [vmem:[%s9256_s1 + $0x10] sm:$0xff]   ;;  %v5657_v6 = vcombine.low %v2202_v53, %v2212_v61  ;;  %v2235_v22 = vrot.slane %v2233_v14, 5  ;;  %v352_v39 = vshrl.u32 %v206_v5, 16  ;;  %v358_v40 = vshll.u32 %v250_v11, 16  ;;  %v7058_v14 = vld [vmem:[%s9256_s1 + $0x28] sm:$0xff]   ;;  %v7051_v20 = vld [vmem:[%s9256_s1 + $0x160] sm:$0xff]  }
  0x31   : > { %6349 = vmatprep.subr.bf16.mxu1 %v7047_v46  ;;  %v2226_v42 = vsel %vm7476_vm2, %v2221_v29, %v2225_v13  ;;  %v2231_v43 = vrot.slane %v2230_v30, 4  ;;  %v345_v44 = vor.u32 %v344_v31, %v341_v25  ;;  %v2238_v47 = vshrl.u32 %v5617_v16, 16  ;;  %6319 = vmatprep.mubr.bf16.mxu1 %v5466_v35  ;;  %v7602_v28 = vld [vmem:[%s7444_s16 + $0x44] sm:$0x1]  ;;  %v7060_v35 = vld [vmem:[%s9256_s1 + $0x30] sm:$0xff]  }
  0x32   : > { %6508 = vmatmul.mubr.bf16.vlgmr.msra.gmra.mrb[0].mxu0 %v5657_v6  ;;  %v354_v49 = vrot.slane %v352_v39, 4  ;;  %v360_v50 = vrot.slane %v358_v40, 5  ;;  %v2241_v52 = vshll.u32 %v5617_v16, 16  ;;  %v2247_v53 = vshll.u32 %v7560_v33, 16 }
  0x33   : > { %6540 = vmatpush3.bf16.msra.mxu0 %v7501_v4  ;;  %v7048_v4 = vld [vmem:[%s9256_s1 + $0x150] sm:$0xff]   ;;  %v2236_v55 = vsel %vm7476_vm2, %v2231_v43, %v2235_v22  ;;  %v346_v56 = vrot.slane %v345_v44, 4  ;;  %v2240_v57 = vrot.slane %v2238_v47, 4  ;;  %v2251_v58 = vshrl.u32 %v7560_v33, 16 }
  0x34   : > { %6350 = vmatpush3.bf16.msra.mxu1 %v7047_v46  ;;  %6541 = vmatprep.subr.bf16.mxu0 %v7046_v63  ;;  %v7571_v46 = vld [vmem:[%s7444_s16 + $0x38] sm:$0x1]  ;;  %v5658_v61 = vcombine.low %v2226_v42, %v2236_v55  ;;  %v2243_v0 = vrot.slane %v2241_v52, 5  ;;  %v2249_v1 = vrot.slane %v2247_v53, 5  ;;  %v363_v7 = vshrl.u32 %v207_v54, 16 }
  0x35   : > { %6351 = vmatprep.subr.bf16.mxu1 %v7050_v3  ;;  %v351_v5 = vsel %vm7476_vm2, %v346_v56, %v350_v38  ;;  %v2257_v6 = vshll.u32 %v7571_v46, 16  ;;  %v366_v12 = vshll.u32 %v207_v54, 16  ;;  %v372_v13 = vshll.u32 %v208_v59, 16  ;;  %v210_v55 = vld [vmem:[%s7444_s16 + $0x40] sm:$0xf] }
  0x36   : > { %6511 = vmatprep.mubr.bf16.mxu0 %v5658_v61  ;;  %v2244_v11 = vor.u32 %v2243_v0, %v2240_v57  ;;  %v365_v17 = vrot.slane %v363_v7, 4  ;;  %v376_v18 = vshrl.u32 %v208_v59, 16  ;;  %v2262_v40 = vshrl.u32 %v5620_v9, 16 }
  0x37   : > { %6542 = vmatpush3.bf16.msra.mxu0 %v7046_v63  ;;  %v355_v63 = vor.u32 %v354_v49, %v350_v38  ;;  %v2259_v16 = vrot.slane %v2257_v6, 5  ;;  %v368_v25 = vrot.slane %v366_v12, 5  ;;  %v374_v26 = vrot.slane %v372_v13, 5 }
  0x38   : > { %6352 = vmatpush3.bf16.msra.mxu1 %v7050_v3  ;;  %6543 = vmatprep.subr.bf16.mxu0 %v7048_v4  ;;  %v2253_v3 = vrot.slane %v2251_v58, 4  ;;  %v2245_v22 = vrot.slane %v2244_v11, 4  ;;  %v378_v31 = vrot.slane %v376_v18, 4  ;;  %v2265_v42 = vshll.u32 %v5620_v9, 16  ;;  %v5623_v9 = vld [vmem:[%s7444_s16 + $0x48] sm:$0xf] }
  0x39   : > { %6353 = vmatprep.subr.bf16.mxu1 %v7053_v34  ;;  %v356_v10 = vrot.slane %v355_v63, 4  ;;  %v369_v39 = vor.u32 %v368_v25, %v365_v17  ;;  %v2271_v49 = vshll.u32 %v7594_v19, 16  ;;  %v2264_v53 = vrot.slane %v2262_v40, 4  ;;  %v252_v63 = vld [vmem:[%s7444_s16 + $0x44] sm:$0x1] }
  0x3a   : > { %v2254_v15 = vor.u32 %v2253_v3, %v2249_v1  ;;  %v2250_v38 = vsel %vm7476_vm2, %v2245_v22, %v2249_v1  ;;  %v379_v44 = vor.u32 %v378_v31, %v374_v26  ;;  %v2267_v54 = vrot.slane %v2265_v42, 5  ;;  %v7635_v22 = vld [vmem:[%s7444_s16 + $0x50] sm:$0x1]  ;;  %v7055_v31 = vld [vmem:[%s9256_s1 + $0x178] sm:$0xff]  }
  0x3b   : > { %6544 = vmatpush3.bf16.msra.mxu0 %v7048_v4  ;;  %v361_v21 = vsel %vm7476_vm2, %v356_v10, %v360_v50  ;;  %v382_v4 = vshll.u32 %v251_v2, 16  ;;  %v370_v52 = vrot.slane %v369_v39, 4  ;;  %v2273_v57 = vrot.slane %v2271_v49, 5  ;;  %v7062_v2 = vld [vmem:[%s9256_s1 + $0x38] sm:$0xff]  }
  0x3c   : > { %6354 = vmatpush3.bf16.msra.mxu1 %v7053_v34  ;;  %6545 = vmatprep.subr.bf16.mxu0 %v7049_v48  ;;  %v5467_v29 = vcombine.low %v351_v5, %v361_v21  ;;  %v2255_v30 = vrot.slane %v2254_v15, 4  ;;  %v209_v34 = vld [vmem:[%s7444_s16 + $0x3c] sm:$0xf]  ;;  %v380_v56 = vrot.slane %v379_v44, 4  ;;  %v2275_v58 = vshrl.u32 %v7594_v19, 16  ;;  %v7054_v15 = vld [vmem:[%s9256_s1 + $0x170] sm:$0xff]  }
  0x3d   : > { %6355 = vmatprep.subr.bf16.mxu1 %v7056_v60  ;;  %v384_v47 = vrot.slane %v382_v4, 5  ;;  %v2281_v59 = vshll.u32 %v7602_v28, 16  ;;  %v2268_v61 = vor.u32 %v2267_v54, %v2264_v53  ;;  %v387_v0 = vshrl.u32 %v209_v34, 16  ;;  %v7646_v4 = vld [vmem:[%s9256_s1 + $0x80] sm:$0xff]   ;;  %v212_v53 = vld [vmem:[%s7444_s16 + $0x4c] sm:$0xf] }
  0x3e   : > { %6320 = vmatmul.mubr.bf16.gmra.mrb[4].mxu1 %v5467_v29  ;;  %v2260_v43 = vsel %vm7476_vm2, %v2255_v30, %v2259_v16  ;;  %v390_v1 = vshll.u32 %v209_v34, 16  ;;  %v2277_v3 = vrot.slane %v2275_v58, 4  ;;  %v396_v7 = vshll.u32 %v210_v55, 16  ;;  %v211_v30 = vld [vmem:[%s7444_s16 + $0x48] sm:$0xf] }
  0x3f   : > { %6546 = vmatpush3.bf16.msra.mxu0 %v7049_v48  ;;  %v5659_v50 = vcombine.low %v2250_v38, %v2260_v43  ;;  %v7052_v48 = vld [vmem:[%s9256_s1 + $0x168] sm:$0xff]   ;;  %v385_v5 = vsel %vm7476_vm2, %v380_v56, %v384_v47  ;;  %v2283_v6 = vrot.slane %v2281_v59, 5  ;;  %v2269_v11 = vrot.slane %v2268_v61, 4  ;;  %v253_v54 = vld [vmem:[%s7444_s16 + $0x50] sm:$0x1] }
  0x40   : > { %6356 = vmatpush3.bf16.msra.mxu1 %v7056_v60  ;;  %6547 = vmatprep.subr.bf16.mxu0 %v7051_v20  ;;  %v375_v60 = vsel %vm7476_vm2, %v370_v52, %v374_v26  ;;  %v389_v12 = vrot.slane %v387_v0, 4  ;;  %v392_v13 = vrot.slane %v390_v1, 5  ;;  %v2278_v16 = vor.u32 %v2277_v3, %v2273_v57  ;;  %v5626_v58 = vld [vmem:[%s7444_s16 + $0x54] sm:$0xf]  ;;  %v7660_v0 = vld [vmem:[%s7444_s16 + $0x58] sm:$0xf] }
  0x41   : > { %6357 = vmatprep.subr.bf16.mxu1 %v7058_v14  ;;  %6512 = vmatmul.mubr.bf16.gmra.mrb[4].mxu0 %v5659_v50  ;;  %v5468_v10 = vcombine.low %v375_v60, %v385_v5  ;;  %v398_v17 = vrot.slane %v396_v7, 5  ;;  %v400_v18 = vshrl.u32 %v210_v55, 16  ;;  %v406_v21 = vshll.u32 %v252_v63, 16 }
  0x42   : > { %v393_v25 = vor.u32 %v392_v13, %v389_v12  ;;  %v2286_v26 = vshrl.u32 %v5623_v9, 16  ;;  %v2289_v29 = vshll.u32 %v5623_v9, 16  ;;  %v2279_v34 = vrot.slane %v2278_v16, 4 }
  0x43   : > { %6548 = vmatpush3.bf16.msra.mxu0 %v7051_v20  ;;  %6323 = vmatprep.mubr.bf16.mxu1 %v5468_v10  ;;  %v2274_v20 = vsel %vm7476_vm2, %v2269_v11, %v2273_v57  ;;  %v408_v38 = vrot.slane %v406_v21, 5  ;;  %v2305_v52 = vshll.u32 %v7635_v22, 16  ;;  %v411_v61 = vshrl.u32 %v211_v30, 16 }
  0x44   : > { %6358 = vmatpush3.bf16.msra.mxu1 %v7058_v14  ;;  %v7629_v14 = vld [vmem:[%s7444_s16 + $0x4c] sm:$0xf]  ;;  %6549 = vmatprep.subr.bf16.mxu0 %v7052_v48  ;;  %v394_v40 = vrot.slane %v393_v25, 4  ;;  %v2288_v42 = vrot.slane %v2286_v26, 4  ;;  %v2291_v43 = vrot.slane %v2289_v29, 5  ;;  %v2284_v47 = vsel %vm7476_vm2, %v2279_v34, %v2283_v6  ;;  %v7665_v6 = vld [vmem:[%s9256_s1 + $0x180] sm:$0xff]  }
  0x45   : > { %6359 = vmatprep.subr.bf16.mxu1 %v7060_v35  ;;  %v2295_v39 = vshll.u32 %v7629_v14, 16  ;;  %v2299_v44 = vshrl.u32 %v7629_v14, 16  ;;  %v5660_v55 = vcombine.low %v2274_v20, %v2284_v47  ;;  %v2307_v60 = vrot.slane %v2305_v52, 5  ;;  %v7672_v20 = vld [vmem:[%s7444_s16 + $0x5c] sm:$0x1] }
  0x46   : > { %v2292_v56 = vor.u32 %v2291_v43, %v2288_v42  ;;  %v414_v63 = vshll.u32 %v211_v30, 16  ;;  %v424_v3 = vshrl.u32 %v212_v53, 16  ;;  %v413_v9 = vrot.slane %v411_v61, 4  ;;  %v214_v43 = vld [vmem:[%s7444_s16 + $0x58] sm:$0xf] }
  0x47   : > { %6550 = vmatpush3.bf16.msra.mxu0 %v7052_v48  ;;  %v2297_v50 = vrot.slane %v2295_v39, 5  ;;  %v399_v48 = vsel %vm7476_vm2, %v394_v40, %v398_v17  ;;  %v2301_v57 = vrot.slane %v2299_v44, 4  ;;  %6515 = vmatprep.mubr.bf16.mxu0 %v5660_v55  ;;  %v430_v11 = vshll.u32 %v253_v54, 16  ;;  %v5629_v52 = vld [vmem:[%s7444_s16 + $0x60] sm:$0xf] }
  0x48   : > { %6360 = vmatpush3.bf16.msra.mxu1 %v7060_v35  ;;  %v402_v35 = vrot.slane %v400_v18, 4  ;;  %6551 = vmatprep.subr.bf16.mxu0 %v7054_v15  ;;  %v2293_v1 = vrot.slane %v2292_v56, 4  ;;  %v416_v10 = vrot.slane %v414_v63, 5  ;;  %v426_v18 = vrot.slane %v424_v3, 4 }
  0x49   : > { %6361 = vmatprep.subr.bf16.mxu1 %v7062_v2  ;;  %v2302_v5 = vor.u32 %v2301_v57, %v2297_v50  ;;  %v432_v21 = vrot.slane %v430_v11, 5  ;;  %v2310_v25 = vshrl.u32 %v5626_v58, 16  ;;  %v2313_v29 = vshll.u32 %v5626_v58, 16 }
  0x4a   : > { %v403_v49 = vor.u32 %v402_v35, %v398_v17  ;;  %v2298_v13 = vsel %vm7476_vm2, %v2293_v1, %v2297_v50  ;;  %v417_v17 = vor.u32 %v416_v10, %v413_v9  ;;  %v2319_v30 = vshll.u32 %v7660_v0, 16  ;;  %v213_v35 = vld [vmem:[%s7444_s16 + $0x54] sm:$0xf]  ;;  %v254_v50 = vld [vmem:[%s7444_s16 + $0x5c] sm:$0x1] }
  0x4b   : > { %6552 = vmatpush3.bf16.msra.mxu0 %v7054_v15  ;;  %v2303_v15 = vrot.slane %v2302_v5, 4  ;;  %v2323_v34 = vshrl.u32 %v7660_v0, 16  ;;  %v2312_v42 = vrot.slane %v2310_v25, 4  ;;  %v435_v55 = vshrl.u32 %v213_v35, 16  ;;  %v7700_v25 = vld [vmem:[%s7444_s16 + $0x60] sm:$0xf] }
  0x4c   : > { %6362 = vmatpush3.bf16.msra.mxu1 %v7062_v2  ;;  %v404_v59 = vrot.slane %v403_v49, 4  ;;  %v420_v2 = vshll.u32 %v212_v53, 16  ;;  %6553 = vmatprep.subr.bf16.mxu0 %v7055_v31  ;;  %v418_v39 = vrot.slane %v417_v17, 4  ;;  %v2321_v44 = vrot.slane %v2319_v30, 5  ;;  %v7696_v17 = vld [vmem:[%s7444_s16 + $0x68] sm:$0x1] }
  0x4d   : > { %6395 = vmatprep.subr.bf16.mxu1 %v7646_v4  ;;  %v2308_v26 = vsel %vm7476_vm2, %v2303_v15, %v2307_v60  ;;  %v2325_v47 = vrot.slane %v2323_v34, 4  ;;  %v2329_v49 = vshll.u32 %v7672_v20, 16  ;;  %v7687_v60 = vld [vmem:[%s7444_s16 + $0x64] sm:$0xf]  ;;  %v437_v63 = vrot.slane %v435_v55, 4 }
  0x4e   : > { %v409_v7 = vsel %vm7476_vm2, %v404_v59, %v408_v38  ;;  %v422_v16 = vrot.slane %v420_v2, 5  ;;  %v5661_v38 = vcombine.low %v2298_v13, %v2308_v26  ;;  %v444_v59 = vshll.u32 %v214_v43, 16 }
  0x4f   : > { %v5469_v12 = vcombine.low %v399_v48, %v409_v7  ;;  %6554 = vmatpush3.bf16.msra.mxu0 %v7055_v31  ;;  %v2315_v31 = vrot.slane %v2313_v29, 5  ;;  %v438_v48 = vshll.u32 %v213_v35, 16  ;;  %v2326_v57 = vor.u32 %v2325_v47, %v2321_v44  ;;  %v7703_v35 = vld [vmem:[%s7444_s16 + $0x64] sm:$0xf] }
  0x50   : > { %6587 = vmatprep.subr.bf16.mxu0 %v7665_v6  ;;  %v427_v40 = vor.u32 %v426_v18, %v422_v16  ;;  %6516 = vmatmul.mubr.bf16.gmra.mrb[8].mxu0 %v5661_v38  ;;  %v423_v53 = vsel %vm7476_vm2, %v418_v39, %v422_v16  ;;  %v2331_v58 = vrot.slane %v2329_v49, 5  ;;  %v448_v5 = vshrl.u32 %v214_v43, 16  ;;  %v255_v43 = vld [vmem:[%s7444_s16 + $0x68] sm:$0x1] }
  0x51   : > { %6324 = vmatmul.mubr.bf16.gmra.mrb[8].mxu1 %v5469_v12  ;;  %v2316_v56 = vor.u32 %v2315_v31, %v2312_v42  ;;  %v440_v1 = vrot.slane %v438_v48, 5  ;;  %v2327_v7 = vrot.slane %v2326_v57, 4  ;;  %v446_v9 = vrot.slane %v444_v59, 5 }
  0x52   : > { %v428_v54 = vrot.slane %v427_v40, 4  ;;  %v450_v11 = vrot.slane %v448_v5, 4  ;;  %v454_v12 = vshll.u32 %v254_v50, 16  ;;  %v2334_v13 = vshrl.u32 %v5629_v52, 16  ;;  %v5680_v50 = vld [vmem:[%s7444_s16 + $0xc] sm:$0xe] }
  0x53   : > { %v2317_v3 = vrot.slane %v2316_v56, 4  ;;  %v441_v10 = vor.u32 %v440_v1, %v437_v63  ;;  %v2332_v16 = vsel %vm7476_vm2, %v2327_v7, %v2331_v58  ;;  %v2337_v18 = vshll.u32 %v5629_v52, 16  ;;  %v7718_v5 = vld [vmem:[%s7444_s16 + $0x6c] sm:$0xf] }
  0x54   : > { %v433_v61 = vsel %vm7476_vm2, %v428_v54, %v432_v21  ;;  %v2343_v21 = vshll.u32 %v7687_v60, 16  ;;  %v451_v30 = vor.u32 %v450_v11, %v446_v9  ;;  %v456_v34 = vrot.slane %v454_v12, 5 }
  0x55   : > { %v5470_v2 = vcombine.low %v423_v53, %v433_v61  ;;  %v2322_v15 = vsel %vm7476_vm2, %v2317_v3, %v2321_v44  ;;  %v442_v29 = vrot.slane %v441_v10, 4  ;;  %v2336_v38 = vrot.slane %v2334_v13, 4 }
  0x56   : > { %v5662_v26 = vcombine.low %v2322_v15, %v2332_v16  ;;  %v2339_v39 = vrot.slane %v2337_v18, 5  ;;  %v2345_v40 = vrot.slane %v2343_v21, 5  ;;  %v2347_v42 = vshrl.u32 %v7687_v60, 16  ;;  %v7730_v21 = vld [vmem:[%s7444_s16 + $0x70] sm:$0xf] }
  0x57   : > { %6327 = vmatprep.mubr.bf16.mxu1 %v5470_v2  ;;  %v447_v31 = vsel %vm7476_vm2, %v442_v29, %v446_v9  ;;  %v452_v44 = vrot.slane %v451_v30, 4  ;;  %v2353_v47 = vshll.u32 %v7696_v17, 16  ;;  %v459_v49 = vshrl.u32 %v7700_v25, 16  ;;  %v7146_v9 = vld [vmem:[%s7444_s16 + $0xb4] sm:$0xff]  }
  0x58   : > { %6519 = vmatprep.mubr.bf16.mxu0 %v5662_v26  ;;  %v2340_v52 = vor.u32 %v2339_v39, %v2336_v38  ;;  %v2349_v53 = vrot.slane %v2347_v42, 4  ;;  %v462_v54 = vshll.u32 %v7700_v25, 16  ;;  %v468_v55 = vshll.u32 %v7703_v35, 16 }
  0x59   : > { %v457_v48 = vsel %vm7476_vm2, %v452_v44, %v456_v34  ;;  %v2355_v56 = vrot.slane %v2353_v47, 5  ;;  %v461_v57 = vrot.slane %v459_v49, 4  ;;  %v472_v58 = vshrl.u32 %v7703_v35, 16  ;;  %v7741_v47 = vld [vmem:[%s7444_s16 + $0x78] sm:$0xf] }
  0x5a   : > { %v5471_v59 = vcombine.low %v447_v31, %v457_v48  ;;  %v2341_v61 = vrot.slane %v2340_v52, 4  ;;  %v2350_v63 = vor.u32 %v2349_v53, %v2345_v40  ;;  %v464_v1 = vrot.slane %v462_v54, 5  ;;  %v7752_v54 = vld [vmem:[%s7444_s16 + $0x7c] sm:$0xf] }
  0x5b   : > { %v470_v2 = vrot.slane %v468_v55, 5  ;;  %v474_v3 = vrot.slane %v472_v58, 4  ;;  %v478_v7 = vshll.u32 %v255_v43, 16  ;;  %v5696_v10 = vrot.slane %v5680_v50, 9  ;;  %v257_v58 = vld [vmem:[%s7444_s16 + $0x80] sm:$0x1] }
  0x5c   : > { %6328 = vmatmul.mubr.bf16.gmra.mrb[12].mxu1 %v5471_v59  ;;  %v2346_v11 = vsel %vm7476_vm2, %v2341_v61, %v2345_v40  ;;  %v2351_v12 = vrot.slane %v2350_v63, 4  ;;  %v465_v13 = vor.u32 %v464_v1, %v461_v57  ;;  %v2936_v15 = vrot.slane %v7457_v23, 5  ;;  %v256_v40 = vld [vmem:[%s7444_s16 + $0x74] sm:$0x1]  ;;  %v5681_v23 = vld [vmem:[%s7444_s16 + $0x18] sm:$0xe] }
  0x5d   : > { %v475_v16 = vor.u32 %v474_v3, %v470_v2  ;;  %v480_v18 = vrot.slane %v478_v7, 5  ;;  %v483_v26 = vshrl.u32 %v7718_v5, 16  ;;  %v486_v29 = vshll.u32 %v7718_v5, 16 }
  0x5e   : > { %v2356_v30 = vsel %vm7476_vm2, %v2351_v12, %v2355_v56  ;;  %v466_v34 = vrot.slane %v465_v13, 4  ;;  %v2937_v38 = vsel %vm7722_vm5, %v5696_v10, %v2936_v15  ;;  %v2938_v39 = vrot.slane %v2936_v15, 4  ;;  %v5682_v13 = vld [vmem:[%s7444_s16 + $0x24] sm:$0xe] }
  0x5f   : > { %v5663_v42 = vcombine.low %v2346_v11, %v2356_v30  ;;  %v476_v43 = vrot.slane %v475_v16, 4  ;;  %v485_v31 = vrot.slane %v483_v26, 4  ;;  %v488_v44 = vrot.slane %v486_v29, 5  ;;  %v7774_v16 = vld [vmem:[%s7444_s16 + $0x84] sm:$0xf]  ;;  %v7059_v29 = vld [vmem:[%s9256_s1 + $0x188] sm:$0xff]  }
  0x60   : > { %v471_v49 = vsel %vm7476_vm2, %v466_v34, %v470_v2  ;;  %v2940_v50 = vsel %vm7722_vm5, %v2938_v39, %v2939_v41  ;;  %v492_v52 = vshll.u32 %v7730_v21, 16  ;;  %v496_v53 = vshrl.u32 %v7730_v21, 16 }
  0x61   : > { %6520 = vmatmul.mubr.bf16.gmra.mrb[12].mxu0 %v5663_v42  ;;  %v481_v55 = vsel %vm7476_vm2, %v476_v43, %v480_v18  ;;  %v5712_v48 = vcombine.low %v2937_v38, %v2940_v50  ;;  %v489_v56 = vor.u32 %v488_v44, %v485_v31  ;;  %v502_v57 = vshll.u32 %v256_v40, 16  ;;  %v7782_v40 = vld [vmem:[%s7444_s16 + $0x88] sm:$0xf]  ;;  %v258_v31 = vld [vmem:[%s7444_s16 + $0x8c] sm:$0x1] }
  0x62   : > { %v5472_v59 = vcombine.low %v471_v49, %v481_v55  ;;  %v494_v24 = vrot.slane %v492_v52, 5  ;;  %v498_v61 = vrot.slane %v496_v53, 4  ;;  %v5697_v63 = vrot.slane %v5681_v23, 9 }
  0x63   : > { %6555 = vmatprep.mubr.bf16.mxu0 %v5712_v48  ;;  %v490_v41 = vrot.slane %v489_v56, 4  ;;  %v504_v1 = vrot.slane %v502_v57, 5  ;;  %v2947_v2 = vsel %vm7722_vm5, %v7525_v36, %v2946_v32  ;;  %v507_v3 = vshrl.u32 %v7741_v47, 16 }
  0x64   : > { %6331 = vmatprep.mubr.bf16.mxu1 %v5472_v59  ;;  %v499_v7 = vor.u32 %v498_v61, %v494_v24  ;;  %v2944_v10 = vsel %vm7722_vm5, %v5697_v63, %v2943_v27  ;;  %v510_v11 = vshll.u32 %v7741_v47, 16  ;;  %v516_v12 = vshll.u32 %v7752_v54, 16 }
  0x65   : > { %v495_v8 = vsel %vm7476_vm2, %v490_v41, %v494_v24  ;;  %v5713_v15 = vcombine.low %v2944_v10, %v2947_v2  ;;  %v509_v32 = vrot.slane %v507_v3, 4  ;;  %v520_v36 = vshrl.u32 %v7752_v54, 16  ;;  %v7803_v2 = vld [vmem:[%s7444_s16 + $0x90] sm:$0xf]  ;;  %v7806_v3 = vld [vmem:[%s7444_s16 + $0x94] sm:$0xf] }
  0x66   : > { %v500_v62 = vrot.slane %v499_v7, 4  ;;  %v512_v18 = vrot.slane %v510_v11, 5  ;;  %v518_v26 = vrot.slane %v516_v12, 5  ;;  %v526_v27 = vshll.u32 %v257_v58, 16 }
  0x67   : > { %v522_v30 = vrot.slane %v520_v36, 4  ;;  %v5698_v34 = vrot.slane %v5682_v13, 9  ;;  %v2950_v38 = vrot.slane %v7529_v45, 5  ;;  %v2953_v39 = vrot.slane %v7535_v51, 5  ;;  %v5683_v45 = vld [vmem:[%s7444_s16 + $0x30] sm:$0xe] }
  0x68   : > { %v505_v23 = vsel %vm7476_vm2, %v500_v62, %v504_v1  ;;  %v513_v42 = vor.u32 %v512_v18, %v509_v32  ;;  %v528_v43 = vrot.slane %v526_v27, 5  ;;  %v531_v44 = vshrl.u32 %v7774_v16, 16  ;;  %v259_v62 = vld [vmem:[%s7444_s16 + $0x98] sm:$0x1] }
  0x69   : > { %v5473_v49 = vcombine.low %v495_v8, %v505_v23  ;;  %6556 = vmatmul.mubr.bf16.vlgmr.msra.gmra.mrb[0].mxu0 %v5713_v15  ;;  %v523_v50 = vor.u32 %v522_v30, %v518_v26  ;;  %v2951_v52 = vsel %vm7722_vm5, %v5698_v34, %v2950_v38  ;;  %v2952_v53 = vrot.slane %v2950_v38, 4  ;;  %v7063_v30 = vld [vmem:[%s9256_s1 + $0x198] sm:$0xff]  }
  0x6a   : > { %6588 = vmatpush3.bf16.msra.mxu0 %v7665_v6  ;;  %v514_v51 = vrot.slane %v513_v42, 4  ;;  %v533_v55 = vrot.slane %v531_v44, 4  ;;  %v534_v48 = vshll.u32 %v7774_v16, 16  ;;  %v540_v56 = vshll.u32 %v7782_v40, 16  ;;  %v7061_v6 = vld [vmem:[%s9256_s1 + $0x190] sm:$0xff]  }
  0x6b   : > { %6332 = vmatmul.mubr.bf16.gmra.mrb[16].mxu1 %v5473_v49  ;;  %v524_v57 = vrot.slane %v523_v50, 4  ;;  %v2954_v58 = vsel %vm7722_vm5, %v2952_v53, %v2953_v39  ;;  %v544_v59 = vshrl.u32 %v7782_v40, 16  ;;  %v550_v24 = vshll.u32 %v258_v31, 16  ;;  %6589 = vmatprep.subr.bf16.mxu0 %v7059_v29  ;;  %v5684_v38 = vld [vmem:[%s7444_s16 + $0x3c] sm:$0xe] }
  0x6c   : > { %v519_v61 = vsel %vm7476_vm2, %v514_v51, %v518_v26  ;;  %v5714_v63 = vcombine.low %v2951_v52, %v2954_v58  ;;  %v536_v41 = vrot.slane %v534_v48, 5  ;;  %v542_v1 = vrot.slane %v540_v56, 5  ;;  %v7824_v31 = vld [vmem:[%s7444_s16 + $0x9c] sm:$0xf]  ;;  %v7833_v48 = vld [vmem:[%s7444_s16 + $0xa0] sm:$0xf] }
  0x6d   : > { %v529_v7 = vsel %vm7476_vm2, %v524_v57, %v528_v43  ;;  %v546_v10 = vrot.slane %v544_v59, 4  ;;  %v552_v11 = vrot.slane %v550_v24, 5  ;;  %v5699_v12 = vrot.slane %v5683_v45, 9  ;;  %v7067_v56 = vld [vmem:[%s9256_s1 + $0x1a0] sm:$0xff]  }
  0x6e   : > { %v5474_v13 = vcombine.low %v519_v61, %v529_v7  ;;  %6559 = vmatprep.mubr.bf16.mxu0 %v5714_v63  ;;  %v537_v8 = vor.u32 %v536_v41, %v533_v55  ;;  %v2957_v15 = vrot.slane %v7560_v33, 5  ;;  %v2960_v32 = vrot.slane %v7571_v46, 5  ;;  %6590 = vmatpush3.bf16.msra.mxu0 %v7059_v29  ;;  %v260_v61 = vld [vmem:[%s7444_s16 + $0xa4] sm:$0x1] }
  0x6f   : > { %v547_v36 = vor.u32 %v546_v10, %v542_v1  ;;  %v555_v18 = vshrl.u32 %v7803_v2, 16  ;;  %v558_v26 = vshll.u32 %v7803_v2, 16  ;;  %v564_v27 = vshll.u32 %v7806_v3, 16  ;;  %6591 = vmatprep.subr.bf16.mxu0 %v7061_v6 }
  0x70   : > { %6335 = vmatprep.mubr.bf16.mxu1 %v5474_v13  ;;  %v538_v34 = vrot.slane %v537_v8, 4  ;;  %v2958_v33 = vsel %vm7722_vm5, %v5699_v12, %v2957_v15  ;;  %v2959_v46 = vrot.slane %v2957_v15, 4  ;;  %v568_v29 = vshrl.u32 %v7806_v3, 16  ;;  %v5685_v15 = vld [vmem:[%s7444_s16 + $0x48] sm:$0xe] }
  0x71   : > { %v548_v39 = vrot.slane %v547_v36, 4  ;;  %v557_v23 = vrot.slane %v555_v18, 4  ;;  %v560_v42 = vrot.slane %v558_v26, 5  ;;  %v566_v43 = vrot.slane %v564_v27, 5  ;;  %v7858_v27 = vld [vmem:[%s7444_s16 + $0xa8] sm:$0xf] }
  0x72   : > { %v543_v44 = vsel %vm7476_vm2, %v538_v34, %v542_v1  ;;  %v2961_v49 = vsel %vm7722_vm5, %v2959_v46, %v2960_v32  ;;  %v570_v50 = vrot.slane %v568_v29, 4  ;;  %v574_v52 = vshll.u32 %v259_v62, 16  ;;  %6592 = vmatpush3.bf16.msra.mxu0 %v7061_v6  ;;  %v7071_v32 = vld [vmem:[%s9256_s1 + $0x1a8] sm:$0xff]  }
  0x73   : > { %v553_v53 = vsel %vm7476_vm2, %v548_v39, %v552_v11  ;;  %v5715_v45 = vcombine.low %v2958_v33, %v2961_v49  ;;  %v561_v51 = vor.u32 %v560_v42, %v557_v23  ;;  %v5700_v55 = vrot.slane %v5684_v38, 9  ;;  %6593 = vmatprep.subr.bf16.mxu0 %v7063_v30  ;;  %v7861_v29 = vld [vmem:[%s7444_s16 + $0xac] sm:$0xf] }
  0x74   : > { %v5475_v57 = vcombine.low %v543_v44, %v553_v53  ;;  %v571_v58 = vor.u32 %v570_v50, %v566_v43  ;;  %v576_v59 = vrot.slane %v574_v52, 5  ;;  %v2964_v24 = vrot.slane %v7594_v19, 5  ;;  %v5686_v53 = vld [vmem:[%s7444_s16 + $0x54] sm:$0xe] }
  0x75   : > { %6560 = vmatmul.mubr.bf16.gmra.mrb[4].mxu0 %v5715_v45  ;;  %v562_v6 = vrot.slane %v561_v51, 4  ;;  %v2967_v63 = vrot.slane %v7602_v28, 5  ;;  %v579_v41 = vshrl.u32 %v7824_v31, 16  ;;  %v582_v1 = vshll.u32 %v7824_v31, 16  ;;  %v7075_v45 = vld [vmem:[%s9256_s1 + $0x1b0] sm:$0xff]  }
  0x76   : > { %6336 = vmatmul.mubr.bf16.gmra.mrb[20].mxu1 %v5475_v57  ;;  %v572_v7 = vrot.slane %v571_v58, 4  ;;  %v2965_v10 = vsel %vm7722_vm5, %v5700_v55, %v2964_v24  ;;  %v2966_v11 = vrot.slane %v2964_v24, 4  ;;  %v588_v12 = vshll.u32 %v7833_v48, 16  ;;  %6594 = vmatpush3.bf16.msra.mxu0 %v7063_v30 }
  0x77   : > { %v567_v19 = vsel %vm7476_vm2, %v562_v6, %v566_v43  ;;  %v581_v13 = vrot.slane %v579_v41, 4  ;;  %v584_v28 = vrot.slane %v582_v1, 5  ;;  %v592_v8 = vshrl.u32 %v7833_v48, 16  ;;  %6595 = vmatprep.subr.bf16.mxu0 %v7067_v56  ;;  %v261_v43 = vld [vmem:[%s7444_s16 + $0xb0] sm:$0x1] }
  0x78   : > { %v577_v36 = vsel %vm7476_vm2, %v572_v7, %v576_v59  ;;  %v2968_v62 = vsel %vm7722_vm5, %v2966_v11, %v2967_v63  ;;  %v590_v18 = vrot.slane %v588_v12, 5  ;;  %v598_v26 = vshll.u32 %v260_v61, 16  ;;  %v7881_v41 = vld [vmem:[%s7444_s16 + $0xb4] sm:$0xf]  ;;  %v7886_v12 = vld [vmem:[%s7444_s16 + $0xb8] sm:$0xf] }
  0x79   : > { %v5476_v30 = vcombine.low %v567_v19, %v577_v36  ;;  %v5716_v34 = vcombine.low %v2965_v10, %v2968_v62  ;;  %v585_v33 = vor.u32 %v584_v28, %v581_v13  ;;  %v594_v46 = vrot.slane %v592_v8, 4  ;;  %v262_v19 = vld [vmem:[%s7444_s16 + $0xbc] sm:$0x1] }
  0x7a   : > { %v600_v38 = vrot.slane %v598_v26, 5  ;;  %v5701_v39 = vrot.slane %v5685_v15, 9  ;;  %v2971_v23 = vrot.slane %v7629_v14, 5  ;;  %v2974_v42 = vrot.slane %v7635_v22, 5  ;;  %6596 = vmatpush3.bf16.msra.mxu0 %v7067_v56  ;;  %v7079_v13 = vld [vmem:[%s9256_s1 + $0x1b8] sm:$0xff]  }
  0x7b   : > { %6339 = vmatprep.mubr.bf16.mxu1 %v5476_v30  ;;  %6563 = vmatprep.mubr.bf16.mxu0 %v5716_v34  ;;  %v586_v44 = vrot.slane %v585_v33, 4  ;;  %v595_v49 = vor.u32 %v594_v46, %v590_v18  ;;  %v603_v50 = vshrl.u32 %v7858_v27, 16  ;;  %v606_v52 = vshll.u32 %v7858_v27, 16  ;;  %v5687_v30 = vld [vmem:[%s7444_s16 + $0x60] sm:$0xe] }
  0x7c   : > { %v2972_v14 = vsel %vm7722_vm5, %v5701_v39, %v2971_v23  ;;  %v2973_v22 = vrot.slane %v2971_v23, 4  ;;  %v612_v51 = vshll.u32 %v7861_v29, 16  ;;  %v616_v55 = vshrl.u32 %v7861_v29, 16  ;;  %6597 = vmatprep.subr.bf16.mxu0 %v7071_v32  ;;  %v5633_v39 = vld [vmem:[%s7444_s16 + $0x70] sm:$0xf] }
  0x7d   : > { %v591_v56 = vsel %vm7476_vm2, %v586_v44, %v590_v18  ;;  %v596_v57 = vrot.slane %v595_v49, 4  ;;  %v605_v58 = vrot.slane %v603_v50, 4  ;;  %v608_v59 = vrot.slane %v606_v52, 5  ;;  %v7908_v44 = vld [vmem:[%s9256_s1 + $0x1c0] sm:$0xff]  }
  0x7e   : > { %v2975_v24 = vsel %vm7722_vm5, %v2973_v22, %v2974_v42  ;;  %v614_v61 = vrot.slane %v612_v51, 5  ;;  %v618_v6 = vrot.slane %v616_v55, 4  ;;  %v622_v63 = vshll.u32 %v261_v43, 16  ;;  %6598 = vmatpush3.bf16.msra.mxu0 %v7071_v32  ;;  %v5688_v43 = vld [vmem:[%s7444_s16 + $0x6c] sm:$0xe] }
  0x7f   : > { %v601_v1 = vsel %vm7476_vm2, %v596_v57, %v600_v38  ;;  %v5717_v7 = vcombine.low %v2972_v14, %v2975_v24  ;;  %v609_v10 = vor.u32 %v608_v59, %v605_v58  ;;  %v5702_v11 = vrot.slane %v5686_v53, 9  ;;  %6599 = vmatprep.subr.bf16.mxu0 %v7075_v45  ;;  %v5634_v55 = vld [vmem:[%s7444_s16 + $0x74] sm:$0x1]  ;;  %v5689_v24 = vld [vmem:[%s7444_s16 + $0x78] sm:$0xe] }
  0x80   : > { %v5477_v28 = vcombine.low %v591_v56, %v601_v1  ;;  %v619_v8 = vor.u32 %v618_v6, %v614_v61  ;;  %v624_v15 = vrot.slane %v622_v63, 5  ;;  %v2978_v32 = vrot.slane %v7660_v0, 5 }
  0x81   : > { %6564 = vmatmul.mubr.bf16.gmra.mrb[8].mxu0 %v5717_v7  ;;  %v610_v36 = vrot.slane %v609_v10, 4  ;;  %v2981_v62 = vrot.slane %v7672_v20, 5  ;;  %v627_v18 = vshrl.u32 %v7881_v41, 16  ;;  %v630_v26 = vshll.u32 %v7881_v41, 16 }
  0x82   : > { %6340 = vmatmul.mubr.bf16.gmra.mrb[24].mxu1 %v5477_v28  ;;  %v620_v34 = vrot.slane %v619_v8, 4  ;;  %v2979_v33 = vsel %vm7722_vm5, %v5702_v11, %v2978_v32  ;;  %v2980_v46 = vrot.slane %v2978_v32, 4  ;;  %v636_v38 = vshll.u32 %v7886_v12, 16  ;;  %6600 = vmatpush3.bf16.msra.mxu0 %v7075_v45  ;;  %v7921_v11 = vld [vmem:[%s7444_s16 + $0x7c] sm:$0xf] }
  0x83   : > { %v615_v0 = vsel %vm7476_vm2, %v610_v36, %v614_v61  ;;  %v629_v20 = vrot.slane %v627_v18, 4  ;;  %v632_v23 = vrot.slane %v630_v26, 5  ;;  %v640_v42 = vshrl.u32 %v7886_v12, 16  ;;  %6601 = vmatprep.subr.bf16.mxu0 %v7079_v13  ;;  %v7276_v36 = vld [vmem:[%s7444_s16] sm:$0xf] }
  0x84   : > { %v625_v49 = vsel %vm7476_vm2, %v620_v34, %v624_v15  ;;  %v2982_v50 = vsel %vm7722_vm5, %v2980_v46, %v2981_v62  ;;  %v638_v52 = vrot.slane %v636_v38, 5  ;;  %v646_v53 = vshll.u32 %v262_v19, 16  ;;  %v5639_v15 = vld [vmem:[%s7444_s16 + $0x88] sm:$0xf]  ;;  %v7936_v62 = vld [vmem:[%s7444_s16 + $0x4] sm:$0xf] }
  0x85   : > { %v5478_v45 = vcombine.low %v615_v0, %v625_v49  ;;  %v5718_v14 = vcombine.low %v2979_v33, %v2982_v50  ;;  %v633_v22 = vor.u32 %v632_v23, %v629_v20  ;;  %v642_v51 = vrot.slane %v640_v42, 4  ;;  %v5640_v26 = vld [vmem:[%s7444_s16 + $0x8c] sm:$0x1]  ;;  %v5643_v23 = vld [vmem:[%s7444_s16 + $0x98] sm:$0x1] }
  0x86   : > { %v648_v56 = vrot.slane %v646_v53, 5  ;;  %v5703_v57 = vrot.slane %v5687_v30, 9  ;;  %v2985_v58 = vrot.slane %v7687_v60, 5  ;;  %v2988_v59 = vrot.slane %v7696_v17, 5  ;;  %6602 = vmatpush3.bf16.msra.mxu0 %v7079_v13  ;;  %v7924_v17 = vld [vmem:[%s7444_s16 + $0x80] sm:$0x1] }
  0x87   : > { %6343 = vmatprep.mubr.bf16.mxu1 %v5478_v45  ;;  %6567 = vmatprep.mubr.bf16.mxu0 %v5718_v14  ;;  %v634_v61 = vrot.slane %v633_v22, 4  ;;  %v643_v6 = vor.u32 %v642_v51, %v638_v52  ;;  %v5704_v63 = vrot.slane %v5688_v43, 9  ;;  %v2992_v1 = vrot.slane %v5633_v39, 5  ;;  %v5690_v30 = vld [vmem:[%s7444_s16 + $0x84] sm:$0xe] }
  0x88   : > { %v2986_v7 = vsel %vm7722_vm5, %v5703_v57, %v2985_v58  ;;  %v2987_v10 = vrot.slane %v2985_v58, 4  ;;  %v2995_v60 = vrot.slane %v5634_v55, 5  ;;  %6635 = vmatprep.subr.bf16.mxu0 %v7908_v44  ;;  %v5488_v18 = vcombine.low %v7276_v36, %v7936_v62  ;;  %v5642_v39 = vld [vmem:[%s7444_s16 + $0x94] sm:$0xf]  ;;  %v5691_v42 = vld [vmem:[%s7444_s16 + $0x90] sm:$0xe] }
  0x89   : > { %v639_v19 = vsel %vm7476_vm2, %v634_v61, %v638_v52  ;;  %v644_v13 = vrot.slane %v643_v6, 4  ;;  %v2993_v28 = vsel %vm7722_vm5, %v5704_v63, %v2992_v1  ;;  %v2994_v8 = vrot.slane %v2992_v1, 4  ;;  %v5692_v50 = vld [vmem:[%s7444_s16 + $0x9c] sm:$0xe]  ;;  %v5645_v14 = vld [vmem:[%s7444_s16 + $0xa0] sm:$0xf] }
  0x8a   : > { %v2989_v32 = vsel %vm7722_vm5, %v2987_v10, %v2988_v59  ;;  %v5705_v38 = vrot.slane %v5689_v24, 9  ;;  %v2999_v43 = vrot.slane %v7921_v11, 5  ;;  %v3002_v49 = vrot.slane %v7924_v17, 5  ;;  %v5646_v22 = vld [vmem:[%s7444_s16 + $0xa4] sm:$0x1] }
  0x8b   : > { %v649_v34 = vsel %vm7476_vm2, %v644_v13, %v648_v56  ;;  %v5719_v33 = vcombine.low %v2986_v7, %v2989_v32  ;;  %v2996_v46 = vsel %vm7722_vm5, %v2994_v8, %v2995_v60  ;;  %v5706_v52 = vrot.slane %v5690_v30, 9  ;;  %v5648_v59 = vld [vmem:[%s7444_s16 + $0xac] sm:$0xf]  ;;  %v7960_v61 = vld [vmem:[%s7444_s16 + $0x10] sm:$0xf] }
  0x8c   : > { %v5479_v0 = vcombine.low %v639_v19, %v649_v34  ;;  %v5720_v20 = vcombine.low %v2993_v28, %v2996_v46  ;;  %v3006_v53 = vrot.slane %v5639_v15, 5  ;;  %v3009_v45 = vrot.slane %v5640_v26, 5  ;;  %v7278_v24 = vld [vmem:[%s7444_s16 + $0xc] sm:$0xf]  ;;  %v7280_v8 = vld [vmem:[%s7444_s16 + $0x18] sm:$0xf] }
  0x8d   : > { %6568 = vmatmul.mubr.bf16.gmra.mrb[12].mxu0 %v5719_v33  ;;  %v3000_v51 = vsel %vm7722_vm5, %v5705_v38, %v2999_v43  ;;  %v3001_v55 = vrot.slane %v2999_v43, 4  ;;  %v3013_v58 = vrot.slane %v5642_v39, 5  ;;  %v5489_v6 = vcombine.low %v7278_v24, %v7960_v61  ;;  %v7070_v19 = vld [vmem:[%s9256_s1 + $0x88] sm:$0xff]   ;;  %v7972_v15 = vld [vmem:[%s7444_s16 + $0x1c] sm:$0xf] }
  0x8e   : > { %6344 = vmatmul.mubr.bf16.gmra.mrb[28].mxu1 %v5479_v0  ;;  %6571 = vmatprep.mubr.bf16.mxu0 %v5720_v20  ;;  %v3007_v56 = vsel %vm7722_vm5, %v5706_v52, %v3006_v53  ;;  %v3008_v57 = vrot.slane %v3006_v53, 4  ;;  %v5707_v1 = vrot.slane %v5691_v42, 9  ;;  %v3016_v7 = vrot.slane %v5643_v23, 5  ;;  %v5649_v30 = vld [vmem:[%s7444_s16 + $0xb0] sm:$0x1] }
  0x8f   : > { %6363 = vmatprep.mubr.bf16.mxu1 %v5488_v18  ;;  %v3003_v63 = vsel %vm7722_vm5, %v3001_v55, %v3002_v49  ;;  %v3015_v13 = vrot.slane %v3013_v58, 4  ;;  %v5708_v28 = vrot.slane %v5692_v50, 9  ;;  %v5490_v32 = vcombine.low %v7280_v8, %v7972_v15  ;;  %v5693_v34 = vld [vmem:[%s7444_s16 + $0xa8] sm:$0xe]  ;;  %v5651_v33 = vld [vmem:[%s7444_s16 + $0xb8] sm:$0xf] }
  0x90   : > { %v5721_v10 = vcombine.low %v3000_v51, %v3003_v63  ;;  %v3010_v60 = vsel %vm7722_vm5, %v3008_v57, %v3009_v45  ;;  %v3020_v18 = vrot.slane %v5645_v14, 5  ;;  %v3023_v26 = vrot.slane %v5646_v22, 5  ;;  %v5652_v20 = vld [vmem:[%s7444_s16 + $0xbc] sm:$0x1]  ;;  %v5694_v23 = vld [vmem:[%s7444_s16 + $0xb4] sm:$0xe] }
  0x91   : > { %v5722_v36 = vcombine.low %v3007_v56, %v3010_v60  ;;  %v3027_v38 = vrot.slane %v5648_v59, 5  ;;  %v3014_v39 = vsel %vm7722_vm5, %v5707_v1, %v3013_v58  ;;  %v3017_v0 = vsel %vm7722_vm5, %v3015_v13, %v3016_v7  ;;  %v7074_v50 = vld [vmem:[%s9256_s1 + $0x90] sm:$0xff]   ;;  %v5654_v53 = vld [vmem:[%s7444_s16 + $0xc4] sm:$0xf]  ;;  %v7995_v51 = vld [vmem:[%s7444_s16 + $0x28] sm:$0xf] }
  0x92   : > { %v3022_v46 = vrot.slane %v3020_v18, 4  ;;  %v3021_v42 = vsel %vm7722_vm5, %v5708_v28, %v3020_v18  ;;  %v3034_v49 = vrot.slane %v5651_v33, 5  ;;  %v5709_v52 = vrot.slane %v5693_v34, 9  ;;  %v7282_v22 = vld [vmem:[%s7444_s16 + $0x24] sm:$0xf]  ;;  %v7078_v1 = vld [vmem:[%s9256_s1 + $0x98] sm:$0xff]  }
  0x93   : > { %v5723_v45 = vcombine.low %v3014_v39, %v3017_v0  ;;  %v3029_v14 = vrot.slane %v3027_v38, 4  ;;  %v5491_v55 = vcombine.low %v7282_v22, %v7995_v51  ;;  %v7284_v57 = vld [vmem:[%s7444_s16 + $0x30] sm:$0xf]  ;;  %v8000_v58 = vld [vmem:[%s7444_s16 + $0x34] sm:$0xf]  ;;  %v5710_v24 = vrot.slane %v5694_v23, 9 }
  0x94   : > { %v3024_v43 = vsel %vm7722_vm5, %v3022_v46, %v3023_v26  ;;  %v5492_v59 = vcombine.low %v7284_v57, %v8000_v58  ;;  %v3037_v63 = vrot.slane %v5652_v20, 5  ;;  %v5695_v7 = vld [vmem:[%s7444_s16 + $0xc0] sm:$0xe]  ;;  %v3028_v60 = vsel %vm7722_vm5, %v5709_v52, %v3027_v38  ;;  %v5655_v8 = vld [vmem:[%s7444_s16 + $0xc8] sm:$0x1]  ;;  %v7081_v22 = vld [vmem:[%s7444_s16 + $0x18] sm:$0xff]  }
  0x95   : > { %6572 = vmatmul.mubr.bf16.gmra.mrb[16].mxu0 %v5721_v10  ;;  %v5724_v56 = vcombine.low %v3021_v42, %v3024_v43  ;;  %v3041_v10 = vrot.slane %v5654_v53, 5  ;;  %v3035_v13 = vsel %vm7722_vm5, %v5710_v24, %v3034_v49  ;;  %v5711_v18 = vrot.slane %v5695_v7, 9  ;;  %v7286_v26 = vld [vmem:[%s7444_s16 + $0x3c] sm:$0xf]  ;;  %v7288_v39 = vld [vmem:[%s7444_s16 + $0x48] sm:$0xf] }
  0x96   : > { %6364 = vmatmul.mubr.bf16.vlgmr.msra.gmra.mrb[0].mxu1 %v5489_v6  ;;  %6575 = vmatprep.mubr.bf16.mxu0 %v5722_v36  ;;  %v3036_v6 = vrot.slane %v3034_v49, 4  ;;  %v3044_v38 = vrot.slane %v5655_v8, 5  ;;  %v8026_v0 = vld [vmem:[%s7444_s16 + $0x4c] sm:$0xf]  ;;  %v7095_v49 = vld [vmem:[%s9256_s1 + $0xb0] sm:$0xff]   ;;  %v2395_v52 = vshrl.u32 %v7921_v11, 16 }
  0x97   : > { %6396 = vmatpush3.bf16.msra.mxu1 %v7646_v4  ;;  %6367 = vmatprep.mubr.bf16.mxu1 %v5490_v32  ;;  %v3030_v4 = vrot.slane %v5649_v30, 5  ;;  %v7083_v32 = vld [vmem:[%s9256_s1 + $0xa0] sm:$0xff]   ;;  %v3043_v46 = vrot.slane %v3041_v10, 4  ;;  %v5494_v20 = vcombine.low %v7288_v39, %v8026_v0  ;;  %v7089_v23 = vld [vmem:[%s9256_s1 + $0xa8] sm:$0xff]   ;;  %v3042_v42 = vsel %vm7722_vm5, %v5711_v18, %v3041_v10  ;;  %v7087_v18 = vld [vmem:[%s7444_s16 + $0x30] sm:$0xff]  }
  0x98   : > { %6397 = vmatprep.subr.bf16.mxu1 %v7070_v19  ;;  %v3038_v28 = vsel %vm7722_vm5, %v3036_v6, %v3037_v63  ;;  %v8021_v30 = vld [vmem:[%s7444_s16 + $0x40] sm:$0xf]  ;;  %v8054_v57 = vrot.slane %v2395_v52, 4  ;;  %v7084_v6 = vld [vmem:[%s7444_s16 + $0x24] sm:$0xff]   ;;  %v1304_v7 = vrot.slane %v7960_v61, 5  ;;  %v2401_v8 = vshll.u32 %v7924_v17, 16 }
  0x99   : > { %v5493_v34 = vcombine.low %v7286_v26, %v8021_v30  ;;  %v5726_v33 = vcombine.low %v3035_v13, %v3038_v28  ;;  %v3045_v43 = vsel %vm7722_vm5, %v3043_v46, %v3044_v38  ;;  %v1244_v63 = vld [vmem:[%s7444_s16] sm:$0xe]  ;;  %v1245_v10 = vld [vmem:[%s7444_s16 + $0xc] sm:$0xe]  ;;  %v1311_v13 = vrot.slane %v7972_v15, 5 }
  0x9a   : > { %v5727_v53 = vcombine.low %v3042_v42, %v3045_v43  ;;  %v1247_v61 = vld [vmem:[%s7444_s16 + $0x24] sm:$0xe]  ;;  %v5499_v15 = vcombine.low %v7774_v16, %v7782_v40  ;;  %v5500_v26 = vcombine.low %v7803_v2, %v7806_v3  ;;  %v5512_v17 = vrot.slane %v1244_v63, 9  ;;  %v7294_v38 = vld [vmem:[%s7444_s16 + $0x20] sm:$0x1]  ;;  %v7096_v2 = vld [vmem:[%s7444_s16 + $0x54] sm:$0xff]  }
  0x9b   : > { %6398 = vmatpush3.bf16.msra.mxu1 %v7070_v19  ;;  %v3031_v19 = vsel %vm7722_vm5, %v3029_v14, %v3030_v4  ;;  %v8043_v14 = vld [vmem:[%s7444_s16 + $0x58] sm:$0xf]  ;;  %v1313_v46 = vrot.slane %v1311_v13, 4  ;;  %v1314_v39 = vrot.slane %v7294_v38, 5  ;;  %v7295_v43 = vld [vmem:[%s7444_s16 + $0x2c] sm:$0x1] }
  0x9c   : > { %6399 = vmatprep.subr.bf16.mxu1 %v7074_v50  ;;  %v5725_v36 = vcombine.low %v3028_v60, %v3031_v19  ;;  %v8069_v60 = vld [vmem:[%s9256_s1 + $0xc0] sm:$0xff]   ;;  %v1246_v19 = vld [vmem:[%s7444_s16 + $0x18] sm:$0xe]  ;;  %v7298_v38 = vld [vmem:[%s7444_s16 + $0x50] sm:$0x1]  ;;  %v1346_v16 = vrot.slane %v8043_v14, 5 }
  0x9d   : > { %6576 = vmatmul.mubr.bf16.gmra.mrb[20].mxu0 %v5723_v45  ;;  %v7290_v45 = vld [vmem:[%s7444_s16 + $0x54] sm:$0xf]  ;;  %v8192_v40 = vld [vmem:[%s7444_s16 + $0x64] sm:$0xf] }
  0x9e   : > { %6368 = vmatmul.mubr.bf16.gmra.mrb[4].mxu1 %v5491_v55  ;;  %6579 = vmatprep.mubr.bf16.mxu0 %v5724_v56  ;;  %v5495_v4 = vcombine.low %v7290_v45, %v8043_v14  ;;  %v5496_v55 = vcombine.low %v7700_v25, %v7703_v35  ;;  %v7101_v56 = vld [vmem:[%s9256_s1 + $0xb8] sm:$0xff]   ;;  %v7293_v25 = vld [vmem:[%s7444_s16 + $0x14] sm:$0x1]  ;;  %v7099_v3 = vld [vmem:[%s7444_s16 + $0x60] sm:$0xff]  }
  0x9f   : > { %6371 = vmatprep.mubr.bf16.mxu1 %v5492_v59  ;;  %6400 = vmatpush3.bf16.msra.mxu1 %v7074_v50  ;;  %v2391_v50 = vshll.u32 %v7921_v11, 16  ;;  %v8057_v59 = vld [vmem:[%s7444_s16 + $0x8] sm:$0x1]  ;;  %v1307_v35 = vrot.slane %v7293_v25, 5 }
  0xa0   : > { %6401 = vmatprep.subr.bf16.mxu1 %v7078_v1  ;;  %v1300_v24 = vrot.slane %v8057_v59, 5 }
  0xa1   : > { %v8052_v11 = vrot.slane %v2391_v50, 5 }
  0xa3   : > { %6402 = vmatpush3.bf16.msra.mxu1 %v7078_v1  ;;  %v1297_v1 = vrot.slane %v7936_v62, 5  ;;  %v5497_v62 = vcombine.low %v7718_v5, %v7730_v21  ;;  %v5513_v21 = vrot.slane %v1245_v10, 9  ;;  %v5792_v10 = vld [vmem:[%s7444_s16 + $0x18] sm:$0xf] }
  0xa4   : > { %6403 = vmatprep.subr.bf16.mxu1 %v7083_v32 }
  0xa5   : > { %6580 = vmatmul.mubr.bf16.gmra.mrb[24].mxu0 %v5725_v36  ;;  %v5498_v36 = vcombine.low %v7741_v47, %v7752_v54  ;;  %v1299_v5 = vrot.slane %v1297_v1, 4  ;;  %v7091_v47 = vld [vmem:[%s9256_s1 + $0x1c8] sm:$0xff]   ;;  %v5514_v54 = vrot.slane %v1246_v19, 9  ;;  %v8112_v59 = vsel %vm7722_vm5, %v5512_v17, %v1297_v1  ;;  %v5793_v19 = vld [vmem:[%s7444_s16 + $0x1c] sm:$0xf] }
  0xa6   : > { %6372 = vmatmul.mubr.bf16.gmra.mrb[8].mxu1 %v5493_v34  ;;  %6583 = vmatprep.mubr.bf16.mxu0 %v5726_v33  ;;  %v1325_v34 = vrot.slane %v8000_v58, 5  ;;  %v1306_v33 = vrot.slane %v1304_v7, 4  ;;  %v5515_v58 = vrot.slane %v1247_v61, 9  ;;  %v1339_v1 = vrot.slane %v8026_v0, 5  ;;  %v7093_v0 = vld [vmem:[%s7444_s16 + $0x48] sm:$0xff]  }
  0xa7   : > { %6375 = vmatprep.mubr.bf16.mxu1 %v5494_v20  ;;  %6404 = vmatpush3.bf16.msra.mxu1 %v7083_v32  ;;  %v1318_v32 = vrot.slane %v7995_v51, 5  ;;  %v1248_v51 = vld [vmem:[%s7444_s16 + $0x30] sm:$0xe]  ;;  %v5501_v20 = vcombine.low %v7824_v31, %v7833_v48  ;;  %v8120_v25 = vsel %vm7722_vm5, %v1299_v5, %v1300_v24  ;;  %v8128_v63 = vsel %vm7722_vm5, %v5514_v54, %v1311_v13  ;;  %v1250_v13 = vld [vmem:[%s7444_s16 + $0x48] sm:$0xe] }
  0xa8   : > { %6405 = vmatprep.subr.bf16.mxu1 %v7089_v23  ;;  %v5516_v50 = vrot.slane %v1248_v51, 9  ;;  %v1327_v52 = vrot.slane %v1325_v34, 4  ;;  %v3805_v5 = vshrl.u32 %v5792_v10, 16  ;;  %v3818_v51 = vshrl.u32 %v5793_v19, 16  ;;  %v7102_v48 = vld [vmem:[%s7444_s16 + $0x6c] sm:$0xff]  }
  0xa9   : > { %v1320_v42 = vrot.slane %v1318_v32, 4  ;;  %v8140_v24 = vsel %vm7722_vm5, %v5515_v58, %v1318_v32  ;;  %v7297_v32 = vld [vmem:[%s7444_s16 + $0x44] sm:$0x1]  ;;  %v5518_v54 = vrot.slane %v1250_v13, 9  ;;  %v5796_v13 = vld [vmem:[%s7444_s16 + $0x28] sm:$0xf] }
  0xaa   : > { %v8150_v61 = vsel %vm7722_vm5, %v5516_v50, %v1325_v34  ;;  %v1335_v17 = vrot.slane %v7297_v32, 5  ;;  %v5794_v50 = vld [vmem:[%s7444_s16 + $0x20] sm:$0x1]  ;;  %v1252_v32 = vld [vmem:[%s7444_s16 + $0x60] sm:$0xe] }
  0xab   : > { %6406 = vmatpush3.bf16.msra.mxu1 %v7089_v23  ;;  %v5502_v23 = vcombine.low %v7858_v27, %v7861_v29 }
  0xac   : > { %6407 = vmatprep.subr.bf16.mxu1 %v7095_v49 }
  0xad   : > { %6584 = vmatmul.mubr.bf16.gmra.mrb[28].mxu0 %v5727_v53  ;;  %v7296_v53 = vld [vmem:[%s7444_s16 + $0x38] sm:$0x1] }
  0xae   : > { %6376 = vmatmul.mubr.bf16.gmra.mrb[12].mxu1 %v5495_v4  ;;  %6603 = vmatprep.mubr.bf16.mxu0 %v7081_v22  ;;  %v1328_v45 = vrot.slane %v7296_v53, 5  ;;  %v1249_v4 = vld [vmem:[%s7444_s16 + $0x3c] sm:$0xe]  ;;  %v1332_v22 = vrot.slane %v8021_v30, 5  ;;  %v8116_v30 = vsel %vm7722_vm5, %v5513_v21, %v1304_v7  ;;  %v3808_v21 = vshll.u32 %v5792_v10, 16  ;;  %v7107_v53 = vld [vmem:[%s9256_s1 + $0x1e0] sm:$0xff]  }
  0xaf   : > { %6379 = vmatprep.mubr.bf16.mxu1 %v5496_v55  ;;  %6408 = vmatpush3.bf16.msra.mxu1 %v7095_v49  ;;  %v1321_v49 = vrot.slane %v7295_v43, 5  ;;  %v8103_v55 = vrot.slane %v2401_v8, 5  ;;  %v7090_v7 = vld [vmem:[%s7444_s16 + $0x3c] sm:$0xff]   ;;  %v8136_v8 = vsel %vm7722_vm5, %v1313_v46, %v1314_v39  ;;  %v1341_v46 = vrot.slane %v1339_v1, 4  ;;  %v5798_v43 = vld [vmem:[%s7444_s16 + $0x30] sm:$0xf] }
  0xb0   : > { %6409 = vmatprep.subr.bf16.mxu1 %v7101_v56  ;;  %v1342_v39 = vrot.slane %v7298_v38, 5  ;;  %v3807_v10 = vrot.slane %v3805_v5, 4 }
  0xb1   : > { %9277 = vst [vmem:[#allocation2_spill] sm:$0xff] %v8103_v55 }
  0xb3   : > { %6410 = vmatpush3.bf16.msra.mxu1 %v7101_v56  ;;  %v7097_v56 = vld [vmem:[%s9256_s1 + $0x1d0] sm:$0xff]  }
  0xb4   : > { %6443 = vmatprep.subr.bf16.mxu1 %v8069_v60 }
  0xb5   : > { %6604 = vmatmul.mubr.bf16.vlgmr.msra.gmra.mrb[0].mxu0 %v7084_v6  ;;  %v8124_v6 = vsel %vm7722_vm5, %v1306_v33, %v1307_v35  ;;  %v8144_v35 = vsel %vm7722_vm5, %v1320_v42, %v1321_v49  ;;  %v3814_v33 = vshll.u32 %v5793_v19, 16  ;;  %v3810_v19 = vrot.slane %v3808_v21, 5  ;;  %v1253_v21 = vld [vmem:[%s7444_s16 + $0x6c] sm:$0xe] }
  0xb6   : > { %6380 = vmatmul.mubr.bf16.gmra.mrb[16].mxu1 %v5497_v62  ;;  %6636 = vmatpush3.bf16.msra.mxu0 %v7908_v44  ;;  %v5517_v62 = vrot.slane %v1249_v4, 9  ;;  %v5521_v58 = vrot.slane %v1253_v21, 9 }
  0xb7   : > { %6383 = vmatprep.mubr.bf16.mxu1 %v5498_v36  ;;  %6607 = vmatprep.mubr.bf16.mxu0 %v7087_v18  ;;  %v8154_v36 = vsel %vm7722_vm5, %v1327_v52, %v1328_v45  ;;  %v1334_v18 = vrot.slane %v1332_v22, 4  ;;  %v5795_v52 = vld [vmem:[%s7444_s16 + $0x24] sm:$0xf]  ;;  %v3842_v45 = vshrl.u32 %v5796_v13, 16 }
  0xb8   : > { %6637 = vmatprep.subr.bf16.mxu0 %v7091_v47  ;;  %v8171_v49 = vsel %vm7722_vm5, %v5517_v62, %v1332_v22  ;;  %v8188_v22 = vld [vmem:[%s7444_s16 + $0x54] sm:$0xe]  ;;  %v3820_v62 = vrot.slane %v3818_v51, 4  ;;  %v3829_v38 = vshrl.u32 %v5795_v52, 16  ;;  %v3832_v28 = vshll.u32 %v5795_v52, 16 }
  0xb9   : > { %v8185_v4 = vsel %vm7722_vm5, %v1334_v18, %v1335_v17  ;;  %v3824_v17 = vshll.u32 %v5794_v50, 16  ;;  %v5519_v5 = vrot.slane %v8188_v22, 9  ;;  %v7111_v50 = vld [vmem:[%s9256_s1 + $0x1e8] sm:$0xff]   ;;  %v1348_v52 = vrot.slane %v1346_v16, 4 }
  0xba   : > { %6638 = vmatpush3.bf16.msra.mxu0 %v7091_v47  ;;  %v7103_v47 = vld [vmem:[%s9256_s1 + $0x1d8] sm:$0xff]   ;;  %v3811_v22 = vor.u32 %v3810_v19, %v3807_v10  ;;  %v3831_v34 = vrot.slane %v3829_v38, 4  ;;  %v3834_v44 = vrot.slane %v3832_v28, 5  ;;  %v7303_v10 = vld [vmem:[%s7444_s16 + $0x74] sm:$0x1]  ;;  %v3844_v28 = vrot.slane %v3842_v45, 4 }
  0xbb   : > { %6639 = vmatprep.subr.bf16.mxu0 %v7097_v56  ;;  %v8226_v42 = vrot.slane %v3824_v17, 5  ;;  %v1363_v19 = vrot.slane %v7303_v10, 5  ;;  %v3853_v38 = vshrl.u32 %v5798_v43, 16  ;;  %v8251_v27 = vsel %vm7722_vm5, %v5519_v5, %v1346_v16 }
  0xbc   : > { %v3812_v21 = vrot.slane %v3811_v22, 4 }
  0xbd   : > { %6608 = vmatmul.mubr.bf16.gmra.mrb[4].mxu0 %v7090_v7  ;;  %v8198_v7 = vrot.slane %v3814_v33, 5  ;;  %v7301_v33 = vld [vmem:[%s7444_s16 + $0x70] sm:$0xf] }
  0xbe   : > { %6384 = vmatmul.mubr.bf16.gmra.mrb[20].mxu1 %v5499_v15  ;;  %6611 = vmatprep.mubr.bf16.mxu0 %v7093_v0  ;;  %v1353_v15 = vrot.slane %v8192_v40, 5  ;;  %v7300_v0 = vld [vmem:[%s7444_s16 + $0x5c] sm:$0x1]  ;;  %v1360_v51 = vrot.slane %v7301_v33, 5 }
  0xbf   : > { %6387 = vmatprep.mubr.bf16.mxu1 %v5500_v26  ;;  %6640 = vmatpush3.bf16.msra.mxu0 %v7097_v56  ;;  %v1349_v18 = vrot.slane %v7300_v0, 5  ;;  %v8207_v26 = vsel %vm7722_vm5, %v5518_v54, %v1339_v1  ;;  %v8211_v56 = vsel %vm7722_vm5, %v1341_v46, %v1342_v39  ;;  %v7302_v1 = vld [vmem:[%s7444_s16 + $0x68] sm:$0x1]  ;;  %v3838_v0 = vshll.u32 %v5796_v13, 16  ;;  %v7119_v40 = vld [vmem:[%s9256_s1 + $0x1f8] sm:$0xff]  }
  0xc0   : > { %6641 = vmatprep.subr.bf16.mxu0 %v7103_v47  ;;  %v1356_v54 = vrot.slane %v7302_v1, 5  ;;  %v5520_v46 = vrot.slane %v1252_v32, 9  ;;  %v1355_v39 = vrot.slane %v1353_v15, 4  ;;  %v3821_v33 = vor.u32 %v3820_v62, %v8198_v7  ;;  %v5799_v1 = vld [vmem:[%s7444_s16 + $0x34] sm:$0xf] }
  0xc1   : > { %v1362_v32 = vrot.slane %v1360_v51, 4  ;;  %v5797_v62 = vld [vmem:[%s7444_s16 + $0x2c] sm:$0x1]  ;;  %v8238_v17 = vrot.slane %v3838_v0, 5  ;;  %v3862_v13 = vshll.u32 %v5799_v1, 16  ;;  %v3866_v31 = vshrl.u32 %v5799_v1, 16 }
  0xc2   : > { %v3822_v10 = vrot.slane %v3821_v33, 4  ;;  %v8255_v29 = vsel %vm7722_vm5, %v1348_v52, %v1349_v18  ;;  %v8262_v45 = vsel %vm7722_vm5, %v5520_v46, %v1353_v15  ;;  %v8266_v14 = vsel %vm7722_vm5, %v1355_v39, %v1356_v54  ;;  %v1254_v18 = vld [vmem:[%s7444_s16 + $0x78] sm:$0xe] }
  0xc3   : > { %6642 = vmatpush3.bf16.msra.mxu0 %v7103_v47  ;;  %v8270_v16 = vsel %vm7722_vm5, %v5521_v58, %v1360_v51  ;;  %v8280_v15 = vsel %vm7722_vm5, %v1362_v32, %v1363_v19  ;;  %v3845_v5 = vor.u32 %v3844_v28, %v8238_v17  ;;  %v3855_v52 = vrot.slane %v3853_v38, 4  ;;  %v5801_v58 = vld [vmem:[%s7444_s16 + $0x3c] sm:$0xf]  ;;  %v5802_v51 = vld [vmem:[%s7444_s16 + $0x40] sm:$0xf] }
  0xc4   : > { %6643 = vmatprep.subr.bf16.mxu0 %v7107_v53  ;;  %v3817_v0 = vsel %vm7476_vm2, %v3812_v21, %v8198_v7  ;;  %v3827_v46 = vsel %vm7476_vm2, %v3822_v10, %v8226_v42  ;;  %v8291_v39 = vrot.slane %v3862_v13, 5  ;;  %v3868_v22 = vrot.slane %v3866_v31, 4  ;;  %v7305_v19 = vld [vmem:[%s7444_s16 + $0x80] sm:$0x1]  ;;  %v8450_v47 = vld [vmem:[%s7444_s16 + $0x68] sm:$0x1] }
  0xc5   : > { %6612 = vmatmul.mubr.bf16.gmra.mrb[8].mxu0 %v7096_v2  ;;  %v3856_v2 = vshll.u32 %v5798_v43, 16  ;;  %v3848_v43 = vshll.u32 %v5797_v62, 16  ;;  %v5522_v32 = vrot.slane %v1254_v18, 9  ;;  %v1255_v62 = vld [vmem:[%s7444_s16 + $0x84] sm:$0xe]  ;;  %v3877_v28 = vshrl.u32 %v5801_v58, 16 }
  0xc6   : > { %6388 = vmatmul.mubr.bf16.gmra.mrb[24].mxu1 %v5501_v20  ;;  %6615 = vmatprep.mubr.bf16.mxu0 %v7099_v3  ;;  %v7115_v20 = vld [vmem:[%s9256_s1 + $0x1f0] sm:$0xff]   ;;  %v7304_v3 = vld [vmem:[%s7444_s16 + $0x7c] sm:$0xf]  ;;  %v3880_v7 = vshll.u32 %v5801_v58, 16  ;;  %v3886_v38 = vshll.u32 %v5802_v51, 16  ;;  %v9278_v42 = vcombine.low %v7881_v41, %v7886_v12  ;;  %v8302_v13 = vrot.slane %v3845_v5, 4 }
  0xc7   : > { %6391 = vmatprep.mubr.bf16.mxu1 %v5502_v23  ;;  %6644 = vmatpush3.bf16.msra.mxu0 %v7107_v53  ;;  %v3835_v23 = vor.u32 %v3834_v44, %v3831_v34  ;;  %v7104_v53 = vld [vmem:[%s7444_s16 + $0x78] sm:$0xff]   ;;  %v1367_v44 = vrot.slane %v7304_v3, 5  ;;  %v3858_v54 = vrot.slane %v3856_v2, 5  ;;  %v8295_v1 = vrot.slane %v3848_v43, 5  ;;  %v8307_v21 = vld [vmem:[%s9256_s1 + $0x200] sm:$0xff]   ;;  %9286 = vst [vmem:[#allocation5_spill] sm:$0xff] %v8450_v47 }
  0xc8   : > { %6645 = vmatprep.subr.bf16.mxu0 %v7111_v50  ;;  %v5800_v34 = vld [vmem:[%s7444_s16 + $0x38] sm:$0x1]  ;;  %v3890_v2 = vshrl.u32 %v5802_v51, 16  ;;  %v7106_v43 = vld [vmem:[%s7444_s16 + $0x84] sm:$0xff]   ;;  %v3869_v12 = vor.u32 %v3868_v22, %v8291_v39  ;;  %v3882_v58 = vrot.slane %v3880_v7, 5  ;;  %v8329_v51 = vrot.slane %v3886_v38, 5 }
  0xc9   : > { %v8293_v33 = vrot.slane %v3835_v23, 4  ;;  %v1369_v10 = vrot.slane %v1367_v44, 4  ;;  %v3859_v31 = vor.u32 %v3858_v54, %v3855_v52  ;;  %v9279_v23 = vcombine.low %v8112_v59, %v8120_v25  ;;  %v7306_v18 = vld [vmem:[%s7444_s16 + $0x88] sm:$0xf]  ;;  %v5803_v5 = vld [vmem:[%s7444_s16 + $0x44] sm:$0x1] }
  0xca   : > { %v1374_v3 = vrot.slane %v7306_v18, 5  ;;  %v8320_v59 = vcombine.low %v3817_v0, %v3827_v46  ;;  %v5804_v52 = vld [vmem:[%s7444_s16 + $0x48] sm:$0xf]  ;;  %v3879_v54 = vrot.slane %v3877_v28, 4  ;;  %v3892_v22 = vrot.slane %v3890_v2, 4 }
  0xcb   : > { %6646 = vmatpush3.bf16.msra.mxu0 %v7111_v50  ;;  %v1370_v50 = vrot.slane %v7305_v19, 5  ;;  %v7108_v19 = vld [vmem:[%s7444_s16 + $0x90] sm:$0xff]   ;;  %v3841_v0 = vsel %vm7476_vm2, %v8293_v33, %v8238_v17  ;;  %v3860_v46 = vrot.slane %v3859_v31, 4  ;;  %v3851_v28 = vsel %vm7476_vm2, %v8302_v13, %v8295_v1  ;;  %v8351_v33 = vld [vmem:[%s7444_s16 + $0x58] sm:$0xf]  ;;  %v7109_v31 = vld [vmem:[%s9256_s1 + $0xc8] sm:$0xff]  }
  0xcc   : > { %6647 = vmatprep.subr.bf16.mxu0 %v7115_v20  ;;  %v3870_v38 = vrot.slane %v3869_v12, 4  ;;  %v1376_v2 = vrot.slane %v1374_v3, 4  ;;  %v5807_v17 = vld [vmem:[%s7444_s16 + $0x54] sm:$0xf]  ;;  %v3896_v1 = vshll.u32 %v5803_v5, 16  ;;  %v3901_v13 = vshrl.u32 %v5804_v52, 16 }
  0xcd   : > { %6616 = vmatmul.mubr.bf16.gmra.mrb[12].mxu0 %v7102_v48  ;;  %v3872_v48 = vshll.u32 %v5800_v34, 16  ;;  %v8347_v7 = vsel %vm7722_vm5, %v1369_v10, %v1370_v50  ;;  %v3904_v50 = vshll.u32 %v5804_v52, 16  ;;  %v3883_v10 = vor.u32 %v3882_v58, %v3879_v54  ;;  %v7110_v54 = vld [vmem:[%s7444_s16 + $0x9c] sm:$0xff]   ;;  %v7312_v41 = vld [vmem:[%s7444_s16 + $0xac] sm:$0xf] }
  0xce   : > { %6392 = vmatmul.mubr.bf16.gmra.mrb[28].mxu1 %v9278_v42  ;;  %6619 = vmatprep.mubr.bf16.mxu0 %v7104_v53  ;;  %v5523_v53 = vrot.slane %v1255_v62, 9  ;;  %v7307_v42 = vld [vmem:[%s7444_s16 + $0x8c] sm:$0x1]  ;;  %v3934_v5 = vshll.u32 %v8351_v33, 16  ;;  %v9281_v52 = vcombine.low %v8128_v63, %v8136_v8  ;;  %v8387_v63 = vld [vmem:[%s7444_s16 + $0x50] sm:$0x1] }
  0xcf   : > { %6411 = vmatprep.mubr.bf16.mxu1 %v9279_v23  ;;  %6648 = vmatpush3.bf16.msra.mxu0 %v7115_v20  ;;  %v8326_v20 = vsel %vm7722_vm5, %v5522_v32, %v1367_v44  ;;  %v3874_v62 = vrot.slane %v3872_v48, 5  ;;  %v1377_v23 = vrot.slane %v7307_v42, 5  ;;  %v1256_v44 = vld [vmem:[%s7444_s16 + $0x90] sm:$0xe]  ;;  %v8339_v32 = vld [vmem:[%s7444_s16 + $0x4c] sm:$0xf]  ;;  %v3893_v48 = vor.u32 %v3892_v22, %v8329_v51 }
  0xd0   : > { %6649 = vmatprep.subr.bf16.mxu0 %v7119_v40  ;;  %v3910_v12 = vshll.u32 %v8339_v32, 16  ;;  %v3914_v18 = vshrl.u32 %v8339_v32, 16  ;;  %v9280_v42 = vcombine.low %v8116_v30, %v8124_v6  ;;  %v7113_v30 = vld [vmem:[%s9256_s1 + $0xd0] sm:$0xff]   ;;  %v3865_v6 = vsel %vm7476_vm2, %v3860_v46, %v8291_v39  ;;  %v7112_v8 = vld [vmem:[%s7444_s16 + $0xa8] sm:$0xff]   ;;  %v8394_v39 = vld [vmem:[%s7444_s16 + $0x5c] sm:$0x1] }
  0xd1   : > { %v3875_v58 = vsel %vm7476_vm2, %v3870_v38, %v3874_v62  ;;  %v5524_v22 = vrot.slane %v1256_v44, 9  ;;  %v3906_v25 = vrot.slane %v3904_v50, 5  ;;  %9282 = vst [vmem:[#allocation3_spill] sm:$0xff] %v8394_v39  ;;  %v3884_v46 = vrot.slane %v3883_v10, 4 }
  0xd2   : > { %v3894_v62 = vrot.slane %v3893_v48, 4  ;;  %v8396_v38 = vrot.slane %v3910_v12, 5  ;;  %v8398_v34 = vrot.slane %v3934_v5, 5  ;;  %v8403_v50 = vcombine.low %v3841_v0, %v3851_v28  ;;  %v5810_v28 = vld [vmem:[%s7444_s16 + $0x60] sm:$0xf] }
  0xd3   : > { %6650 = vmatpush3.bf16.msra.mxu0 %v7119_v40  ;;  %v8359_v40 = vsel %vm7722_vm5, %v5523_v53, %v1374_v3  ;;  %v3925_v53 = vshrl.u32 %v5807_v17, 16  ;;  %v3928_v3 = vshll.u32 %v5807_v17, 16  ;;  %v7308_v17 = vld [vmem:[%s7444_s16 + $0x94] sm:$0xf]  ;;  %v8407_v48 = vcombine.low %v3865_v6, %v3875_v58 }
  0xd4   : > { %6683 = vmatprep.subr.bf16.mxu0 %v8307_v21  ;;  %v3920_v0 = vshll.u32 %v8387_v63, 16  ;;  %v3889_v6 = vsel %vm7476_vm2, %v3884_v46, %v8329_v51  ;;  %v9285_v46 = vcombine.low %v8150_v61, %v8154_v36 }
  0xd5   : > { %6620 = vmatmul.mubr.bf16.gmra.mrb[16].mxu0 %v7106_v43  ;;  %v3938_v43 = vshrl.u32 %v8351_v33, 16  ;;  %v3927_v44 = vrot.slane %v3925_v53, 4  ;;  %v7309_v53 = vld [vmem:[%s7444_s16 + $0x98] sm:$0x1] }
  0xd6   : > { %6412 = vmatmul.mubr.bf16.vlgmr.msra.gmra.mrb[0].mxu1 %v9280_v42  ;;  %6623 = vmatprep.mubr.bf16.mxu0 %v7108_v19  ;;  %v8390_v19 = vrot.slane %v3896_v1, 5  ;;  %v1381_v42 = vrot.slane %v7308_v17, 5  ;;  %v7310_v17 = vld [vmem:[%s7444_s16 + $0xa0] sm:$0xf]  ;;  %v3922_v36 = vrot.slane %v3920_v0, 5 }
  0xd7   : > { %6444 = vmatpush3.bf16.msra.mxu1 %v8069_v60  ;;  %6415 = vmatprep.mubr.bf16.mxu1 %v9281_v52  ;;  %v8384_v60 = vsel %vm7722_vm5, %v1376_v2, %v1377_v23  ;;  %v3903_v52 = vrot.slane %v3901_v13, 4  ;;  %v3916_v23 = vrot.slane %v3914_v18, 4  ;;  %v3930_v2 = vrot.slane %v3928_v3, 5  ;;  %v7117_v13 = vld [vmem:[%s9256_s1 + $0xd8] sm:$0xff]  }
  0xd8   : > { %6445 = vmatprep.subr.bf16.mxu1 %v7109_v31  ;;  %v3940_v1 = vrot.slane %v3938_v43, 4  ;;  %v1257_v18 = vld [vmem:[%s7444_s16 + $0x9c] sm:$0xe]  ;;  %v1384_v3 = vrot.slane %v7309_v53, 5  ;;  %v8420_v43 = vld [vmem:[%s7444_s16 + $0x64] sm:$0xf] }
  0xd9   : > { %v3907_v5 = vor.u32 %v3906_v25, %v3903_v52  ;;  %9283 = vst [vmem:[#allocation4_spill] sm:$0xff] %v8420_v43  ;;  %v3917_v58 = vor.u32 %v3916_v23, %v8396_v38  ;;  %v1388_v12 = vrot.slane %v7310_v17, 5  ;;  %v9284_v25 = vcombine.low %v8140_v24, %v8144_v35  ;;  %v7114_v23 = vld [vmem:[%s7444_s16 + $0xb4] sm:$0xff]   ;;  %v7120_v24 = vld [vmem:[%s9256_s1 + $0xe0] sm:$0xff]   ;;  %v5813_v17 = vld [vmem:[%s7444_s16 + $0x6c] sm:$0xf] }
  0xda   : > { %v1383_v52 = vrot.slane %v1381_v42, 4  ;;  %v3931_v53 = vor.u32 %v3930_v2, %v3927_v44  ;;  %v3941_v51 = vor.u32 %v3940_v1, %v8398_v34  ;;  %v3949_v35 = vshrl.u32 %v5810_v28, 16  ;;  %v7311_v2 = vld [vmem:[%s7444_s16 + $0xa4] sm:$0x1] }
  0xdb   : > { %6446 = vmatpush3.bf16.msra.mxu1 %v7109_v31  ;;  %v8414_v31 = vsel %vm7722_vm5, %v5524_v22, %v1381_v42  ;;  %v3944_v22 = vshll.u32 %v8394_v39, 16  ;;  %v3962_v42 = vshrl.u32 %v8420_v43, 16  ;;  %v3908_v61 = vrot.slane %v3907_v5, 4  ;;  %v8589_v39 = vld [vmem:[%s7444_s16 + $0x98] sm:$0x1] }
  0xdc   : > { %6447 = vmatprep.subr.bf16.mxu1 %v7113_v30  ;;  %v5525_v44 = vrot.slane %v1257_v18, 9  ;;  %v1391_v1 = vrot.slane %v7311_v2, 5  ;;  %v3932_v5 = vrot.slane %v3931_v53, 4  ;;  %v3942_v18 = vrot.slane %v3941_v51, 4  ;;  %9299 = vst [vmem:[#allocation14_spill] sm:$0xff] %v8589_v39 }
  0xdd   : > { %6624 = vmatmul.mubr.bf16.gmra.mrb[20].mxu0 %v7110_v54  ;;  %v3899_v54 = vsel %vm7476_vm2, %v3894_v62, %v8390_v19  ;;  %v3958_v19 = vshll.u32 %v8420_v43, 16  ;;  %v7116_v62 = vld [vmem:[%s7444_s16 + $0xc0] sm:$0xff]   ;;  %v3946_v10 = vrot.slane %v3944_v22, 5  ;;  %v8456_v43 = vsel %vm7722_vm5, %v1383_v52, %v1384_v3 }
  0xde   : > { %6416 = vmatmul.mubr.bf16.gmra.mrb[4].mxu1 %v9284_v25  ;;  %6627 = vmatprep.mubr.bf16.mxu0 %v7112_v8  ;;  %v3952_v8 = vshll.u32 %v5810_v28, 16  ;;  %v3918_v25 = vrot.slane %v3917_v58, 4  ;;  %v1395_v28 = vrot.slane %v7312_v41, 5  ;;  %v8452_v55 = vcombine.low %v3889_v6, %v3899_v54  ;;  %v7122_v41 = vld [vmem:[%s9256_s1 + $0xe8] sm:$0xff]  }
  0xdf   : > { %6419 = vmatprep.mubr.bf16.mxu1 %v9285_v46  ;;  %6448 = vmatpush3.bf16.msra.mxu1 %v7113_v30  ;;  %v1258_v30 = vld [vmem:[%s7444_s16 + $0xa8] sm:$0xe]  ;;  %v1390_v46 = vrot.slane %v1388_v12, 4  ;;  %v3951_v0 = vrot.slane %v3949_v35, 4  ;;  %v8458_v58 = vrot.slane %v3958_v19, 5  ;;  %v3964_v22 = vrot.slane %v3962_v42, 4 }
  0xe0   : > { %6449 = vmatprep.subr.bf16.mxu1 %v7117_v13  ;;  %v3954_v2 = vrot.slane %v3952_v8, 5  ;;  %v3913_v3 = vsel %vm7476_vm2, %v3908_v61, %v8396_v38  ;;  %v8468_v6 = vsel %vm7722_vm5, %v5525_v44, %v1388_v12  ;;  %v3973_v54 = vshrl.u32 %v5813_v17, 16  ;;  %v7313_v38 = vld [vmem:[%s7444_s16 + $0xb0] sm:$0x1]  ;;  %v1259_v19 = vld [vmem:[%s7444_s16 + $0xb4] sm:$0xe] }
  0xe1   : > { %v3976_v52 = vshll.u32 %v5813_v17, 16  ;;  %v3923_v53 = vsel %vm7476_vm2, %v3918_v25, %v3922_v36  ;;  %v8477_v51 = vsel %vm7722_vm5, %v1390_v46, %v1391_v1  ;;  %v5526_v35 = vrot.slane %v1258_v30, 9  ;;  %v8499_v30 = vld [vmem:[%s7444_s16 + $0x74] sm:$0x1]  ;;  %v7314_v25 = vld [vmem:[%s7444_s16 + $0xb8] sm:$0xf] }
  0xe2   : > { %v1398_v8 = vrot.slane %v7313_v38, 5  ;;  %v9288_v12 = vcombine.low %v8171_v49, %v8185_v4  ;;  %v3937_v42 = vsel %vm7476_vm2, %v3932_v5, %v8398_v34  ;;  %v3947_v61 = vsel %vm7476_vm2, %v3942_v18, %v3946_v10  ;;  %v7118_v4 = vld [vmem:[%s7444_s16 + $0xcc] sm:$0xff]   ;;  %9290 = vst [vmem:[#allocation7_spill] sm:$0xff] %v8499_v30  ;;  %v5819_v38 = vld [vmem:[%s7444_s16 + $0x84] sm:$0xf] }
  0xe3   : > { %6450 = vmatpush3.bf16.msra.mxu1 %v7117_v13  ;;  %v8471_v13 = vld [vmem:[%s7444_s16 + $0x70] sm:$0xf]  ;;  %v1397_v36 = vrot.slane %v1395_v28, 4  ;;  %v3968_v44 = vshll.u32 %v8450_v47, 16  ;;  %v9289_v49 = vcombine.low %v8207_v26, %v8211_v56  ;;  %v3965_v1 = vor.u32 %v3964_v22, %v8458_v58  ;;  %v8516_v22 = vld [vmem:[%s7444_s16 + $0x7c] sm:$0xf] }
  0xe4   : > { %6451 = vmatprep.subr.bf16.mxu1 %v7120_v24  ;;  %9287 = vst [vmem:[#allocation6_spill] sm:$0xff] %v8471_v13  ;;  %v3982_v34 = vshll.u32 %v8471_v13, 16  ;;  %v3986_v10 = vshrl.u32 %v8471_v13, 16  ;;  %v5527_v17 = vrot.slane %v1259_v19, 9  ;;  %v1402_v46 = vrot.slane %v7314_v25, 5  ;;  %9291 = vst [vmem:[#allocation8_spill] sm:$0xff] %v8516_v22 }
  0xe5   : > { %6628 = vmatmul.mubr.bf16.gmra.mrb[24].mxu0 %v7114_v23  ;;  %v7124_v23 = vld [vmem:[%s9256_s1 + $0xf0] sm:$0xff]   ;;  %v3975_v26 = vrot.slane %v3973_v54, 4  ;;  %v3978_v56 = vrot.slane %v3976_v52, 5  ;;  %v8507_v18 = vcombine.low %v3913_v3, %v3923_v53  ;;  %v8519_v19 = vcombine.low %v3937_v42, %v3947_v61  ;;  %v7315_v3 = vld [vmem:[%s7444_s16 + $0xbc] sm:$0x1] }
  0xe6   : > { %6420 = vmatmul.mubr.bf16.gmra.mrb[8].mxu1 %v9288_v12  ;;  %6631 = vmatprep.mubr.bf16.mxu0 %v7116_v62  ;;  %v3955_v62 = vor.u32 %v3954_v2, %v3951_v0  ;;  %v8513_v2 = vsel %vm7722_vm5, %v5526_v35, %v1395_v28  ;;  %v8523_v54 = vsel %vm7722_vm5, %v1397_v36, %v1398_v8  ;;  %v8525_v52 = vrot.slane %v3968_v44, 5  ;;  %v7126_v12 = vld [vmem:[%s9256_s1 + $0xf8] sm:$0xff]   ;;  %v8532_v28 = vld [vmem:[%s7444_s16 + $0x88] sm:$0xf] }
  0xe7   : > { %6423 = vmatprep.mubr.bf16.mxu1 %v9289_v49  ;;  %6452 = vmatpush3.bf16.msra.mxu1 %v7120_v24  ;;  %v5816_v24 = vld [vmem:[%s7444_s16 + $0x78] sm:$0xf]  ;;  %v1405_v53 = vrot.slane %v7315_v3, 5  ;;  %9292 = vst [vmem:[#allocation9_spill] sm:$0xff] %v8532_v28  ;;  %v8536_v42 = vrot.slane %v3965_v1, 4  ;;  %v8538_v61 = vrot.slane %v3982_v34, 5  ;;  %v8542_v36 = vsel %vm7722_vm5, %v5527_v17, %v1402_v46 }
  0xe8   : > { %6453 = vmatprep.subr.bf16.mxu1 %v7122_v41  ;;  %v8534_v35 = vrot.slane %v3955_v62, 4  ;;  %v3988_v8 = vrot.slane %v3986_v10, 4  ;;  %v1404_v44 = vrot.slane %v1402_v46, 4  ;;  %v3979_v49 = vor.u32 %v3978_v56, %v3975_v26  ;;  %v5822_v3 = vld [vmem:[%s7444_s16 + $0x90] sm:$0xf] }
  0xe9   : > { %v3992_v25 = vshll.u32 %v8499_v30, 16  ;;  %v4000_v0 = vshll.u32 %v5816_v24, 16  ;;  %v4006_v62 = vshll.u32 %v8516_v22, 16  ;;  %v4010_v1 = vshrl.u32 %v8516_v22, 16  ;;  %v8549_v34 = vld [vmem:[%s7444_s16 + $0x94] sm:$0xf] }
  0xea   : > { %9293 = vst [vmem:[#allocation10_spill] sm:$0xff] %v8549_v34  ;;  %v9294_v10 = vcombine.low %v8251_v27, %v8255_v29  ;;  %v4021_v17 = vshrl.u32 %v5819_v38, 16  ;;  %v4024_v46 = vshll.u32 %v5819_v38, 16  ;;  %v4034_v26 = vshrl.u32 %v8532_v28, 16  ;;  %v5825_v38 = vld [vmem:[%s7444_s16 + $0x9c] sm:$0xf] }
  0xeb   : > { %6454 = vmatpush3.bf16.msra.mxu1 %v7122_v41  ;;  %v3997_v41 = vshrl.u32 %v5816_v24, 16  ;;  %v9295_v56 = vcombine.low %v8262_v45, %v8266_v14  ;;  %v3989_v29 = vor.u32 %v3988_v8, %v8538_v61  ;;  %v4048_v24 = vshll.u32 %v5822_v3, 16  ;;  %v8571_v45 = vld [vmem:[%s7444_s16 + $0x80] sm:$0x1] }
  0xec   : > { %6455 = vmatprep.subr.bf16.mxu1 %v7124_v23  ;;  %v8568_v5 = vrot.slane %v3992_v25, 5  ;;  %9296 = vst [vmem:[#allocation11_spill] sm:$0xff] %v8571_v45  ;;  %v4054_v14 = vshll.u32 %v8549_v34, 16  ;;  %v4002_v27 = vrot.slane %v4000_v0, 5  ;;  %v4012_v8 = vrot.slane %v4010_v1, 4 }
  0xed   : > { %6632 = vmatmul.mubr.bf16.gmra.mrb[28].mxu0 %v7118_v4  ;;  %v4030_v4 = vshll.u32 %v8532_v28, 16  ;;  %v8575_v28 = vrot.slane %v4006_v62, 5  ;;  %v8581_v22 = vld [vmem:[%s7444_s16 + $0xa0] sm:$0xf]  ;;  %v4023_v25 = vrot.slane %v4021_v17, 4  ;;  %v4026_v30 = vrot.slane %v4024_v46, 5 }
  0xee   : > { %6424 = vmatmul.mubr.bf16.gmra.mrb[12].mxu1 %v9294_v10  ;;  %6651 = vmatprep.mubr.bf16.mxu0 %v8320_v59  ;;  %v4045_v59 = vshrl.u32 %v5822_v3, 16  ;;  %v8566_v10 = vrot.slane %v3979_v49, 4  ;;  %v8578_v3 = vld [vmem:[%s7444_s16 + $0x8c] sm:$0x1]  ;;  %9298 = vst [vmem:[#allocation13_spill] sm:$0xff] %v8581_v22  ;;  %v4036_v47 = vrot.slane %v4034_v26, 4  ;;  %v8598_v62 = vsel %vm7722_vm5, %v1404_v44, %v1405_v53 }
  0xef   : > { %6427 = vmatprep.mubr.bf16.mxu1 %v9295_v56  ;;  %6456 = vmatpush3.bf16.msra.mxu1 %v7124_v23  ;;  %v4058_v23 = vshrl.u32 %v8549_v34, 16  ;;  %v3999_v56 = vrot.slane %v3997_v41, 4  ;;  %9297 = vst [vmem:[#allocation12_spill] sm:$0xff] %v8578_v3  ;;  %v7123_v49 = vld [vmem:[%s9256_s1 + $0x208] sm:$0xff]   ;;  %v8586_v13 = vrot.slane %v4030_v4, 5  ;;  %v4050_v34 = vrot.slane %v4048_v24, 5 }
  0xf0   : > { %6457 = vmatprep.subr.bf16.mxu1 %v7126_v12  ;;  %v5828_v41 = vld [vmem:[%s7444_s16 + $0xa8] sm:$0xf]  ;;  %v4047_v1 = vrot.slane %v4045_v59, 4  ;;  %v8603_v17 = vld [vmem:[%s9256_s1 + $0x100] sm:$0xff]   ;;  %v8606_v46 = vrot.slane %v4054_v14, 5  ;;  %v4069_v26 = vshrl.u32 %v5825_v38, 16  ;;  %v9301_v24 = vcombine.low %v8270_v16, %v8280_v15 }
  0xf1   : > { %9300 = vst [vmem:[#allocation15_spill] sm:$0xff] %v8603_v17  ;;  %v4060_v4 = vrot.slane %v4058_v23, 4  ;;  %v4072_v0 = vshll.u32 %v5825_v38, 16  ;;  %v8609_v53 = vrot.slane %v3989_v29, 4  ;;  %v4078_v44 = vshll.u32 %v8581_v22, 16  ;;  %v7125_v16 = vld [vmem:[%s9256_s1 + $0x210] sm:$0xff]  }
  0xf2   : > { %v4082_v59 = vshrl.u32 %v8581_v22, 16  ;;  %v4003_v14 = vor.u32 %v4002_v27, %v3999_v56  ;;  %v4013_v38 = vor.u32 %v4012_v8, %v8575_v28  ;;  %v4027_v23 = vor.u32 %v4026_v30, %v4023_v25  ;;  %v8621_v29 = vld [vmem:[%s7444_s16 + $0xac] sm:$0xf]  ;;  %v8634_v25 = vld [vmem:[%s7444_s16 + $0xa4] sm:$0x1] }
  0xf3   : > { %6458 = vmatpush3.bf16.msra.mxu1 %v7126_v12  ;;  %v4016_v12 = vshll.u32 %v8571_v45, 16  ;;  %9302 = vst [vmem:[#allocation16_spill] sm:$0xff] %v8621_v29  ;;  %v4037_v15 = vor.u32 %v4036_v47, %v8586_v13  ;;  %v4093_v27 = vshrl.u32 %v5828_v41, 16  ;;  %v4096_v30 = vshll.u32 %v5828_v41, 16 }
  0xf4   : > { %6731 = vmatprep.subr.bf16.mxu1 %v8603_v17  ;;  %v9303_v17 = vcombine.low %v8326_v20, %v8347_v7  ;;  %v4051_v56 = vor.u32 %v4050_v34, %v4047_v1  ;;  %v4061_v8 = vor.u32 %v4060_v4, %v8606_v46  ;;  %v4071_v20 = vrot.slane %v4069_v26, 4 }
  0xf5   : > { %6652 = vmatmul.mubr.bf16.vlgmr.msra.gmra.mrb[0].mxu0 %v8403_v50  ;;  %v4040_v50 = vshll.u32 %v8578_v3, 16  ;;  %v4074_v7 = vrot.slane %v4072_v0, 5  ;;  %v4106_v22 = vshrl.u32 %v8621_v29, 16  ;;  %v4004_v47 = vrot.slane %v4003_v14, 4  ;;  %v7127_v0 = vld [vmem:[%s9256_s1 + $0x218] sm:$0xff]  }
  0xf6   : > { %6428 = vmatmul.mubr.bf16.gmra.mrb[16].mxu1 %v9301_v24  ;;  %6684 = vmatpush3.bf16.msra.mxu0 %v8307_v21  ;;  %v4064_v21 = vshll.u32 %v8589_v39, 16  ;;  %v4102_v24 = vshll.u32 %v8621_v29, 16  ;;  %v4014_v39 = vrot.slane %v4013_v38, 4  ;;  %v4018_v3 = vrot.slane %v4016_v12, 5 }
  0xf7   : > { %6431 = vmatprep.mubr.bf16.mxu1 %v9303_v17  ;;  %6655 = vmatprep.mubr.bf16.mxu0 %v8407_v48  ;;  %v8636_v17 = vrot.slane %v4078_v44, 5  ;;  %v4084_v48 = vrot.slane %v4082_v59, 4  ;;  %v4042_v41 = vrot.slane %v4040_v50, 5  ;;  %v4028_v34 = vrot.slane %v4027_v23, 4 }
  0xf8   : > { %6685 = vmatprep.subr.bf16.mxu0 %v7123_v49  ;;  %v4038_v1 = vrot.slane %v4037_v15, 4  ;;  %v4095_v4 = vrot.slane %v4093_v27, 4  ;;  %v4098_v45 = vrot.slane %v4096_v30, 5  ;;  %v4052_v26 = vrot.slane %v4051_v56, 4  ;;  %v8702_v27 = vld [vmem:[%s7444_s16 + $0xbc] sm:$0x1] }
  0xf9   : > { %v4066_v44 = vrot.slane %v4064_v21, 5  ;;  %v4075_v59 = vor.u32 %v4074_v7, %v4071_v20  ;;  %v4088_v29 = vshll.u32 %v8634_v25, 16  ;;  %v4085_v12 = vor.u32 %v4084_v48, %v8636_v17  ;;  %v8669_v21 = vld [vmem:[%s7444_s16 + $0xb0] sm:$0x1] }
  0xfa   : > { %6686 = vmatpush3.bf16.msra.mxu0 %v7123_v49  ;;  %v4062_v49 = vrot.slane %v4061_v8, 4  ;;  %v8646_v14 = vrot.slane %v4102_v24, 5  ;;  %v4108_v38 = vrot.slane %v4106_v22, 4  ;;  %v9304_v23 = vor.u32 %v8054_v57, %v8052_v11 }
  0xfb   : > { %6687 = vmatprep.subr.bf16.mxu0 %v7125_v16  ;;  %v9305_v15 = vcombine.low %v8359_v40, %v8384_v60  ;;  %v3995_v22 = vsel %vm7476_vm2, %v8609_v53, %v8568_v5  ;;  %v4009_v57 = vsel %vm7476_vm2, %v4004_v47, %v8575_v28  ;;  %v9306_v40 = vcombine.low %v8414_v31, %v8456_v43  ;;  %v7130_v31 = vld [vmem:[%s9256_s1 + $0x220] sm:$0xff]  }
  0xfc   : > { %v8651_v50 = vrot.slane %v9304_v23, 4  ;;  %v4019_v60 = vsel %vm7476_vm2, %v4014_v39, %v4018_v3  ;;  %v4099_v5 = vor.u32 %v4098_v45, %v4095_v4  ;;  %v4043_v28 = vsel %vm7476_vm2, %v4038_v1, %v4042_v41  ;;  %v5868_v41 = vld [vmem:[%s7444_s16 + $0x48] sm:$0xe] }
  0xfd   : > { %6656 = vmatmul.mubr.bf16.gmra.mrb[4].mxu0 %v8452_v55  ;;  %v3985_v55 = vsel %vm7476_vm2, %v8566_v10, %v8538_v61  ;;  %v5831_v61 = vld [vmem:[%s7444_s16 + $0xb4] sm:$0xf]  ;;  %v8681_v10 = vld [vmem:[%s7444_s16 + $0xb8] sm:$0xf]  ;;  %v4057_v39 = vsel %vm7476_vm2, %v4052_v26, %v8606_v46  ;;  %v8691_v43 = vrot.slane %v4075_v59, 4  ;;  %v8693_v3 = vrot.slane %v4088_v29, 5 }
  0xfe   : > { %6432 = vmatmul.mubr.bf16.gmra.mrb[20].mxu1 %v9305_v15  ;;  %6659 = vmatprep.mubr.bf16.mxu0 %v8507_v18  ;;  %v4033_v18 = vsel %vm7476_vm2, %v4028_v34, %v8586_v13  ;;  %v4067_v13 = vsel %vm7476_vm2, %v4062_v49, %v4066_v44  ;;  %v8697_v45 = vrot.slane %v4085_v12, 4  ;;  %v4109_v53 = vor.u32 %v4108_v38, %v8646_v14  ;;  %v5869_v26 = vld [vmem:[%s7444_s16 + $0x54] sm:$0xe] }
  0xff   : > { %6435 = vmatprep.mubr.bf16.mxu1 %v9306_v40  ;;  %6688 = vmatpush3.bf16.msra.mxu0 %v7125_v16  ;;  %v4112_v16 = vshll.u32 %v8669_v21, 16  ;;  %v9307_v46 = vsel %vm7476_vm2, %v8536_v42, %v8525_v52  ;;  %v9308_v29 = vsel %vm7476_vm2, %v8534_v35, %v8458_v58  ;;  %v4117_v56 = vshrl.u32 %v5831_v61, 16 }
 0x100   : > { %6689 = vmatprep.subr.bf16.mxu0 %v7127_v0  ;;  %v5846_v30 = vcombine.low %v9308_v29, %v9307_v46  ;;  %v4120_v8 = vshll.u32 %v5831_v61, 16  ;;  %v4126_v20 = vshll.u32 %v8681_v10, 16  ;;  %v5542_v7 = vcombine.low %v8513_v2, %v8523_v54  ;;  %v7133_v2 = vld [vmem:[%s9256_s1 + $0x228] sm:$0xff]   ;;  %v5834_v54 = vld [vmem:[%s7444_s16 + $0xc0] sm:$0xf]  ;;  %v9312_v29 = vld [vmem:[#allocation5_spill] sm:$0xff] }
 0x101   : > { %v5543_v48 = vcombine.low %v8542_v36, %v8598_v62  ;;  %v5847_v24 = vcombine.low %v3985_v55, %v3995_v22  ;;  %v8719_v52 = vrot.slane %v4099_v5, 4  ;;  %v5848_v42 = vcombine.low %v4009_v57, %v4019_v60 }
 0x102   : > { %v8721_v58 = vcombine.low %v4033_v18, %v4043_v28  ;;  %v8723_v35 = vcombine.low %v4057_v39, %v4067_v13  ;;  %v4081_v47 = vsel %vm7476_vm2, %v8691_v43, %v8636_v17  ;;  %v4091_v34 = vsel %vm7476_vm2, %v8697_v45, %v8693_v3  ;;  %v5871_v28 = vld [vmem:[%s7444_s16 + $0x6c] sm:$0xe] }
 0x103   : > { %6690 = vmatpush3.bf16.msra.mxu0 %v7127_v0  ;;  %v8739_v1 = vrot.slane %v4109_v53, 4  ;;  %v8741_v4 = vrot.slane %v4112_v16, 5  ;;  %v4130_v0 = vshrl.u32 %v8681_v10, 16  ;;  %v9309_v44 = vcombine.low %v8468_v6, %v8477_v51  ;;  %v7136_v6 = vld [vmem:[%s9256_s1 + $0x230] sm:$0xff]   ;;  %v8763_v51 = vld [vmem:[%s7444_s16 + $0xc4] sm:$0xf] }
 0x104   : > { %6691 = vmatprep.subr.bf16.mxu0 %v7130_v31  ;;  %v8748_v59 = vrot.slane %v4117_v56, 4  ;;  %v8752_v49 = vrot.slane %v4126_v20, 5  ;;  %v4136_v12 = vshll.u32 %v8702_v27, 16  ;;  %v4105_v38 = vsel %vm7476_vm2, %v8719_v52, %v8646_v14  ;;  %v5870_v14 = vld [vmem:[%s7444_s16 + $0x60] sm:$0xe]  ;;  %v9310_v39 = vld [vmem:[#allocation3_spill] sm:$0xff] }
 0x105   : > { %6660 = vmatmul.mubr.bf16.gmra.mrb[8].mxu0 %v8519_v19  ;;  %v8750_v19 = vrot.slane %v4120_v8, 5  ;;  %v4141_v23 = vshrl.u32 %v5834_v54, 16  ;;  %v5884_v15 = vrot.slane %v5868_v41, 9  ;;  %v4603_v55 = vrot.slane %v8339_v32, 5  ;;  %v7128_v13 = vld [vmem:[%s7444_s16 + $0xc] sm:$0xff]   ;;  %v7139_v56 = vld [vmem:[%s9256_s1 + $0x238] sm:$0xff]  }
 0x106   : > { %6436 = vmatmul.mubr.bf16.gmra.mrb[24].mxu1 %v9309_v44  ;;  %6663 = vmatprep.mubr.bf16.mxu0 %v5846_v30  ;;  %v4144_v22 = vshll.u32 %v5834_v54, 16  ;;  %v4606_v57 = vrot.slane %v8387_v63, 5  ;;  %v5885_v40 = vrot.slane %v5869_v26, 9  ;;  %v4610_v60 = vrot.slane %v8351_v33, 5  ;;  %v9311_v16 = vld [vmem:[#allocation4_spill] sm:$0xff]  ;;  %v9313_v52 = vld [vmem:[#allocation6_spill] sm:$0xff] }
 0x107   : > { %6439 = vmatprep.mubr.bf16.mxu1 %v5542_v7  ;;  %6692 = vmatpush3.bf16.msra.mxu0 %v7130_v31  ;;  %v4115_v18 = vsel %vm7476_vm2, %v8739_v1, %v8741_v4  ;;  %v8773_v5 = vrot.slane %v4130_v0, 4  ;;  %v8777_v61 = vsel %vm7722_vm5, %v5884_v15, %v4603_v55  ;;  %v4605_v32 = vrot.slane %v4603_v55, 4  ;;  %v9314_v4 = vld [vmem:[#allocation7_spill] sm:$0xff] }
 0x108   : > { %6693 = vmatprep.subr.bf16.mxu0 %v7133_v2  ;;  %v4150_v31 = vshll.u32 %v8763_v51, 16  ;;  %v8783_v63 = vsel %vm7722_vm5, %v5885_v40, %v4610_v60  ;;  %v4612_v33 = vrot.slane %v4610_v60, 4  ;;  %v4613_v3 = vrot.slane %v9310_v39, 5  ;;  %v8814_v26 = vld [vmem:[%s7444_s16 + $0xc8] sm:$0x1]  ;;  %v7129_v40 = vld [vmem:[%s7444_s16 + $0x18] sm:$0xff]  }
 0x109   : > { %v8789_v45 = vsel %vm7722_vm5, %v4605_v32, %v4606_v57  ;;  %v5886_v53 = vrot.slane %v5870_v14, 9  ;;  %v4617_v46 = vrot.slane %v9311_v16, 5  ;;  %v4620_v30 = vrot.slane %v9312_v29, 5  ;;  %v7131_v39 = vld [vmem:[%s7444_s16 + $0x24] sm:$0xff]  }
 0x10a   : > { %v5900_v8 = vcombine.low %v8777_v61, %v8789_v45  ;;  %v8800_v20 = vsel %vm7722_vm5, %v4612_v33, %v4613_v3  ;;  %v5887_v7 = vrot.slane %v5871_v28, 9  ;;  %v4627_v0 = vrot.slane %v9314_v4, 5  ;;  %v9316_v28 = vld [vmem:[#allocation11_spill] sm:$0xff]  ;;  %v5641_v61 = vld [vmem:[%s7444_s16 + $0x90] sm:$0xf] }
 0x10b   : > { %6694 = vmatpush3.bf16.msra.mxu0 %v7133_v2  ;;  %v4624_v2 = vrot.slane %v9313_v52, 5  ;;  %v5901_v54 = vcombine.low %v8783_v63, %v8800_v20  ;;  %v8807_v41 = vsel %vm7722_vm5, %v5886_v53, %v4617_v46  ;;  %v4619_v1 = vrot.slane %v4617_v46, 4  ;;  %v9317_v53 = vld [vmem:[#allocation2_spill] sm:$0xff]  ;;  %v7145_v45 = vld [vmem:[%s7444_s16 + $0xa8] sm:$0xff]  }
 0x10c   : > { %6695 = vmatprep.subr.bf16.mxu0 %v7136_v6  ;;  %v8816_v44 = vrot.slane %v4141_v23, 4  ;;  %v8829_v36 = vcombine.low %v4081_v47, %v4091_v34  ;;  %v4123_v62 = vor.u32 %v8750_v19, %v8748_v59  ;;  %v5872_v23 = vld [vmem:[%s7444_s16 + $0x78] sm:$0xe]  ;;  %v8841_v57 = vrot.slane %v4136_v12, 5  ;;  %v5837_v12 = vld [vmem:[%s7444_s16 + $0xcc] sm:$0xf] }
 0x10d   : > { %6664 = vmatmul.mubr.bf16.gmra.mrb[12].mxu0 %v5847_v24  ;;  %v8818_v24 = vrot.slane %v4144_v22, 5  ;;  %v8822_v15 = vsel %vm7722_vm5, %v5887_v7, %v4624_v2  ;;  %v4626_v55 = vrot.slane %v4624_v2, 4  ;;  %v8839_v22 = vcombine.low %v4105_v38, %v4115_v18  ;;  %v5635_v47 = vld [vmem:[%s7444_s16 + $0x78] sm:$0xf]  ;;  %v9315_v18 = vld [vmem:[#allocation8_spill] sm:$0xff] }
 0x10e   : > { %6440 = vmatmul.mubr.bf16.gmra.mrb[28].mxu1 %v5543_v48  ;;  %6667 = vmatprep.mubr.bf16.mxu0 %v5848_v42  ;;  %v4154_v48 = vshrl.u32 %v8763_v51, 16  ;;  %v8836_v42 = vsel %vm7722_vm5, %v4619_v1, %v4620_v30  ;;  %v4133_v34 = vor.u32 %v8773_v5, %v8752_v49  ;;  %v8852_v59 = vrot.slane %v4150_v31, 5  ;;  %v8866_v31 = vld [vmem:[%s7444_s16 + $0xd0] sm:$0xf]  ;;  %v9318_v1 = vld [vmem:[#allocation9_spill] sm:$0xff] }
 0x10f   : > { %6459 = vmatprep.mubr.bf16.mxu1 %v7128_v13  ;;  %6696 = vmatpush3.bf16.msra.mxu0 %v7136_v6  ;;  %v5902_v17 = vcombine.low %v8807_v41, %v8836_v42  ;;  %v8847_v43 = vsel %vm7722_vm5, %v4626_v55, %v4627_v0  ;;  %v4160_v19 = vshll.u32 %v8814_v26, 16  ;;  %v5873_v6 = vld [vmem:[%s7444_s16 + $0x84] sm:$0xe]  ;;  %v4147_v60 = vor.u32 %v8818_v24, %v8816_v44  ;;  %v9319_v24 = vld [vmem:[#allocation12_spill] sm:$0xff]  ;;  %v7337_v63 = vld [vmem:[%s7444_s16 + $0x8c] sm:$0x1] }
 0x110   : > { %6697 = vmatprep.subr.bf16.mxu0 %v7139_v56  ;;  %v5903_v38 = vcombine.low %v8822_v15, %v8847_v43  ;;  %v5888_v14 = vrot.slane %v5872_v23, 9  ;;  %v4631_v32 = vrot.slane %v9315_v18, 5  ;;  %v4634_v33 = vrot.slane %v9316_v28, 5 }
 0x111   : > { %v4156_v5 = vrot.slane %v4154_v48, 4  ;;  %v2382_v3 = vshrl.u32 %v5635_v47, 16  ;;  %v2385_v13 = vshll.u32 %v5635_v47, 16  ;;  %v2404_v16 = vsel %vm7476_vm2, %v8651_v50, %v9317_v53 }
 0x112   : > { %v4165_v46 = vshrl.u32 %v5837_v12, 16  ;;  %v8874_v29 = vsel %vm7722_vm5, %v5888_v14, %v4631_v32  ;;  %v4633_v30 = vrot.slane %v4631_v32, 4  ;;  %v5889_v7 = vrot.slane %v5873_v6, 9  ;;  %v7317_v6 = vld [vmem:[%s9256_s1 + $0x108] sm:$0xff]  }
 0x113   : > { %6698 = vmatpush3.bf16.msra.mxu0 %v7139_v56  ;;  %v4168_v52 = vshll.u32 %v5837_v12, 16  ;;  %v2384_v2 = vrot.slane %v2382_v3, 4  ;;  %v2387_v56 = vrot.slane %v2385_v13, 5  ;;  %v4638_v4 = vrot.slane %v9318_v1, 5  ;;  %v5874_v12 = vld [vmem:[%s7444_s16 + $0x90] sm:$0xe] }
 0x114   : > { %v4174_v50 = vshll.u32 %v8866_v31, 16  ;;  %v4178_v0 = vshrl.u32 %v8866_v31, 16  ;;  %v8883_v44 = vsel %vm7722_vm5, %v4633_v30, %v4634_v33  ;;  %v4641_v55 = vrot.slane %v9319_v24, 5  ;;  %v7132_v3 = vld [vmem:[%s7444_s16 + $0x30] sm:$0xff]  }
 0x115   : > { %6668 = vmatmul.mubr.bf16.gmra.mrb[16].mxu0 %v8721_v58  ;;  %v9320_v58 = vld [vmem:[#allocation15_spill] sm:$0xff]  ;;  %v4157_v48 = vor.u32 %v4156_v5, %v8852_v59  ;;  %v2388_v23 = vor.u32 %v2387_v56, %v2384_v2  ;;  %v4640_v47 = vrot.slane %v4638_v4, 4  ;;  %v4134_v14 = vrot.slane %v4133_v34, 4  ;;  %v8904_v13 = vld [vmem:[%s7444_s16 + $0xd4] sm:$0x1]  ;;  %v9321_v2 = vld [vmem:[#allocation10_spill] sm:$0xff] }
 0x116   : > { %6460 = vmatmul.mubr.bf16.vlgmr.msra.gmra.mrb[0].mxu1 %v7129_v40  ;;  %6671 = vmatprep.mubr.bf16.mxu0 %v8723_v35  ;;  %v5904_v35 = vcombine.low %v8874_v29, %v8883_v44  ;;  %v4124_v40 = vrot.slane %v4123_v62, 4  ;;  %v4162_v18 = vrot.slane %v4160_v19, 5  ;;  %v8896_v32 = vsel %vm7722_vm5, %v5889_v7, %v4638_v4  ;;  %v7134_v19 = vld [vmem:[%s7444_s16 + $0x3c] sm:$0xff]   ;;  %v7318_v1 = vld [vmem:[%s9256_s1 + $0x110] sm:$0xff]  }
 0x117   : > { %6739 = vmatpush3.bf16.msra.mxu1 %v9320_v58  ;;  %6463 = vmatprep.mubr.bf16.mxu1 %v7131_v39  ;;  %v4167_v28 = vrot.slane %v4165_v46, 4  ;;  %v4170_v33 = vrot.slane %v4168_v52, 5  ;;  %v2389_v39 = vrot.slane %v2388_v23, 4  ;;  %v8900_v5 = vsel %vm7722_vm5, %v4640_v47, %v4641_v55  ;;  %v7319_v47 = vld [vmem:[%s7444_s16 + $0x1c] sm:$0xf] }
 0x118   : > { %6732 = vmatprep.subr.bf16.mxu1 %v7317_v6  ;;  %v8906_v53 = vrot.slane %v4174_v50, 5  ;;  %v4180_v30 = vrot.slane %v4178_v0, 4  ;;  %v5905_v62 = vcombine.low %v8896_v32, %v8900_v5  ;;  %v5890_v34 = vrot.slane %v5874_v12, 9 }
 0x119   : > { %v4148_v7 = vrot.slane %v4147_v60, 4  ;;  %v4158_v46 = vrot.slane %v4157_v48, 4  ;;  %v2394_v52 = vsel %vm7476_vm2, %v2389_v39, %v8052_v11  ;;  %v4645_v56 = vrot.slane %v9321_v2, 5  ;;  %v9322_v11 = vld [vmem:[#allocation14_spill] sm:$0xff]  ;;  %v7135_v39 = vld [vmem:[%s7444_s16 + $0x48] sm:$0xff]  }
 0x11a   : > { %v4129_v4 = vsel %vm7476_vm2, %v4124_v40, %v8752_v49  ;;  %v4139_v60 = vsel %vm7476_vm2, %v4134_v14, %v8841_v57  ;;  %v8924_v50 = vcombine.low %v2394_v52, %v2404_v16  ;;  %v4648_v0 = vrot.slane %v9322_v11, 5  ;;  %v5864_v57 = vld [vmem:[%s7444_s16 + $0x18] sm:$0xe]  ;;  %v5875_v16 = vld [vmem:[%s7444_s16 + $0x9c] sm:$0xe] }
 0x11b   : > { %6740 = vmatpush3.bf16.msra.mxu1 %v7317_v6  ;;  %v4171_v24 = vor.u32 %v4170_v33, %v4167_v28  ;;  %v4184_v55 = vshll.u32 %v8904_v13, 16  ;;  %v8931_v58 = vsel %vm7722_vm5, %v5890_v34, %v4645_v56  ;;  %v4647_v48 = vrot.slane %v4645_v56, 4  ;;  %v7320_v40 = vld [vmem:[%s9256_s1 + $0x118] sm:$0xff]   ;;  %v7321_v2 = vld [vmem:[%s7444_s16 + $0x20] sm:$0x1] }
 0x11c   : > { %6733 = vmatprep.subr.bf16.mxu1 %v7318_v1  ;;  %v4181_v49 = vor.u32 %v4180_v30, %v8906_v53  ;;  %v4163_v23 = vsel %vm7476_vm2, %v4158_v46, %v4162_v18  ;;  %v4575_v12 = vrot.slane %v7319_v47, 5  ;;  %v5853_v6 = vcombine.low %v4129_v4, %v4139_v60  ;;  %v9323_v34 = vld [vmem:[#allocation13_spill] sm:$0xff]  ;;  %v5876_v11 = vld [vmem:[%s7444_s16 + $0xa8] sm:$0xe] }
 0x11d   : > { %6672 = vmatmul.mubr.bf16.gmra.mrb[20].mxu0 %v8829_v36  ;;  %v4153_v36 = vsel %vm7476_vm2, %v4148_v7, %v8852_v59  ;;  %v4172_v14 = vrot.slane %v4171_v24, 4  ;;  %v4186_v28 = vrot.slane %v4184_v55, 5  ;;  %v5880_v18 = vrot.slane %v5864_v57, 9  ;;  %v7137_v46 = vld [vmem:[%s7444_s16 + $0x54] sm:$0xff]   ;;  %v5865_v55 = vld [vmem:[%s7444_s16 + $0x24] sm:$0xe] }
 0x11e   : > { %6464 = vmatmul.mubr.bf16.gmra.mrb[4].mxu1 %v7132_v3  ;;  %6675 = vmatprep.mubr.bf16.mxu0 %v8839_v22  ;;  %v8945_v22 = vsel %vm7722_vm5, %v4647_v48, %v4648_v0  ;;  %v5891_v33 = vrot.slane %v5875_v16, 9  ;;  %v5854_v3 = vcombine.low %v4153_v36, %v4163_v23  ;;  %v4182_v30 = vrot.slane %v4181_v49, 4  ;;  %v7323_v48 = vld [vmem:[%s7444_s16 + $0x28] sm:$0xf]  ;;  %v7324_v36 = vld [vmem:[%s7444_s16 + $0x34] sm:$0xf] }
 0x11f   : > { %6467 = vmatprep.mubr.bf16.mxu1 %v7134_v19  ;;  %6741 = vmatpush3.bf16.msra.mxu1 %v7318_v1  ;;  %v5906_v59 = vcombine.low %v8931_v58, %v8945_v22  ;;  %v4652_v19 = vrot.slane %v9323_v34, 5  ;;  %v4655_v7 = vrot.slane %v8634_v25, 5  ;;  %v4577_v52 = vrot.slane %v4575_v12, 4  ;;  %v7322_v1 = vld [vmem:[%s9256_s1 + $0x120] sm:$0xff]  }
 0x120   : > { %6734 = vmatprep.subr.bf16.mxu1 %v7320_v40  ;;  %v4578_v56 = vrot.slane %v7321_v2, 5  ;;  %v4576_v25 = vsel %vm7722_vm5, %v5880_v18, %v4575_v12  ;;  %v4177_v0 = vsel %vm7476_vm2, %v4172_v14, %v8906_v53  ;;  %v4187_v24 = vsel %vm7476_vm2, %v4182_v30, %v4186_v28  ;;  %v5866_v12 = vld [vmem:[%s7444_s16 + $0x30] sm:$0xe]  ;;  %v7138_v30 = vld [vmem:[%s7444_s16 + $0x60] sm:$0xff]  }
 0x121   : > { %v8962_v4 = vsel %vm7722_vm5, %v5891_v33, %v4652_v19  ;;  %v4654_v60 = vrot.slane %v4652_v19, 4  ;;  %v4582_v49 = vrot.slane %v7323_v48, 5  ;;  %v4589_v23 = vrot.slane %v7324_v36, 5  ;;  %v7326_v33 = vld [vmem:[%s7444_s16 + $0x2c] sm:$0x1] }
 0x122   : > { %v4579_v16 = vsel %vm7722_vm5, %v4577_v52, %v4578_v56  ;;  %v5892_v47 = vrot.slane %v5876_v11, 9  ;;  %v5855_v28 = vcombine.low %v4177_v0, %v4187_v24  ;;  %v5881_v18 = vrot.slane %v5865_v55, 9  ;;  %v7140_v52 = vld [vmem:[%s7444_s16 + $0x6c] sm:$0xff]   ;;  %v5877_v11 = vld [vmem:[%s7444_s16 + $0xb4] sm:$0xe] }
 0x123   : > { %6742 = vmatpush3.bf16.msra.mxu1 %v7320_v40  ;;  %v8976_v57 = vsel %vm7722_vm5, %v4654_v60, %v4655_v7  ;;  %v9324_v40 = vld [vmem:[#allocation16_spill] sm:$0xff]  ;;  %v5896_v34 = vcombine.low %v4576_v25, %v4579_v16  ;;  %v4584_v19 = vrot.slane %v4582_v49, 4  ;;  %v5882_v2 = vrot.slane %v5866_v12, 9  ;;  %v5867_v0 = vld [vmem:[%s7444_s16 + $0x3c] sm:$0xe] }
 0x124   : > { %6735 = vmatprep.subr.bf16.mxu1 %v7322_v1  ;;  %v5907_v53 = vcombine.low %v8962_v4, %v8976_v57  ;;  %v4659_v14 = vrot.slane %v9324_v40, 5  ;;  %v4591_v56 = vrot.slane %v4589_v23, 4  ;;  %v7328_v24 = vld [vmem:[%s7444_s16 + $0x40] sm:$0xf]  ;;  %v4583_v48 = vsel %vm7722_vm5, %v5881_v18, %v4582_v49  ;;  %v7330_v18 = vld [vmem:[%s7444_s16 + $0x44] sm:$0x1] }
 0x125   : > { %6676 = vmatmul.mubr.bf16.gmra.mrb[24].mxu0 %v5853_v6  ;;  %v7325_v6 = vld [vmem:[%s9256_s1 + $0x128] sm:$0xff]   ;;  %v4596_v55 = vrot.slane %v7328_v24, 5  ;;  %v4666_v12 = vrot.slane %v8681_v10, 5  ;;  %v4590_v49 = vsel %vm7722_vm5, %v5882_v2, %v4589_v23  ;;  %v7331_v10 = vld [vmem:[%s9256_s1 + $0x138] sm:$0xff]   ;;  %v5878_v23 = vld [vmem:[%s7444_s16 + $0xc0] sm:$0xe] }
 0x126   : > { %6468 = vmatmul.mubr.bf16.gmra.mrb[8].mxu1 %v7135_v39  ;;  %6679 = vmatprep.mubr.bf16.mxu0 %v5854_v3  ;;  %v4585_v39 = vrot.slane %v7326_v33, 5  ;;  %v4662_v3 = vrot.slane %v8669_v21, 5  ;;  %v8993_v7 = vsel %vm7722_vm5, %v5892_v47, %v4659_v14  ;;  %v7329_v21 = vld [vmem:[%s9256_s1 + $0x130] sm:$0xff]   ;;  %v5893_v47 = vrot.slane %v5877_v11, 9 }
 0x127   : > { %6471 = vmatprep.mubr.bf16.mxu1 %v7137_v46  ;;  %6743 = vmatpush3.bf16.msra.mxu1 %v7322_v1  ;;  %v4661_v46 = vrot.slane %v4659_v14, 4  ;;  %v7327_v1 = vld [vmem:[%s7444_s16 + $0x38] sm:$0x1]  ;;  %v5883_v14 = vrot.slane %v5867_v0, 9  ;;  %v4599_v33 = vrot.slane %v7330_v18, 5  ;;  %v4673_v11 = vrot.slane %v8763_v51, 5 }
 0x128   : > { %6736 = vmatprep.subr.bf16.mxu1 %v7325_v6  ;;  %v4592_v60 = vrot.slane %v7327_v1, 5  ;;  %v4586_v36 = vsel %vm7722_vm5, %v4584_v19, %v4585_v39  ;;  %v4668_v39 = vrot.slane %v4666_v12, 4  ;;  %v5632_v19 = vld [vmem:[%s7444_s16 + $0x6c] sm:$0xf]  ;;  %v7143_v18 = vld [vmem:[%s7444_s16 + $0x90] sm:$0xff]   ;;  %v2425_v20 = vshll.u32 %v7337_v63, 16 }
 0x129   : > { %v9005_v25 = vsel %vm7722_vm5, %v4661_v46, %v4662_v3  ;;  %v5897_v3 = vcombine.low %v4583_v48, %v4586_v36  ;;  %v4597_v1 = vsel %vm7722_vm5, %v5883_v14, %v4596_v55  ;;  %v2358_v0 = vshrl.u32 %v5632_v19, 16  ;;  %v5879_v51 = vld [vmem:[%s7444_s16 + $0xcc] sm:$0xe] }
 0x12a   : > { %v5908_v16 = vcombine.low %v8993_v7, %v9005_v25  ;;  %v4593_v40 = vsel %vm7722_vm5, %v4591_v56, %v4592_v60  ;;  %v5894_v56 = vrot.slane %v5878_v23, 9  ;;  %v2361_v24 = vshll.u32 %v5632_v19, 16 }
 0x12b   : > { %6744 = vmatpush3.bf16.msra.mxu1 %v7325_v6  ;;  %v4669_v6 = vrot.slane %v8702_v27, 5  ;;  %v9025_v27 = vsel %vm7722_vm5, %v5893_v47, %v4666_v12  ;;  %v4676_v36 = vrot.slane %v8814_v26, 5  ;;  %v4675_v12 = vrot.slane %v4673_v11, 4 }
 0x12c   : > { %6737 = vmatprep.subr.bf16.mxu1 %v7329_v21  ;;  %v2363_v26 = vrot.slane %v2361_v24, 5  ;;  %v4683_v23 = vrot.slane %v8904_v13, 5 }
 0x12d   : > { %6680 = vmatmul.mubr.bf16.gmra.mrb[28].mxu0 %v5855_v28  ;;  %v4598_v28 = vrot.slane %v4596_v55, 4  ;;  %v9032_v46 = vsel %vm7722_vm5, %v4668_v39, %v4669_v6  ;;  %v9046_v55 = vsel %vm7722_vm5, %v5894_v56, %v4673_v11  ;;  %v4680_v39 = vrot.slane %v8866_v31, 5  ;;  %v7333_v56 = vld [vmem:[%s7444_s16 + $0x74] sm:$0x1] }
 0x12e   : > { %6472 = vmatmul.mubr.bf16.gmra.mrb[12].mxu1 %v7138_v30  ;;  %6699 = vmatprep.mubr.bf16.mxu0 %v5896_v34  ;;  %v7141_v30 = vld [vmem:[%s7444_s16 + $0x78] sm:$0xff]   ;;  %v5898_v34 = vcombine.low %v4590_v49, %v4593_v40  ;;  %v5909_v2 = vcombine.low %v9025_v27, %v9032_v46  ;;  %v9051_v49 = vsel %vm7722_vm5, %v4675_v12, %v4676_v36  ;;  %v2360_v40 = vrot.slane %v2358_v0, 4  ;;  %v7334_v0 = vld [vmem:[%s7444_s16 + $0x88] sm:$0xf] }
 0x12f   : > { %6475 = vmatprep.mubr.bf16.mxu1 %v7140_v52  ;;  %6745 = vmatpush3.bf16.msra.mxu1 %v7329_v21  ;;  %v7142_v52 = vld [vmem:[%s7444_s16 + $0x84] sm:$0xff]   ;;  %v4600_v60 = vsel %vm7722_vm5, %v4598_v28, %v4599_v33  ;;  %v7332_v21 = vld [vmem:[%s7444_s16 + $0x70] sm:$0xf]  ;;  %v5910_v28 = vcombine.low %v9046_v55, %v9051_v49  ;;  %v4682_v19 = vrot.slane %v4680_v39, 4  ;;  %v2415_v24 = vshll.u32 %v7334_v0, 16 }
 0x130   : > { %6738 = vmatprep.subr.bf16.mxu1 %v7331_v10  ;;  %v2367_v48 = vshll.u32 %v7332_v21, 16  ;;  %v2371_v47 = vshrl.u32 %v7332_v21, 16  ;;  %v5899_v6 = vcombine.low %v4597_v1, %v4600_v60  ;;  %v2377_v1 = vshll.u32 %v7333_v56, 16 }
 0x131   : > { %v9073_v11 = vsel %vm7722_vm5, %v4682_v19, %v4683_v23  ;;  %v2419_v21 = vshrl.u32 %v7334_v0, 16  ;;  %v7336_v19 = vld [vmem:[%s7444_s16 + $0xa0] sm:$0xf] }
 0x132   : > { %v9053_v14 = vrot.slane %v2367_v48, 5  ;;  %v2373_v33 = vrot.slane %v2371_v47, 4  ;;  %v2467_v56 = vshrl.u32 %v7336_v19, 16 }
 0x133   : > { %6746 = vmatpush3.bf16.msra.mxu1 %v7331_v10  ;;  %v5895_v10 = vrot.slane %v5879_v51, 9 }
 0x134   : > { %v2374_v31 = vor.u32 %v2373_v33, %v9053_v14  ;;  %v2433_v33 = vshll.u32 %v5641_v61, 16 }
 0x135   : > { %6700 = vmatmul.mubr.bf16.vlgmr.msra.gmra.mrb[0].mxu0 %v5897_v3  ;;  %v7144_v3 = vld [vmem:[%s7444_s16 + $0x9c] sm:$0xff]  }
 0x136   : > { %6476 = vmatmul.mubr.bf16.gmra.mrb[16].mxu1 %v7141_v30  ;;  %6703 = vmatprep.mubr.bf16.mxu0 %v5898_v34  ;;  %v5638_v30 = vld [vmem:[%s7444_s16 + $0x84] sm:$0xf]  ;;  %v9064_v34 = vsel %vm7722_vm5, %v5895_v10, %v4680_v39  ;;  %v2375_v47 = vrot.slane %v2374_v31, 4  ;;  %v7335_v10 = vld [vmem:[%s7444_s16 + $0x94] sm:$0xf]  ;;  %v2435_v0 = vrot.slane %v2433_v33, 5 }
 0x137   : > { %6479 = vmatprep.mubr.bf16.mxu1 %v7142_v52  ;;  %v2364_v52 = vor.u32 %v2363_v26, %v2360_v40  ;;  %v2406_v13 = vshrl.u32 %v5638_v30, 16  ;;  %v2409_v60 = vshll.u32 %v5638_v30, 16  ;;  %v5911_v48 = vcombine.low %v9064_v34, %v9073_v11 }
 0x138   : > { %v9082_v40 = vrot.slane %v2415_v24, 5  ;;  %v2421_v26 = vrot.slane %v2419_v21, 4  ;;  %v2439_v39 = vshll.u32 %v7335_v10, 16  ;;  %v2443_v23 = vshrl.u32 %v7335_v10, 16  ;;  %v7339_v10 = vld [vmem:[%s7444_s16 + $0xa4] sm:$0x1] }
 0x139   : > { %v2365_v36 = vrot.slane %v2364_v52, 4  ;;  %v2408_v12 = vrot.slane %v2406_v13, 4  ;;  %v2411_v51 = vrot.slane %v2409_v60, 5  ;;  %v2463_v52 = vshll.u32 %v7336_v19, 16  ;;  %v7340_v19 = vld [vmem:[%s7444_s16 + $0xac] sm:$0xf] }
 0x13a   : > { %v2422_v13 = vor.u32 %v2421_v26, %v9082_v40  ;;  %v9099_v41 = vrot.slane %v2439_v39, 5  ;;  %v2445_v42 = vrot.slane %v2443_v23, 4  ;;  %v2469_v21 = vrot.slane %v2467_v56, 4  ;;  %v5650_v23 = vld [vmem:[%s7444_s16 + $0xb4] sm:$0xf] }
 0x13b   : > { %v2473_v39 = vshll.u32 %v7339_v10, 16  ;;  %v2491_v15 = vshrl.u32 %v7340_v19, 16  ;;  %v2505_v63 = vshll.u32 %v5650_v23, 16 }
 0x13c   : > { %v2446_v26 = vor.u32 %v2445_v42, %v9099_v41 }
 0x13d   : > { %6704 = vmatmul.mubr.bf16.gmra.mrb[4].mxu0 %v5899_v6  ;;  %v5644_v6 = vld [vmem:[%s7444_s16 + $0x9c] sm:$0xf] }
 0x13e   : > { %6480 = vmatmul.mubr.bf16.gmra.mrb[20].mxu1 %v7143_v18  ;;  %6707 = vmatprep.mubr.bf16.mxu0 %v5900_v8  ;;  %v2379_v8 = vrot.slane %v2377_v1, 5  ;;  %v2430_v18 = vshrl.u32 %v5641_v61, 16  ;;  %v2457_v30 = vshll.u32 %v5644_v6, 16  ;;  %v2370_v1 = vsel %vm7476_vm2, %v2365_v36, %v9053_v14  ;;  %v7147_v61 = vld [vmem:[%s7444_s16 + $0xc0] sm:$0xff]  }
 0x13f   : > { %6483 = vmatprep.mubr.bf16.mxu1 %v7144_v3  ;;  %v2454_v3 = vshrl.u32 %v5644_v6, 16  ;;  %v9101_v14 = vrot.slane %v2463_v52, 5  ;;  %v2487_v52 = vshll.u32 %v7340_v19, 16 }
 0x140   : > { %v2380_v31 = vsel %vm7476_vm2, %v2375_v47, %v2379_v8  ;;  %v2432_v60 = vrot.slane %v2430_v18, 4  ;;  %v2459_v24 = vrot.slane %v2457_v30, 5  ;;  %v2427_v8 = vrot.slane %v2425_v20, 5  ;;  %v7341_v20 = vld [vmem:[%s7444_s16 + $0xb8] sm:$0xf] }
 0x141   : > { %v2423_v47 = vrot.slane %v2422_v13, 4  ;;  %v2470_v33 = vor.u32 %v2469_v21, %v9101_v14  ;;  %v2511_v29 = vshll.u32 %v7341_v20, 16  ;;  %v2515_v44 = vshrl.u32 %v7341_v20, 16 }
 0x143   : > { %v2471_v13 = vrot.slane %v2470_v33, 4 }
 0x145   : > { %6708 = vmatmul.mubr.bf16.gmra.mrb[8].mxu0 %v5901_v54  ;;  %v2412_v54 = vor.u32 %v2411_v51, %v2408_v12  ;;  %v2436_v12 = vor.u32 %v2435_v0, %v2432_v60  ;;  %v7338_v51 = vld [vmem:[%s7444_s16 + $0x98] sm:$0x1]  ;;  %v2475_v60 = vrot.slane %v2473_v39, 5 }
 0x146   : > { %6484 = vmatmul.mubr.bf16.gmra.mrb[24].mxu1 %v7145_v45  ;;  %6711 = vmatprep.mubr.bf16.mxu0 %v5902_v17  ;;  %v2456_v17 = vrot.slane %v2454_v3, 4  ;;  %v5664_v45 = vcombine.low %v2370_v1, %v2380_v31  ;;  %v2449_v6 = vshll.u32 %v7338_v51, 16  ;;  %v2502_v31 = vshrl.u32 %v5650_v23, 16 }
 0x147   : > { %6487 = vmatprep.mubr.bf16.mxu1 %v7146_v9  ;;  %v2413_v36 = vrot.slane %v2412_v54, 4  ;;  %v5647_v9 = vld [vmem:[%s7444_s16 + $0xa8] sm:$0xf]  ;;  %v2437_v56 = vrot.slane %v2436_v12, 4  ;;  %v2476_v32 = vsel %vm7476_vm2, %v2471_v13, %v2475_v60 }
 0x148   : > { %v2460_v18 = vor.u32 %v2459_v24, %v2456_v17  ;;  %v2478_v3 = vshrl.u32 %v5647_v9, 16  ;;  %v2481_v30 = vshll.u32 %v5647_v9, 16  ;;  %v2451_v1 = vrot.slane %v2449_v6, 5 }
 0x149   : > { %v2418_v43 = vsel %vm7476_vm2, %v2413_v36, %v9082_v40  ;;  %v2489_v17 = vrot.slane %v2487_v52, 5  ;;  %v2493_v24 = vrot.slane %v2491_v15, 4  ;;  %v2504_v21 = vrot.slane %v2502_v31, 4  ;;  %v5653_v36 = vld [vmem:[%s7444_s16 + $0xc0] sm:$0xf] }
 0x14a   : > { %v2461_v54 = vrot.slane %v2460_v18, 4  ;;  %v2480_v0 = vrot.slane %v2478_v3, 4  ;;  %v2483_v42 = vrot.slane %v2481_v30, 5  ;;  %v2526_v9 = vshrl.u32 %v5653_v36, 16  ;;  %v7343_v18 = vld [vmem:[%s7444_s16 + $0xc4] sm:$0xf] }
 0x14b   : > { %v2535_v33 = vshll.u32 %v7343_v18, 16 }
 0x14c   : > { %v2466_v51 = vsel %vm7476_vm2, %v2461_v54, %v9101_v14  ;;  %v2484_v5 = vor.u32 %v2483_v42, %v2480_v0  ;;  %v2539_v14 = vshrl.u32 %v7343_v18, 16  ;;  %v2528_v19 = vrot.slane %v2526_v9, 4 }
 0x14d   : > { %6712 = vmatmul.mubr.bf16.gmra.mrb[12].mxu0 %v5903_v38  ;;  %v2428_v38 = vsel %vm7476_vm2, %v2423_v47, %v2427_v8  ;;  %v2517_v8 = vrot.slane %v2515_v44, 4  ;;  %v2442_v47 = vsel %vm7476_vm2, %v2437_v56, %v9099_v41  ;;  %v7342_v41 = vld [vmem:[%s7444_s16 + $0xb0] sm:$0x1]  ;;  %v5668_v58 = vcombine.low %v2466_v51, %v2476_v32  ;;  %v7345_v44 = vld [vmem:[%s7444_s16 + $0xc8] sm:$0x1] }
 0x14e   : > { %6488 = vmatmul.mubr.bf16.gmra.mrb[28].mxu1 %v7147_v61  ;;  %6715 = vmatprep.mubr.bf16.mxu0 %v5904_v35  ;;  %v2447_v35 = vrot.slane %v2446_v26, 4  ;;  %v5666_v40 = vcombine.low %v2418_v43, %v2428_v38  ;;  %v2507_v61 = vrot.slane %v2505_v63, 5  ;;  %v2497_v6 = vshll.u32 %v7342_v41, 16 }
 0x14f   : > { %6523 = vmatprep.mubr.bf16.mxu1 %v5664_v45  ;;  %v2513_v45 = vrot.slane %v2511_v29, 5  ;;  %v2529_v26 = vshll.u32 %v5653_v36, 16  ;;  %v2485_v22 = vrot.slane %v2484_v5, 4  ;;  %v2537_v15 = vrot.slane %v2535_v33, 5 }
 0x150   : > { %v2452_v12 = vsel %vm7476_vm2, %v2447_v35, %v2451_v1  ;;  %v2508_v10 = vor.u32 %v2507_v61, %v2504_v21  ;;  %v2499_v30 = vrot.slane %v2497_v6, 5  ;;  %v2541_v43 = vrot.slane %v2539_v14, 4 }
 0x151   : > { %v2518_v39 = vor.u32 %v2517_v8, %v2513_v45  ;;  %v5667_v3 = vcombine.low %v2442_v47, %v2452_v12  ;;  %v2531_v52 = vrot.slane %v2529_v26, 5  ;;  %v2490_v31 = vsel %vm7476_vm2, %v2485_v22, %v2489_v17  ;;  %v9185_v8 = vld [vmem:[%s9257_s2] ss:$0 sm:$0xff] }
 0x152   : > { %v2509_v38 = vrot.slane %v2508_v10, 4  ;;  %v2542_v29 = vor.u32 %v2541_v43, %v2537_v15  ;;  %v2545_v35 = vshll.u32 %v7345_v44, 16 }
 0x153   : > { %v2519_v56 = vrot.slane %v2518_v39, 4  ;;  %v2532_v20 = vor.u32 %v2531_v52, %v2528_v19 }
 0x154   : > { %v2514_v4 = vsel %vm7476_vm2, %v2509_v38, %v2513_v45  ;;  %v2547_v54 = vrot.slane %v2545_v35, 5 }
 0x155   : > { %6716 = vmatmul.mubr.bf16.gmra.mrb[16].mxu0 %v5905_v62  ;;  %v2494_v62 = vor.u32 %v2493_v24, %v2489_v17  ;;  %v2533_v25 = vrot.slane %v2532_v20, 4 }
 0x156   : > { %6524 = vmatmul.mubr.bf16.vlgmr.msra.gmra.mrb[16].mxu1 %v8924_v50  ;;  %6719 = vmatprep.mubr.bf16.mxu0 %v5906_v59  ;;  %v7344_v50 = vld [vmem:[%s7444_s16 + $0xbc] sm:$0x1] }
 0x157   : > { %6527 = vmatprep.mubr.bf16.mxu1 %v5666_v40  ;;  %v2521_v23 = vshll.u32 %v7344_v50, 16  ;;  %v2495_v59 = vrot.slane %v2494_v62, 4  ;;  %v2538_v13 = vsel %vm7476_vm2, %v2533_v25, %v2537_v15 }
 0x159   : > { %v2523_v1 = vrot.slane %v2521_v23, 5  ;;  %v2500_v63 = vsel %vm7476_vm2, %v2495_v59, %v2499_v30 }
 0x15b   : > { %v2524_v57 = vsel %vm7476_vm2, %v2519_v56, %v2523_v1 }
 0x15c   : > { %v5670_v7 = vcombine.low %v2514_v4, %v2524_v57 }
 0x15d   : > { %6720 = vmatmul.mubr.bf16.gmra.mrb[20].mxu0 %v5907_v53  ;;  %v5669_v53 = vcombine.low %v2490_v31, %v2500_v63 }
 0x15e   : > { %6528 = vmatmul.mubr.bf16.gmra.mrb[20].mxu1 %v5667_v3  ;;  %6723 = vmatprep.mubr.bf16.mxu0 %v5908_v16  ;;  %v2543_v16 = vrot.slane %v2542_v29, 4 }
 0x15f   : > { %6531 = vmatprep.mubr.bf16.mxu1 %v5668_v58 }
 0x160   : > { %v2548_v60 = vsel %vm7476_vm2, %v2543_v16, %v2547_v54 }
 0x161   : > { %v5671_v0 = vcombine.low %v2538_v13, %v2548_v60 }
 0x165   : > { %6724 = vmatmul.mubr.bf16.gmra.mrb[24].mxu0 %v5909_v2 }
 0x166   : > { %6532 = vmatmul.mubr.bf16.gmra.mrb[24].mxu1 %v5669_v53  ;;  %6727 = vmatprep.mubr.bf16.mxu0 %v5910_v28 }
 0x167   : > { %6535 = vmatprep.mubr.bf16.mxu1 %v5670_v7 }
 0x16d   : > { %6728 = vmatmul.mubr.bf16.gmra.mrb[28].mxu0 %v5911_v48 }
 0x16e   : > { %6536 = vmatmul.mubr.bf16.gmra.mrb[28].mxu1 %v5671_v0 }
 0x1e9   : > { %v6461_v27 = vpop.f32.mrb[0].mxu1 }
 0x1ea   : > { %v1958_v46 = vpop.f32.mrb[1].mxu1 }
 0x1eb   : > { %v6462_v2 = vpop.f32.mrb[2].mxu1 }
 0x1ec   : > { %v1961_v42 = vpop.f32.mrb[3].mxu1 }
 0x1f1   : > { %v6465_v17 = vpop.f32.mrb[4].mxu1 }
 0x1f2   : > { %v1974_v55 = vpop.f32.mrb[5].mxu1 }
 0x1f3   : > { %v6466_v49 = vpop.f32.mrb[6].mxu1 }
 0x1f4   : > { %v1977_v28 = vpop.f32.mrb[7].mxu1 }
 0x1f9   : > { %v6469_v24 = vpop.f32.mrb[8].mxu1 }
 0x1fa   : > { %v1990_v40 = vpop.f32.mrb[9].mxu1 }
 0x1fb   : > { %v6470_v21 = vpop.f32.mrb[10].mxu1 }
 0x1fc   : > { %v9172_v61 = vpop.f32.mrb[11].mxu1 }
 0x201   : > { %v9174_v37 = vpop.f32.mrb[12].mxu1 }
 0x202   : > { %v9176_v45 = vpop.f32.mrb[13].mxu1 }
 0x203   : > { %v9178_v34 = vpop.f32.mrb[14].mxu1 }
 0x204   : > { %v9180_v11 = vpop.f32.mrb[15].mxu1 }
 0x208   : > { %v6701_v48 = vpop.f32.mrb[0].mxu0 }
 0x209   : > { %v6747_v36 = vadd.f32 %v6701_v48, %v6461_v27  ;;  %v4847_v47 = vpop.f32.mrb[1].mxu0 }
 0x20a   : > { %v6748_v12 = vadd.f32 %v4847_v47, %v1958_v46  ;;  %v6702_v51 = vpop.f32.mrb[2].mxu0 }
 0x20b   : > { %v5015_v32 = vadd.f32 %v6747_v36, %v9185_v8  ;;  %v6749_v5 = vadd.f32 %v6702_v51, %v6462_v2  ;;  %v4850_v62 = vpop.f32.mrb[3].mxu0 }
 0x20c   : > { %v5013_v41 = vadd.f32 %v6748_v12, %v9185_v8  ;;  %v6750_v6 = vadd.f32 %v4850_v62, %v1961_v42 }
 0x20d   : > { %v5047_v9 = vsub.f32 0.0, %v5015_v32  ;;  %v5016_v26 = vadd.f32 %v6749_v5, %v9185_v8 }
 0x20e   : > { %v5045_v18 = vsub.f32 0.0, %v5013_v41  ;;  %v5014_v33 = vadd.f32 %v6750_v6, %v9185_v8 }
 0x20f   : > { %v5081_v14 = vmul.f32 1.442695, %v5047_v9  ;;  %v5048_v10 = vsub.f32 0.0, %v5016_v26 }
 0x210   : > { %v5077_v39 = vmul.f32 1.442695, %v5045_v18  ;;  %v5046_v50 = vsub.f32 0.0, %v5014_v33  ;;  %v6705_v23 = vpop.f32.mrb[4].mxu0 }
 0x211   : > { %7148 = vpow2.f32 %v5081_v14  ;;  %v5083_v3 = vmul.f32 1.442695, %v5048_v10  ;;  %v6751_v58 = vadd.f32 %v6705_v23, %v6465_v17  ;;  %v4863_v22 = vpop.f32.mrb[5].mxu0 }
 0x212   : > { %7150 = vpow2.f32 %v5077_v39  ;;  %v5079_v59 = vmul.f32 1.442695, %v5046_v50  ;;  %v6752_v30 = vadd.f32 %v4863_v22, %v1974_v55  ;;  %v6706_v19 = vpop.f32.mrb[6].mxu0 }
 0x213   : > { %7152 = vpow2.f32 %v5083_v3  ;;  %v5019_v52 = vadd.f32 %v6751_v58, %v9185_v8  ;;  %v6753_v15 = vadd.f32 %v6706_v19, %v6466_v49  ;;  %v4866_v43 = vpop.f32.mrb[7].mxu0 }
 0x214   : > { %7154 = vpow2.f32 %v5079_v59  ;;  %v5017_v38 = vadd.f32 %v6752_v30, %v9185_v8  ;;  %v6754_v56 = vadd.f32 %v4866_v43, %v1977_v28 }
 0x215   : > { %v5051_v1 = vsub.f32 0.0, %v5019_v52  ;;  %v5020_v31 = vadd.f32 %v6753_v15, %v9185_v8 }
 0x216   : > { %v5049_v63 = vsub.f32 0.0, %v5017_v38  ;;  %v5018_v20 = vadd.f32 %v6754_v56, %v9185_v8 }
 0x217   : > { %v5089_v29 = vmul.f32 1.442695, %v5051_v1  ;;  %v5052_v44 = vsub.f32 0.0, %v5020_v31 }
 0x218   : > { %v5085_v35 = vmul.f32 1.442695, %v5049_v63  ;;  %v5050_v4 = vsub.f32 0.0, %v5018_v20  ;;  %v6709_v57 = vpop.f32.mrb[8].mxu0 }
 0x219   : > { %7156 = vpow2.f32 %v5089_v29  ;;  %v5091_v53 = vmul.f32 1.442695, %v5052_v44  ;;  %v6755_v7 = vadd.f32 %v6709_v57, %v6469_v24  ;;  %v4879_v25 = vpop.f32.mrb[9].mxu0 }
 0x21a   : > { %7158 = vpow2.f32 %v5085_v35  ;;  %v5087_v16 = vmul.f32 1.442695, %v5050_v4  ;;  %v6756_v54 = vadd.f32 %v4879_v25, %v1990_v40  ;;  %v6710_v13 = vpop.f32.mrb[10].mxu0 }
 0x21b   : > { %v7149_v60 = vpop.eup %7148  ;;  %7160 = vpow2.f32 %v5091_v53  ;;  %v5023_v0 = vadd.f32 %v6755_v7, %v9185_v8  ;;  %v6757_v27 = vadd.f32 %v6710_v13, %v6470_v21  ;;  %v4882_v46 = vpop.f32.mrb[11].mxu0 }
 0x21c   : > { %v7151_v2 = vpop.eup %7150  ;;  %v5143_v42 = vadd.f32 1.0, %v7149_v60  ;;  %7162 = vpow2.f32 %v5087_v16  ;;  %v5021_v17 = vadd.f32 %v6756_v54, %v9185_v8  ;;  %v6758_v55 = vadd.f32 %v4882_v46, %v9172_v61 }
 0x21d   : > { %v7153_v49 = vpop.eup %7152  ;;  %v5141_v28 = vadd.f32 1.0, %v7151_v2  ;;  %v5055_v24 = vsub.f32 0.0, %v5023_v0  ;;  %v5024_v48 = vadd.f32 %v6757_v27, %v9185_v8 }
 0x21e   : > { %v7155_v40 = vpop.eup %7154  ;;  %7164 = vrcp.f32 %v5143_v42  ;;  %v5144_v36 = vadd.f32 1.0, %v7153_v49  ;;  %v5053_v47 = vsub.f32 0.0, %v5021_v17  ;;  %v5022_v12 = vadd.f32 %v6758_v55, %v9185_v8 }
 0x21f   : > { %7166 = vrcp.f32 %v5141_v28  ;;  %v5142_v21 = vadd.f32 1.0, %v7155_v40  ;;  %v5097_v51 = vmul.f32 1.442695, %v5055_v24  ;;  %v5056_v32 = vsub.f32 0.0, %v5024_v48 }
 0x220   : > { %7168 = vrcp.f32 %v5144_v36  ;;  %v5093_v5 = vmul.f32 1.442695, %v5053_v47  ;;  %v5054_v62 = vsub.f32 0.0, %v5022_v12  ;;  %v6713_v41 = vpop.f32.mrb[12].mxu0 }
 0x221   : > { %7170 = vrcp.f32 %v5142_v21  ;;  %v5099_v61 = vmul.f32 1.442695, %v5056_v32  ;;  %v6759_v6 = vadd.f32 %v6713_v41, %v9174_v37  ;;  %v4895_v9 = vpop.f32.mrb[13].mxu0 }
 0x222   : > { %7172 = vpow2.f32 %v5097_v51  ;;  %v5095_v26 = vmul.f32 1.442695, %v5054_v62  ;;  %v6760_v18 = vadd.f32 %v4895_v9, %v9176_v45  ;;  %v6714_v33 = vpop.f32.mrb[14].mxu0 }
 0x223   : > { %v7157_v14 = vpop.eup %7156  ;;  %7174 = vpow2.f32 %v5093_v5  ;;  %v5027_v10 = vadd.f32 %v6759_v6, %v9185_v8  ;;  %v6761_v39 = vadd.f32 %v6714_v33, %v9178_v34  ;;  %v4898_v50 = vpop.f32.mrb[15].mxu0 }
 0x224   : > { %v7159_v23 = vpop.eup %7158  ;;  %v5147_v3 = vadd.f32 1.0, %v7157_v14  ;;  %7176 = vpow2.f32 %v5099_v61  ;;  %v5025_v58 = vadd.f32 %v6760_v18, %v9185_v8  ;;  %v6762_v37 = vadd.f32 %v4898_v50, %v9180_v11 }
 0x225   : > { %v7161_v22 = vpop.eup %7160  ;;  %v5145_v59 = vadd.f32 1.0, %v7159_v23  ;;  %7178 = vpow2.f32 %v5095_v26  ;;  %v5059_v45 = vsub.f32 0.0, %v5027_v10  ;;  %v5028_v30 = vadd.f32 %v6761_v39, %v9185_v8 }
 0x226   : > { %v7163_v19 = vpop.eup %7162  ;;  %7180 = vrcp.f32 %v5147_v3  ;;  %v5148_v52 = vadd.f32 1.0, %v7161_v22  ;;  %v5057_v15 = vsub.f32 0.0, %v5025_v58  ;;  %v5026_v34 = vadd.f32 %v6762_v37, %v9185_v8 }
 0x227   : > { %7182 = vrcp.f32 %v5145_v59  ;;  %v5146_v43 = vadd.f32 1.0, %v7163_v19  ;;  %v5105_v38 = vmul.f32 1.442695, %v5059_v45  ;;  %v5060_v56 = vsub.f32 0.0, %v5028_v30 }
 0x228   : > { %v7165_v1 = vpop.eup %7164  ;;  %7184 = vrcp.f32 %v5148_v52  ;;  %v5101_v11 = vmul.f32 1.442695, %v5057_v15  ;;  %v5058_v31 = vsub.f32 0.0, %v5026_v34  ;;  %v6717_v63 = vpop.f32.mrb[16].mxu0 }
 0x229   : > { %v7167_v20 = vpop.eup %7166  ;;  %7186 = vrcp.f32 %v5146_v43  ;;  %v5107_v29 = vmul.f32 1.442695, %v5060_v56  ;;  %v6525_v44 = vpop.f32.mrb[16].mxu1 }
 0x22a   : > { %v4911_v35 = vpop.f32.mrb[17].mxu0  ;;  %v7169_v4 = vpop.eup %7168  ;;  %7188 = vpow2.f32 %v5105_v38  ;;  %v5103_v57 = vmul.f32 1.442695, %v5058_v31  ;;  %v6763_v53 = vadd.f32 %v6717_v63, %v6525_v44 }
 0x22b   : > { %v2775_v7 = vpop.f32.mrb[17].mxu1  ;;  %v6718_v25 = vpop.f32.mrb[18].mxu0  ;;  %v5996_v54 = vpack.c.bf16 %v7169_v4, %v7165_v1  ;;  %7190 = vpow2.f32 %v5101_v11 }
 0x22c   : > { %v7171_v16 = vpop.eup %7170  ;;  %v6764_v13 = vadd.f32 %v4911_v35, %v2775_v7  ;;  %v6526_v60 = vpop.f32.mrb[18].mxu1  ;;  %7192 = vpow2.f32 %v5107_v29  ;;  %v5031_v2 = vadd.f32 %v6763_v53, %v9185_v8 }
 0x22d   : > { %v4914_v0 = vpop.f32.mrb[19].mxu0  ;;  %v7173_v27 = vpop.eup %7172  ;;  %v5991_v46 = vpack.c.bf16 %v7171_v16, %v7167_v20  ;;  %v6765_v42 = vadd.f32 %v6718_v25, %v6526_v60  ;;  %6068 = vst [vmem:[%s9212_s29 + $0x8] sm:$0xff] %v5996_v54   ;;  %7194 = vpow2.f32 %v5103_v57 }
 0x22e   : > { %v2778_v17 = vpop.f32.mrb[19].mxu1  ;;  %v7175_v55 = vpop.eup %7174  ;;  %v5151_v49 = vadd.f32 1.0, %v7173_v27  ;;  %v5029_v28 = vadd.f32 %v6764_v13, %v9185_v8  ;;  %v5063_v36 = vsub.f32 0.0, %v5031_v2 }
 0x22f   : > { %v6766_v24 = vadd.f32 %v4914_v0, %v2778_v17  ;;  %v7177_v48 = vpop.eup %7176  ;;  %5992 = vst [vmem:[%s9212_s29] sm:$0xff] %v5991_v46   ;;  %v5149_v40 = vadd.f32 1.0, %v7175_v55  ;;  %v5032_v47 = vadd.f32 %v6765_v42, %v9185_v8 }
 0x230   : > { %v7179_v12 = vpop.eup %7178  ;;  %7196 = vrcp.f32 %v5151_v49  ;;  %v5152_v21 = vadd.f32 1.0, %v7177_v48  ;;  %v5061_v51 = vsub.f32 0.0, %v5029_v28  ;;  %v5113_v41 = vmul.f32 1.442695, %v5063_v36  ;;  %v6721_v6 = vpop.f32.mrb[20].mxu0 }
 0x231   : > { %v5030_v32 = vadd.f32 %v6766_v24, %v9185_v8  ;;  %v7181_v5 = vpop.eup %7180  ;;  %7198 = vrcp.f32 %v5149_v40  ;;  %v5150_v62 = vadd.f32 1.0, %v7179_v12  ;;  %v5064_v61 = vsub.f32 0.0, %v5032_v47  ;;  %v6529_v33 = vpop.f32.mrb[20].mxu1 }
 0x232   : > { %v7183_v9 = vpop.eup %7182  ;;  %7200 = vrcp.f32 %v5152_v21  ;;  %v5109_v26 = vmul.f32 1.442695, %v5061_v51  ;;  %v4927_v14 = vpop.f32.mrb[21].mxu0  ;;  %v6767_v50 = vadd.f32 %v6721_v6, %v6529_v33 }
 0x233   : > { %v5062_v18 = vsub.f32 0.0, %v5030_v32  ;;  %v7185_v10 = vpop.eup %7184  ;;  %7202 = vrcp.f32 %v5150_v62  ;;  %v5115_v39 = vmul.f32 1.442695, %v5064_v61  ;;  %v2791_v23 = vpop.f32.mrb[21].mxu1 }
 0x234   : > { %v6722_v3 = vpop.f32.mrb[22].mxu0  ;;  %v7187_v58 = vpop.eup %7186  ;;  %v6006_v37 = vpack.c.bf16 %v7185_v10, %v7181_v5  ;;  %7204 = vpow2.f32 %v5113_v41  ;;  %v6768_v59 = vadd.f32 %v4927_v14, %v2791_v23  ;;  %v5035_v15 = vadd.f32 %v6767_v50, %v9185_v8 }
 0x235   : > { %v5111_v22 = vmul.f32 1.442695, %v5062_v18  ;;  %v6530_v45 = vpop.f32.mrb[22].mxu1  ;;  %v4930_v30 = vpop.f32.mrb[23].mxu0  ;;  %v6001_v52 = vpack.c.bf16 %v7187_v58, %v7183_v9  ;;  %7206 = vpow2.f32 %v5109_v26 }
 0x236   : > { %v7189_v19 = vpop.eup %7188  ;;  %v6769_v34 = vadd.f32 %v6722_v3, %v6530_v45  ;;  %v2794_v43 = vpop.f32.mrb[23].mxu1  ;;  %6070 = vst [vmem:[%s9212_s29 + $0x18] sm:$0xff] %v6006_v37   ;;  %7208 = vpow2.f32 %v5115_v39  ;;  %v5033_v1 = vadd.f32 %v6768_v59, %v9185_v8  ;;  %v5067_v20 = vsub.f32 0.0, %v5035_v15 }
 0x237   : > { %v7191_v38 = vpop.eup %7190  ;;  %v5155_v56 = vadd.f32 1.0, %v7189_v19  ;;  %v6770_v11 = vadd.f32 %v4930_v30, %v2794_v43  ;;  %6069 = vst [vmem:[%s9212_s29 + $0x10] sm:$0xff] %v6001_v52   ;;  %7210 = vpow2.f32 %v5111_v22 }
 0x238   : > { %v7193_v31 = vpop.eup %7192  ;;  %v5153_v63 = vadd.f32 1.0, %v7191_v38  ;;  %v5036_v29 = vadd.f32 %v6769_v34, %v9185_v8  ;;  %v5065_v4 = vsub.f32 0.0, %v5033_v1  ;;  %v5121_v7 = vmul.f32 1.442695, %v5067_v20  ;;  %v6725_v16 = vpop.f32.mrb[24].mxu0 }
 0x239   : > { %v7195_v44 = vpop.eup %7194  ;;  %7212 = vrcp.f32 %v5155_v56  ;;  %v5156_v35 = vadd.f32 1.0, %v7193_v31  ;;  %v5034_v57 = vadd.f32 %v6770_v11, %v9185_v8  ;;  %v6533_v0 = vpop.f32.mrb[24].mxu1 }
 0x23a   : > { %7214 = vrcp.f32 %v5153_v63  ;;  %v5154_v53 = vadd.f32 1.0, %v7195_v44  ;;  %v5068_v25 = vsub.f32 0.0, %v5036_v29  ;;  %v7197_v54 = vpop.eup %7196  ;;  %v5117_v13 = vmul.f32 1.442695, %v5065_v4  ;;  %v4943_v27 = vpop.f32.mrb[25].mxu0 }
 0x23b   : > { %7216 = vrcp.f32 %v5156_v35  ;;  %v5066_v60 = vsub.f32 0.0, %v5034_v57  ;;  %v7199_v46 = vpop.eup %7198  ;;  %v6771_v42 = vadd.f32 %v6725_v16, %v6533_v0  ;;  %v2807_v17 = vpop.f32.mrb[25].mxu1 }
 0x23c   : > { %7218 = vrcp.f32 %v5154_v53  ;;  %v5123_v2 = vmul.f32 1.442695, %v5068_v25  ;;  %v6726_v55 = vpop.f32.mrb[26].mxu0  ;;  %v7201_v49 = vpop.eup %7200  ;;  %v6772_v24 = vadd.f32 %v4943_v27, %v2807_v17 }
 0x23d   : > { %7220 = vpow2.f32 %v5121_v7  ;;  %v5119_v28 = vmul.f32 1.442695, %v5066_v60  ;;  %v6534_v48 = vpop.f32.mrb[26].mxu1  ;;  %v4946_v40 = vpop.f32.mrb[27].mxu0  ;;  %v6016_v47 = vpack.c.bf16 %v7201_v49, %v7197_v54  ;;  %v5039_v12 = vadd.f32 %v6771_v42, %v9185_v8 }
 0x23e   : > { %v7203_v36 = vpop.eup %7202  ;;  %7222 = vpow2.f32 %v5117_v13  ;;  %v6773_v21 = vadd.f32 %v6726_v55, %v6534_v48  ;;  %v2810_v51 = vpop.f32.mrb[27].mxu1  ;;  %v5037_v62 = vadd.f32 %v6772_v24, %v9185_v8 }
 0x23f   : > { %v7205_v32 = vpop.eup %7204  ;;  %v6011_v5 = vpack.c.bf16 %v7203_v36, %v7199_v46  ;;  %7224 = vpow2.f32 %v5123_v2  ;;  %v6774_v41 = vadd.f32 %v4946_v40, %v2810_v51  ;;  %6072 = vst [vmem:[%s9212_s29 + $0x28] sm:$0xff] %v6016_v47   ;;  %v5071_v9 = vsub.f32 0.0, %v5039_v12 }
 0x240   : > { %v7207_v61 = vpop.eup %7206  ;;  %v5159_v6 = vadd.f32 1.0, %v7205_v32  ;;  %7226 = vpow2.f32 %v5119_v28  ;;  %v5040_v26 = vadd.f32 %v6773_v21, %v9185_v8  ;;  %v5069_v14 = vsub.f32 0.0, %v5037_v62  ;;  %v6729_v58 = vpop.f32.mrb[28].mxu0 }
 0x241   : > { %v7209_v18 = vpop.eup %7208  ;;  %6071 = vst [vmem:[%s9212_s29 + $0x20] sm:$0xff] %v6011_v5   ;;  %v5157_v33 = vadd.f32 1.0, %v7207_v61  ;;  %v5038_v10 = vadd.f32 %v6774_v41, %v9185_v8  ;;  %v5129_v23 = vmul.f32 1.442695, %v5071_v9  ;;  %v6537_v30 = vpop.f32.mrb[28].mxu1 }
 0x242   : > { %v7211_v39 = vpop.eup %7210  ;;  %7228 = vrcp.f32 %v5159_v6  ;;  %v5160_v50 = vadd.f32 1.0, %v7209_v18  ;;  %v5072_v3 = vsub.f32 0.0, %v5040_v26  ;;  %v5125_v59 = vmul.f32 1.442695, %v5069_v14  ;;  %v4959_v19 = vpop.f32.mrb[29].mxu0 }
 0x243   : > { %v7213_v37 = vpop.eup %7212  ;;  %7230 = vrcp.f32 %v5157_v33  ;;  %v5158_v22 = vadd.f32 1.0, %v7211_v39  ;;  %v5070_v45 = vsub.f32 0.0, %v5038_v10  ;;  %v6775_v34 = vadd.f32 %v6729_v58, %v6537_v30  ;;  %v2823_v43 = vpop.f32.mrb[29].mxu1 }
 0x244   : > { %v7215_v52 = vpop.eup %7214  ;;  %7232 = vrcp.f32 %v5160_v50  ;;  %v5131_v15 = vmul.f32 1.442695, %v5072_v3  ;;  %v6730_v38 = vpop.f32.mrb[30].mxu0  ;;  %v6776_v11 = vadd.f32 %v4959_v19, %v2823_v43 }
 0x245   : > { %v7217_v56 = vpop.eup %7216  ;;  %7234 = vrcp.f32 %v5158_v22  ;;  %v5127_v1 = vmul.f32 1.442695, %v5070_v45  ;;  %v6538_v31 = vpop.f32.mrb[30].mxu1  ;;  %v5043_v44 = vadd.f32 %v6775_v34, %v9185_v8 }
 0x246   : > { %v4962_v63 = vpop.f32.mrb[31].mxu0  ;;  %v7219_v20 = vpop.eup %7218  ;;  %v6026_v29 = vpack.c.bf16 %v7217_v56, %v7213_v37  ;;  %7236 = vpow2.f32 %v5129_v23  ;;  %v6777_v35 = vadd.f32 %v6730_v38, %v6538_v31  ;;  %v5041_v7 = vadd.f32 %v6776_v11, %v9185_v8 }
 0x247   : > { %v2826_v4 = vpop.f32.mrb[31].mxu1  ;;  %v7221_v57 = vpop.eup %7220  ;;  %v6021_v53 = vpack.c.bf16 %v7219_v20, %v7215_v52  ;;  %7238 = vpow2.f32 %v5125_v59  ;;  %v5075_v13 = vsub.f32 0.0, %v5043_v44 }
 0x248   : > { %v6778_v25 = vadd.f32 %v4962_v63, %v2826_v4  ;;  %v7223_v16 = vpop.eup %7222  ;;  %6074 = vst [vmem:[%s9212_s29 + $0x38] sm:$0xff] %v6026_v29   ;;  %v5163_v54 = vadd.f32 1.0, %v7221_v57  ;;  %7240 = vpow2.f32 %v5131_v15  ;;  %v5044_v60 = vadd.f32 %v6777_v35, %v9185_v8 }
 0x249   : > { %v7225_v0 = vpop.eup %7224  ;;  %6073 = vst [vmem:[%s9212_s29 + $0x30] sm:$0xff] %v6021_v53   ;;  %v5161_v27 = vadd.f32 1.0, %v7223_v16  ;;  %7242 = vpow2.f32 %v5127_v1  ;;  %v5073_v46 = vsub.f32 0.0, %v5041_v7  ;;  %v5137_v55 = vmul.f32 1.442695, %v5075_v13 }
 0x24a   : > { %v5042_v2 = vadd.f32 %v6778_v25, %v9185_v8  ;;  %v7227_v42 = vpop.eup %7226  ;;  %7244 = vrcp.f32 %v5163_v54  ;;  %v5164_v17 = vadd.f32 1.0, %v7225_v0  ;;  %v5076_v49 = vsub.f32 0.0, %v5044_v60 }
 0x24b   : > { %7246 = vrcp.f32 %v5161_v27  ;;  %v5162_v28 = vadd.f32 1.0, %v7227_v42  ;;  %v5133_v24 = vmul.f32 1.442695, %v5073_v46 }
 0x24c   : > { %v5074_v48 = vsub.f32 0.0, %v5042_v2  ;;  %v7229_v40 = vpop.eup %7228  ;;  %7248 = vrcp.f32 %v5164_v17  ;;  %v5139_v36 = vmul.f32 1.442695, %v5076_v49 }
 0x24d   : > { %v7231_v47 = vpop.eup %7230  ;;  %7250 = vrcp.f32 %v5162_v28 }
 0x24e   : > { %v5135_v12 = vmul.f32 1.442695, %v5074_v48  ;;  %v7233_v21 = vpop.eup %7232  ;;  %7252 = vpow2.f32 %v5137_v55 }
 0x24f   : > { %v7235_v8 = vpop.eup %7234  ;;  %v6036_v51 = vpack.c.bf16 %v7233_v21, %v7229_v40  ;;  %7254 = vpow2.f32 %v5133_v24 }
 0x250   : > { %v7237_v32 = vpop.eup %7236  ;;  %v6031_v5 = vpack.c.bf16 %v7235_v8, %v7231_v47  ;;  %7256 = vpow2.f32 %v5139_v36 }
 0x251   : > { %v7239_v62 = vpop.eup %7238  ;;  %6076 = vst [vmem:[%s9212_s29 + $0x48] sm:$0xff] %v6036_v51   ;;  %v5167_v41 = vadd.f32 1.0, %v7237_v32  ;;  %7258 = vpow2.f32 %v5135_v12 }
 0x252   : > { %v7241_v61 = vpop.eup %7240  ;;  %6075 = vst [vmem:[%s9212_s29 + $0x40] sm:$0xff] %v6031_v5   ;;  %v5165_v6 = vadd.f32 1.0, %v7239_v62 }
 0x253   : > { %v7243_v9 = vpop.eup %7242  ;;  %7260 = vrcp.f32 %v5167_v41  ;;  %v5168_v26 = vadd.f32 1.0, %v7241_v61 }
 0x254   : > { %v7245_v18 = vpop.eup %7244  ;;  %7262 = vrcp.f32 %v5165_v6  ;;  %v5166_v33 = vadd.f32 1.0, %v7243_v9 }
 0x255   : > { %v7247_v14 = vpop.eup %7246  ;;  %7264 = vrcp.f32 %v5168_v26 }
 0x256   : > { %v7249_v10 = vpop.eup %7248  ;;  %7266 = vrcp.f32 %v5166_v33 }
 0x257   : > { %v7251_v39 = vpop.eup %7250  ;;  %v6046_v50 = vpack.c.bf16 %v7249_v10, %v7245_v18 }
 0x258   : > { %v7253_v23 = vpop.eup %7252  ;;  %v6041_v3 = vpack.c.bf16 %v7251_v39, %v7247_v14 }
 0x259   : > { %v7255_v58 = vpop.eup %7254  ;;  %6078 = vst [vmem:[%s9212_s29 + $0x58] sm:$0xff] %v6046_v50   ;;  %v5171_v37 = vadd.f32 1.0, %v7253_v23 }
 0x25a   : > { %v7257_v22 = vpop.eup %7256  ;;  %6077 = vst [vmem:[%s9212_s29 + $0x50] sm:$0xff] %v6041_v3   ;;  %v5169_v59 = vadd.f32 1.0, %v7255_v58 }
 0x25b   : > { %v7259_v45 = vpop.eup %7258  ;;  %7268 = vrcp.f32 %v5171_v37  ;;  %v5172_v30 = vadd.f32 1.0, %v7257_v22 }
 0x25c   : > { %7270 = vrcp.f32 %v5169_v59  ;;  %v5170_v19 = vadd.f32 1.0, %v7259_v45 }
 0x25d   : > { %v7261_v52 = vpop.eup %7260  ;;  %7272 = vrcp.f32 %v5172_v30 }
 0x25e   : > { %v7263_v15 = vpop.eup %7262  ;;  %7274 = vrcp.f32 %v5170_v19 }
 0x25f   : > { %v7265_v34 = vpop.eup %7264 }
 0x260   : > { %v7267_v43 = vpop.eup %7266  ;;  %v6056_v38 = vpack.c.bf16 %v7265_v34, %v7261_v52 }
 0x261   : > { %v6051_v56 = vpack.c.bf16 %v7267_v43, %v7263_v15 }
 0x262   : > { %6080 = vst [vmem:[%s9212_s29 + $0x68] sm:$0xff] %v6056_v38  }
 0x263   : > { %6079 = vst [vmem:[%s9212_s29 + $0x60] sm:$0xff] %v6051_v56  }
 0x265   : > { %v7269_v1 = vpop.eup %7268 }
 0x266   : > { %v7271_v11 = vpop.eup %7270 }
 0x267   : > { %v7273_v31 = vpop.eup %7272 }
 0x268   : > { %v7275_v63 = vpop.eup %7274  ;;  %v6066_v20 = vpack.c.bf16 %v7273_v31, %v7269_v1 }
 0x269   : > { %v6061_v29 = vpack.c.bf16 %v7275_v63, %v7271_v11 }
 0x26a   : > { %6082 = vst [vmem:[%s9212_s29 + $0x78] sm:$0xff] %v6066_v20  }
 0x26b   : > { %6081 = vst [vmem:[%s9212_s29 + $0x70] sm:$0xff] %v6061_v29  }
 0x26c PF: > { %s13_s14 = sadd.s32 1, %s7368_s14   ;;  %s9325_s12 = smov %s7364_s13 }
 0x26d   : > { %p10_p5 = scmp.ge.s32.totalorder %s13_s14, 4   ;;  %s9326_s13 = smov %s9328_s15 }
 0x26f   :  { %12 = sbr.rel (!%p10_p5) target bundleno = 2 (0x2), region = 65 }

// kernel: global_level_forward.7
= control target key start
LH: loop header
LB: loop body
LE: loop exit
PB: predicated region body
PF: predicated region fallthrough
CT: control target
= control target key end

     0   :  { %s2578_s12 = smov 0   ;;  %s2580_s13 = smov 0   ;;  %s3046_s0 = inlined_call_operand.vmem [shape: bf16[2,9,9,512], index: 0, kind: input, shape index: {}]   ;;  %s3047_s1 = inlined_call_operand.vmem [shape: bf16[1152,128], index: 1, kind: input, shape index: {}]   ;;  %s3048_s2 = inlined_call_operand.vmem [shape: f32[1,128], index: 2, kind: input, shape index: {}]   ;;  %s3049_s3 = inlined_call_operand.vmem [shape: bf16[2,64,128], index: 3, kind: output, shape index: {}]  }
   0x1   :  { %s2582_s14 = smov 0  }
   0x2 LB: > { %s25_s15 = sadd.s32 1, %s2552_s13  ;;  %p1958_p0 = scmp.ge.s32.totalorder %s2556_s14, 1  ;;  %s2556_s14 = sphi %s2582_s14, %s13_s14   ;;  %s2552_s13 = sphi %s2580_s13, %s3053_s13   ;;  %s2548_s12 = sphi %s2578_s12, %s3052_s12  }
   0x3   : > { %p27_p1 = scmp.ge.s32.totalorder %s25_s15, 2  ;;  %p151_p2 = scmp.lt.s32.totalorder %s2556_s14, 3 }
   0x5   : > { %s3055_s15 = smov (%p27_p1, %s25_s15), 0  ;;  %p152_p3 = pnand %p1958_p0, %p151_p2 }
   0x6   : > { %v2430_v0 = vld [vmem:[%s3047_s1 + $0x100] sm:$0xff] (!%p152_p3)   ;;  %v2433_v3 = vld [vmem:[%s3047_s1 + $0x108] sm:$0xff] (!%p152_p3)   ;;  %v2436_v6 = vld [vmem:[%s3047_s1 + $0x110] sm:$0xff] (!%p152_p3)   ;;  %p179_p4 = scmp.lt.s32.totalorder (!%p152_p3), %s2548_s12, 1  ;;  %vm295_vm0 = vsmask.f32 (!%p152_p3), 3328 }
   0x7   : > { %155 = sbr.rel (%p152_p3) target bundleno = 374 (0x176), region = 32  ;;  %v2431_v1 = vld [vmem:[%s3047_s1 + $0x40] sm:$0xff] (!%p152_p3)   ;;  %2293 = vmatprep.subr.bf16.mxu0 (!%p152_p3), %v2430_v0  ;;  %v2434_v4 = vld [vmem:[%s3047_s1 + $0x48] sm:$0xff] (!%p152_p3)   ;;  %v2437_v7 = vld [vmem:[%s3047_s1 + $0x50] sm:$0xff] (!%p152_p3)   ;;  %vm296_vm1 = vsmask.f32 (!%p152_p3), 7440 }
   0x8   : > { %v2432_v2 = vld [vmem:[%s3047_s1] sm:$0xff] (!%p152_p3)   ;;  %2294 = vmatpush3.bf16.msra.mxu0 (!%p152_p3), %v2430_v0  ;;  %2149 = vmatprep.subr.bf16.mxu1 (!%p152_p3), %v2431_v1  ;;  %v2435_v5 = vld [vmem:[%s3047_s1 + $0x8] sm:$0xff] (!%p152_p3)   ;;  %v2438_v8 = vld [vmem:[%s3047_s1 + $0x10] sm:$0xff] (!%p152_p3)  }
   0x9   : > { %2150 = vmatpush3.bf16.msra.mxu1 (!%p152_p3), %v2432_v2  ;;  %2295 = vmatprep.subr.bf16.mxu0 (!%p152_p3), %v2433_v3  ;;  %v2439_v9 = vld [vmem:[%s3047_s1 + $0x118] sm:$0xff] (!%p152_p3)   ;;  %v2442_v12 = vld [vmem:[%s3047_s1 + $0x120] sm:$0xff] (!%p152_p3)   ;;  %v2445_v15 = vld [vmem:[%s3047_s1 + $0x128] sm:$0xff] (!%p152_p3)  }
   0xa   : > { %2151 = vmatprep.subr.bf16.mxu1 (!%p152_p3), %v2434_v4  ;;  %v2440_v10 = vld [vmem:[%s3047_s1 + $0x58] sm:$0xff] (!%p152_p3)   ;;  %v2443_v13 = vld [vmem:[%s3047_s1 + $0x60] sm:$0xff] (!%p152_p3)   ;;  %v2446_v16 = vld [vmem:[%s3047_s1 + $0x68] sm:$0xff] (!%p152_p3)  }
   0xb   : > { %v2441_v11 = vld [vmem:[%s3047_s1 + $0x18] sm:$0xff] (!%p152_p3)   ;;  %v2444_v14 = vld [vmem:[%s3047_s1 + $0x20] sm:$0xff] (!%p152_p3)   ;;  %v2447_v17 = vld [vmem:[%s3047_s1 + $0x28] sm:$0xff] (!%p152_p3)  }
   0xc   : > { %2296 = vmatpush3.bf16.msra.mxu0 (!%p152_p3), %v2433_v3  ;;  %v2448_v18 = vld [vmem:[%s3047_s1 + $0x130] sm:$0xff] (!%p152_p3)   ;;  %v2451_v21 = vld [vmem:[%s3047_s1 + $0x138] sm:$0xff] (!%p152_p3)   ;;  %v2454_v34 = vld [vmem:[%s3047_s1 + $0xc0] sm:$0xff] (!%p152_p3)  }
   0xd   : > { %2152 = vmatpush3.bf16.msra.mxu1 (!%p152_p3), %v2435_v5  ;;  %2297 = vmatprep.subr.bf16.mxu0 (!%p152_p3), %v2436_v6  ;;  %v2449_v19 = vld [vmem:[%s3047_s1 + $0x70] sm:$0xff] (!%p152_p3)   ;;  %v2452_v22 = vld [vmem:[%s3047_s1 + $0x78] sm:$0xff] (!%p152_p3)   ;;  %vm2694_vm2 = vmor (!%p152_p3), %vm295_vm0, %vm296_vm1 }
   0xe   : > { %2153 = vmatprep.subr.bf16.mxu1 %v2437_v7  ;;  %s3057_s12 = smov (!%p179_p4, %s2548_s12), 1  ;;  %v2450_v20 = vld [vmem:[%s3047_s1 + $0x30] sm:$0xff]   ;;  %v2453_v31 = vld [vmem:[%s3047_s1 + $0x38] sm:$0xff]   ;;  %v2456_v3 = vld [vmem:[%s3047_s1 + $0x1c0] sm:$0xff]  }
   0xf   : > { %s2405_s27 = smul.u32 288, %s3057_s12  ;;  %v2457_v7 = vld [vmem:[%s3047_s1 + $0x180] sm:$0xff]   ;;  %s2105_s4 = sshll.u32 %s3057_s12, 5 }
  0x10   : > { %2298 = vmatpush3.bf16.msra.mxu0 %v2436_v6  ;;  %s192_s7 = scalar_lea.vmem %s3049_s3, %s2105_s4 }
  0x11   : > { %2154 = vmatpush3.bf16.msra.mxu1 %v2438_v8  ;;  %2299 = vmatprep.subr.bf16.mxu0 %v2439_v9  ;;  %s2666_s9 = scalar_lea.vmem %s3046_s0, %s2405_s27 }
  0x12   : > { %2155 = vmatprep.subr.bf16.mxu1 %v2440_v10  ;;  %v279_v23 = vld [vmem:[%s2666_s9] sm:$0xf]  ;;  %v280_v24 = vld [vmem:[%s2666_s9 + $0x10] sm:$0x1] }
  0x13   : > { %v281_v25 = vld [vmem:[%s2666_s9 + $0x20] sm:$0xf]  ;;  %v282_v26 = vld [vmem:[%s2666_s9 + $0x30] sm:$0x1]  ;;  %v299_v27 = vshrl.u32 %v279_v23, 16  ;;  %v302_v28 = vshll.u32 %v279_v23, 16 }
  0x14   : > { %2300 = vmatpush3.bf16.msra.mxu0 %v2439_v9  ;;  %v308_v29 = vshll.u32 %v280_v24, 16  ;;  %v313_v30 = vshrl.u32 %v281_v25, 16  ;;  %v316_v32 = vshll.u32 %v281_v25, 16  ;;  %v322_v33 = vshll.u32 %v282_v26, 16  ;;  %v283_v39 = vld [vmem:[%s2666_s9 + $0x40] sm:$0xf] }
  0x15   : > { %2156 = vmatpush3.bf16.msra.mxu1 %v2441_v11  ;;  %2301 = vmatprep.subr.bf16.mxu0 %v2442_v12  ;;  %v301_v35 = vrot.slane %v299_v27, 4  ;;  %v304_v36 = vrot.slane %v302_v28, 5  ;;  %v284_v42 = vld [vmem:[%s2666_s9 + $0x50] sm:$0x1]  ;;  %v285_v43 = vld [vmem:[%s2666_s9 + $0x60] sm:$0xf] }
  0x16   : > { %2157 = vmatprep.subr.bf16.mxu1 %v2443_v13  ;;  %v310_v37 = vrot.slane %v308_v29, 5  ;;  %v315_v38 = vrot.slane %v313_v30, 4  ;;  %v318_v40 = vrot.slane %v316_v32, 5  ;;  %v324_v41 = vrot.slane %v322_v33, 5  ;;  %v286_v45 = vld [vmem:[%s2666_s9 + $0x70] sm:$0x1] }
  0x17   : > { %v305_v44 = vor.u32 %v304_v36, %v301_v35  ;;  %v327_v46 = vshrl.u32 %v283_v39, 16  ;;  %v330_v47 = vshll.u32 %v283_v39, 16  ;;  %v336_v48 = vshll.u32 %v284_v42, 16  ;;  %v199_v49 = vld [vmem:[%s2666_s9] sm:$0xff]  ;;  %v2460_v13 = vld [vmem:[%s3047_s1 + $0x1c8] sm:$0xff]   ;;  %v2464_v24 = vld [vmem:[%s3047_s1 + $0x1d0] sm:$0xff]  }
  0x18   : > { %2302 = vmatpush3.bf16.msra.mxu0 %v2442_v12  ;;  %v319_v51 = vor.u32 %v318_v40, %v315_v38  ;;  %v341_v52 = vshrl.u32 %v285_v43, 16  ;;  %v344_v53 = vshll.u32 %v285_v43, 16  ;;  %v350_v54 = vshll.u32 %v286_v45, 16  ;;  %v2699_v55 = vld [vmem:[%s2666_s9 + $0x20] sm:$0xff]  ;;  %v2465_v25 = vld [vmem:[%s3047_s1 + $0x190] sm:$0xff]   ;;  %v2466_v27 = vld [vmem:[%s3047_s1 + $0xd8] sm:$0xff]  }
  0x19   : > { %2158 = vmatpush3.bf16.msra.mxu1 %v2444_v14  ;;  %2303 = vmatprep.subr.bf16.mxu0 %v2445_v15  ;;  %v306_v56 = vrot.slane %v305_v44, 4  ;;  %v329_v57 = vrot.slane %v327_v46, 4  ;;  %v332_v58 = vrot.slane %v330_v47, 5  ;;  %v338_v60 = vrot.slane %v336_v48, 5  ;;  %v2455_v11 = vld [vmem:[%s3047_s1 + $0x80] sm:$0xff]   ;;  %v2463_v26 = vld [vmem:[%s3047_s1 + $0x90] sm:$0xff]  }
  0x1a   : > { %2159 = vmatprep.subr.bf16.mxu1 %v2446_v16  ;;  %v320_v59 = vrot.slane %v319_v51, 4  ;;  %v343_v61 = vrot.slane %v341_v52, 4  ;;  %v346_v62 = vrot.slane %v344_v53, 5  ;;  %v1974_v1 = vcombine.low %v199_v49, %v2699_v55  ;;  %v2468_v28 = vld [vmem:[%s3047_s1 + $0x1d8] sm:$0xff]   ;;  %v2770_v32 = vld [vmem:[%s2666_s9 + $0xa0] sm:$0xff]  ;;  %v2474_v39 = vld [vmem:[%s3047_s1 + $0xe8] sm:$0xff]  }
  0x1b   : > { %v311_v63 = vsel %vm2694_vm2, %v306_v56, %v310_v37  ;;  %v333_v0 = vor.u32 %v332_v58, %v329_v57  ;;  %v1975_v2 = vcombine.high %v199_v49, %v2699_v55  ;;  %v352_v6 = vrot.slane %v350_v54, 5  ;;  %v2469_v29 = vld [vmem:[%s3047_s1 + $0x198] sm:$0xff]   ;;  %v2470_v33 = vld [vmem:[%s3047_s1 + $0xe0] sm:$0xff]   ;;  %v2476_v40 = vld [vmem:[%s3047_s1 + $0x1e8] sm:$0xff]  }
  0x1c   : > { %2304 = vmatpush3.bf16.msra.mxu0 %v2445_v15  ;;  %v325_v4 = vsel %vm2694_vm2, %v320_v59, %v324_v41  ;;  %v347_v5 = vor.u32 %v346_v62, %v343_v61  ;;  %v2461_v15 = vld [vmem:[%s3047_s1 + $0x188] sm:$0xff]   ;;  %v2467_v30 = vld [vmem:[%s3047_s1 + $0x98] sm:$0xff]   ;;  %v2472_v36 = vld [vmem:[%s3047_s1 + $0x1e0] sm:$0xff]  }
  0x1d   : > { %2160 = vmatpush3.bf16.msra.mxu1 %v2447_v17  ;;  %2305 = vmatprep.subr.bf16.mxu0 %v2448_v18  ;;  %v1962_v8 = vcombine.low %v311_v63, %v325_v4  ;;  %v334_v9 = vrot.slane %v333_v0, 4  ;;  %v2458_v17 = vld [vmem:[%s3047_s1 + $0xc8] sm:$0xff]   ;;  %v2473_v37 = vld [vmem:[%s3047_s1 + $0x1a0] sm:$0xff]   ;;  %v288_v42 = vld [vmem:[%s2666_s9 + $0x90] sm:$0x1] }
  0x1e   : > { %2161 = vmatprep.subr.bf16.mxu1 %v2449_v19  ;;  %859 = vmatprep.mubr.bf16.mxu1 %v1975_v2  ;;  %v348_v10 = vrot.slane %v347_v5, 4  ;;  %v2459_v19 = vld [vmem:[%s3047_s1 + $0x88] sm:$0xff]   ;;  %v2471_v38 = vld [vmem:[%s3047_s1 + $0xa0] sm:$0xff]   ;;  %v290_v45 = vld [vmem:[%s2666_s9 + $0xb0] sm:$0x1]  ;;  %v364_v48 = vshll.u32 %v288_v42, 16 }
  0x1f   : > { %2309 = vmatprep.mubr.bf16.mxu0 %v1962_v8  ;;  %v339_v12 = vsel %vm2694_vm2, %v334_v9, %v338_v60  ;;  %v287_v41 = vld [vmem:[%s2666_s9 + $0x80] sm:$0xf]  ;;  %v2475_v44 = vld [vmem:[%s3047_s1 + $0xa8] sm:$0xff]   ;;  %v378_v52 = vshll.u32 %v290_v45, 16  ;;  %v2478_v59 = vld [vmem:[%s3047_s1 + $0xf0] sm:$0xff]  }
  0x20   : > { %2306 = vmatpush3.bf16.msra.mxu0 %v2448_v18  ;;  %v353_v14 = vsel %vm2694_vm2, %v348_v10, %v352_v6  ;;  %v2730_v18 = vld [vmem:[%s2666_s9 + $0x40] sm:$0xff]  ;;  %v355_v46 = vshrl.u32 %v287_v41, 16  ;;  %v358_v47 = vshll.u32 %v287_v41, 16  ;;  %v366_v56 = vrot.slane %v364_v48, 5  ;;  %v2477_v58 = vld [vmem:[%s3047_s1 + $0x1a8] sm:$0xff]   ;;  %v2484_v41 = vld [vmem:[%s3047_s1 + $0x1f8] sm:$0xff]  }
  0x21   : > { %2162 = vmatpush3.bf16.msra.mxu1 %v2450_v20  ;;  %2307 = vmatprep.subr.bf16.mxu0 %v2451_v21  ;;  %v1963_v16 = vcombine.low %v339_v12, %v353_v14  ;;  %v2736_v20 = vld [vmem:[%s2666_s9 + $0x60] sm:$0xff]  ;;  %v380_v61 = vrot.slane %v378_v52, 5  ;;  %v292_v63 = vld [vmem:[%s2666_s9 + $0xd0] sm:$0x1]  ;;  %v200_v42 = vld [vmem:[%s2666_s9 + $0x8] sm:$0xff]  ;;  %v2042_v48 = vcombine.low %v2699_v55, %v2730_v18 }
  0x22   : > { %2163 = vmatprep.subr.bf16.mxu1 %v2452_v22  ;;  %v1979_v22 = vcombine.high %v2730_v18, %v2736_v20  ;;  %v1978_v23 = vcombine.low %v2730_v18, %v2736_v20  ;;  %v289_v43 = vld [vmem:[%s2666_s9 + $0xa0] sm:$0xf]  ;;  %v357_v53 = vrot.slane %v355_v46, 4  ;;  %v360_v54 = vrot.slane %v358_v47, 5  ;;  %v294_v2 = vld [vmem:[%s2666_s9 + $0xf0] sm:$0x1] }
  0x23   : > { %v369_v49 = vshrl.u32 %v289_v43, 16  ;;  %v372_v51 = vshll.u32 %v289_v43, 16  ;;  %v291_v62 = vld [vmem:[%s2666_s9 + $0xc0] sm:$0xf]  ;;  %v392_v6 = vshll.u32 %v292_v63, 16  ;;  %v2485_v46 = vld [vmem:[%s3047_s1 + $0x1b8] sm:$0xff]  }
  0x24   : > { %2308 = vmatpush3.bf16.msra.mxu0 %v2451_v21  ;;  %v2462_v21 = vld [vmem:[%s3047_s1 + $0xd0] sm:$0xff]   ;;  %v361_v0 = vor.u32 %v360_v54, %v357_v53  ;;  %v386_v4 = vshll.u32 %v291_v62, 16  ;;  %v2812_v9 = vld [vmem:[%s2666_s9 + $0xc0] sm:$0xff]  ;;  %v2489_v52 = vld [vmem:[%s3047_s1 + $0x208] sm:$0xff]  }
  0x25   : > { %2164 = vmatpush3.bf16.msra.mxu1 %v2453_v31  ;;  %2189 = vmatprep.subr.bf16.mxu0 %v2454_v34  ;;  %v2767_v31 = vld [vmem:[%s2666_s9 + $0x80] sm:$0xff]  ;;  %v371_v57 = vrot.slane %v369_v49, 4  ;;  %v374_v60 = vrot.slane %v372_v51, 5  ;;  %v204_v53 = vld [vmem:[%s2666_s9 + $0x48] sm:$0xff]  ;;  %v2493_v63 = vld [vmem:[%s3047_s1 + $0x218] sm:$0xff]  }
  0x26   : > { %2241 = vmatprep.subr.bf16.mxu1 %v2456_v3  ;;  %v1983_v34 = vcombine.high %v2767_v31, %v2770_v32  ;;  %v1982_v35 = vcombine.low %v2767_v31, %v2770_v32  ;;  %v383_v3 = vshrl.u32 %v291_v62, 16  ;;  %v362_v10 = vrot.slane %v361_v0, 4  ;;  %v2486_v47 = vld [vmem:[%s3047_s1 + $0x140] sm:$0xff]   ;;  %v206_v54 = vld [vmem:[%s2666_s9 + $0x68] sm:$0xff] }
  0x27   : > { %2310 = vmatmul.mubr.bf16.vlgmr.msra.gmra.mrb[0].mxu0 %v1963_v16  ;;  %v375_v5 = vor.u32 %v374_v60, %v371_v57  ;;  %v388_v12 = vrot.slane %v386_v4, 5  ;;  %v2487_v49 = vld [vmem:[%s3047_s1 + $0x200] sm:$0xff]   ;;  %v2045_v51 = vcombine.high %v2736_v20, %v2767_v31  ;;  %v2491_v57 = vld [vmem:[%s3047_s1 + $0x210] sm:$0xff]   ;;  %v2881_v60 = vld [vmem:[%s2666_s9 + $0x88] sm:$0xff] }
  0x28   : > { %860 = vmatmul.mubr.bf16.vlgmr.msra.gmra.mrb[0].mxu1 %v1974_v1  ;;  %2190 = vmatpush3.bf16.msra.mxu0 %v2455_v11  ;;  %v293_v1 = vld [vmem:[%s2666_s9 + $0xe0] sm:$0xf]  ;;  %v385_v11 = vrot.slane %v383_v3, 4  ;;  %v2886_v62 = vld [vmem:[%s2666_s9 + $0xa8] sm:$0xff] }
  0x29   : > { %2242 = vmatpush3.bf16.msra.mxu1 %v2457_v7  ;;  %2191 = vmatprep.subr.bf16.mxu0 %v2458_v17  ;;  %v397_v7 = vshrl.u32 %v293_v1, 16  ;;  %v400_v8 = vshll.u32 %v293_v1, 16  ;;  %v376_v14 = vrot.slane %v375_v5, 4  ;;  %v1985_v0 = vcombine.high %v2881_v60, %v2886_v62  ;;  %v2495_v1 = vld [vmem:[%s3047_s1 + $0x220] sm:$0xff]   ;;  %v2906_v4 = vld [vmem:[%s2666_s9 + $0xe8] sm:$0xff] }
  0x2a   : > { %2243 = vmatprep.subr.bf16.mxu1 %v2460_v13  ;;  %867 = vmatprep.mubr.bf16.mxu1 %v1979_v22  ;;  %v406_v13 = vshll.u32 %v294_v2, 16  ;;  %v367_v22 = vsel %vm2694_vm2, %v362_v10, %v366_v56  ;;  %v2900_v2 = vld [vmem:[%s2666_s9 + $0xc8] sm:$0xff]  ;;  %v2903_v3 = vld [vmem:[%s2666_s9 + $0x100] sm:$0xff] }
  0x2b   : > { %v399_v16 = vrot.slane %v397_v7, 4  ;;  %v402_v17 = vrot.slane %v400_v8, 5  ;;  %v2494_v5 = vld [vmem:[%s3047_s1 + $0x160] sm:$0xff]   ;;  %v2497_v7 = vld [vmem:[%s3047_s1 + $0x228] sm:$0xff]  }
  0x2c   : > { %2192 = vmatpush3.bf16.msra.mxu0 %v2459_v19  ;;  %v2815_v19 = vld [vmem:[%s2666_s9 + $0xe0] sm:$0xff]  ;;  %v957_v10 = vld [vmem:[%s2666_s9 + $0x8] sm:$0xf] }
  0x2d   : > { %2244 = vmatpush3.bf16.msra.mxu1 %v2461_v15  ;;  %2193 = vmatprep.subr.bf16.mxu0 %v2462_v21  ;;  %v394_v15 = vrot.slane %v392_v6, 5  ;;  %v2479_v21 = vld [vmem:[%s3047_s1 + $0xb0] sm:$0xff]   ;;  %v2046_v6 = vcombine.low %v2770_v32, %v2812_v9  ;;  %v2049_v8 = vcombine.high %v2815_v19, %v2903_v3 }
  0x2e   : > { %2245 = vmatprep.subr.bf16.mxu1 %v2464_v24  ;;  %v408_v24 = vrot.slane %v406_v13, 5  ;;  %v960_v13 = vld [vmem:[%s2666_s9 + $0x38] sm:$0x1] }
  0x30   : > { %868 = vmatmul.mubr.bf16.gmra.mrb[4].mxu1 %v1978_v23  ;;  %2194 = vmatpush3.bf16.msra.mxu0 %v2463_v26  ;;  %v389_v23 = vor.u32 %v388_v12, %v385_v11  ;;  %v2480_v26 = vld [vmem:[%s3047_s1 + $0x1f0] sm:$0xff]   ;;  %v1984_v11 = vcombine.low %v2881_v60, %v2886_v62  ;;  %v959_v12 = vld [vmem:[%s2666_s9 + $0x28] sm:$0xf]  ;;  %v2501_v60 = vld [vmem:[%s3047_s1 + $0x238] sm:$0xff]  }
  0x31   : > { %2246 = vmatpush3.bf16.msra.mxu1 %v2465_v25  ;;  %2195 = vmatprep.subr.bf16.mxu0 %v2466_v27  ;;  %v1987_v25 = vcombine.high %v2812_v9, %v2815_v19  ;;  %v381_v27 = vsel %vm2694_vm2, %v376_v14, %v380_v61  ;;  %v2047_v61 = vcombine.high %v2770_v32, %v2812_v9  ;;  %v974_v14 = vshrl.u32 %v957_v10, 16 }
  0x32   : > { %2247 = vmatprep.subr.bf16.mxu1 %v2468_v28  ;;  %875 = vmatprep.mubr.bf16.mxu1 %v1983_v34  ;;  %v403_v28 = vor.u32 %v402_v17, %v399_v16  ;;  %v390_v34 = vrot.slane %v389_v23, 4  ;;  %v1989_v32 = vcombine.high %v2900_v2, %v2906_v4  ;;  %v988_v17 = vshrl.u32 %v959_v12, 16 }
  0x33   : > { %v2048_v23 = vcombine.low %v2815_v19, %v2903_v3 }
  0x34   : > { %2196 = vmatpush3.bf16.msra.mxu0 %v2467_v30  ;;  %v2043_v30 = vcombine.high %v2699_v55, %v2730_v18  ;;  %v1981_v55 = vcombine.high %v204_v53, %v206_v54  ;;  %v2488_v18 = vld [vmem:[%s3047_s1 + $0x148] sm:$0xff]  }
  0x35   : > { %2248 = vmatpush3.bf16.msra.mxu1 %v2469_v29  ;;  %2197 = vmatprep.subr.bf16.mxu0 %v2470_v33  ;;  %v1986_v29 = vcombine.low %v2812_v9, %v2815_v19  ;;  %v1964_v33 = vcombine.low %v367_v22, %v381_v27  ;;  %v958_v9 = vld [vmem:[%s2666_s9 + $0x18] sm:$0x1]  ;;  %v1988_v22 = vcombine.low %v2900_v2, %v2906_v4  ;;  %v963_v27 = vld [vmem:[%s2666_s9 + $0x68] sm:$0xf] }
  0x36   : > { %2249 = vmatprep.subr.bf16.mxu1 %v2472_v36  ;;  %v404_v36 = vrot.slane %v403_v28, 4  ;;  %v983_v16 = vshll.u32 %v958_v9, 16  ;;  %v976_v28 = vrot.slane %v974_v14, 4  ;;  %v2500_v9 = vld [vmem:[%s3047_s1 + $0x178] sm:$0xff]  }
  0x37   : > { %2313 = vmatprep.mubr.bf16.mxu0 %v1964_v33  ;;  %v990_v33 = vrot.slane %v988_v17, 4 }
  0x38   : > { %876 = vmatmul.mubr.bf16.gmra.mrb[8].mxu1 %v1982_v35  ;;  %2198 = vmatpush3.bf16.msra.mxu0 %v2471_v38  ;;  %v2481_v35 = vld [vmem:[%s3047_s1 + $0x1b0] sm:$0xff]   ;;  %v395_v38 = vsel %vm2694_vm2, %v390_v34, %v394_v15  ;;  %v977_v15 = vshll.u32 %v957_v10, 16  ;;  %v964_v34 = vld [vmem:[%s2666_s9 + $0x78] sm:$0x1] }
  0x39   : > { %2250 = vmatpush3.bf16.msra.mxu1 %v2473_v37  ;;  %2199 = vmatprep.subr.bf16.mxu0 %v2474_v39  ;;  %v2482_v37 = vld [vmem:[%s3047_s1 + $0xf8] sm:$0xff]  }
  0x3a   : > { %2251 = vmatprep.subr.bf16.mxu1 %v2476_v40  ;;  %883 = vmatprep.mubr.bf16.mxu1 %v1987_v25  ;;  %v2483_v39 = vld [vmem:[%s3047_s1 + $0xb8] sm:$0xff]   ;;  %v409_v40 = vsel %vm2694_vm2, %v404_v36, %v408_v24  ;;  %v991_v24 = vshll.u32 %v959_v12, 16  ;;  %v997_v25 = vshll.u32 %v960_v13, 16 }
  0x3b   : > { %v1965_v43 = vcombine.low %v395_v38, %v409_v40 }
  0x3c   : > { %2200 = vmatpush3.bf16.msra.mxu0 %v2475_v44  ;;  %v202_v44 = vld [vmem:[%s2666_s9 + $0x28] sm:$0xff]  ;;  %v993_v36 = vrot.slane %v991_v24, 5  ;;  %v999_v19 = vrot.slane %v997_v25, 5 }
  0x3d   : > { %2252 = vmatpush3.bf16.msra.mxu1 %v2477_v58  ;;  %2201 = vmatprep.subr.bf16.mxu0 %v2478_v59  ;;  %v1977_v45 = vcombine.high %v200_v42, %v202_v44  ;;  %v1976_v56 = vcombine.low %v200_v42, %v202_v44  ;;  %v2490_v58 = vld [vmem:[%s3047_s1 + $0x150] sm:$0xff]   ;;  %v2044_v59 = vcombine.low %v2736_v20, %v2767_v31  ;;  %v2492_v31 = vld [vmem:[%s3047_s1 + $0x158] sm:$0xff]   ;;  %v1016_v42 = vshrl.u32 %v963_v27, 16  ;;  %v2066_v44 = vld [vmem:[%s2666_s9 + $0x20] sm:$0xf] }
  0x3e   : > { %2253 = vmatprep.subr.bf16.mxu1 %v2480_v26  ;;  %2314 = vmatmul.mubr.bf16.gmra.mrb[4].mxu0 %v1965_v43  ;;  %v1980_v20 = vcombine.low %v204_v53, %v206_v54  ;;  %v962_v26 = vld [vmem:[%s2666_s9 + $0x58] sm:$0x1]  ;;  %v1019_v43 = vshll.u32 %v963_v27, 16 }
  0x3f   : > { %924 = vmatprep.mubr.bf16.mxu0 %v1977_v45  ;;  %v994_v45 = vor.u32 %v993_v36, %v990_v33  ;;  %v1018_v53 = vrot.slane %v1016_v42, 4 }
  0x40   : > { %2202 = vmatpush3.bf16.msra.mxu0 %v2479_v21  ;;  %884 = vmatmul.mubr.bf16.gmra.mrb[12].mxu1 %v1986_v29  ;;  %v961_v21 = vld [vmem:[%s2666_s9 + $0x48] sm:$0xf]  ;;  %v979_v29 = vrot.slane %v977_v15, 5  ;;  %v1021_v54 = vrot.slane %v1019_v43, 5 }
  0x41   : > { %2254 = vmatpush3.bf16.msra.mxu1 %v2481_v35  ;;  %2203 = vmatprep.subr.bf16.mxu0 %v2482_v37  ;;  %v2496_v35 = vld [vmem:[%s3047_s1 + $0x168] sm:$0xff]   ;;  %v1002_v37 = vshrl.u32 %v961_v21, 16  ;;  %v1005_v38 = vshll.u32 %v961_v21, 16 }
  0x42   : > { %1450 = vmatprep.mubr.bf16.mxu1 %v2043_v30  ;;  %2255 = vmatprep.subr.bf16.mxu1 %v2484_v41  ;;  %v985_v30 = vrot.slane %v983_v16, 5  ;;  %v980_v40 = vor.u32 %v979_v29, %v976_v28  ;;  %v1011_v41 = vshll.u32 %v962_v26, 16  ;;  %v1022_v62 = vor.u32 %v1021_v54, %v1018_v53  ;;  %v2072_v16 = vld [vmem:[%s2666_s9 + $0x80] sm:$0xf]  ;;  %v969_v53 = vld [vmem:[%s2666_s9 + $0xc8] sm:$0xf] }
  0x43   : > { %v1550_v36 = vshrl.u32 %v2072_v16, 16  ;;  %v1553_v2 = vshll.u32 %v2072_v16, 16 }
  0x44   : > { %2204 = vmatpush3.bf16.msra.mxu0 %v2483_v39  ;;  %v2499_v39 = vld [vmem:[%s3047_s1 + $0x230] sm:$0xff]  }
  0x45   : > { %2256 = vmatpush3.bf16.msra.mxu1 %v2485_v46  ;;  %2317 = vmatprep.subr.bf16.mxu0 %v2486_v47  ;;  %v1004_v46 = vrot.slane %v1002_v37, 4 }
  0x46   : > { %2341 = vmatprep.subr.bf16.mxu1 %v2487_v49 }
  0x47   : > { %925 = vmatmul.mubr.bf16.vlgmr.msra.gmra.mrb[8].mxu0 %v1976_v56  ;;  %v2068_v56 = vld [vmem:[%s2666_s9 + $0x40] sm:$0xf] }
  0x48   : > { %1451 = vmatmul.mubr.bf16.vlgmr.msra.gmra.mrb[16].mxu1 %v2042_v48  ;;  %2318 = vmatpush3.bf16.msra.mxu0 %v2486_v47  ;;  %v1007_v47 = vrot.slane %v1005_v38, 5  ;;  %v1025_v48 = vshll.u32 %v964_v34, 16  ;;  %v1525_v14 = vshll.u32 %v2068_v56, 16 }
  0x49   : > { %2342 = vmatpush3.bf16.msra.mxu1 %v2487_v49  ;;  %1458 = vmatprep.mubr.bf16.mxu1 %v2045_v51  ;;  %v2067_v49 = vld [vmem:[%s2666_s9 + $0x30] sm:$0x1]  ;;  %v981_v51 = vrot.slane %v980_v40, 4 }
  0x4a   : > { %2343 = vmatprep.subr.bf16.mxu1 %v2489_v52  ;;  %932 = vmatprep.mubr.bf16.mxu0 %v1981_v55  ;;  %v2498_v55 = vld [vmem:[%s3047_s1 + $0x170] sm:$0xff]   ;;  %v1527_v27 = vrot.slane %v1525_v14, 5 }
  0x4b   : > { %2319 = vmatprep.subr.bf16.mxu0 %v2488_v18 }
  0x4c   : > { %2320 = vmatpush3.bf16.msra.mxu0 %v2488_v18  ;;  %v995_v18 = vrot.slane %v994_v45, 4 }
  0x4d   : > { %2344 = vmatpush3.bf16.msra.mxu1 %v2489_v52  ;;  %2321 = vmatprep.subr.bf16.mxu0 %v2490_v58  ;;  %v1013_v52 = vrot.slane %v1011_v41, 5  ;;  %v1552_v41 = vrot.slane %v1550_v36, 4 }
  0x4e   : > { %2345 = vmatprep.subr.bf16.mxu1 %v2491_v57 }
  0x4f   : > { %933 = vmatmul.mubr.bf16.gmra.mrb[12].mxu0 %v1980_v20  ;;  %v1511_v20 = vshll.u32 %v2066_v44, 16 }
  0x50   : > { %1459 = vmatmul.mubr.bf16.gmra.mrb[20].mxu1 %v2044_v59  ;;  %2322 = vmatpush3.bf16.msra.mxu0 %v2490_v58  ;;  %v1027_v58 = vrot.slane %v1025_v48, 5  ;;  %v1508_v59 = vshrl.u32 %v2066_v44, 16  ;;  %v1555_v44 = vrot.slane %v1553_v2, 5 }
  0x51   : > { %1466 = vmatprep.mubr.bf16.mxu1 %v2047_v61  ;;  %2346 = vmatpush3.bf16.msra.mxu1 %v2491_v57  ;;  %v1008_v57 = vor.u32 %v1007_v47, %v1004_v46  ;;  %v986_v61 = vsel %vm2694_vm2, %v981_v51, %v985_v30  ;;  %v1513_v10 = vrot.slane %v1511_v20, 5  ;;  %v965_v30 = vld [vmem:[%s2666_s9 + $0x88] sm:$0xf]  ;;  %v968_v46 = vld [vmem:[%s2666_s9 + $0xb8] sm:$0x1] }
  0x52   : > { %2347 = vmatprep.subr.bf16.mxu1 %v2493_v63  ;;  %940 = vmatprep.mubr.bf16.mxu0 %v1985_v0  ;;  %v1000_v0 = vsel %vm2694_vm2, %v995_v18, %v999_v19  ;;  %v1510_v3 = vrot.slane %v1508_v59, 4  ;;  %v966_v19 = vld [vmem:[%s2666_s9 + $0x98] sm:$0x1]  ;;  %v1030_v42 = vshrl.u32 %v965_v30, 16  ;;  %v1033_v47 = vshll.u32 %v965_v30, 16 }
  0x53   : > { %2323 = vmatprep.subr.bf16.mxu0 %v2492_v31  ;;  %v1039_v51 = vshll.u32 %v966_v19, 16  ;;  %v2078_v19 = vld [vmem:[%s2666_s9 + $0xe0] sm:$0xf] }
  0x54   : > { %2324 = vmatpush3.bf16.msra.mxu0 %v2492_v31  ;;  %v1517_v31 = vshll.u32 %v2067_v49, 16  ;;  %v1514_v21 = vor.u32 %v1513_v10, %v1510_v3  ;;  %v1032_v49 = vrot.slane %v1030_v42, 4  ;;  %v1058_v3 = vshrl.u32 %v969_v53, 16  ;;  %v2080_v42 = vld [vmem:[%s2666_s9 + $0x100] sm:$0xf] }
  0x55   : > { %2348 = vmatpush3.bf16.msra.mxu1 %v2493_v63  ;;  %2325 = vmatprep.subr.bf16.mxu0 %v2494_v5  ;;  %v2069_v63 = vld [vmem:[%s2666_s9 + $0x50] sm:$0x1] }
  0x56   : > { %2349 = vmatprep.subr.bf16.mxu1 %v2495_v1  ;;  %v1531_v15 = vshll.u32 %v2069_v63, 16  ;;  %v1515_v33 = vrot.slane %v1514_v21, 4  ;;  %v1060_v14 = vrot.slane %v1058_v3, 4 }
  0x57   : > { %941 = vmatmul.mubr.bf16.gmra.mrb[16].mxu0 %v1984_v11  ;;  %v1519_v11 = vrot.slane %v1517_v31, 5 }
  0x58   : > { %1467 = vmatmul.mubr.bf16.gmra.mrb[24].mxu1 %v2046_v6  ;;  %2326 = vmatpush3.bf16.msra.mxu0 %v2494_v5  ;;  %v1522_v5 = vshrl.u32 %v2068_v56, 16  ;;  %v2070_v6 = vld [vmem:[%s2666_s9 + $0x60] sm:$0xf]  ;;  %v1533_v28 = vrot.slane %v1531_v15, 5  ;;  %v1556_v56 = vor.u32 %v1555_v44, %v1552_v41 }
  0x59   : > { %1474 = vmatprep.mubr.bf16.mxu1 %v2049_v8  ;;  %2350 = vmatpush3.bf16.msra.mxu1 %v2495_v1  ;;  %v1009_v1 = vrot.slane %v1008_v57, 4  ;;  %v1023_v8 = vrot.slane %v1022_v62, 4  ;;  %v1536_v24 = vshrl.u32 %v2070_v6, 16  ;;  %v1539_v25 = vshll.u32 %v2070_v6, 16  ;;  %v970_v57 = vld [vmem:[%s2666_s9 + $0xd8] sm:$0x1] }
  0x5a   : > { %2351 = vmatprep.subr.bf16.mxu1 %v2497_v7  ;;  %948 = vmatprep.mubr.bf16.mxu0 %v1989_v32  ;;  %v2071_v32 = vld [vmem:[%s2666_s9 + $0x70] sm:$0x1]  ;;  %v1524_v13 = vrot.slane %v1522_v5, 4  ;;  %v1557_v63 = vrot.slane %v1556_v56, 4  ;;  %v1061_v5 = vshll.u32 %v969_v53, 16  ;;  %v1067_v6 = vshll.u32 %v970_v57, 16 }
  0x5b   : > { %2327 = vmatprep.subr.bf16.mxu0 %v2496_v35  ;;  %v1014_v12 = vsel %vm2694_vm2, %v1009_v1, %v1013_v52  ;;  %v1028_v17 = vsel %vm2694_vm2, %v1023_v8, %v1027_v58  ;;  %v1545_v29 = vshll.u32 %v2071_v32, 16  ;;  %v1538_v34 = vrot.slane %v1536_v24, 4  ;;  %v971_v58 = vld [vmem:[%s2666_s9 + $0xe8] sm:$0xf]  ;;  %v972_v1 = vld [vmem:[%s2666_s9 + $0xf8] sm:$0x1] }
  0x5c   : > { %2328 = vmatpush3.bf16.msra.mxu0 %v2496_v35  ;;  %v2023_v26 = vcombine.low %v1014_v12, %v1028_v17  ;;  %v1541_v35 = vrot.slane %v1539_v25, 5  ;;  %v1528_v37 = vor.u32 %v1527_v27, %v1524_v13  ;;  %v2075_v12 = vld [vmem:[%s2666_s9 + $0xb0] sm:$0x1]  ;;  %v1063_v15 = vrot.slane %v1061_v5, 5  ;;  %v2076_v17 = vld [vmem:[%s2666_s9 + $0xc0] sm:$0xf] }
  0x5d   : > { %2352 = vmatpush3.bf16.msra.mxu1 %v2497_v7  ;;  %v2022_v7 = vcombine.low %v986_v61, %v1000_v0  ;;  %2329 = vmatprep.subr.bf16.mxu0 %v2498_v55  ;;  %v1547_v38 = vrot.slane %v1545_v29, 5  ;;  %v1041_v61 = vrot.slane %v1039_v51, 5  ;;  %v1053_v0 = vshll.u32 %v968_v46, 16  ;;  %v2081_v53 = vld [vmem:[%s2666_s9 + $0x110] sm:$0x1] }
  0x5e   : > { %2353 = vmatprep.subr.bf16.mxu1 %v2499_v39  ;;  %v1542_v40 = vor.u32 %v1541_v35, %v1538_v34  ;;  %v1529_v43 = vrot.slane %v1528_v37, 4  ;;  %v1069_v16 = vrot.slane %v1067_v6, 5  ;;  %v1075_v25 = vshll.u32 %v971_v58, 16 }
  0x5f   : > { %949 = vmatmul.mubr.bf16.gmra.mrb[20].mxu0 %v1988_v22  ;;  %v967_v22 = vld [vmem:[%s2666_s9 + $0xa8] sm:$0xf]  ;;  %v1055_v32 = vrot.slane %v1053_v0, 5  ;;  %v1081_v27 = vshll.u32 %v972_v1, 16  ;;  %v1573_v35 = vshll.u32 %v2075_v12, 16  ;;  %v1578_v36 = vshrl.u32 %v2076_v17, 16 }
  0x60   : > { %1475 = vmatmul.mubr.bf16.gmra.mrb[28].mxu1 %v2048_v23  ;;  %v2073_v23 = vld [vmem:[%s2666_s9 + $0x90] sm:$0x1]  ;;  %2330 = vmatpush3.bf16.msra.mxu0 %v2498_v55  ;;  %v1543_v48 = vrot.slane %v1542_v40, 4  ;;  %v1044_v52 = vshrl.u32 %v967_v22, 16  ;;  %v1534_v54 = vsel %vm2694_vm2, %v1529_v43, %v1533_v28  ;;  %v1035_v55 = vrot.slane %v1033_v47, 5 }
  0x61   : > { %2354 = vmatpush3.bf16.msra.mxu1 %v2499_v39  ;;  %2333 = vmatprep.mubr.bf16.mxu0 %v2022_v7  ;;  %v1559_v4 = vshll.u32 %v2073_v23, 16  ;;  %v1520_v39 = vsel %vm2694_vm2, %v1515_v33, %v1519_v11  ;;  %v1047_v18 = vshll.u32 %v967_v22, 16  ;;  %v1072_v7 = vshrl.u32 %v971_v58, 16  ;;  %v2077_v28 = vld [vmem:[%s2666_s9 + $0xd0] sm:$0x1] }
  0x62   : > { %2355 = vmatprep.subr.bf16.mxu1 %v2501_v60  ;;  %2331 = vmatprep.subr.bf16.mxu0 %v2500_v9  ;;  %v2082_v59 = vcombine.low %v1520_v39, %v1534_v54  ;;  %v1046_v62 = vrot.slane %v1044_v52, 4  ;;  %v1036_v20 = vor.u32 %v1035_v55, %v1032_v49  ;;  %v1077_v34 = vrot.slane %v1075_v25, 5 }
  0x63   : > { %v1561_v45 = vrot.slane %v1559_v4, 5  ;;  %v1049_v31 = vrot.slane %v1047_v18, 5  ;;  %v1074_v24 = vrot.slane %v1072_v7, 4  ;;  %v2079_v4 = vld [vmem:[%s2666_s9 + $0xf0] sm:$0x1]  ;;  %v1083_v39 = vrot.slane %v1081_v27, 5 }
  0x64   : > { %2332 = vmatpush3.bf16.msra.mxu0 %v2500_v9  ;;  %2357 = vmatprep.mubr.bf16.mxu1 %v2082_v59  ;;  %v1037_v10 = vrot.slane %v1036_v20, 4  ;;  %v2074_v9 = vld [vmem:[%s2666_s9 + $0xa0] sm:$0xf]  ;;  %v1575_v41 = vrot.slane %v1573_v35, 5  ;;  %v1580_v43 = vrot.slane %v1578_v36, 4  ;;  %v1581_v44 = vshll.u32 %v2076_v17, 16 }
  0x65   : > { %2356 = vmatpush3.bf16.msra.mxu1 %v2501_v60  ;;  %v1548_v60 = vsel %vm2694_vm2, %v1543_v48, %v1547_v38  ;;  %v1562_v8 = vsel %vm2694_vm2, %v1557_v63, %v1561_v45  ;;  %v1050_v11 = vor.u32 %v1049_v31, %v1046_v62  ;;  %v1564_v29 = vshrl.u32 %v2074_v9, 16 }
  0x66   : > { %v2083_v13 = vcombine.low %v1548_v60, %v1562_v8  ;;  %v1042_v21 = vsel %vm2694_vm2, %v1037_v10, %v1041_v61  ;;  %v1567_v30 = vshll.u32 %v2074_v9, 16  ;;  %v1078_v22 = vor.u32 %v1077_v34, %v1074_v24 }
  0x67   : > { %2334 = vmatmul.mubr.bf16.vlgmr.msra.gmra.mrb[0].mxu0 %v2023_v26  ;;  %v1051_v23 = vrot.slane %v1050_v11, 4  ;;  %v1064_v26 = vor.u32 %v1063_v15, %v1060_v14  ;;  %v1566_v2 = vrot.slane %v1564_v29, 4  ;;  %v1587_v45 = vshll.u32 %v2077_v28, 16 }
  0x68   : > { %2358 = vmatmul.mubr.bf16.vlgmr.msra.gmra.mrb[32].mxu1 %v2083_v13  ;;  %v1569_v40 = vrot.slane %v1567_v30, 5  ;;  %v1592_v46 = vshrl.u32 %v2078_v19, 16  ;;  %v1079_v48 = vrot.slane %v1078_v22, 4  ;;  %v1595_v51 = vshll.u32 %v2078_v19, 16 }
  0x69   : > { %v1056_v33 = vsel %vm2694_vm2, %v1051_v23, %v1055_v32  ;;  %v1065_v38 = vrot.slane %v1064_v26, 4  ;;  %v1583_v52 = vrot.slane %v1581_v44, 5  ;;  %v1601_v56 = vshll.u32 %v2079_v4, 16 }
  0x6a   : > { %v2024_v37 = vcombine.low %v1042_v21, %v1056_v33  ;;  %v1570_v49 = vor.u32 %v1569_v40, %v1566_v2  ;;  %v1594_v54 = vrot.slane %v1592_v46, 4  ;;  %v1606_v55 = vshrl.u32 %v2080_v42, 16 }
  0x6b   : > { %v1070_v47 = vsel %vm2694_vm2, %v1065_v38, %v1069_v16  ;;  %v1084_v18 = vsel %vm2694_vm2, %v1079_v48, %v1083_v39  ;;  %v1589_v58 = vrot.slane %v1587_v45, 5  ;;  %v1597_v59 = vrot.slane %v1595_v51, 5 }
  0x6c   : > { %2337 = vmatprep.mubr.bf16.mxu0 %v2024_v37  ;;  %v1571_v57 = vrot.slane %v1570_v49, 4  ;;  %v2025_v60 = vcombine.low %v1070_v47, %v1084_v18  ;;  %v1584_v61 = vor.u32 %v1583_v52, %v1580_v43  ;;  %v1608_v62 = vrot.slane %v1606_v55, 4 }
  0x6d   : > { %v1609_v63 = vshll.u32 %v2080_v42, 16  ;;  %v1598_v20 = vor.u32 %v1597_v59, %v1594_v54  ;;  %v1615_v31 = vshll.u32 %v2081_v53, 16  ;;  %v1603_v3 = vrot.slane %v1601_v56, 5 }
  0x6e   : > { %v1576_v0 = vsel %vm2694_vm2, %v1571_v57, %v1575_v41  ;;  %v1585_v1 = vrot.slane %v1584_v61, 4 }
  0x6f   : > { %2338 = vmatmul.mubr.bf16.gmra.mrb[4].mxu0 %v2025_v60  ;;  %v1611_v5 = vrot.slane %v1609_v63, 5  ;;  %v1599_v6 = vrot.slane %v1598_v20, 4  ;;  %v1617_v10 = vrot.slane %v1615_v31, 5 }
  0x70   : > { %v1590_v7 = vsel %vm2694_vm2, %v1585_v1, %v1589_v58 }
  0x71   : > { %v1612_v8 = vor.u32 %v1611_v5, %v1608_v62  ;;  %v2084_v11 = vcombine.low %v1576_v0, %v1590_v7  ;;  %v1604_v32 = vsel %vm2694_vm2, %v1599_v6, %v1603_v3 }
  0x73   : > { %v1613_v9 = vrot.slane %v1612_v8, 4  ;;  %2361 = vmatprep.mubr.bf16.mxu1 %v2084_v11 }
  0x75   : > { %v1618_v12 = vsel %vm2694_vm2, %v1613_v9, %v1617_v10 }
  0x76   : > { %v2085_v13 = vcombine.low %v1604_v32, %v1618_v12 }
  0x78   : > { %2362 = vmatmul.mubr.bf16.gmra.mrb[36].mxu1 %v2085_v13 }
  0xfb   : > { %v2165_v14 = vpop.f32.mrb[0].mxu1 }
  0xfc   : > { %v2166_v15 = vpop.f32.mrb[1].mxu1 }
  0xfd   : > { %v2167_v16 = vadd.f32 %v2166_v15, %v2165_v14  ;;  %v2168_v17 = vpop.f32.mrb[2].mxu1 }
  0xfe   : > { %v2169_v21 = vpop.f32.mrb[3].mxu1 }
  0xff   : > { %v2170_v23 = vadd.f32 %v2169_v21, %v2168_v17 }
 0x103   : > { %v2171_v24 = vpop.f32.mrb[4].mxu1 }
 0x104   : > { %v2172_v25 = vpop.f32.mrb[5].mxu1 }
 0x105   : > { %v2173_v26 = vadd.f32 %v2172_v25, %v2171_v24  ;;  %v2174_v27 = vpop.f32.mrb[6].mxu1 }
 0x106   : > { %v2175_v28 = vpop.f32.mrb[7].mxu1 }
 0x107   : > { %v2176_v29 = vadd.f32 %v2175_v28, %v2174_v27 }
 0x10b   : > { %v2177_v30 = vpop.f32.mrb[8].mxu1 }
 0x10c   : > { %v2178_v33 = vpop.f32.mrb[9].mxu1 }
 0x10d   : > { %v2179_v34 = vadd.f32 %v2178_v33, %v2177_v30  ;;  %v2180_v35 = vpop.f32.mrb[10].mxu1 }
 0x10e   : > { %v2181_v50 = vpop.f32.mrb[11].mxu1 }
 0x10f   : > { %v2182_v36 = vadd.f32 %v2181_v50, %v2180_v35 }
 0x113   : > { %v2183_v19 = vpop.f32.mrb[12].mxu1 }
 0x114   : > { %v2184_v37 = vpop.f32.mrb[13].mxu1 }
 0x115   : > { %v2185_v38 = vadd.f32 %v2184_v37, %v2183_v19  ;;  %v2186_v2 = vpop.f32.mrb[14].mxu1 }
 0x116   : > { %v2187_v4 = vpop.f32.mrb[15].mxu1 }
 0x117   : > { %v2188_v22 = vadd.f32 %v2187_v4, %v2186_v2 }
 0x11a   : > { %v2205_v44 = vpop.f32.mrb[8].mxu0 }
 0x11b   : > { %v2257_v39 = vpop.f32.mrb[16].mxu1  ;;  %v2206_v46 = vpop.f32.mrb[9].mxu0 }
 0x11c   : > { %v2258_v40 = vpop.f32.mrb[17].mxu1  ;;  %v2207_v47 = vadd.f32 %v2206_v46, %v2205_v44  ;;  %v2208_v48 = vpop.f32.mrb[10].mxu0  ;;  %v3020_v46 = vld [vmem:[%s3048_s2] ss:$0 sm:$0xff] }
 0x11d   : > { %v3008_v41 = vadd.f32 %v2258_v40, %v2257_v39  ;;  %v2260_v42 = vpop.f32.mrb[18].mxu1  ;;  %v2209_v49 = vpop.f32.mrb[11].mxu0 }
 0x11e   : > { %v2261_v43 = vpop.f32.mrb[19].mxu1  ;;  %v2210_v51 = vadd.f32 %v2209_v49, %v2208_v48  ;;  %v2369_v53 = vadd.f32 %v2207_v47, %v2167_v16 }
 0x11f   : > { %v3010_v45 = vadd.f32 %v2261_v43, %v2260_v42 }
 0x120   : > { %v2377_v18 = vadd.f32 %v2210_v51, %v2170_v23 }
 0x122   : > { %v2211_v58 = vpop.f32.mrb[12].mxu0 }
 0x123   : > { %v2263_v52 = vpop.f32.mrb[20].mxu1  ;;  %v2212_v60 = vpop.f32.mrb[13].mxu0 }
 0x124   : > { %v2264_v54 = vpop.f32.mrb[21].mxu1  ;;  %v2213_v61 = vadd.f32 %v2212_v60, %v2211_v58  ;;  %v2214_v62 = vpop.f32.mrb[14].mxu0 }
 0x125   : > { %v2265_v56 = vadd.f32 %v2264_v54, %v2263_v52  ;;  %v2266_v55 = vpop.f32.mrb[22].mxu1  ;;  %v2215_v63 = vpop.f32.mrb[15].mxu0 }
 0x126   : > { %v2267_v57 = vpop.f32.mrb[23].mxu1  ;;  %v2216_v20 = vadd.f32 %v2215_v63, %v2214_v62  ;;  %v2365_v0 = vadd.f32 %v2213_v61, %v2173_v26 }
 0x127   : > { %v2268_v59 = vadd.f32 %v2267_v57, %v2266_v55 }
 0x128   : > { %v2373_v6 = vadd.f32 %v2216_v20, %v2176_v29 }
 0x12a   : > { %v2217_v8 = vpop.f32.mrb[16].mxu0 }
 0x12b   : > { %v2269_v31 = vpop.f32.mrb[24].mxu1  ;;  %v2218_v11 = vpop.f32.mrb[17].mxu0 }
 0x12c   : > { %v2270_v1 = vpop.f32.mrb[25].mxu1  ;;  %v2219_v32 = vadd.f32 %v2218_v11, %v2217_v8  ;;  %v2220_v9 = vpop.f32.mrb[18].mxu0 }
 0x12d   : > { %v3012_v3 = vadd.f32 %v2270_v1, %v2269_v31  ;;  %v2272_v5 = vpop.f32.mrb[26].mxu1  ;;  %v2221_v12 = vpop.f32.mrb[19].mxu0 }
 0x12e   : > { %v2273_v7 = vpop.f32.mrb[27].mxu1  ;;  %v2222_v13 = vadd.f32 %v2221_v12, %v2220_v9  ;;  %v2385_v15 = vadd.f32 %v2219_v32, %v2179_v34 }
 0x12f   : > { %v3014_v10 = vadd.f32 %v2273_v7, %v2272_v5 }
 0x130   : > { %v2393_v23 = vadd.f32 %v2222_v13, %v2182_v36 }
 0x132   : > { %v2223_v25 = vpop.f32.mrb[20].mxu0 }
 0x133   : > { %v2275_v14 = vpop.f32.mrb[28].mxu1  ;;  %v2224_v27 = vpop.f32.mrb[21].mxu0 }
 0x134   : > { %v2276_v16 = vpop.f32.mrb[29].mxu1  ;;  %v2225_v28 = vadd.f32 %v2224_v27, %v2223_v25  ;;  %v2226_v29 = vpop.f32.mrb[22].mxu0 }
 0x135   : > { %v2277_v17 = vadd.f32 %v2276_v16, %v2275_v14  ;;  %v2278_v21 = vpop.f32.mrb[30].mxu1  ;;  %v2227_v30 = vpop.f32.mrb[23].mxu0 }
 0x136   : > { %v2279_v24 = vpop.f32.mrb[31].mxu1  ;;  %v2228_v33 = vadd.f32 %v2227_v30, %v2226_v29  ;;  %v2381_v35 = vadd.f32 %v2225_v28, %v2185_v38 }
 0x137   : > { %v2280_v26 = vadd.f32 %v2279_v24, %v2278_v21 }
 0x138   : > { %v2389_v50 = vadd.f32 %v2228_v33, %v2188_v22 }
 0x13a   : > { %v2335_v19 = vpop.f32.mrb[0].mxu0 }
 0x13b   : > { %v2366_v37 = vadd.f32 %v2365_v0, %v2335_v19  ;;  %v1199_v2 = vpop.f32.mrb[1].mxu0  ;;  %v2359_v44 = vpop.f32.mrb[32].mxu1 }
 0x13c   : > { %v2370_v4 = vadd.f32 %v2369_v53, %v1199_v2  ;;  %v2336_v39 = vpop.f32.mrb[2].mxu0  ;;  %v1733_v22 = vpop.f32.mrb[33].mxu1 }
 0x13d   : > { %v2374_v34 = vadd.f32 %v2373_v6, %v2336_v39  ;;  %v2367_v40 = vadd.f32 %v2366_v37, %v2265_v56  ;;  %v1202_v42 = vpop.f32.mrb[3].mxu0  ;;  %v2360_v51 = vpop.f32.mrb[34].mxu1 }
 0x13e   : > { %v2378_v43 = vadd.f32 %v2377_v18, %v1202_v42  ;;  %v2371_v36 = vadd.f32 %v2370_v4, %v3008_v41  ;;  %v1736_v54 = vpop.f32.mrb[35].mxu1 }
 0x13f   : > { %v2375_v47 = vadd.f32 %v2374_v34, %v2268_v59  ;;  %v2368_v38 = vadd.f32 %v2367_v40, %v2359_v44 }
 0x140   : > { %v2379_v48 = vadd.f32 %v2378_v43, %v3010_v45  ;;  %v2372_v49 = vadd.f32 %v2371_v36, %v1733_v22 }
 0x141   : > { %v1781_v52 = vadd.f32 %v2368_v38, %v3020_v46  ;;  %v2376_v53 = vadd.f32 %v2375_v47, %v2360_v51 }
 0x142   : > { %v1779_v56 = vadd.f32 %v2372_v49, %v3020_v46  ;;  %v2380_v41 = vadd.f32 %v2379_v48, %v1736_v54  ;;  %v2339_v20 = vpop.f32.mrb[4].mxu0 }
 0x143   : > { %v1789_v55 = vsub.f32 0.0, %v1781_v52  ;;  %v1782_v18 = vadd.f32 %v2376_v53, %v3020_v46  ;;  %v2382_v31 = vadd.f32 %v2381_v35, %v2339_v20  ;;  %v1215_v0 = vpop.f32.mrb[5].mxu0 }
 0x144   : > { %v1787_v57 = vsub.f32 0.0, %v1779_v56  ;;  %v1780_v58 = vadd.f32 %v2380_v41, %v3020_v46  ;;  %v2386_v1 = vadd.f32 %v2385_v15, %v1215_v0  ;;  %v2340_v5 = vpop.f32.mrb[6].mxu0 }
 0x145   : > { %v1799_v59 = vmul.f32 1.442695, %v1789_v55  ;;  %v1790_v60 = vsub.f32 0.0, %v1782_v18  ;;  %v2390_v6 = vadd.f32 %v2389_v50, %v2340_v5  ;;  %v2383_v7 = vadd.f32 %v2382_v31, %v2277_v17  ;;  %v1218_v8 = vpop.f32.mrb[7].mxu0 }
 0x146   : > { %v1795_v61 = vmul.f32 1.442695, %v1787_v57  ;;  %v1788_v62 = vsub.f32 0.0, %v1780_v58  ;;  %v2394_v11 = vadd.f32 %v2393_v23, %v1218_v8  ;;  %v2387_v32 = vadd.f32 %v2386_v1, %v3012_v3 }
 0x147   : > { %2502 = vpow2.f32 %v1799_v59  ;;  %v1801_v45 = vmul.f32 1.442695, %v1790_v60  ;;  %v2391_v9 = vadd.f32 %v2390_v6, %v2280_v26 }
 0x148   : > { %2504 = vpow2.f32 %v1795_v61  ;;  %v1797_v63 = vmul.f32 1.442695, %v1788_v62  ;;  %v2395_v12 = vadd.f32 %v2394_v11, %v3014_v10 }
 0x149   : > { %2506 = vpow2.f32 %v1801_v45 }
 0x14a   : > { %2508 = vpow2.f32 %v1797_v63 }
 0x14b   : > { %v2363_v14 = vpop.f32.mrb[36].mxu1 }
 0x14c   : > { %v2384_v24 = vadd.f32 %v2383_v7, %v2363_v14  ;;  %v1749_v25 = vpop.f32.mrb[37].mxu1 }
 0x14d   : > { %v2388_v29 = vadd.f32 %v2387_v32, %v1749_v25  ;;  %v2364_v15 = vpop.f32.mrb[38].mxu1 }
 0x14e   : > { %v1785_v23 = vadd.f32 %v2384_v24, %v3020_v46  ;;  %v2392_v33 = vadd.f32 %v2391_v9, %v2364_v15  ;;  %v1752_v3 = vpop.f32.mrb[39].mxu1 }
 0x14f   : > { %v1783_v10 = vadd.f32 %v2388_v29, %v3020_v46  ;;  %v2396_v35 = vadd.f32 %v2395_v12, %v1752_v3 }
 0x150   : > { %v1793_v50 = vsub.f32 0.0, %v1785_v23  ;;  %v1786_v19 = vadd.f32 %v2392_v33, %v3020_v46 }
 0x151   : > { %v2503_v13 = vpop.eup %2502  ;;  %v1791_v37 = vsub.f32 0.0, %v1783_v10  ;;  %v1784_v2 = vadd.f32 %v2396_v35, %v3020_v46 }
 0x152   : > { %v2505_v16 = vpop.eup %2504  ;;  %v1813_v21 = vadd.f32 1.0, %v2503_v13  ;;  %v1807_v4 = vmul.f32 1.442695, %v1793_v50  ;;  %v1794_v39 = vsub.f32 0.0, %v1786_v19 }
 0x153   : > { %v2507_v27 = vpop.eup %2506  ;;  %v1811_v28 = vadd.f32 1.0, %v2505_v16  ;;  %v1803_v34 = vmul.f32 1.442695, %v1791_v37  ;;  %v1792_v40 = vsub.f32 0.0, %v1784_v2 }
 0x154   : > { %v2509_v30 = vpop.eup %2508  ;;  %2510 = vrcp.f32 %v1813_v21  ;;  %v1814_v17 = vadd.f32 1.0, %v2507_v27  ;;  %v1809_v42 = vmul.f32 1.442695, %v1794_v39 }
 0x155   : > { %2512 = vrcp.f32 %v1811_v28  ;;  %v1812_v26 = vadd.f32 1.0, %v2509_v30  ;;  %v1805_v43 = vmul.f32 1.442695, %v1792_v40 }
 0x156   : > { %2514 = vrcp.f32 %v1814_v17 }
 0x157   : > { %2516 = vrcp.f32 %v1812_v26 }
 0x158   : > { %2518 = vpow2.f32 %v1807_v4 }
 0x159   : > { %2520 = vpow2.f32 %v1803_v34 }
 0x15a   : > { %2522 = vpow2.f32 %v1809_v42 }
 0x15b   : > { %2524 = vpow2.f32 %v1805_v43 }
 0x15e   : > { %v2511_v36 = vpop.eup %2510 }
 0x15f   : > { %v2513_v44 = vpop.eup %2512 }
 0x160   : > { %v2515_v47 = vpop.eup %2514 }
 0x161   : > { %v2517_v38 = vpop.eup %2516  ;;  %v2122_v46 = vpack.c.bf16 %v2515_v47, %v2511_v36 }
 0x162   : > { %v2117_v22 = vpack.c.bf16 %v2517_v38, %v2513_v44  ;;  %v2519_v48 = vpop.eup %2518 }
 0x163   : > { %2134 = vst [vmem:[%s192_s7 + $0x8] sm:$0xff] %v2122_v46   ;;  %v2521_v49 = vpop.eup %2520  ;;  %v1817_v51 = vadd.f32 1.0, %v2519_v48 }
 0x164   : > { %2118 = vst [vmem:[%s192_s7] sm:$0xff] %v2117_v22   ;;  %v2523_v52 = vpop.eup %2522  ;;  %v1815_v53 = vadd.f32 1.0, %v2521_v49 }
 0x165   : > { %v2525_v54 = vpop.eup %2524  ;;  %2526 = vrcp.f32 %v1817_v51  ;;  %v1818_v56 = vadd.f32 1.0, %v2523_v52 }
 0x166   : > { %2528 = vrcp.f32 %v1815_v53  ;;  %v1816_v41 = vadd.f32 1.0, %v2525_v54 }
 0x167   : > { %2530 = vrcp.f32 %v1818_v56 }
 0x168   : > { %2532 = vrcp.f32 %v1816_v41 }
 0x16f   : > { %v2527_v55 = vpop.eup %2526 }
 0x170   : > { %v2529_v18 = vpop.eup %2528 }
 0x171   : > { %v2531_v57 = vpop.eup %2530 }
 0x172   : > { %v2533_v58 = vpop.eup %2532  ;;  %v2132_v59 = vpack.c.bf16 %v2531_v57, %v2527_v55 }
 0x173   : > { %v2127_v60 = vpack.c.bf16 %v2533_v58, %v2529_v18 }
 0x174   : > { %2136 = vst [vmem:[%s192_s7 + $0x18] sm:$0xff] %v2132_v59  }
 0x175   : > { %2135 = vst [vmem:[%s192_s7 + $0x10] sm:$0xff] %v2127_v60  }
 0x176 PF: > { %s13_s14 = sadd.s32 1, %s2556_s14   ;;  %s3052_s12 = smov %s2552_s13 }
 0x177   : > { %p10_p5 = scmp.ge.s32.totalorder %s13_s14, 4   ;;  %s3053_s13 = smov %s3055_s15 }
 0x179   :  { %12 = sbr.rel (!%p10_p5) target bundleno = 2 (0x2), region = 64 }

// kernel: global_level_forward.8
= control target key start
LH: loop header
LB: loop body
LE: loop exit
PB: predicated region body
PF: predicated region fallthrough
CT: control target
= control target key end

     0   :  { %s3188_s12 = smov 0   ;;  %s3190_s13 = smov 0   ;;  %s3776_s0 = inlined_call_operand.vmem [shape: bf16[2,10,10,128], index: 0, kind: input, shape index: {}]   ;;  %s3777_s1 = inlined_call_operand.vmem [shape: bf16[1152,128], index: 1, kind: input, shape index: {}]   ;;  %s3778_s2 = inlined_call_operand.vmem [shape: f32[1,128], index: 2, kind: input, shape index: {}]   ;;  %s3779_s3 = inlined_call_operand.vmem [shape: bf16[2,64,128], index: 3, kind: output, shape index: {}]  }
   0x1   :  { %s3192_s14 = smov 0  }
   0x2 LB: > { %s25_s15 = sadd.s32 1, %s3162_s13  ;;  %p2356_p0 = scmp.ge.s32.totalorder %s3166_s14, 1  ;;  %s3166_s14 = sphi %s3192_s14, %s13_s14   ;;  %s3162_s13 = sphi %s3190_s13, %s3785_s13   ;;  %s3158_s12 = sphi %s3188_s12, %s3784_s12  }
   0x3   : > { %p27_p1 = scmp.ge.s32.totalorder %s25_s15, 2  ;;  %p151_p2 = scmp.lt.s32.totalorder %s3166_s14, 3 }
   0x5   : > { %s3787_s15 = smov (%p27_p1, %s25_s15), 0  ;;  %p152_p3 = pnand %p2356_p0, %p151_p2 }
   0x6   : > { %v3028_v0 = vld [vmem:[%s3777_s1 + $0x40] sm:$0xff] (!%p152_p3)   ;;  %p179_p4 = scmp.lt.s32.totalorder (!%p152_p3), %s3158_s12, 1  ;;  %v3030_v2 = vld [vmem:[%s3777_s1 + $0x48] sm:$0xff] (!%p152_p3)   ;;  %v3032_v4 = vld [vmem:[%s3777_s1 + $0x50] sm:$0xff] (!%p152_p3)   ;;  %vm231_vm0 = vsmask.f32 (!%p152_p3), 3328 }
   0x7   : > { %155 = sbr.rel (%p152_p3) target bundleno = 424 (0x1a8), region = 32  ;;  %v3029_v1 = vld [vmem:[%s3777_s1 + $0x100] sm:$0xff] (!%p152_p3)   ;;  %2707 = vmatprep.subr.bf16.mxu1 (!%p152_p3), %v3028_v0  ;;  %v3031_v3 = vld [vmem:[%s3777_s1 + $0x108] sm:$0xff] (!%p152_p3)   ;;  %v3033_v5 = vld [vmem:[%s3777_s1 + $0x110] sm:$0xff] (!%p152_p3)   ;;  %vm232_vm1 = vsmask.f32 (!%p152_p3), 7440 }
   0x8   : > { %2803 = vmatprep.subr.bf16.mxu0 (!%p152_p3), %v3029_v1  ;;  %2708 = vmatpush3.bf16.msra.mxu1 (!%p152_p3), %v3028_v0  ;;  %v3034_v6 = vld [vmem:[%s3777_s1 + $0x58] sm:$0xff] (!%p152_p3)   ;;  %v3036_v8 = vld [vmem:[%s3777_s1 + $0x60] sm:$0xff] (!%p152_p3)   ;;  %v3038_v10 = vld [vmem:[%s3777_s1 + $0x68] sm:$0xff] (!%p152_p3)   ;;  %vm652_vm3 = vcmask (!%p152_p3), 1042432   ;;  %vm653_vm4 = vcmask (!%p152_p3), 1046532  }
   0x9   : > { %2804 = vmatpush3.bf16.msra.mxu0 (!%p152_p3), %v3029_v1  ;;  %2709 = vmatprep.subr.bf16.mxu1 (!%p152_p3), %v3030_v2  ;;  %v3035_v7 = vld [vmem:[%s3777_s1 + $0x118] sm:$0xff] (!%p152_p3)   ;;  %v3037_v9 = vld [vmem:[%s3777_s1 + $0x120] sm:$0xff] (!%p152_p3)   ;;  %v3039_v14 = vld [vmem:[%s3777_s1 + $0x128] sm:$0xff] (!%p152_p3)  }
   0xa   : > { %2805 = vmatprep.subr.bf16.mxu0 (!%p152_p3), %v3031_v3  ;;  %v3040_v22 = vld [vmem:[%s3777_s1 + $0x70] sm:$0xff] (!%p152_p3)   ;;  %v3042_v37 = vld [vmem:[%s3777_s1 + $0x78] sm:$0xff] (!%p152_p3)   ;;  %vm3287_vm2 = vmor (!%p152_p3), %vm231_vm0, %vm232_vm1 }
   0xb   : > { %v3041_v23 = vld [vmem:[%s3777_s1 + $0x130] sm:$0xff] (!%p152_p3)   ;;  %v3043_v47 = vld [vmem:[%s3777_s1 + $0x138] sm:$0xff] (!%p152_p3)   ;;  %v3044_v63 = vld [vmem:[%s3777_s1] sm:$0xff] (!%p152_p3)  }
   0xc   : > { %2710 = vmatpush3.bf16.msra.mxu1 (!%p152_p3), %v3030_v2  ;;  %v3319_v1 = vld [vmem:[%s3777_s1 + $0x140] sm:$0xff] (!%p152_p3)   ;;  %vm3461_vm5 = vmor (!%p152_p3), %vm652_vm3, %vm653_vm4 }
   0xd   : > { %2806 = vmatpush3.bf16.msra.mxu0 (!%p152_p3), %v3031_v3  ;;  %2711 = vmatprep.subr.bf16.mxu1 (!%p152_p3), %v3032_v4  ;;  %v3108_v38 = vld [vmem:[%s3777_s1 + $0x220] sm:$0xff] (!%p152_p3)  }
   0xe   : > { %s3789_s12 = smov (!%p179_p4, %s3158_s12), 1  ;;  %2807 = vmatprep.subr.bf16.mxu0 %v3033_v5 }
   0xf   : > { %s3003_s5 = smul.u32 80, %s3789_s12 }
  0x10   : > { %2712 = vmatpush3.bf16.msra.mxu1 %v3032_v4 }
  0x11   : > { %2808 = vmatpush3.bf16.msra.mxu0 %v3033_v5  ;;  %2713 = vmatprep.subr.bf16.mxu1 %v3034_v6  ;;  %s3242_s16 = scalar_lea.vmem %s3776_s0, %s3003_s5  ;;  %s2567_s5 = sshll.u32 %s3789_s12, 5 }
  0x12   : > { %2809 = vmatprep.subr.bf16.mxu0 %v3035_v7  ;;  %v3248_v11 = vld [vmem:[%s3242_s16] sm:$0xf]  ;;  %v3251_v12 = vld [vmem:[%s3242_s16 + $0x8] sm:$0xf]  ;;  %v3254_v13 = vld [vmem:[%s3242_s16 + $0x4] sm:$0x1]  ;;  %s192_s8 = scalar_lea.vmem %s3779_s3, %s2567_s5 }
  0x13   : > { %v3260_v15 = vld [vmem:[%s3242_s16 + $0xc] sm:$0x1]  ;;  %v235_v16 = vshrl.u32 %v3248_v11, 16  ;;  %v238_v17 = vshll.u32 %v3248_v11, 16  ;;  %v244_v18 = vshll.u32 %v3254_v13, 16  ;;  %v249_v19 = vshrl.u32 %v3251_v12, 16 }
  0x14   : > { %2714 = vmatpush3.bf16.msra.mxu1 %v3034_v6  ;;  %v252_v20 = vshll.u32 %v3251_v12, 16  ;;  %v258_v21 = vshll.u32 %v3260_v15, 16  ;;  %v2424_v30 = vld [vmem:[%s3242_s16 + $0x8] sm:$0xf]  ;;  %v3276_v31 = vld [vmem:[%s3242_s16 + $0xc] sm:$0x1] }
  0x15   : > { %2810 = vmatpush3.bf16.msra.mxu0 %v3035_v7  ;;  %2715 = vmatprep.subr.bf16.mxu1 %v3036_v8  ;;  %v237_v24 = vrot.slane %v235_v16, 4  ;;  %v240_v25 = vrot.slane %v238_v17, 5  ;;  %v246_v26 = vrot.slane %v244_v18, 5  ;;  %v251_v27 = vrot.slane %v249_v19, 4  ;;  %v2426_v33 = vld [vmem:[%s3242_s16 + $0x10] sm:$0xf] }
  0x16   : > { %2811 = vmatprep.subr.bf16.mxu0 %v3037_v9  ;;  %v254_v28 = vrot.slane %v252_v20, 5  ;;  %v260_v29 = vrot.slane %v258_v21, 5  ;;  %v3280_v34 = vld [vmem:[%s3242_s16 + $0x14] sm:$0x1]  ;;  %v1030_v35 = vshrl.u32 %v2424_v30, 16  ;;  %v1033_v36 = vshll.u32 %v2424_v30, 16 }
  0x17   : > { %v241_v32 = vor.u32 %v240_v25, %v237_v24  ;;  %v1039_v40 = vshll.u32 %v3276_v31, 16  ;;  %v1044_v41 = vshrl.u32 %v2426_v33, 16  ;;  %v1047_v42 = vshll.u32 %v2426_v33, 16  ;;  %v3297_v51 = vld [vmem:[%s3242_s16 + $0x10] sm:$0xf] }
  0x18   : > { %2716 = vmatpush3.bf16.msra.mxu1 %v3036_v8  ;;  %v255_v39 = vor.u32 %v254_v28, %v251_v27  ;;  %v1032_v44 = vrot.slane %v1030_v35, 4  ;;  %v1035_v45 = vrot.slane %v1033_v36, 5  ;;  %v1053_v46 = vshll.u32 %v3280_v34, 16  ;;  %v3302_v55 = vld [vmem:[%s3242_s16 + $0x18] sm:$0xf] }
  0x19   : > { %2812 = vmatpush3.bf16.msra.mxu0 %v3037_v9  ;;  %2717 = vmatprep.subr.bf16.mxu1 %v3038_v10  ;;  %v242_v43 = vrot.slane %v241_v32, 4  ;;  %v1046_v49 = vrot.slane %v1044_v41, 4  ;;  %v1049_v50 = vrot.slane %v1047_v42, 5  ;;  %v1041_v54 = vrot.slane %v1039_v40, 5  ;;  %v3305_v56 = vld [vmem:[%s3242_s16 + $0x14] sm:$0x1] }
  0x1a   : > { %2813 = vmatprep.subr.bf16.mxu0 %v3039_v14  ;;  %v256_v48 = vrot.slane %v255_v39, 4  ;;  %v1036_v53 = vor.u32 %v1035_v45, %v1032_v44  ;;  %v1055_v59 = vrot.slane %v1053_v46, 5  ;;  %v3310_v60 = vld [vmem:[%s3242_s16 + $0x1c] sm:$0x1]  ;;  %v263_v61 = vshrl.u32 %v3297_v51, 16 }
  0x1b   : > { %v247_v52 = vsel %vm3287_vm2, %v242_v43, %v246_v26  ;;  %v1050_v58 = vor.u32 %v1049_v50, %v1046_v49  ;;  %v266_v2 = vshll.u32 %v3297_v51, 16  ;;  %v272_v3 = vshll.u32 %v3305_v56, 16  ;;  %v2428_v8 = vld [vmem:[%s3242_s16 + $0x18] sm:$0xf]  ;;  %v3330_v16 = vld [vmem:[%s3242_s16 + $0x1c] sm:$0x1] }
  0x1c   : > { %2718 = vmatpush3.bf16.msra.mxu1 %v3038_v10  ;;  %v261_v57 = vsel %vm3287_vm2, %v256_v48, %v260_v29  ;;  %v1037_v0 = vrot.slane %v1036_v53, 4  ;;  %v265_v5 = vrot.slane %v263_v61, 4  ;;  %v277_v6 = vshrl.u32 %v3302_v55, 16  ;;  %v2430_v17 = vld [vmem:[%s3242_s16 + $0x20] sm:$0xf]  ;;  %v3046_v43 = vld [vmem:[%s3777_s1 + $0x8] sm:$0xff]  }
  0x1d   : > { %2814 = vmatpush3.bf16.msra.mxu0 %v3039_v14  ;;  %2719 = vmatprep.subr.bf16.mxu1 %v3040_v22  ;;  %v2360_v62 = vcombine.low %v247_v52, %v261_v57  ;;  %v1051_v4 = vrot.slane %v1050_v58, 4  ;;  %v280_v7 = vshll.u32 %v3302_v55, 16  ;;  %v268_v10 = vrot.slane %v266_v2, 5  ;;  %v3336_v21 = vld [vmem:[%s3242_s16 + $0x24] sm:$0x1] }
  0x1e   : > { %2815 = vmatprep.subr.bf16.mxu0 %v3041_v23  ;;  %v1042_v9 = vsel %vm3287_vm2, %v1037_v0, %v1041_v54  ;;  %v286_v14 = vshll.u32 %v3310_v60, 16  ;;  %v279_v19 = vrot.slane %v277_v6, 4  ;;  %v274_v24 = vrot.slane %v272_v3, 5  ;;  %v3047_v54 = vld [vmem:[%s3777_s1 + $0x148] sm:$0xff]   ;;  %v3366_v0 = vld [vmem:[%s3242_s16 + $0x24] sm:$0x1] }
  0x1f   : > { %2723 = vmatprep.mubr.bf16.mxu1 %v2360_v62  ;;  %v1056_v18 = vsel %vm3287_vm2, %v1051_v4, %v1055_v59  ;;  %v282_v20 = vrot.slane %v280_v7, 5  ;;  %v1058_v27 = vshrl.u32 %v2428_v8, 16  ;;  %v1061_v28 = vshll.u32 %v2428_v8, 16  ;;  %v3048_v59 = vld [vmem:[%s3777_s1 + $0x10] sm:$0xff]   ;;  %v3360_v62 = vld [vmem:[%s3242_s16 + $0x20] sm:$0xf] }
  0x20   : > { %2720 = vmatpush3.bf16.msra.mxu1 %v3040_v22  ;;  %v2440_v22 = vcombine.low %v1042_v9, %v1056_v18  ;;  %v288_v25 = vrot.slane %v286_v14, 5  ;;  %v1067_v29 = vshll.u32 %v3330_v16, 16  ;;  %v1072_v32 = vshrl.u32 %v2430_v17, 16  ;;  %v3369_v2 = vld [vmem:[%s3242_s16 + $0x2c] sm:$0x1]  ;;  %v3049_v9 = vld [vmem:[%s3777_s1 + $0x150] sm:$0xff]  }
  0x21   : > { %2816 = vmatpush3.bf16.msra.mxu0 %v3041_v23  ;;  %2721 = vmatprep.subr.bf16.mxu1 %v3042_v37  ;;  %v269_v23 = vor.u32 %v268_v10, %v265_v5  ;;  %v283_v26 = vor.u32 %v282_v20, %v279_v19  ;;  %v1075_v33 = vshll.u32 %v2430_v17, 16  ;;  %v1081_v35 = vshll.u32 %v3336_v21, 16  ;;  %v3050_v10 = vld [vmem:[%s3777_s1 + $0x18] sm:$0xff]  }
  0x22   : > { %2817 = vmatprep.subr.bf16.mxu0 %v3043_v47  ;;  %2819 = vmatprep.mubr.bf16.mxu0 %v2440_v22  ;;  %v1063_v39 = vrot.slane %v1061_v28, 5  ;;  %v1074_v41 = vrot.slane %v1072_v32, 4  ;;  %v1069_v46 = vrot.slane %v1067_v29, 5  ;;  %v1320_v57 = vrot.slane %v3276_v31, 5  ;;  %v3051_v29 = vld [vmem:[%s3777_s1 + $0x158] sm:$0xff]  }
  0x23   : > { %v270_v30 = vrot.slane %v269_v23, 4  ;;  %v284_v36 = vrot.slane %v283_v26, 4  ;;  %v1077_v42 = vrot.slane %v1075_v33, 5  ;;  %v291_v3 = vshrl.u32 %v3360_v62, 16  ;;  %v2432_v23 = vld [vmem:[%s3242_s16 + $0x28] sm:$0xf] }
  0x24   : > { %2722 = vmatpush3.bf16.msra.mxu1 %v3042_v37  ;;  %v1060_v37 = vrot.slane %v1058_v27, 4  ;;  %v294_v4 = vshll.u32 %v3360_v62, 16  ;;  %v300_v5 = vshll.u32 %v3366_v0, 16  ;;  %v314_v8 = vshll.u32 %v3369_v2, 16  ;;  %v3390_v26 = vld [vmem:[%s3242_s16 + $0x34] sm:$0x1] }
  0x25   : > { %2818 = vmatpush3.bf16.msra.mxu0 %v3043_v47  ;;  %2731 = vmatprep.subr.bf16.mxu1 %v3044_v63  ;;  %v275_v40 = vsel %vm3287_vm2, %v270_v30, %v274_v24  ;;  %v289_v44 = vsel %vm3287_vm2, %v284_v36, %v288_v25  ;;  %v1083_v47 = vrot.slane %v1081_v35, 5  ;;  %v1078_v49 = vor.u32 %v1077_v42, %v1074_v41  ;;  %v3386_v24 = vld [vmem:[%s3242_s16 + $0x2c] sm:$0x1]  ;;  %v2434_v25 = vld [vmem:[%s3242_s16 + $0x30] sm:$0xf]  ;;  %v3052_v30 = vld [vmem:[%s3777_s1 + $0x20] sm:$0xff]  }
  0x26   : > { %2827 = vmatprep.subr.bf16.mxu0 %v3319_v1  ;;  %v1064_v45 = vor.u32 %v1063_v39, %v1060_v37  ;;  %v2361_v48 = vcombine.low %v275_v40, %v289_v44  ;;  %v293_v14 = vrot.slane %v291_v3, 4  ;;  %v296_v17 = vrot.slane %v294_v4, 5 }
  0x27   : > { %v1079_v52 = vrot.slane %v1078_v49, 4  ;;  %v302_v18 = vrot.slane %v300_v5, 5  ;;  %v316_v22 = vrot.slane %v314_v8, 5  ;;  %v1086_v27 = vshrl.u32 %v2432_v23, 16  ;;  %v2436_v5 = vld [vmem:[%s3242_s16 + $0x38] sm:$0xf] }
  0x28   : > { %v1065_v50 = vrot.slane %v1064_v45, 4  ;;  %2724 = vmatmul.mubr.bf16.vlgmr.msra.gmra.mrb[0].mxu1 %v2361_v48  ;;  %v1089_v28 = vshll.u32 %v2432_v23, 16  ;;  %v1095_v33 = vshll.u32 %v3386_v24, 16  ;;  %v1100_v35 = vshrl.u32 %v2434_v25, 16 }
  0x29   : > { %2732 = vmatpush3.bf16.msra.mxu1 %v3044_v63  ;;  %v1084_v58 = vsel %vm3287_vm2, %v1079_v52, %v1083_v47  ;;  %v3363_v63 = vld [vmem:[%s3242_s16 + $0x28] sm:$0xf]  ;;  %v1103_v36 = vshll.u32 %v2434_v25, 16  ;;  %v1088_v39 = vrot.slane %v1086_v27, 4  ;;  %v1109_v41 = vshll.u32 %v3390_v26, 16 }
  0x2a   : > { %v1070_v53 = vsel %vm3287_vm2, %v1065_v50, %v1069_v46  ;;  %2733 = vmatprep.subr.bf16.mxu1 %v3046_v43  ;;  %v305_v6 = vshrl.u32 %v3363_v63, 16  ;;  %v308_v7 = vshll.u32 %v3363_v63, 16  ;;  %v1091_v40 = vrot.slane %v1089_v28, 5  ;;  %v3401_v46 = vld [vmem:[%s3242_s16 + $0x30] sm:$0xf] }
  0x2b   : > { %v2441_v61 = vcombine.low %v1070_v53, %v1084_v58  ;;  %v1102_v44 = vrot.slane %v1100_v35, 4  ;;  %v1105_v45 = vrot.slane %v1103_v36, 5  ;;  %v1111_v49 = vrot.slane %v1109_v41, 5  ;;  %v3406_v50 = vld [vmem:[%s3242_s16 + $0x38] sm:$0xf] }
  0x2c   : > { %v307_v19 = vrot.slane %v305_v6, 4  ;;  %v310_v20 = vrot.slane %v308_v7, 5  ;;  %v1092_v48 = vor.u32 %v1091_v40, %v1088_v39  ;;  %v3409_v52 = vld [vmem:[%s3242_s16 + $0x34] sm:$0x1]  ;;  %v319_v53 = vshrl.u32 %v3401_v46, 16  ;;  %v3054_v6 = vld [vmem:[%s3777_s1 + $0x28] sm:$0xff]  }
  0x2d   : > { %2820 = vmatmul.mubr.bf16.vlgmr.msra.gmra.mrb[0].mxu0 %v2441_v61  ;;  %2734 = vmatpush3.bf16.msra.mxu1 %v3046_v43  ;;  %v1097_v43 = vrot.slane %v1095_v33, 5  ;;  %v3418_v61 = vld [vmem:[%s3242_s16 + $0x3c] sm:$0x1]  ;;  %v322_v3 = vshll.u32 %v3401_v46, 16  ;;  %v328_v4 = vshll.u32 %v3409_v52, 16  ;;  %v1114_v28 = vshrl.u32 %v2436_v5, 16 }
  0x2e   : > { %2828 = vmatpush3.bf16.msra.mxu0 %v3319_v1  ;;  %2735 = vmatprep.subr.bf16.mxu1 %v3048_v59  ;;  %v297_v1 = vor.u32 %v296_v17, %v293_v14  ;;  %v311_v32 = vor.u32 %v310_v20, %v307_v19  ;;  %v1093_v8 = vrot.slane %v1092_v48, 4  ;;  %v333_v14 = vshrl.u32 %v3406_v50, 16  ;;  %v3428_v17 = vld [vmem:[%s3242_s16 + $0x3c] sm:$0x1]  ;;  %v3436_v27 = vld [vmem:[%s3242_s16 + $0x44] sm:$0x1] }
  0x2f   : > { %2829 = vmatprep.subr.bf16.mxu0 %v3047_v54  ;;  %v324_v19 = vrot.slane %v322_v3, 5  ;;  %v330_v20 = vrot.slane %v328_v4, 5  ;;  %v342_v25 = vshll.u32 %v3418_v61, 16  ;;  %v1117_v36 = vshll.u32 %v2436_v5, 16 }
  0x30   : > { %v298_v37 = vrot.slane %v297_v1, 4  ;;  %v312_v42 = vrot.slane %v311_v32, 4  ;;  %v1098_v23 = vsel %vm3287_vm2, %v1093_v8, %v1097_v43  ;;  %v335_v1 = vrot.slane %v333_v14, 4 }
  0x31   : > { %2736 = vmatpush3.bf16.msra.mxu1 %v3048_v59  ;;  %v1106_v59 = vor.u32 %v1105_v45, %v1102_v44  ;;  %v344_v40 = vrot.slane %v342_v25, 5  ;;  %v1116_v41 = vrot.slane %v1114_v28, 4  ;;  %v1119_v45 = vrot.slane %v1117_v36, 5  ;;  %v2454_v25 = vld [vmem:[%s3242_s16 + $0x18] sm:$0xe] }
  0x32   : > { %2830 = vmatpush3.bf16.msra.mxu0 %v3047_v54  ;;  %2737 = vmatprep.subr.bf16.mxu1 %v3050_v10  ;;  %v303_v47 = vsel %vm3287_vm2, %v298_v37, %v302_v18  ;;  %v3053_v54 = vld [vmem:[%s3777_s1 + $0x160] sm:$0xff]   ;;  %v317_v58 = vsel %vm3287_vm2, %v312_v42, %v316_v22  ;;  %v336_v22 = vshll.u32 %v3406_v50, 16  ;;  %v3056_v37 = vld [vmem:[%s3777_s1 + $0x30] sm:$0xff]   ;;  %v1123_v42 = vshll.u32 %v3428_v17, 16  ;;  %v3059_v28 = vld [vmem:[%s3777_s1 + $0x178] sm:$0xff]  }
  0x33   : > { %2831 = vmatprep.subr.bf16.mxu0 %v3049_v9  ;;  %v2362_v7 = vcombine.low %v303_v47, %v317_v58  ;;  %v1107_v18 = vrot.slane %v1106_v59, 4  ;;  %v1324_v47 = vrot.slane %v3280_v34, 5  ;;  %v1328_v48 = vrot.slane %v3330_v16, 5  ;;  %v3057_v58 = vld [vmem:[%s3777_s1 + $0x170] sm:$0xff]  }
  0x34   : > { %v338_v35 = vrot.slane %v336_v22, 5  ;;  %v1120_v4 = vor.u32 %v1119_v45, %v1116_v41  ;;  %v1125_v34 = vrot.slane %v1123_v42, 5  ;;  %v1332_v22 = vrot.slane %v3336_v21, 5  ;;  %v3062_v41 = vld [vmem:[%s3777_s1 + $0x180] sm:$0xff]  }
  0x35   : > { %2738 = vmatpush3.bf16.msra.mxu1 %v3050_v10  ;;  %v321_v10 = vrot.slane %v319_v53, 4  ;;  %2727 = vmatprep.mubr.bf16.mxu1 %v2362_v7  ;;  %v1112_v32 = vsel %vm3287_vm2, %v1107_v18, %v1111_v49  ;;  %v1137_v53 = vshll.u32 %v3436_v27, 16  ;;  %v2452_v7 = vld [vmem:[%s3242_s16 + $0x8] sm:$0xe]  ;;  %v2462_v36 = vrot.slane %v2454_v25, 9 }
  0x36   : > { %2832 = vmatpush3.bf16.msra.mxu0 %v3049_v9  ;;  %2739 = vmatprep.subr.bf16.mxu1 %v3052_v30  ;;  %v2438_v9 = vld [vmem:[%s3242_s16 + $0x40] sm:$0xf]  ;;  %v2442_v39 = vcombine.low %v1098_v23, %v1112_v32  ;;  %v339_v44 = vor.u32 %v338_v35, %v335_v1  ;;  %v2460_v14 = vrot.slane %v2452_v7, 9  ;;  %v1121_v18 = vrot.slane %v1120_v4, 4 }
  0x37   : > { %2833 = vmatprep.subr.bf16.mxu0 %v3051_v29  ;;  %v325_v33 = vor.u32 %v324_v19, %v321_v10  ;;  %v1131_v49 = vshll.u32 %v2438_v9, 16  ;;  %v2453_v10 = vld [vmem:[%s3242_s16 + $0x10] sm:$0xe]  ;;  %v2372_v19 = vcombine.low %v3248_v11, %v3251_v12  ;;  %v1139_v1 = vrot.slane %v1137_v53, 5  ;;  %v2455_v12 = vld [vmem:[%s3242_s16 + $0x20] sm:$0xe] }
  0x38   : > { %2823 = vmatprep.mubr.bf16.mxu0 %v2442_v39  ;;  %v340_v3 = vrot.slane %v339_v44, 4  ;;  %v1321_v32 = vsel %vm3461_vm5, %v2460_v14, %v1320_v57  ;;  %v1126_v21 = vsel %vm3287_vm2, %v1121_v18, %v1125_v34  ;;  %v3061_v35 = vld [vmem:[%s3777_s1 + $0x80] sm:$0xff]   ;;  %v1329_v42 = vsel %vm3461_vm5, %v2462_v36, %v1328_v48  ;;  %v3066_v44 = vld [vmem:[%s3777_s1 + $0x90] sm:$0xff]  }
  0x39   : > { %2740 = vmatpush3.bf16.msra.mxu1 %v3052_v30  ;;  %v3055_v30 = vld [vmem:[%s3777_s1 + $0x168] sm:$0xff]   ;;  %v326_v43 = vrot.slane %v325_v33, 4  ;;  %v1133_v16 = vrot.slane %v1131_v49, 5  ;;  %v1336_v45 = vrot.slane %v3386_v24, 5  ;;  %v1344_v53 = vrot.slane %v3428_v17, 5  ;;  %v3070_v18 = vld [vmem:[%s3777_s1 + $0xa0] sm:$0xff]  }
  0x3a   : > { %2834 = vmatpush3.bf16.msra.mxu0 %v3051_v29  ;;  %2741 = vmatprep.subr.bf16.mxu1 %v3054_v6  ;;  %v1128_v29 = vshrl.u32 %v2438_v9, 16  ;;  %v1348_v24 = vrot.slane %v3436_v27, 5  ;;  %v661_v34 = vrot.slane %v3260_v15, 5  ;;  %v665_v17 = vrot.slane %v3305_v56, 5  ;;  %v629_v15 = vld [vmem:[%s3242_s16 + $0x8] sm:$0xe] }
  0x3b   : > { %2835 = vmatprep.subr.bf16.mxu0 %v3053_v54  ;;  %v331_v59 = vsel %vm3287_vm2, %v326_v43, %v330_v20  ;;  %v2461_v20 = vrot.slane %v2453_v10, 9  ;;  %v3064_v43 = vld [vmem:[%s3777_s1 + $0x88] sm:$0xff]   ;;  %v3067_v10 = vld [vmem:[%s3777_s1 + $0x190] sm:$0xff]   ;;  %v2385_v14 = vrot.slane %v629_v15, 9  ;;  %v673_v36 = vrot.slane %v3366_v0, 5  ;;  %v3080_v0 = vld [vmem:[%s3777_s1 + $0xc0] sm:$0xff]  }
  0x3c   : > { %v1130_v5 = vrot.slane %v1128_v29, 4  ;;  %v1340_v29 = vrot.slane %v3390_v26, 5  ;;  %v2375_v26 = vcombine.low %v3401_v46, %v3406_v50  ;;  %v3068_v46 = vld [vmem:[%s3777_s1 + $0x98] sm:$0xff]   ;;  %v3085_v15 = vld [vmem:[%s3777_s1 + $0x1c8] sm:$0xff]  }
  0x3d   : > { %2742 = vmatpush3.bf16.msra.mxu1 %v3054_v6  ;;  %v3058_v6 = vld [vmem:[%s3777_s1 + $0x38] sm:$0xff]   ;;  %v1325_v11 = vsel %vm3461_vm5, %v2461_v20, %v1324_v47 }
  0x3e   : > { %2836 = vmatpush3.bf16.msra.mxu0 %v3053_v54  ;;  %2743 = vmatprep.subr.bf16.mxu1 %v3056_v37  ;;  %v345_v54 = vsel %vm3287_vm2, %v340_v3, %v344_v40  ;;  %v1134_v23 = vor.u32 %v1133_v16, %v1130_v5  ;;  %v2468_v57 = vcombine.low %v1321_v32, %v1325_v11  ;;  %v628_v16 = vld [vmem:[%s3242_s16] sm:$0xe]  ;;  %v3069_v20 = vld [vmem:[%s3777_s1 + $0x198] sm:$0xff]  }
  0x3f   : > { %2837 = vmatprep.subr.bf16.mxu0 %v3055_v30  ;;  %v2363_v9 = vcombine.low %v331_v59, %v345_v54  ;;  %v2373_v40 = vcombine.low %v3297_v51, %v3302_v55  ;;  %v2374_v51 = vcombine.low %v3360_v62, %v3363_v63  ;;  %v657_v55 = vrot.slane %v3254_v13, 5  ;;  %v3065_v62 = vld [vmem:[%s3777_s1 + $0x188] sm:$0xff]   ;;  %v2457_v63 = vld [vmem:[%s3242_s16 + $0x30] sm:$0xe]  ;;  %v2459_v59 = vld [vmem:[%s3242_s16 + $0x40] sm:$0xe] }
  0x40   : > { %v1135_v33 = vrot.slane %v1134_v23, 4  ;;  %v2456_v13 = vld [vmem:[%s3242_s16 + $0x28] sm:$0xe]  ;;  %v2465_v49 = vrot.slane %v2457_v63, 9  ;;  %v2467_v7 = vrot.slane %v2459_v59, 9  ;;  %v2384_v56 = vrot.slane %v628_v16, 9 }
  0x41   : > { %2744 = vmatpush3.bf16.msra.mxu1 %v3056_v37  ;;  %v2463_v37 = vrot.slane %v2455_v12, 9  ;;  %v2464_v48 = vrot.slane %v2456_v13, 9  ;;  %v669_v54 = vrot.slane %v3310_v60, 5  ;;  %v630_v23 = vld [vmem:[%s3242_s16 + $0x10] sm:$0xe] }
  0x42   : > { %2838 = vmatpush3.bf16.msra.mxu0 %v3055_v30  ;;  %2728 = vmatmul.mubr.bf16.gmra.mrb[4].mxu1 %v2363_v9  ;;  %v1140_v31 = vsel %vm3287_vm2, %v1135_v33, %v1139_v1  ;;  %v1341_v4 = vsel %vm3461_vm5, %v2465_v49, %v1340_v29  ;;  %v662_v9 = vsel %vm3461_vm5, %v2385_v14, %v661_v34  ;;  %v631_v60 = vld [vmem:[%s3242_s16 + $0x18] sm:$0xe]  ;;  %v2386_v25 = vrot.slane %v630_v23, 9  ;;  %v3072_v33 = vld [vmem:[%s3777_s1 + $0xa8] sm:$0xff]  }
  0x43   : > { %2839 = vmatprep.subr.bf16.mxu0 %v3057_v58  ;;  %2745 = vmatprep.subr.bf16.mxu1 %v3058_v6  ;;  %v2443_v39 = vcombine.low %v1126_v21, %v1140_v31  ;;  %v1333_v30 = vsel %vm3461_vm5, %v2463_v37, %v1332_v22  ;;  %v1337_v3 = vsel %vm3461_vm5, %v2464_v48, %v1336_v45  ;;  %v3081_v32 = vld [vmem:[%s3242_s16 + $0x10] ss:$8 sps:$4 sm:$0xff]   ;;  %v681_v29 = vrot.slane %v3409_v52, 5  ;;  %v3084_v49 = vld [vmem:[%s3777_s1 + $0xc8] sm:$0xff]  }
  0x44   : > { %2747 = vmatprep.mubr.bf16.mxu1 %v2372_v19  ;;  %v2469_v47 = vcombine.low %v1329_v42, %v1333_v30  ;;  %v2470_v27 = vcombine.low %v1337_v3, %v1341_v4  ;;  %v658_v19 = vsel %vm3461_vm5, %v2384_v56, %v657_v55  ;;  %v666_v11 = vsel %vm3461_vm5, %v2386_v25, %v665_v17  ;;  %v3075_v31 = vld [vmem:[%s3777_s1 + $0xb0] sm:$0xff]   ;;  %v3078_v37 = vld [vmem:[%s3777_s1 + $0xb8] sm:$0xff]   ;;  %v2506_v25 = vld [vmem:[%s3242_s16 + $0x28] sm:$0xf] }
  0x45   : > { %2746 = vmatpush3.bf16.msra.mxu1 %v3058_v6  ;;  %2824 = vmatmul.mubr.bf16.gmra.mrb[4].mxu0 %v2443_v39  ;;  %v1349_v6 = vsel %vm3461_vm5, %v2467_v7, %v1348_v24  ;;  %v2392_v1 = vcombine.low %v658_v19, %v662_v9  ;;  %v632_v39 = vld [vmem:[%s3242_s16 + $0x20] sm:$0xe]  ;;  %v3079_v45 = vld [vmem:[%s3777_s1 + $0x1b8] sm:$0xff]   ;;  %v3600_v24 = vld [vmem:[%s3242_s16 + $0x14] sm:$0x1] }
  0x46   : > { %2840 = vmatpush3.bf16.msra.mxu0 %v3057_v58  ;;  %2755 = vmatprep.subr.bf16.mxu1 %v3061_v35  ;;  %v2458_v58 = vld [vmem:[%s3242_s16 + $0x38] sm:$0xe]  ;;  %v2388_v42 = vrot.slane %v632_v39, 9  ;;  %v1702_v59 = vshll.u32 %v3600_v24, 16  ;;  %v3083_v7 = vld [vmem:[%s3242_s16 + $0x20] ss:$8 sps:$4 sm:$0xff]  }
  0x47   : > { %2841 = vmatprep.subr.bf16.mxu0 %v3059_v28  ;;  %2843 = vmatprep.mubr.bf16.mxu0 %v2468_v57  ;;  %v2466_v5 = vrot.slane %v2458_v58, 9  ;;  %v3073_v57 = vld [vmem:[%s3777_s1 + $0x1a8] sm:$0xff]   ;;  %v2502_v52 = vld [vmem:[%s3242_s16 + $0x18] sm:$0xf]  ;;  %v3087_v9 = vld [vmem:[%s3777_s1 + $0x1d0] sm:$0xff]  }
  0x48   : > { %v1707_v3 = vshrl.u32 %v2502_v52, 16  ;;  %v1710_v4 = vshll.u32 %v2502_v52, 16  ;;  %v3094_v56 = vld [vmem:[%s3242_s16 + $0x30] ss:$8 sps:$4 sm:$0xff]   ;;  %v3093_v52 = vld [vmem:[%s3777_s1 + $0x1e8] sm:$0xff]  }
  0x49   : > { %v1345_v50 = vsel %vm3461_vm5, %v2466_v5, %v1344_v53  ;;  %v2500_v53 = vld [vmem:[%s3242_s16 + $0x10] sm:$0xf]  ;;  %v3088_v23 = vld [vmem:[%s3777_s1 + $0xd8] sm:$0xff]  }
  0x4a   : > { %2842 = vmatpush3.bf16.msra.mxu0 %v3059_v28  ;;  %2748 = vmatmul.mubr.bf16.vlgmr.msra.gmra.mrb[0].mxu1 %v2373_v40  ;;  %v2471_v22 = vcombine.low %v1345_v50, %v1349_v6  ;;  %v2387_v28 = vrot.slane %v631_v60, 9  ;;  %v633_v40 = vld [vmem:[%s3242_s16 + $0x28] sm:$0xe]  ;;  %v1696_v58 = vshll.u32 %v2500_v53, 16  ;;  %v1709_v50 = vrot.slane %v1707_v3, 4 }
  0x4b   : > { %2851 = vmatprep.subr.bf16.mxu0 %v3062_v41  ;;  %2756 = vmatpush3.bf16.msra.mxu1 %v3061_v35  ;;  %v3071_v35 = vld [vmem:[%s3777_s1 + $0x1a0] sm:$0xff]   ;;  %v2389_v30 = vrot.slane %v633_v40, 9  ;;  %v1712_v6 = vrot.slane %v1710_v4, 5 }
  0x4c   : > { %2757 = vmatprep.subr.bf16.mxu1 %v3064_v43  ;;  %2751 = vmatprep.mubr.bf16.mxu1 %v2374_v51  ;;  %v670_v12 = vsel %vm3461_vm5, %v2387_v28, %v669_v54  ;;  %v634_v51 = vld [vmem:[%s3242_s16 + $0x30] sm:$0xe]  ;;  %v1698_v16 = vrot.slane %v1696_v58, 5  ;;  %v1704_v54 = vrot.slane %v1702_v59, 5 }
  0x4d   : > { %2844 = vmatmul.mubr.bf16.vlgmr.msra.gmra.mrb[0].mxu0 %v2469_v47  ;;  %v2393_v21 = vcombine.low %v666_v11, %v670_v12  ;;  %v685_v47 = vrot.slane %v3418_v61, 5  ;;  %v2390_v63 = vrot.slane %v634_v51, 9  ;;  %v3604_v61 = vld [vmem:[%s3242_s16 + $0x1c] sm:$0x1]  ;;  %v3096_v11 = vld [vmem:[%s3242_s16 + $0x40] ss:$8 sps:$4 sm:$0xff]  }
  0x4e   : > { %2852 = vmatpush3.bf16.msra.mxu0 %v3062_v41  ;;  %2847 = vmatprep.mubr.bf16.mxu0 %v2470_v27  ;;  %v677_v41 = vrot.slane %v3369_v2, 5  ;;  %v674_v2 = vsel %vm3461_vm5, %v2388_v42, %v673_v36  ;;  %v1716_v5 = vshll.u32 %v3604_v61, 16  ;;  %v2508_v12 = vld [vmem:[%s3242_s16 + $0x30] sm:$0xf]  ;;  %v1738_v36 = vshll.u32 %v2506_v25, 16 }
  0x4f   : > { %2758 = vmatpush3.bf16.msra.mxu1 %v3064_v43  ;;  %2853 = vmatprep.subr.bf16.mxu0 %v3065_v62  ;;  %v3076_v43 = vld [vmem:[%s3777_s1 + $0x1b0] sm:$0xff]   ;;  %v682_v34 = vsel %vm3461_vm5, %v2390_v63, %v681_v29  ;;  %v1749_v40 = vshrl.u32 %v2508_v12, 16  ;;  %v3649_v51 = vld [vmem:[%s3242_s16 + $0x24] sm:$0x1] }
  0x50   : > { %2759 = vmatprep.subr.bf16.mxu1 %v3066_v44  ;;  %v678_v55 = vsel %vm3461_vm5, %v2389_v30, %v677_v41  ;;  %v1718_v19 = vrot.slane %v1716_v5, 5  ;;  %v1752_v41 = vshll.u32 %v2508_v12, 16  ;;  %v1740_v29 = vrot.slane %v1738_v36, 5  ;;  %v2514_v5 = vld [vmem:[%s3242_s16 + $0x48] sm:$0xf]  ;;  %v3099_v12 = vld [vmem:[%s3777_s1 + $0x1f8] sm:$0xff]  }
  0x51   : > { %v2394_v13 = vcombine.low %v674_v2, %v678_v55  ;;  %v3652_v2 = vld [vmem:[%s3242_s16 + $0x2c] sm:$0x1]  ;;  %v1730_v58 = vshll.u32 %v3649_v51, 16 }
  0x52   : > { %2752 = vmatmul.mubr.bf16.gmra.mrb[4].mxu1 %v2375_v26  ;;  %2854 = vmatpush3.bf16.msra.mxu0 %v3065_v62  ;;  %v3082_v62 = vld [vmem:[%s3777_s1 + $0x1c0] sm:$0xff]   ;;  %v1693_v26 = vshrl.u32 %v2500_v53, 16  ;;  %v1754_v63 = vrot.slane %v1752_v41, 5  ;;  %v1744_v59 = vshll.u32 %v3652_v2, 16 }
  0x53   : > { %2760 = vmatpush3.bf16.msra.mxu1 %v3066_v44  ;;  %2855 = vmatprep.subr.bf16.mxu0 %v3067_v10  ;;  %v635_v44 = vld [vmem:[%s3242_s16 + $0x38] sm:$0xe]  ;;  %v2512_v53 = vld [vmem:[%s3242_s16 + $0x40] sm:$0xf] }
  0x54   : > { %2761 = vmatprep.subr.bf16.mxu1 %v3068_v46  ;;  %2771 = vmatprep.mubr.bf16.mxu1 %v2392_v1  ;;  %v2391_v48 = vrot.slane %v635_v44, 9  ;;  %v1695_v27 = vrot.slane %v1693_v26, 4  ;;  %v2504_v1 = vld [vmem:[%s3242_s16 + $0x20] sm:$0xf]  ;;  %v3095_v26 = vld [vmem:[%s3777_s1 + $0xf0] sm:$0xff]  }
  0x55   : > { %2848 = vmatmul.mubr.bf16.gmra.mrb[4].mxu0 %v2471_v22 }
  0x56   : > { %2856 = vmatpush3.bf16.msra.mxu0 %v3067_v10  ;;  %2867 = vmatprep.mubr.bf16.mxu0 %v3081_v32  ;;  %v686_v17 = vsel %vm3461_vm5, %v2391_v48, %v685_v47  ;;  %v1699_v10 = vor.u32 %v1698_v16, %v1695_v27  ;;  %v3655_v47 = vld [vmem:[%s3242_s16 + $0x34] sm:$0x1]  ;;  %v1780_v27 = vshll.u32 %v2512_v53, 16 }
  0x57   : > { %2762 = vmatpush3.bf16.msra.mxu1 %v3068_v46  ;;  %2857 = vmatprep.subr.bf16.mxu0 %v3069_v20  ;;  %v3086_v46 = vld [vmem:[%s3777_s1 + $0xd0] sm:$0xff]   ;;  %v2395_v14 = vcombine.low %v682_v34, %v686_v17  ;;  %v1758_v3 = vshll.u32 %v3655_v47, 16  ;;  %v1777_v17 = vshrl.u32 %v2512_v53, 16  ;;  %v2529_v53 = vld [vmem:[%s3242_s16 + $0x18] sm:$0xe] }
  0x58   : > { %2763 = vmatprep.subr.bf16.mxu1 %v3070_v18  ;;  %v1700_v22 = vrot.slane %v1699_v10, 4 }
  0x5a   : > { %2858 = vmatpush3.bf16.msra.mxu0 %v3069_v20  ;;  %v3100_v20 = vld [vmem:[%s3242_s16 + $0x8] ss:$8 sps:$4 sm:$0xff]   ;;  %v1705_v28 = vsel %vm3287_vm2, %v1700_v22, %v1704_v54 }
  0x5b   : > { %2764 = vmatpush3.bf16.msra.mxu1 %v3070_v18  ;;  %2859 = vmatprep.subr.bf16.mxu0 %v3071_v35  ;;  %v1713_v18 = vor.u32 %v1712_v6, %v1709_v50  ;;  %v1791_v50 = vshrl.u32 %v2514_v5, 16  ;;  %v1794_v6 = vshll.u32 %v2514_v5, 16  ;;  %v2537_v5 = vrot.slane %v2529_v53, 9 }
  0x5c   : > { %2765 = vmatprep.subr.bf16.mxu1 %v3072_v33 }
  0x5d   : > { %v1714_v60 = vrot.slane %v1713_v18, 4  ;;  %v1746_v18 = vrot.slane %v1744_v59, 5  ;;  %v3105_v59 = vld [vmem:[%s3242_s16 + $0x38] ss:$8 sps:$4 sm:$0xff]  }
  0x5e   : > { %2860 = vmatpush3.bf16.msra.mxu0 %v3071_v35  ;;  %v1721_v35 = vshrl.u32 %v2504_v1, 16 }
  0x5f   : > { %2766 = vmatpush3.bf16.msra.mxu1 %v3072_v33  ;;  %2861 = vmatprep.subr.bf16.mxu0 %v3073_v57  ;;  %v1719_v32 = vsel %vm3287_vm2, %v1714_v60, %v1718_v19  ;;  %v3090_v33 = vld [vmem:[%s3777_s1 + $0xe0] sm:$0xff]   ;;  %v3682_v60 = vld [vmem:[%s3242_s16 + $0x4c] sm:$0x1] }
  0x60   : > { %2767 = vmatprep.subr.bf16.mxu1 %v3075_v31  ;;  %v2516_v39 = vcombine.low %v1705_v28, %v1719_v32  ;;  %v1723_v55 = vrot.slane %v1721_v35, 4  ;;  %v1793_v28 = vrot.slane %v1791_v50, 4  ;;  %v1796_v32 = vrot.slane %v1794_v6, 5  ;;  %v3101_v35 = vld [vmem:[%s3242_s16 + $0x18] ss:$8 sps:$4 sm:$0xff]   ;;  %v3109_v6 = vld [vmem:[%s3777_s1 + $0x228] sm:$0xff]  }
  0x62   : > { %2862 = vmatpush3.bf16.msra.mxu0 %v3073_v57  ;;  %v1735_v57 = vshrl.u32 %v2506_v25, 16  ;;  %v1782_v25 = vrot.slane %v1780_v27, 5 }
  0x63   : > { %2768 = vmatpush3.bf16.msra.mxu1 %v3075_v31  ;;  %2863 = vmatprep.subr.bf16.mxu0 %v3076_v43  ;;  %v1724_v31 = vshll.u32 %v2504_v1, 16  ;;  %v1779_v1 = vrot.slane %v1777_v17, 4 }
  0x64   : > { %2769 = vmatprep.subr.bf16.mxu1 %v3078_v37 }
  0x65   : > { %v1726_v44 = vrot.slane %v1724_v31, 5 }
  0x66   : > { %2864 = vmatpush3.bf16.msra.mxu0 %v3076_v43  ;;  %v3091_v43 = vld [vmem:[%s3777_s1 + $0x1e0] sm:$0xff]  }
  0x67   : > { %2770 = vmatpush3.bf16.msra.mxu1 %v3078_v37  ;;  %2865 = vmatprep.subr.bf16.mxu0 %v3079_v45  ;;  %v3089_v37 = vld [vmem:[%s3777_s1 + $0x1d8] sm:$0xff]  }
  0x68   : > { %2779 = vmatprep.subr.bf16.mxu1 %v3080_v0 }
  0x6a   : > { %2772 = vmatmul.mubr.bf16.vlgmr.msra.gmra.mrb[0].mxu1 %v2393_v21  ;;  %2866 = vmatpush3.bf16.msra.mxu0 %v3079_v45  ;;  %v2510_v21 = vld [vmem:[%s3242_s16 + $0x38] sm:$0xf]  ;;  %v1737_v45 = vrot.slane %v1735_v57, 4 }
  0x6b   : > { %2780 = vmatpush3.bf16.msra.mxu1 %v3080_v0  ;;  %2775 = vmatprep.mubr.bf16.mxu1 %v2394_v13  ;;  %v1763_v42 = vshrl.u32 %v2510_v21, 16  ;;  %v1766_v30 = vshll.u32 %v2510_v21, 16  ;;  %v3092_v0 = vld [vmem:[%s3777_s1 + $0xe8] sm:$0xff]   ;;  %v1751_v13 = vrot.slane %v1749_v40, 4  ;;  %v2532_v21 = vld [vmem:[%s3242_s16 + $0x30] sm:$0xe] }
  0x6c   : > { %2781 = vmatprep.subr.bf16.mxu1 %v3084_v49  ;;  %2875 = vmatprep.subr.bf16.mxu0 %v3082_v62  ;;  %v1741_v34 = vor.u32 %v1740_v29, %v1737_v45 }
  0x6d   : > { %2868 = vmatmul.mubr.bf16.vlgmr.msra.gmra.mrb[0].mxu0 %v3083_v7  ;;  %v1765_v48 = vrot.slane %v1763_v42, 4  ;;  %v1727_v7 = vor.u32 %v1726_v44, %v1723_v55  ;;  %v1755_v16 = vor.u32 %v1754_v63, %v1751_v13  ;;  %v1783_v42 = vor.u32 %v1782_v25, %v1779_v1 }
  0x6e   : > { %2876 = vmatpush3.bf16.msra.mxu0 %v3082_v62  ;;  %2871 = vmatprep.mubr.bf16.mxu0 %v3094_v56  ;;  %v3658_v62 = vld [vmem:[%s3242_s16 + $0x3c] sm:$0x1]  ;;  %v3097_v56 = vld [vmem:[%s3777_s1 + $0x1f0] sm:$0xff]   ;;  %v1742_v54 = vrot.slane %v1741_v34, 4  ;;  %v1999_v55 = vrot.slane %v3655_v47, 5  ;;  %v1991_v25 = vrot.slane %v3649_v51, 5 }
  0x6f   : > { %2782 = vmatpush3.bf16.msra.mxu1 %v3084_v49  ;;  %2877 = vmatprep.subr.bf16.mxu0 %v3085_v15  ;;  %v1768_v49 = vrot.slane %v1766_v30, 5  ;;  %v1772_v4 = vshll.u32 %v3658_v62, 16  ;;  %v1728_v10 = vrot.slane %v1727_v7, 4  ;;  %v1756_v19 = vrot.slane %v1755_v16, 4  ;;  %v3107_v16 = vld [vmem:[%s3777_s1 + $0x218] sm:$0xff]  }
  0x70   : > { %2783 = vmatprep.subr.bf16.mxu1 %v3086_v46  ;;  %v1747_v57 = vsel %vm3287_vm2, %v1742_v54, %v1746_v18  ;;  %v1797_v30 = vor.u32 %v1796_v32, %v1793_v28  ;;  %v2003_v45 = vrot.slane %v3658_v62, 5  ;;  %v1987_v7 = vrot.slane %v3604_v61, 5 }
  0x71   : > { %v2011_v54 = vrot.slane %v3682_v60, 5  ;;  %v1995_v32 = vrot.slane %v3652_v2, 5 }
  0x72   : > { %2776 = vmatmul.mubr.bf16.gmra.mrb[4].mxu1 %v2395_v14  ;;  %2878 = vmatpush3.bf16.msra.mxu0 %v3085_v15  ;;  %v3098_v15 = vld [vmem:[%s3777_s1 + $0xf8] sm:$0xff]   ;;  %v1732_v14 = vrot.slane %v1730_v58, 5  ;;  %v3106_v58 = vld [vmem:[%s3777_s1 + $0x210] sm:$0xff]   ;;  %v1988_v61 = vsel %vm3461_vm5, %v2537_v5, %v1987_v7 }
  0x73   : > { %2784 = vmatpush3.bf16.msra.mxu1 %v3086_v46  ;;  %2795 = vmatprep.mubr.bf16.mxu1 %v3100_v20  ;;  %v1769_v46 = vor.u32 %v1768_v49, %v1765_v48  ;;  %v1760_v20 = vrot.slane %v1758_v3, 5  ;;  %v2528_v49 = vld [vmem:[%s3242_s16 + $0x10] sm:$0xe] }
  0x74   : > { %2785 = vmatprep.subr.bf16.mxu1 %v3088_v23  ;;  %2879 = vmatprep.subr.bf16.mxu0 %v3087_v9  ;;  %v1733_v31 = vsel %vm3287_vm2, %v1728_v10, %v1732_v14  ;;  %v2536_v3 = vrot.slane %v2528_v49, 9  ;;  %v2535_v10 = vld [vmem:[%s3242_s16 + $0x48] sm:$0xe] }
  0x75   : > { %2872 = vmatmul.mubr.bf16.gmra.mrb[4].mxu0 %v3096_v11  ;;  %v1770_v22 = vrot.slane %v1769_v46, 4  ;;  %v3102_v11 = vld [vmem:[%s3777_s1 + $0x200] sm:$0xff]   ;;  %v1761_v40 = vsel %vm3287_vm2, %v1756_v19, %v1760_v20  ;;  %v2517_v29 = vcombine.low %v1733_v31, %v1747_v57  ;;  %v2543_v19 = vrot.slane %v2535_v10, 9  ;;  %v3111_v20 = vld [vmem:[%s3777_s1 + $0x238] sm:$0xff]  }
  0x76   : > { %2880 = vmatpush3.bf16.msra.mxu0 %v3087_v9  ;;  %2891 = vmatprep.mubr.bf16.mxu0 %v2516_v39  ;;  %v1774_v9 = vrot.slane %v1772_v4, 5  ;;  %v3104_v39 = vld [vmem:[%s3242_s16 + $0x28] ss:$8 sps:$4 sm:$0xff]   ;;  %v1983_v4 = vrot.slane %v3600_v24, 5 }
  0x77   : > { %2786 = vmatpush3.bf16.msra.mxu1 %v3088_v23  ;;  %2881 = vmatprep.subr.bf16.mxu0 %v3089_v37  ;;  %v3679_v23 = vld [vmem:[%s3242_s16 + $0x44] sm:$0x1] }
  0x78   : > { %2787 = vmatprep.subr.bf16.mxu1 %v3090_v33  ;;  %v1786_v36 = vshll.u32 %v3679_v23, 16  ;;  %v1775_v41 = vsel %vm3287_vm2, %v1770_v22, %v1774_v9  ;;  %v1984_v24 = vsel %vm3461_vm5, %v2536_v3, %v1983_v4  ;;  %v2007_v14 = vrot.slane %v3679_v23, 5  ;;  %v2530_v22 = vld [vmem:[%s3242_s16 + $0x20] sm:$0xe]  ;;  %v2531_v9 = vld [vmem:[%s3242_s16 + $0x28] sm:$0xe] }
  0x79   : > { %v2518_v13 = vcombine.low %v1761_v40, %v1775_v41  ;;  %v2544_v50 = vcombine.low %v1984_v24, %v1988_v61  ;;  %v2012_v23 = vsel %vm3461_vm5, %v2543_v19, %v2011_v54  ;;  %v2539_v28 = vrot.slane %v2531_v9, 9 }
  0x7a   : > { %2882 = vmatpush3.bf16.msra.mxu0 %v3089_v37  ;;  %v1800_v37 = vshll.u32 %v3682_v60, 16  ;;  %v1788_v63 = vrot.slane %v1786_v36, 5  ;;  %v2538_v60 = vrot.slane %v2530_v22, 9 }
  0x7b   : > { %2788 = vmatpush3.bf16.msra.mxu1 %v3090_v33  ;;  %2883 = vmatprep.subr.bf16.mxu0 %v3091_v43  ;;  %v2533_v33 = vld [vmem:[%s3242_s16 + $0x38] sm:$0xe] }
  0x7c   : > { %2789 = vmatprep.subr.bf16.mxu1 %v3092_v0  ;;  %v2541_v44 = vrot.slane %v2533_v33, 9  ;;  %v1802_v48 = vrot.slane %v1800_v37, 5 }
  0x7e   : > { %2884 = vmatpush3.bf16.msra.mxu0 %v3091_v43  ;;  %v3103_v43 = vld [vmem:[%s3777_s1 + $0x208] sm:$0xff]   ;;  %v2004_v62 = vsel %vm3461_vm5, %v2541_v44, %v2003_v45  ;;  %v2556_v44 = vld [vmem:[%s3778_s2] ss:$0 sm:$0xff] }
  0x7f   : > { %2790 = vmatpush3.bf16.msra.mxu1 %v3092_v0  ;;  %2885 = vmatprep.subr.bf16.mxu0 %v3093_v52  ;;  %v2540_v0 = vrot.slane %v2532_v21, 9  ;;  %v1996_v21 = vsel %vm3461_vm5, %v2539_v28, %v1995_v32 }
  0x80   : > { %2791 = vmatprep.subr.bf16.mxu1 %v3095_v26 }
  0x81   : > { %v2000_v47 = vsel %vm3461_vm5, %v2540_v0, %v1999_v55 }
  0x82   : > { %2886 = vmatpush3.bf16.msra.mxu0 %v3093_v52  ;;  %v1784_v52 = vrot.slane %v1783_v42, 4  ;;  %v2546_v34 = vcombine.low %v2000_v47, %v2004_v62 }
  0x83   : > { %2792 = vmatpush3.bf16.msra.mxu1 %v3095_v26  ;;  %2887 = vmatprep.subr.bf16.mxu0 %v3097_v56  ;;  %v1798_v26 = vrot.slane %v1797_v30, 4 }
  0x84   : > { %2793 = vmatprep.subr.bf16.mxu1 %v3098_v15  ;;  %v1789_v17 = vsel %vm3287_vm2, %v1784_v52, %v1788_v63 }
  0x85   : > { %v1803_v27 = vsel %vm3287_vm2, %v1798_v26, %v1802_v48 }
  0x86   : > { %2888 = vmatpush3.bf16.msra.mxu0 %v3097_v56  ;;  %v2519_v46 = vcombine.low %v1789_v17, %v1803_v27  ;;  %v2534_v56 = vld [vmem:[%s3242_s16 + $0x40] sm:$0xe] }
  0x87   : > { %2794 = vmatpush3.bf16.msra.mxu1 %v3098_v15  ;;  %2889 = vmatprep.subr.bf16.mxu0 %v3099_v12  ;;  %v3110_v15 = vld [vmem:[%s3777_s1 + $0x230] sm:$0xff]   ;;  %v2542_v18 = vrot.slane %v2534_v56, 9 }
  0x88   : > { %2923 = vmatprep.subr.bf16.mxu1 %v3102_v11 }
  0x89   : > { %v2008_v1 = vsel %vm3461_vm5, %v2542_v18, %v2007_v14 }
  0x8a   : > { %2796 = vmatmul.mubr.bf16.vlgmr.msra.gmra.mrb[0].mxu1 %v3101_v35  ;;  %2890 = vmatpush3.bf16.msra.mxu0 %v3099_v12  ;;  %v1992_v12 = vsel %vm3461_vm5, %v2538_v60, %v1991_v25 }
  0x8b   : > { %2931 = vmatpush3.bf16.msra.mxu1 %v3102_v11  ;;  %2799 = vmatprep.mubr.bf16.mxu1 %v3104_v39  ;;  %v2545_v33 = vcombine.low %v1992_v12, %v1996_v21 }
  0x8c   : > { %2924 = vmatprep.subr.bf16.mxu1 %v3103_v43  ;;  %2899 = vmatprep.subr.bf16.mxu0 %v3102_v11 }
  0x8d   : > { %2892 = vmatmul.mubr.bf16.vlgmr.msra.gmra.mrb[0].mxu0 %v2517_v29 }
  0x8e   : > { %2900 = vmatpush3.bf16.msra.mxu0 %v3102_v11  ;;  %2895 = vmatprep.mubr.bf16.mxu0 %v2518_v13  ;;  %v2547_v11 = vcombine.low %v2008_v1, %v2012_v23 }
  0x8f   : > { %2932 = vmatpush3.bf16.msra.mxu1 %v3103_v43  ;;  %2901 = vmatprep.subr.bf16.mxu0 %v3103_v43 }
  0x90   : > { %2925 = vmatprep.subr.bf16.mxu1 %v3106_v58 }
  0x92   : > { %2800 = vmatmul.mubr.bf16.gmra.mrb[4].mxu1 %v3105_v59  ;;  %2902 = vmatpush3.bf16.msra.mxu0 %v3103_v43 }
  0x93   : > { %2933 = vmatpush3.bf16.msra.mxu1 %v3106_v58  ;;  %2919 = vmatprep.mubr.bf16.mxu1 %v2546_v34 }
  0x94   : > { %2926 = vmatprep.subr.bf16.mxu1 %v3107_v16  ;;  %2903 = vmatprep.subr.bf16.mxu0 %v3106_v58 }
  0x95   : > { %2896 = vmatmul.mubr.bf16.gmra.mrb[4].mxu0 %v2519_v46 }
  0x96   : > { %2904 = vmatpush3.bf16.msra.mxu0 %v3106_v58  ;;  %2915 = vmatprep.mubr.bf16.mxu0 %v2544_v50 }
  0x97   : > { %2934 = vmatpush3.bf16.msra.mxu1 %v3107_v16  ;;  %2905 = vmatprep.subr.bf16.mxu0 %v3107_v16 }
  0x98   : > { %2927 = vmatprep.subr.bf16.mxu1 %v3108_v38 }
  0x9a   : > { %2906 = vmatpush3.bf16.msra.mxu0 %v3107_v16 }
  0x9b   : > { %2935 = vmatpush3.bf16.msra.mxu1 %v3108_v38  ;;  %2907 = vmatprep.subr.bf16.mxu0 %v3108_v38 }
  0x9c   : > { %2928 = vmatprep.subr.bf16.mxu1 %v3109_v6 }
  0x9e   : > { %2908 = vmatpush3.bf16.msra.mxu0 %v3108_v38 }
  0x9f   : > { %2936 = vmatpush3.bf16.msra.mxu1 %v3109_v6  ;;  %2909 = vmatprep.subr.bf16.mxu0 %v3109_v6 }
  0xa0   : > { %2929 = vmatprep.subr.bf16.mxu1 %v3110_v15 }
  0xa2   : > { %2910 = vmatpush3.bf16.msra.mxu0 %v3109_v6 }
  0xa3   : > { %2937 = vmatpush3.bf16.msra.mxu1 %v3110_v15  ;;  %2911 = vmatprep.subr.bf16.mxu0 %v3110_v15 }
  0xa4   : > { %2930 = vmatprep.subr.bf16.mxu1 %v3111_v20 }
  0xa6   : > { %2912 = vmatpush3.bf16.msra.mxu0 %v3110_v15 }
  0xa7   : > { %2938 = vmatpush3.bf16.msra.mxu1 %v3111_v20  ;;  %2913 = vmatprep.subr.bf16.mxu0 %v3111_v20 }
  0xaa   : > { %2920 = vmatmul.mubr.bf16.vlgmr.msra.gmra.mrb[8].mxu1 %v2547_v11  ;;  %2914 = vmatpush3.bf16.msra.mxu0 %v3111_v20 }
  0xad   : > { %2916 = vmatmul.mubr.bf16.vlgmr.msra.gmra.mrb[0].mxu0 %v2545_v33 }
 0x15d   : > { %v2797_v35 = vpop.f32.mrb[0].mxu1 }
 0x15e   : > { %v974_v51 = vpop.f32.mrb[1].mxu1 }
 0x15f   : > { %v2798_v31 = vpop.f32.mrb[2].mxu1 }
 0x160   : > { %v977_v57 = vpop.f32.mrb[3].mxu1 }
 0x165   : > { %v2801_v2 = vpop.f32.mrb[4].mxu1 }
 0x166   : > { %v990_v36 = vpop.f32.mrb[5].mxu1 }
 0x167   : > { %v2802_v37 = vpop.f32.mrb[6].mxu1 }
 0x168   : > { %v993_v39 = vpop.f32.mrb[7].mxu1  ;;  %v2897_v40 = vpop.f32.mrb[4].mxu0 }
 0x169   : > { %v2943_v41 = vadd.f32 %v2897_v40, %v2801_v2  ;;  %v1934_v42 = vpop.f32.mrb[5].mxu0 }
 0x16a   : > { %v2945_v30 = vadd.f32 %v1934_v42, %v990_v36  ;;  %v2898_v43 = vpop.f32.mrb[6].mxu0 }
 0x16b   : > { %v2947_v8 = vadd.f32 %v2898_v43, %v2802_v37  ;;  %v1937_v0 = vpop.f32.mrb[7].mxu0 }
 0x16c   : > { %v2949_v55 = vadd.f32 %v1937_v0, %v993_v39 }
 0x17d   : > { %v2921_v45 = vpop.f32.mrb[8].mxu1 }
 0x17e   : > { %v2944_v29 = vadd.f32 %v2943_v41, %v2921_v45  ;;  %v2143_v13 = vpop.f32.mrb[9].mxu1 }
 0x17f   : > { %v2946_v63 = vadd.f32 %v2945_v30, %v2143_v13  ;;  %v2922_v48 = vpop.f32.mrb[10].mxu1 }
 0x180   : > { %v2179_v49 = vadd.f32 %v2944_v29, %v2556_v44  ;;  %v2948_v53 = vadd.f32 %v2947_v8, %v2922_v48  ;;  %v2146_v52 = vpop.f32.mrb[11].mxu1  ;;  %v2917_v62 = vpop.f32.mrb[0].mxu0 }
 0x181   : > { %v2177_v26 = vadd.f32 %v2946_v63, %v2556_v44  ;;  %v2950_v47 = vadd.f32 %v2949_v55, %v2146_v52  ;;  %v2939_v3 = vadd.f32 %v2917_v62, %v2797_v35  ;;  %v2127_v4 = vpop.f32.mrb[1].mxu0 }
 0x182   : > { %v2187_v58 = vsub.f32 0.0, %v2179_v49  ;;  %v2180_v59 = vadd.f32 %v2948_v53, %v2556_v44  ;;  %v2940_v17 = vadd.f32 %v2127_v4, %v974_v51  ;;  %v2918_v27 = vpop.f32.mrb[2].mxu0 }
 0x183   : > { %v2185_v5 = vsub.f32 0.0, %v2177_v26  ;;  %v2178_v7 = vadd.f32 %v2950_v47, %v2556_v44  ;;  %v2175_v24 = vadd.f32 %v2939_v3, %v2556_v44  ;;  %v2941_v46 = vadd.f32 %v2918_v27, %v2798_v31  ;;  %v2130_v38 = vpop.f32.mrb[3].mxu0 }
 0x184   : > { %v2201_v34 = vmul.f32 1.442695, %v2187_v58  ;;  %v2188_v16 = vsub.f32 0.0, %v2180_v59  ;;  %v2173_v6 = vadd.f32 %v2940_v17, %v2556_v44  ;;  %v2942_v56 = vadd.f32 %v2130_v38, %v977_v57 }
 0x185   : > { %v2197_v61 = vmul.f32 1.442695, %v2185_v5  ;;  %v2186_v50 = vsub.f32 0.0, %v2178_v7  ;;  %v2183_v10 = vsub.f32 0.0, %v2175_v24  ;;  %v2176_v14 = vadd.f32 %v2941_v46, %v2556_v44 }
 0x186   : > { %3112 = vpow2.f32 %v2201_v34  ;;  %v2203_v15 = vmul.f32 1.442695, %v2188_v16  ;;  %v2181_v18 = vsub.f32 0.0, %v2173_v6  ;;  %v2174_v19 = vadd.f32 %v2942_v56, %v2556_v44 }
 0x187   : > { %3114 = vpow2.f32 %v2197_v61  ;;  %v2199_v54 = vmul.f32 1.442695, %v2186_v50  ;;  %v2193_v20 = vmul.f32 1.442695, %v2183_v10  ;;  %v2184_v22 = vsub.f32 0.0, %v2176_v14 }
 0x188   : > { %3116 = vpow2.f32 %v2203_v15  ;;  %v2189_v9 = vmul.f32 1.442695, %v2181_v18  ;;  %v2182_v1 = vsub.f32 0.0, %v2174_v19 }
 0x189   : > { %3118 = vpow2.f32 %v2199_v54  ;;  %v2195_v23 = vmul.f32 1.442695, %v2184_v22 }
 0x18a   : > { %3120 = vpow2.f32 %v2193_v20  ;;  %v2191_v60 = vmul.f32 1.442695, %v2182_v1 }
 0x18b   : > { %3122 = vpow2.f32 %v2189_v9 }
 0x18c   : > { %3124 = vpow2.f32 %v2195_v23 }
 0x18d   : > { %3126 = vpow2.f32 %v2191_v60 }
 0x190   : > { %v3113_v25 = vpop.eup %3112 }
 0x191   : > { %v3115_v28 = vpop.eup %3114  ;;  %v2211_v32 = vadd.f32 1.0, %v3113_v25 }
 0x192   : > { %v3117_v11 = vpop.eup %3116  ;;  %v2209_v12 = vadd.f32 1.0, %v3115_v28 }
 0x193   : > { %v3119_v21 = vpop.eup %3118  ;;  %3128 = vrcp.f32 %v2211_v32  ;;  %v2212_v33 = vadd.f32 1.0, %v3117_v11 }
 0x194   : > { %3130 = vrcp.f32 %v2209_v12  ;;  %v2210_v35 = vadd.f32 1.0, %v3119_v21  ;;  %v3121_v51 = vpop.eup %3120 }
 0x195   : > { %3132 = vrcp.f32 %v2212_v33  ;;  %v3123_v31 = vpop.eup %3122  ;;  %v2207_v57 = vadd.f32 1.0, %v3121_v51 }
 0x196   : > { %3134 = vrcp.f32 %v2210_v35  ;;  %v3125_v2 = vpop.eup %3124  ;;  %v2205_v36 = vadd.f32 1.0, %v3123_v31 }
 0x197   : > { %v3127_v37 = vpop.eup %3126  ;;  %3136 = vrcp.f32 %v2207_v57  ;;  %v2208_v39 = vadd.f32 1.0, %v3125_v2 }
 0x198   : > { %3138 = vrcp.f32 %v2205_v36  ;;  %v2206_v40 = vadd.f32 1.0, %v3127_v37 }
 0x199   : > { %3140 = vrcp.f32 %v2208_v39 }
 0x19a   : > { %3142 = vrcp.f32 %v2206_v40 }
 0x19d   : > { %v3129_v41 = vpop.eup %3128 }
 0x19e   : > { %v3131_v42 = vpop.eup %3130 }
 0x19f   : > { %v3133_v30 = vpop.eup %3132 }
 0x1a0   : > { %v3135_v43 = vpop.eup %3134  ;;  %v2594_v8 = vpack.c.bf16 %v3133_v30, %v3129_v41 }
 0x1a1   : > { %v2589_v0 = vpack.c.bf16 %v3135_v43, %v3131_v42  ;;  %v3137_v55 = vpop.eup %3136 }
 0x1a2   : > { %2598 = vst [vmem:[%s192_s8 + $0x18] sm:$0xff] %v2594_v8   ;;  %v3139_v44 = vpop.eup %3138 }
 0x1a3   : > { %2597 = vst [vmem:[%s192_s8 + $0x10] sm:$0xff] %v2589_v0   ;;  %v3141_v45 = vpop.eup %3140 }
 0x1a4   : > { %v3143_v29 = vpop.eup %3142  ;;  %v2584_v13 = vpack.c.bf16 %v3141_v45, %v3137_v55 }
 0x1a5   : > { %v2579_v63 = vpack.c.bf16 %v3143_v29, %v3139_v44 }
 0x1a6   : > { %2596 = vst [vmem:[%s192_s8 + $0x8] sm:$0xff] %v2584_v13  }
 0x1a7   : > { %2580 = vst [vmem:[%s192_s8] sm:$0xff] %v2579_v63  }
 0x1a8 PF: > { %s13_s14 = sadd.s32 1, %s3166_s14   ;;  %s3784_s12 = smov %s3162_s13 }
 0x1a9   : > { %p10_p5 = scmp.ge.s32.totalorder %s13_s14, 4   ;;  %s3785_s13 = smov %s3787_s15 }
 0x1ab   :  { %12 = sbr.rel (!%p10_p5) target bundleno = 2 (0x2), region = 65 }

// kernel: global_level_forward.9
= control target key start
LH: loop header
LB: loop body
LE: loop exit
PB: predicated region body
PF: predicated region fallthrough
CT: control target
= control target key end

     0   :  { %s3468_s24 = smov 0   ;;  %s3879_s0 = inlined_call_operand.vmem [shape: bf16[8,8192], index: 0, kind: input, shape index: {}]   ;;  %s3880_s1 = inlined_call_operand.vmem [shape: bf16[8192,256], index: 1, kind: input, shape index: {}]   ;;  %s3881_s2 = inlined_call_operand.vmem [shape: f32[1,256], index: 2, kind: input, shape index: {}]   ;;  %s3882_s3 = inlined_call_operand.vmem [shape: bf16[256,128], index: 3, kind: input, shape index: {}]   ;;  %s3883_s4 = inlined_call_operand.vmem [shape: f32[1,128], index: 4, kind: input, shape index: {}]   ;;  %s3884_s5 = inlined_call_operand.vmem [shape: bf16[128,128], index: 5, kind: input, shape index: {}]   ;;  %s3885_s6 = inlined_call_operand.vmem [shape: f32[1,128], index: 6, kind: input, shape index: {}]   ;;  %s3886_s7 = inlined_call_operand.vmem [shape: f32[8,128], index: 7, kind: output, shape index: {}]  }
   0x1 LB: > { %s3474_s25 = sadd.s32 4294967295, %s3423_s24   ;;  %p2606_p0 = scmp.ge.s32.totalorder %s3423_s24, 1  ;;  %s3423_s24 = sphi %s3468_s24, %s17_s24  }
   0x2   : > { %p245_p1 = scmp.lt.s32.totalorder %s3423_s24, 5 }
   0x4   : > { %p246_p2 = pnand %p2606_p0, %p245_p1 }
   0x5   : > { %s2607_s26 = sshll.u32 (!%p246_p2), %s3474_s25, 4  ;;  %s2609_s27 = sshll.u32 (!%p246_p2), %s3474_s25, 8 }
   0x6   : > { %249 = sbr.rel (%p246_p2) target bundleno = 1030 (0x406), region = 48  ;;  %p279_p3 = scmp.lt.s32.totalorder (!%p246_p2), %s2607_s26, 63 }
   0x7   : > { %p285_p4 = scmp.lt.s32.totalorder (!%p246_p2), %s2609_s27, 1023  ;;  %p2612_p5 = scmp.ne.s32.totalorder (!%p246_p2), %s3474_s25, 0 }
   0xd   : > { %s3888_s26 = smov (!%p279_p3, %s2607_s26), 63  ;;  %s3890_s27 = smov (!%p285_p4, %s2609_s27), 1023 }
   0xe   : > { %s2608_s28 = sshll.u32 %s3888_s26, 2  ;;  %s2914_s9 = sshll.u32 %s3890_s27, 3  ;;  %v3425_v0 = vmov (!%p2612_p5), 0.0  }
   0xf   : > { %s3483_s8 = scalar_lea.vmem %s3879_s0, %s2608_s28  ;;  %s3488_s12 = scalar_lea.vmem %s3880_s1, %s2914_s9  ;;  %296 = vst [vmem:[#allocation2] sm:$0xff] (!%p2612_p5), %v3425_v0  ;;  %297 = vst [vmem:[#allocation2 + $0x8] sm:$0xff] (!%p2612_p5), %v3425_v0 }
  0x10   : > { %295 = sbr.rel (%p2612_p5) target bundleno = 23 (0x17), region = 52 }
  0x17 PF: > { %v2977_v1 = vld [vmem:[%s3488_s12 + $0x4] ss:$8 sps:$4 sm:$0xff]   ;;  %v2981_v3 = vld [vmem:[%s3488_s12] ss:$8 sps:$4 sm:$0xff]   ;;  %v2983_v5 = vld [vmem:[%s3488_s12 + $0x14] ss:$8 sps:$4 sm:$0xff]  }
  0x18   : > { %v2979_v2 = vld [vmem:[%s3488_s12 + $0x104] ss:$8 sps:$4 sm:$0xff]   ;;  %1900 = vmatprep.subr.bf16.mxu0 %v2977_v1  ;;  %v2982_v4 = vld [vmem:[%s3488_s12 + $0x100] ss:$8 sps:$4 sm:$0xff]   ;;  %v2985_v6 = vld [vmem:[%s3488_s12 + $0x114] ss:$8 sps:$4 sm:$0xff]  }
  0x19   : > { %1941 = vmatprep.subr.bf16.mxu1 %v2979_v2  ;;  %1901 = vmatpush1.bf16.msra.mxu0 %v2981_v3  ;;  %v2987_v7 = vld [vmem:[%s3488_s12 + $0x10] ss:$8 sps:$4 sm:$0xff]   ;;  %v2989_v9 = vld [vmem:[%s3488_s12 + $0x24] ss:$8 sps:$4 sm:$0xff]   ;;  %v2993_v11 = vld [vmem:[%s3488_s12 + $0x20] ss:$8 sps:$4 sm:$0xff]  }
  0x1a   : > { %1942 = vmatpush1.bf16.msra.mxu1 %v2982_v4  ;;  %1902 = vmatprep.subr.bf16.mxu0 %v2983_v5  ;;  %v2988_v8 = vld [vmem:[%s3488_s12 + $0x110] ss:$8 sps:$4 sm:$0xff]   ;;  %v2991_v10 = vld [vmem:[%s3488_s12 + $0x124] ss:$8 sps:$4 sm:$0xff]   ;;  %v2994_v12 = vld [vmem:[%s3488_s12 + $0x120] ss:$8 sps:$4 sm:$0xff]  }
  0x1b   : > { %1943 = vmatprep.subr.bf16.mxu1 %v2985_v6  ;;  %v2995_v13 = vld [vmem:[%s3488_s12 + $0x34] ss:$8 sps:$4 sm:$0xff]   ;;  %v2999_v15 = vld [vmem:[%s3488_s12 + $0x30] ss:$8 sps:$4 sm:$0xff]   ;;  %v3001_v17 = vld [vmem:[%s3488_s12 + $0x44] ss:$8 sps:$4 sm:$0xff]  }
  0x1c   : > { %v2997_v14 = vld [vmem:[%s3488_s12 + $0x134] ss:$8 sps:$4 sm:$0xff]   ;;  %v3000_v16 = vld [vmem:[%s3488_s12 + $0x130] ss:$8 sps:$4 sm:$0xff]   ;;  %v3003_v18 = vld [vmem:[%s3488_s12 + $0x144] ss:$8 sps:$4 sm:$0xff]  }
  0x1d   : > { %1903 = vmatpush1.bf16.msra.mxu0 %v2987_v7  ;;  %v3005_v19 = vld [vmem:[%s3488_s12 + $0x40] ss:$8 sps:$4 sm:$0xff]   ;;  %v3007_v21 = vld [vmem:[%s3488_s12 + $0x54] ss:$8 sps:$4 sm:$0xff]   ;;  %v3011_v23 = vld [vmem:[%s3488_s12 + $0x50] ss:$8 sps:$4 sm:$0xff]  }
  0x1e   : > { %1944 = vmatpush1.bf16.msra.mxu1 %v2988_v8  ;;  %1904 = vmatprep.subr.bf16.mxu0 %v2989_v9  ;;  %v3006_v20 = vld [vmem:[%s3488_s12 + $0x140] ss:$8 sps:$4 sm:$0xff]   ;;  %v3009_v22 = vld [vmem:[%s3488_s12 + $0x154] ss:$8 sps:$4 sm:$0xff]   ;;  %v3012_v24 = vld [vmem:[%s3488_s12 + $0x150] ss:$8 sps:$4 sm:$0xff]  }
  0x1f   : > { %1945 = vmatprep.subr.bf16.mxu1 %v2991_v10  ;;  %v3013_v25 = vld [vmem:[%s3488_s12 + $0x64] ss:$8 sps:$4 sm:$0xff]   ;;  %v3017_v27 = vld [vmem:[%s3488_s12 + $0x60] ss:$8 sps:$4 sm:$0xff]   ;;  %v3019_v29 = vld [vmem:[%s3488_s12 + $0x74] ss:$8 sps:$4 sm:$0xff]  }
  0x20   : > { %v3015_v26 = vld [vmem:[%s3488_s12 + $0x164] ss:$8 sps:$4 sm:$0xff]   ;;  %v3018_v28 = vld [vmem:[%s3488_s12 + $0x160] ss:$8 sps:$4 sm:$0xff]   ;;  %v3021_v30 = vld [vmem:[%s3488_s12 + $0x174] ss:$8 sps:$4 sm:$0xff]  }
  0x21   : > { %1905 = vmatpush1.bf16.msra.mxu0 %v2993_v11  ;;  %v3023_v31 = vld [vmem:[%s3488_s12 + $0x70] ss:$8 sps:$4 sm:$0xff]   ;;  %v3025_v33 = vld [vmem:[%s3488_s12 + $0x84] ss:$8 sps:$4 sm:$0xff]   ;;  %v3029_v35 = vld [vmem:[%s3488_s12 + $0x80] ss:$8 sps:$4 sm:$0xff]  }
  0x22   : > { %1946 = vmatpush1.bf16.msra.mxu1 %v2994_v12  ;;  %1906 = vmatprep.subr.bf16.mxu0 %v2995_v13  ;;  %v3024_v32 = vld [vmem:[%s3488_s12 + $0x170] ss:$8 sps:$4 sm:$0xff]   ;;  %v3027_v34 = vld [vmem:[%s3488_s12 + $0x184] ss:$8 sps:$4 sm:$0xff]   ;;  %v3030_v36 = vld [vmem:[%s3488_s12 + $0x180] ss:$8 sps:$4 sm:$0xff]  }
  0x23   : > { %1947 = vmatprep.subr.bf16.mxu1 %v2997_v14  ;;  %v3031_v37 = vld [vmem:[%s3488_s12 + $0x94] ss:$8 sps:$4 sm:$0xff]   ;;  %v3035_v39 = vld [vmem:[%s3488_s12 + $0x90] ss:$8 sps:$4 sm:$0xff]   ;;  %v3037_v41 = vld [vmem:[%s3488_s12 + $0xa4] ss:$8 sps:$4 sm:$0xff]  }
  0x24   : > { %v3033_v38 = vld [vmem:[%s3488_s12 + $0x194] ss:$8 sps:$4 sm:$0xff]   ;;  %v3036_v40 = vld [vmem:[%s3488_s12 + $0x190] ss:$8 sps:$4 sm:$0xff]   ;;  %v3039_v42 = vld [vmem:[%s3488_s12 + $0x1a4] ss:$8 sps:$4 sm:$0xff]  }
  0x25   : > { %1907 = vmatpush1.bf16.msra.mxu0 %v2999_v15  ;;  %v3041_v43 = vld [vmem:[%s3488_s12 + $0xa0] ss:$8 sps:$4 sm:$0xff]   ;;  %v3043_v45 = vld [vmem:[%s3488_s12 + $0xb4] ss:$8 sps:$4 sm:$0xff]   ;;  %v3047_v50 = vld [vmem:[%s3488_s12 + $0xb0] ss:$8 sps:$4 sm:$0xff]  }
  0x26   : > { %1948 = vmatpush1.bf16.msra.mxu1 %v3000_v16  ;;  %1908 = vmatprep.subr.bf16.mxu0 %v3001_v17  ;;  %v3042_v44 = vld [vmem:[%s3488_s12 + $0x1a0] ss:$8 sps:$4 sm:$0xff]   ;;  %v3045_v46 = vld [vmem:[%s3488_s12 + $0x1b4] ss:$8 sps:$4 sm:$0xff]   ;;  %v3048_v51 = vld [vmem:[%s3488_s12 + $0x1b0] ss:$8 sps:$4 sm:$0xff]  }
  0x27   : > { %1949 = vmatprep.subr.bf16.mxu1 %v3003_v18  ;;  %v300_v47 = vld [vmem:[%s3483_s8] sm:$0xff]  ;;  %v301_v49 = vld [vmem:[%s3483_s8 + $0x8] sm:$0xff]  ;;  %v3055_v57 = vld [vmem:[%s3488_s12 + $0xd4] ss:$8 sps:$4 sm:$0xff]   ;;  %p2885_p6 = scmp.ne.s32.totalorder %s3474_s25, 3 }
  0x28   : > { %v2614_v48 = vcombine.high %v300_v47, %v300_v47  ;;  %v2616_v52 = vcombine.high %v301_v49, %v301_v49  ;;  %v3049_v53 = vld [vmem:[%s3488_s12 + $0xc4] ss:$8 sps:$4 sm:$0xff]   ;;  %v3053_v55 = vld [vmem:[%s3488_s12 + $0xc0] ss:$8 sps:$4 sm:$0xff]   ;;  %v3057_v58 = vld [vmem:[%s3488_s12 + $0x1d4] ss:$8 sps:$4 sm:$0xff]   ;;  %v2613_v7 = vcombine.low %v300_v47, %v300_v47  ;;  %v2615_v8 = vcombine.low %v301_v49, %v301_v49 }
  0x29   : > { %1909 = vmatpush1.bf16.msra.mxu0 %v3005_v19  ;;  %v3051_v54 = vld [vmem:[%s3488_s12 + $0x1c4] ss:$8 sps:$4 sm:$0xff]   ;;  %v3054_v56 = vld [vmem:[%s3488_s12 + $0x1c0] ss:$8 sps:$4 sm:$0xff]   ;;  %v3059_v59 = vld [vmem:[%s3488_s12 + $0xd0] ss:$8 sps:$4 sm:$0xff]  }
  0x2a   : > { %1950 = vmatpush1.bf16.msra.mxu1 %v3006_v20  ;;  %1910 = vmatprep.subr.bf16.mxu0 %v3007_v21  ;;  %v3060_v60 = vld [vmem:[%s3488_s12 + $0x1d0] ss:$8 sps:$4 sm:$0xff]   ;;  %v3061_v61 = vld [vmem:[%s3488_s12 + $0xe4] ss:$8 sps:$4 sm:$0xff]   ;;  %v3065_v63 = vld [vmem:[%s3488_s12 + $0xe0] ss:$8 sps:$4 sm:$0xff]  }
  0x2b   : > { %1951 = vmatprep.subr.bf16.mxu1 %v3009_v22  ;;  %1932 = vmatprep.mubr.bf16.mxu0 %v2614_v48  ;;  %v3063_v62 = vld [vmem:[%s3488_s12 + $0x1e4] ss:$8 sps:$4 sm:$0xff]   ;;  %v3066_v0 = vld [vmem:[%s3488_s12 + $0x1e0] ss:$8 sps:$4 sm:$0xff]   ;;  %v3067_v1 = vld [vmem:[%s3488_s12 + $0xf4] ss:$8 sps:$4 sm:$0xff]  }
  0x2c   : > { %1973 = vmatprep.mubr.bf16.mxu1 %v2616_v52  ;;  %v3069_v2 = vld [vmem:[%s3488_s12 + $0x1f4] ss:$8 sps:$4 sm:$0xff]   ;;  %v3071_v3 = vld [vmem:[%s3488_s12 + $0xf0] ss:$8 sps:$4 sm:$0xff]   ;;  %v3079_v5 = vld [vmem:[%s3488_s12 + $0x204] ss:$8 sps:$4 sm:$0xff]  }
  0x2d   : > { %1911 = vmatpush1.bf16.msra.mxu0 %v3011_v23  ;;  %v3072_v4 = vld [vmem:[%s3488_s12 + $0x1f0] ss:$8 sps:$4 sm:$0xff]   ;;  %v3082_v6 = vld [vmem:[%s3488_s12 + $0x304] ss:$8 sps:$4 sm:$0xff]   ;;  %v3077_v9 = vld [vmem:[%s3488_s12 + $0x200] ss:$8 sps:$4 sm:$0xff]  }
  0x2e   : > { %1952 = vmatpush1.bf16.msra.mxu1 %v3012_v24  ;;  %1912 = vmatprep.subr.bf16.mxu0 %v3013_v25  ;;  %v3080_v10 = vld [vmem:[%s3488_s12 + $0x300] ss:$8 sps:$4 sm:$0xff]   ;;  %v3085_v11 = vld [vmem:[%s3488_s12 + $0x214] ss:$8 sps:$4 sm:$0xff]   ;;  %v3083_v13 = vld [vmem:[%s3488_s12 + $0x210] ss:$8 sps:$4 sm:$0xff]  }
  0x2f   : > { %1953 = vmatprep.subr.bf16.mxu1 %v3015_v26  ;;  %v3088_v12 = vld [vmem:[%s3488_s12 + $0x314] ss:$8 sps:$4 sm:$0xff]   ;;  %v3086_v14 = vld [vmem:[%s3488_s12 + $0x310] ss:$8 sps:$4 sm:$0xff]   ;;  %v3091_v15 = vld [vmem:[%s3488_s12 + $0x224] ss:$8 sps:$4 sm:$0xff]  }
  0x30   : > { %v3094_v16 = vld [vmem:[%s3488_s12 + $0x324] ss:$8 sps:$4 sm:$0xff]   ;;  %v3089_v17 = vld [vmem:[%s3488_s12 + $0x220] ss:$8 sps:$4 sm:$0xff]   ;;  %v3097_v19 = vld [vmem:[%s3488_s12 + $0x234] ss:$8 sps:$4 sm:$0xff]  }
  0x31   : > { %1913 = vmatpush1.bf16.msra.mxu0 %v3017_v27  ;;  %v3092_v18 = vld [vmem:[%s3488_s12 + $0x320] ss:$8 sps:$4 sm:$0xff]   ;;  %v3100_v20 = vld [vmem:[%s3488_s12 + $0x334] ss:$8 sps:$4 sm:$0xff]   ;;  %v3095_v21 = vld [vmem:[%s3488_s12 + $0x230] ss:$8 sps:$4 sm:$0xff]  }
  0x32   : > { %1954 = vmatpush1.bf16.msra.mxu1 %v3018_v28  ;;  %1914 = vmatprep.subr.bf16.mxu0 %v3019_v29  ;;  %v3098_v22 = vld [vmem:[%s3488_s12 + $0x330] ss:$8 sps:$4 sm:$0xff]   ;;  %v3103_v23 = vld [vmem:[%s3488_s12 + $0x244] ss:$8 sps:$4 sm:$0xff]   ;;  %v3101_v25 = vld [vmem:[%s3488_s12 + $0x240] ss:$8 sps:$4 sm:$0xff]  }
  0x33   : > { %1955 = vmatprep.subr.bf16.mxu1 %v3021_v30  ;;  %v3106_v24 = vld [vmem:[%s3488_s12 + $0x344] ss:$8 sps:$4 sm:$0xff]   ;;  %v3104_v26 = vld [vmem:[%s3488_s12 + $0x340] ss:$8 sps:$4 sm:$0xff]   ;;  %v3109_v27 = vld [vmem:[%s3488_s12 + $0x254] ss:$8 sps:$4 sm:$0xff]  }
  0x34   : > { %v3112_v28 = vld [vmem:[%s3488_s12 + $0x354] ss:$8 sps:$4 sm:$0xff]   ;;  %v3107_v29 = vld [vmem:[%s3488_s12 + $0x250] ss:$8 sps:$4 sm:$0xff]   ;;  %v3142_v52 = vld [vmem:[%s3488_s12 + $0x3a4] ss:$8 sps:$4 sm:$0xff]  }
  0x35   : > { %1915 = vmatpush1.bf16.msra.mxu0 %v3023_v31  ;;  %v3110_v30 = vld [vmem:[%s3488_s12 + $0x350] ss:$8 sps:$4 sm:$0xff]   ;;  %v3115_v31 = vld [vmem:[%s3488_s12 + $0x264] ss:$8 sps:$4 sm:$0xff]   ;;  %v3133_v47 = vld [vmem:[%s3488_s12 + $0x294] ss:$8 sps:$4 sm:$0xff]  }
  0x36   : > { %1956 = vmatpush1.bf16.msra.mxu1 %v3024_v32  ;;  %1916 = vmatprep.subr.bf16.mxu0 %v3025_v33  ;;  %v3118_v32 = vld [vmem:[%s3488_s12 + $0x364] ss:$8 sps:$4 sm:$0xff]   ;;  %v3584_v33 = vld [vmem:[%s3483_s8 + $0x10] sm:$0xff]  ;;  %vm3427_vm0 = vmmov (!%p2885_p6), 0  }
  0x37   : > { %1957 = vmatprep.subr.bf16.mxu1 %v3027_v34  ;;  %v3587_v34 = vld [vmem:[%s3483_s8 + $0x18] sm:$0xff] }
  0x38   : > { %v3136_v48 = vld [vmem:[%s3488_s12 + $0x394] ss:$8 sps:$4 sm:$0xff]   ;;  %v3131_v49 = vld [vmem:[%s3488_s12 + $0x290] ss:$8 sps:$4 sm:$0xff]  }
  0x39   : > { %1917 = vmatpush1.bf16.msra.mxu0 %v3029_v35  ;;  %v3113_v35 = vld [vmem:[%s3488_s12 + $0x260] ss:$8 sps:$4 sm:$0xff]  }
  0x3a   : > { %1958 = vmatpush1.bf16.msra.mxu1 %v3030_v36  ;;  %1918 = vmatprep.subr.bf16.mxu0 %v3031_v37  ;;  %v3116_v36 = vld [vmem:[%s3488_s12 + $0x360] ss:$8 sps:$4 sm:$0xff]   ;;  %v2618_v37 = vcombine.high %v3584_v33, %v3584_v33 }
  0x3b   : > { %1959 = vmatprep.subr.bf16.mxu1 %v3033_v38  ;;  %v2620_v38 = vcombine.high %v3587_v34, %v3587_v34 }
  0x3d   : > { %1919 = vmatpush1.bf16.msra.mxu0 %v3035_v39  ;;  %v3121_v39 = vld [vmem:[%s3488_s12 + $0x274] ss:$8 sps:$4 sm:$0xff]  }
  0x3e   : > { %1960 = vmatpush1.bf16.msra.mxu1 %v3036_v40  ;;  %1920 = vmatprep.subr.bf16.mxu0 %v3037_v41  ;;  %v3124_v40 = vld [vmem:[%s3488_s12 + $0x374] ss:$8 sps:$4 sm:$0xff]   ;;  %v3119_v41 = vld [vmem:[%s3488_s12 + $0x270] ss:$8 sps:$4 sm:$0xff]  }
  0x3f   : > { %1961 = vmatprep.subr.bf16.mxu1 %v3039_v42  ;;  %v3122_v42 = vld [vmem:[%s3488_s12 + $0x370] ss:$8 sps:$4 sm:$0xff]  }
  0x41   : > { %1921 = vmatpush1.bf16.msra.mxu0 %v3041_v43  ;;  %v3127_v43 = vld [vmem:[%s3488_s12 + $0x284] ss:$8 sps:$4 sm:$0xff]  }
  0x42   : > { %1962 = vmatpush1.bf16.msra.mxu1 %v3042_v44  ;;  %1922 = vmatprep.subr.bf16.mxu0 %v3043_v45  ;;  %v3130_v44 = vld [vmem:[%s3488_s12 + $0x384] ss:$8 sps:$4 sm:$0xff]   ;;  %v3125_v45 = vld [vmem:[%s3488_s12 + $0x280] ss:$8 sps:$4 sm:$0xff]  }
  0x43   : > { %1963 = vmatprep.subr.bf16.mxu1 %v3045_v46  ;;  %v3128_v46 = vld [vmem:[%s3488_s12 + $0x380] ss:$8 sps:$4 sm:$0xff]  }
  0x45   : > { %1923 = vmatpush1.bf16.msra.mxu0 %v3047_v50  ;;  %v3134_v50 = vld [vmem:[%s3488_s12 + $0x390] ss:$8 sps:$4 sm:$0xff]  }
  0x46   : > { %1964 = vmatpush1.bf16.msra.mxu1 %v3048_v51  ;;  %1924 = vmatprep.subr.bf16.mxu0 %v3049_v53  ;;  %v3139_v51 = vld [vmem:[%s3488_s12 + $0x2a4] ss:$8 sps:$4 sm:$0xff]   ;;  %v3137_v53 = vld [vmem:[%s3488_s12 + $0x2a0] ss:$8 sps:$4 sm:$0xff]  }
  0x47   : > { %1965 = vmatprep.subr.bf16.mxu1 %v3051_v54  ;;  %v3140_v54 = vld [vmem:[%s3488_s12 + $0x3a0] ss:$8 sps:$4 sm:$0xff]  }
  0x49   : > { %1925 = vmatpush1.bf16.msra.mxu0 %v3053_v55  ;;  %v3145_v55 = vld [vmem:[%s3488_s12 + $0x2b4] ss:$8 sps:$4 sm:$0xff]  }
  0x4a   : > { %1966 = vmatpush1.bf16.msra.mxu1 %v3054_v56  ;;  %1926 = vmatprep.subr.bf16.mxu0 %v3055_v57  ;;  %v3148_v56 = vld [vmem:[%s3488_s12 + $0x3b4] ss:$8 sps:$4 sm:$0xff]   ;;  %v3143_v57 = vld [vmem:[%s3488_s12 + $0x2b0] ss:$8 sps:$4 sm:$0xff]  }
  0x4b   : > { %1967 = vmatprep.subr.bf16.mxu1 %v3057_v58  ;;  %v3146_v58 = vld [vmem:[%s3488_s12 + $0x3b0] ss:$8 sps:$4 sm:$0xff]  }
  0x4d   : > { %1927 = vmatpush1.bf16.msra.mxu0 %v3059_v59  ;;  %v3151_v59 = vld [vmem:[%s3488_s12 + $0x2c4] ss:$8 sps:$4 sm:$0xff]  }
  0x4e   : > { %1968 = vmatpush1.bf16.msra.mxu1 %v3060_v60  ;;  %1928 = vmatprep.subr.bf16.mxu0 %v3061_v61  ;;  %v3154_v60 = vld [vmem:[%s3488_s12 + $0x3c4] ss:$8 sps:$4 sm:$0xff]   ;;  %v3149_v61 = vld [vmem:[%s3488_s12 + $0x2c0] ss:$8 sps:$4 sm:$0xff]  }
  0x4f   : > { %1969 = vmatprep.subr.bf16.mxu1 %v3063_v62  ;;  %v3152_v62 = vld [vmem:[%s3488_s12 + $0x3c0] ss:$8 sps:$4 sm:$0xff]  }
  0x51   : > { %1929 = vmatpush1.bf16.msra.mxu0 %v3065_v63  ;;  %v3157_v63 = vld [vmem:[%s3488_s12 + $0x2d4] ss:$8 sps:$4 sm:$0xff]  }
  0x52   : > { %1970 = vmatpush1.bf16.msra.mxu1 %v3066_v0  ;;  %1930 = vmatprep.subr.bf16.mxu0 %v3067_v1  ;;  %v3160_v0 = vld [vmem:[%s3488_s12 + $0x3d4] ss:$8 sps:$4 sm:$0xff]   ;;  %v3155_v1 = vld [vmem:[%s3488_s12 + $0x2d0] ss:$8 sps:$4 sm:$0xff]  }
  0x53   : > { %1971 = vmatprep.subr.bf16.mxu1 %v3069_v2  ;;  %v3158_v2 = vld [vmem:[%s3488_s12 + $0x3d0] ss:$8 sps:$4 sm:$0xff]  }
  0x55   : > { %1931 = vmatpush1.bf16.msra.mxu0 %v3071_v3  ;;  %v3163_v3 = vld [vmem:[%s3488_s12 + $0x2e4] ss:$8 sps:$4 sm:$0xff]  }
  0x56   : > { %1972 = vmatpush1.bf16.msra.mxu1 %v3072_v4  ;;  %1982 = vmatprep.subr.bf16.mxu0 %v3079_v5  ;;  %v3166_v4 = vld [vmem:[%s3488_s12 + $0x3e4] ss:$8 sps:$4 sm:$0xff]   ;;  %v3161_v5 = vld [vmem:[%s3488_s12 + $0x2e0] ss:$8 sps:$4 sm:$0xff]  }
  0x57   : > { %2023 = vmatprep.subr.bf16.mxu1 %v3082_v6  ;;  %v3164_v6 = vld [vmem:[%s3488_s12 + $0x3e0] ss:$8 sps:$4 sm:$0xff]  }
  0x58   : > { %1933 = vmatmul.mubr.bf16.vlgmr.msra.gmra.mrb[0].mxu0 %v2613_v7  ;;  %v3169_v7 = vld [vmem:[%s3488_s12 + $0x2f4] ss:$8 sps:$4 sm:$0xff]  }
  0x59   : > { %1974 = vmatmul.mubr.bf16.vlgmr.msra.gmra.mrb[0].mxu1 %v2615_v8  ;;  %1983 = vmatpush1.bf16.msra.mxu0 %v3077_v9  ;;  %v3172_v8 = vld [vmem:[%s3488_s12 + $0x3f4] ss:$8 sps:$4 sm:$0xff]   ;;  %v3167_v9 = vld [vmem:[%s3488_s12 + $0x2f0] ss:$8 sps:$4 sm:$0xff]  }
  0x5a   : > { %2024 = vmatpush1.bf16.msra.mxu1 %v3080_v10  ;;  %1984 = vmatprep.subr.bf16.mxu0 %v3085_v11  ;;  %v3170_v10 = vld [vmem:[%s3488_s12 + $0x3f0] ss:$8 sps:$4 sm:$0xff]   ;;  %v3179_v11 = vld [vmem:[%s3488_s12 + $0x404] ss:$8 sps:$4 sm:$0xff]  }
  0x5b   : > { %2025 = vmatprep.subr.bf16.mxu1 %v3088_v12  ;;  %2014 = vmatprep.mubr.bf16.mxu0 %v2618_v37  ;;  %v3182_v12 = vld [vmem:[%s3488_s12 + $0x504] ss:$8 sps:$4 sm:$0xff]   ;;  %v3209_v37 = vld [vmem:[%s3488_s12 + $0x454] ss:$8 sps:$4 sm:$0xff]  }
  0x5c   : > { %2055 = vmatprep.mubr.bf16.mxu1 %v2620_v38  ;;  %v3212_v38 = vld [vmem:[%s3488_s12 + $0x554] ss:$8 sps:$4 sm:$0xff]  }
  0x5d   : > { %1985 = vmatpush1.bf16.msra.mxu0 %v3083_v13  ;;  %v2617_v13 = vcombine.low %v3584_v33, %v3584_v33  ;;  %v3203_v33 = vld [vmem:[%s3488_s12 + $0x444] ss:$8 sps:$4 sm:$0xff]  }
  0x5e   : > { %2026 = vmatpush1.bf16.msra.mxu1 %v3086_v14  ;;  %1986 = vmatprep.subr.bf16.mxu0 %v3091_v15  ;;  %v2619_v14 = vcombine.low %v3587_v34, %v3587_v34  ;;  %v3177_v15 = vld [vmem:[%s3488_s12 + $0x400] ss:$8 sps:$4 sm:$0xff]   ;;  %v3206_v34 = vld [vmem:[%s3488_s12 + $0x544] ss:$8 sps:$4 sm:$0xff]  }
  0x5f   : > { %2027 = vmatprep.subr.bf16.mxu1 %v3094_v16  ;;  %v3180_v16 = vld [vmem:[%s3488_s12 + $0x500] ss:$8 sps:$4 sm:$0xff]  }
  0x61   : > { %1987 = vmatpush1.bf16.msra.mxu0 %v3089_v17  ;;  %v3185_v17 = vld [vmem:[%s3488_s12 + $0x414] ss:$8 sps:$4 sm:$0xff]  }
  0x62   : > { %2028 = vmatpush1.bf16.msra.mxu1 %v3092_v18  ;;  %1988 = vmatprep.subr.bf16.mxu0 %v3097_v19  ;;  %v3188_v18 = vld [vmem:[%s3488_s12 + $0x514] ss:$8 sps:$4 sm:$0xff]   ;;  %v3642_v19 = vld [vmem:[%s3483_s8 + $0x20] sm:$0xff] }
  0x63   : > { %2029 = vmatprep.subr.bf16.mxu1 %v3100_v20  ;;  %v3645_v20 = vld [vmem:[%s3483_s8 + $0x28] sm:$0xff] }
  0x65   : > { %1989 = vmatpush1.bf16.msra.mxu0 %v3095_v21  ;;  %v2622_v21 = vcombine.high %v3642_v19, %v3642_v19 }
  0x66   : > { %2030 = vmatpush1.bf16.msra.mxu1 %v3098_v22  ;;  %1990 = vmatprep.subr.bf16.mxu0 %v3103_v23  ;;  %v2624_v22 = vcombine.high %v3645_v20, %v3645_v20  ;;  %v3183_v23 = vld [vmem:[%s3488_s12 + $0x410] ss:$8 sps:$4 sm:$0xff]  }
  0x67   : > { %2031 = vmatprep.subr.bf16.mxu1 %v3106_v24  ;;  %v3186_v24 = vld [vmem:[%s3488_s12 + $0x510] ss:$8 sps:$4 sm:$0xff]  }
  0x69   : > { %1991 = vmatpush1.bf16.msra.mxu0 %v3101_v25  ;;  %v3191_v25 = vld [vmem:[%s3488_s12 + $0x424] ss:$8 sps:$4 sm:$0xff]  }
  0x6a   : > { %2032 = vmatpush1.bf16.msra.mxu1 %v3104_v26  ;;  %1992 = vmatprep.subr.bf16.mxu0 %v3109_v27  ;;  %v3194_v26 = vld [vmem:[%s3488_s12 + $0x524] ss:$8 sps:$4 sm:$0xff]   ;;  %v3189_v27 = vld [vmem:[%s3488_s12 + $0x420] ss:$8 sps:$4 sm:$0xff]  }
  0x6b   : > { %2033 = vmatprep.subr.bf16.mxu1 %v3112_v28  ;;  %v3192_v28 = vld [vmem:[%s3488_s12 + $0x520] ss:$8 sps:$4 sm:$0xff]  }
  0x6d   : > { %1993 = vmatpush1.bf16.msra.mxu0 %v3107_v29  ;;  %v3197_v29 = vld [vmem:[%s3488_s12 + $0x434] ss:$8 sps:$4 sm:$0xff]  }
  0x6e   : > { %2034 = vmatpush1.bf16.msra.mxu1 %v3110_v30  ;;  %1994 = vmatprep.subr.bf16.mxu0 %v3115_v31  ;;  %v3200_v30 = vld [vmem:[%s3488_s12 + $0x534] ss:$8 sps:$4 sm:$0xff]   ;;  %v3195_v31 = vld [vmem:[%s3488_s12 + $0x430] ss:$8 sps:$4 sm:$0xff]  }
  0x6f   : > { %2035 = vmatprep.subr.bf16.mxu1 %v3118_v32  ;;  %v3198_v32 = vld [vmem:[%s3488_s12 + $0x530] ss:$8 sps:$4 sm:$0xff]  }
  0x71   : > { %1995 = vmatpush1.bf16.msra.mxu0 %v3113_v35  ;;  %v3201_v35 = vld [vmem:[%s3488_s12 + $0x440] ss:$8 sps:$4 sm:$0xff]  }
  0x72   : > { %2036 = vmatpush1.bf16.msra.mxu1 %v3116_v36  ;;  %1996 = vmatprep.subr.bf16.mxu0 %v3121_v39  ;;  %v3204_v36 = vld [vmem:[%s3488_s12 + $0x540] ss:$8 sps:$4 sm:$0xff]   ;;  %v3207_v39 = vld [vmem:[%s3488_s12 + $0x450] ss:$8 sps:$4 sm:$0xff]  }
  0x73   : > { %2037 = vmatprep.subr.bf16.mxu1 %v3124_v40  ;;  %v3210_v40 = vld [vmem:[%s3488_s12 + $0x550] ss:$8 sps:$4 sm:$0xff]  }
  0x75   : > { %1997 = vmatpush1.bf16.msra.mxu0 %v3119_v41  ;;  %v3215_v41 = vld [vmem:[%s3488_s12 + $0x464] ss:$8 sps:$4 sm:$0xff]  }
  0x76   : > { %2038 = vmatpush1.bf16.msra.mxu1 %v3122_v42  ;;  %1998 = vmatprep.subr.bf16.mxu0 %v3127_v43  ;;  %v3218_v42 = vld [vmem:[%s3488_s12 + $0x564] ss:$8 sps:$4 sm:$0xff]   ;;  %v3213_v43 = vld [vmem:[%s3488_s12 + $0x460] ss:$8 sps:$4 sm:$0xff]  }
  0x77   : > { %2039 = vmatprep.subr.bf16.mxu1 %v3130_v44  ;;  %v3216_v44 = vld [vmem:[%s3488_s12 + $0x560] ss:$8 sps:$4 sm:$0xff]  }
  0x79   : > { %1999 = vmatpush1.bf16.msra.mxu0 %v3125_v45  ;;  %v3221_v45 = vld [vmem:[%s3488_s12 + $0x474] ss:$8 sps:$4 sm:$0xff]  }
  0x7a   : > { %2040 = vmatpush1.bf16.msra.mxu1 %v3128_v46  ;;  %2000 = vmatprep.subr.bf16.mxu0 %v3133_v47  ;;  %v3224_v46 = vld [vmem:[%s3488_s12 + $0x574] ss:$8 sps:$4 sm:$0xff]   ;;  %v3219_v47 = vld [vmem:[%s3488_s12 + $0x470] ss:$8 sps:$4 sm:$0xff]  }
  0x7b   : > { %2041 = vmatprep.subr.bf16.mxu1 %v3136_v48  ;;  %v3222_v48 = vld [vmem:[%s3488_s12 + $0x570] ss:$8 sps:$4 sm:$0xff]  }
  0x7d   : > { %2001 = vmatpush1.bf16.msra.mxu0 %v3131_v49  ;;  %v3227_v49 = vld [vmem:[%s3488_s12 + $0x484] ss:$8 sps:$4 sm:$0xff]  }
  0x7e   : > { %2042 = vmatpush1.bf16.msra.mxu1 %v3134_v50  ;;  %2002 = vmatprep.subr.bf16.mxu0 %v3139_v51  ;;  %v3230_v50 = vld [vmem:[%s3488_s12 + $0x584] ss:$8 sps:$4 sm:$0xff]   ;;  %v3225_v51 = vld [vmem:[%s3488_s12 + $0x480] ss:$8 sps:$4 sm:$0xff]  }
  0x7f   : > { %2043 = vmatprep.subr.bf16.mxu1 %v3142_v52  ;;  %v3228_v52 = vld [vmem:[%s3488_s12 + $0x580] ss:$8 sps:$4 sm:$0xff]  }
  0x81   : > { %2003 = vmatpush1.bf16.msra.mxu0 %v3137_v53  ;;  %v3233_v53 = vld [vmem:[%s3488_s12 + $0x494] ss:$8 sps:$4 sm:$0xff]  }
  0x82   : > { %2044 = vmatpush1.bf16.msra.mxu1 %v3140_v54  ;;  %2004 = vmatprep.subr.bf16.mxu0 %v3145_v55  ;;  %v3236_v54 = vld [vmem:[%s3488_s12 + $0x594] ss:$8 sps:$4 sm:$0xff]   ;;  %v3231_v55 = vld [vmem:[%s3488_s12 + $0x490] ss:$8 sps:$4 sm:$0xff]  }
  0x83   : > { %2045 = vmatprep.subr.bf16.mxu1 %v3148_v56  ;;  %v3234_v56 = vld [vmem:[%s3488_s12 + $0x590] ss:$8 sps:$4 sm:$0xff]  }
  0x85   : > { %2005 = vmatpush1.bf16.msra.mxu0 %v3143_v57  ;;  %v3239_v57 = vld [vmem:[%s3488_s12 + $0x4a4] ss:$8 sps:$4 sm:$0xff]  }
  0x86   : > { %2046 = vmatpush1.bf16.msra.mxu1 %v3146_v58  ;;  %2006 = vmatprep.subr.bf16.mxu0 %v3151_v59  ;;  %v3242_v58 = vld [vmem:[%s3488_s12 + $0x5a4] ss:$8 sps:$4 sm:$0xff]   ;;  %v3237_v59 = vld [vmem:[%s3488_s12 + $0x4a0] ss:$8 sps:$4 sm:$0xff]  }
  0x87   : > { %2047 = vmatprep.subr.bf16.mxu1 %v3154_v60  ;;  %v3240_v60 = vld [vmem:[%s3488_s12 + $0x5a0] ss:$8 sps:$4 sm:$0xff]  }
  0x89   : > { %2007 = vmatpush1.bf16.msra.mxu0 %v3149_v61  ;;  %v3245_v61 = vld [vmem:[%s3488_s12 + $0x4b4] ss:$8 sps:$4 sm:$0xff]  }
  0x8a   : > { %2048 = vmatpush1.bf16.msra.mxu1 %v3152_v62  ;;  %2008 = vmatprep.subr.bf16.mxu0 %v3157_v63  ;;  %v3248_v62 = vld [vmem:[%s3488_s12 + $0x5b4] ss:$8 sps:$4 sm:$0xff]   ;;  %v3243_v63 = vld [vmem:[%s3488_s12 + $0x4b0] ss:$8 sps:$4 sm:$0xff]  }
  0x8b   : > { %2049 = vmatprep.subr.bf16.mxu1 %v3160_v0  ;;  %v3246_v0 = vld [vmem:[%s3488_s12 + $0x5b0] ss:$8 sps:$4 sm:$0xff]  }
  0x8d   : > { %2009 = vmatpush1.bf16.msra.mxu0 %v3155_v1  ;;  %v3251_v1 = vld [vmem:[%s3488_s12 + $0x4c4] ss:$8 sps:$4 sm:$0xff]  }
  0x8e   : > { %2050 = vmatpush1.bf16.msra.mxu1 %v3158_v2  ;;  %2010 = vmatprep.subr.bf16.mxu0 %v3163_v3  ;;  %v3254_v2 = vld [vmem:[%s3488_s12 + $0x5c4] ss:$8 sps:$4 sm:$0xff]   ;;  %v3249_v3 = vld [vmem:[%s3488_s12 + $0x4c0] ss:$8 sps:$4 sm:$0xff]  }
  0x8f   : > { %2051 = vmatprep.subr.bf16.mxu1 %v3166_v4  ;;  %v3252_v4 = vld [vmem:[%s3488_s12 + $0x5c0] ss:$8 sps:$4 sm:$0xff]  }
  0x91   : > { %2011 = vmatpush1.bf16.msra.mxu0 %v3161_v5  ;;  %v3257_v5 = vld [vmem:[%s3488_s12 + $0x4d4] ss:$8 sps:$4 sm:$0xff]  }
  0x92   : > { %2052 = vmatpush1.bf16.msra.mxu1 %v3164_v6  ;;  %2012 = vmatprep.subr.bf16.mxu0 %v3169_v7  ;;  %v3260_v6 = vld [vmem:[%s3488_s12 + $0x5d4] ss:$8 sps:$4 sm:$0xff]   ;;  %v3255_v7 = vld [vmem:[%s3488_s12 + $0x4d0] ss:$8 sps:$4 sm:$0xff]  }
  0x93   : > { %2053 = vmatprep.subr.bf16.mxu1 %v3172_v8  ;;  %v3258_v8 = vld [vmem:[%s3488_s12 + $0x5d0] ss:$8 sps:$4 sm:$0xff]  }
  0x95   : > { %2013 = vmatpush1.bf16.msra.mxu0 %v3167_v9  ;;  %v3263_v9 = vld [vmem:[%s3488_s12 + $0x4e4] ss:$8 sps:$4 sm:$0xff]  }
  0x96   : > { %2054 = vmatpush1.bf16.msra.mxu1 %v3170_v10  ;;  %2064 = vmatprep.subr.bf16.mxu0 %v3179_v11  ;;  %v3266_v10 = vld [vmem:[%s3488_s12 + $0x5e4] ss:$8 sps:$4 sm:$0xff]   ;;  %v3261_v11 = vld [vmem:[%s3488_s12 + $0x4e0] ss:$8 sps:$4 sm:$0xff]  }
  0x97   : > { %2105 = vmatprep.subr.bf16.mxu1 %v3182_v12  ;;  %v3264_v12 = vld [vmem:[%s3488_s12 + $0x5e0] ss:$8 sps:$4 sm:$0xff]  }
  0x98   : > { %2015 = vmatmul.mubr.bf16.vlgmr.msra.gmra.mrb[4].mxu0 %v2617_v13  ;;  %v3269_v13 = vld [vmem:[%s3488_s12 + $0x4f4] ss:$8 sps:$4 sm:$0xff]  }
  0x99   : > { %2056 = vmatmul.mubr.bf16.vlgmr.msra.gmra.mrb[4].mxu1 %v2619_v14  ;;  %2065 = vmatpush1.bf16.msra.mxu0 %v3177_v15  ;;  %v3272_v14 = vld [vmem:[%s3488_s12 + $0x5f4] ss:$8 sps:$4 sm:$0xff]   ;;  %v3267_v15 = vld [vmem:[%s3488_s12 + $0x4f0] ss:$8 sps:$4 sm:$0xff]  }
  0x9a   : > { %2106 = vmatpush1.bf16.msra.mxu1 %v3180_v16  ;;  %2066 = vmatprep.subr.bf16.mxu0 %v3185_v17  ;;  %v3270_v16 = vld [vmem:[%s3488_s12 + $0x5f0] ss:$8 sps:$4 sm:$0xff]   ;;  %v3279_v17 = vld [vmem:[%s3488_s12 + $0x604] ss:$8 sps:$4 sm:$0xff]  }
  0x9b   : > { %2107 = vmatprep.subr.bf16.mxu1 %v3188_v18  ;;  %2096 = vmatprep.mubr.bf16.mxu0 %v2622_v21  ;;  %v3282_v18 = vld [vmem:[%s3488_s12 + $0x704] ss:$8 sps:$4 sm:$0xff]   ;;  %v2621_v21 = vcombine.low %v3642_v19, %v3642_v19 }
  0x9c   : > { %2137 = vmatprep.mubr.bf16.mxu1 %v2624_v22  ;;  %v2623_v22 = vcombine.low %v3645_v20, %v3645_v20 }
  0x9d   : > { %2067 = vmatpush1.bf16.msra.mxu0 %v3183_v23  ;;  %v3716_v23 = vld [vmem:[%s3483_s8 + $0x30] sm:$0xff] }
  0x9e   : > { %2108 = vmatpush1.bf16.msra.mxu1 %v3186_v24  ;;  %2068 = vmatprep.subr.bf16.mxu0 %v3191_v25  ;;  %v3719_v24 = vld [vmem:[%s3483_s8 + $0x38] sm:$0xff]  ;;  %v3277_v25 = vld [vmem:[%s3488_s12 + $0x600] ss:$8 sps:$4 sm:$0xff]   ;;  %v2626_v19 = vcombine.high %v3716_v23, %v3716_v23 }
  0x9f   : > { %2109 = vmatprep.subr.bf16.mxu1 %v3194_v26  ;;  %v3280_v26 = vld [vmem:[%s3488_s12 + $0x700] ss:$8 sps:$4 sm:$0xff]   ;;  %v2628_v20 = vcombine.high %v3719_v24, %v3719_v24 }
  0xa1   : > { %2069 = vmatpush1.bf16.msra.mxu0 %v3189_v27  ;;  %v3285_v27 = vld [vmem:[%s3488_s12 + $0x614] ss:$8 sps:$4 sm:$0xff]  }
  0xa2   : > { %2110 = vmatpush1.bf16.msra.mxu1 %v3192_v28  ;;  %2070 = vmatprep.subr.bf16.mxu0 %v3197_v29  ;;  %v3288_v28 = vld [vmem:[%s3488_s12 + $0x714] ss:$8 sps:$4 sm:$0xff]   ;;  %v3283_v29 = vld [vmem:[%s3488_s12 + $0x610] ss:$8 sps:$4 sm:$0xff]  }
  0xa3   : > { %2111 = vmatprep.subr.bf16.mxu1 %v3200_v30  ;;  %v3286_v30 = vld [vmem:[%s3488_s12 + $0x710] ss:$8 sps:$4 sm:$0xff]  }
  0xa5   : > { %2071 = vmatpush1.bf16.msra.mxu0 %v3195_v31  ;;  %v3291_v31 = vld [vmem:[%s3488_s12 + $0x624] ss:$8 sps:$4 sm:$0xff]  }
  0xa6   : > { %2112 = vmatpush1.bf16.msra.mxu1 %v3198_v32  ;;  %2072 = vmatprep.subr.bf16.mxu0 %v3203_v33  ;;  %v3294_v32 = vld [vmem:[%s3488_s12 + $0x724] ss:$8 sps:$4 sm:$0xff]   ;;  %v3289_v33 = vld [vmem:[%s3488_s12 + $0x620] ss:$8 sps:$4 sm:$0xff]  }
  0xa7   : > { %2113 = vmatprep.subr.bf16.mxu1 %v3206_v34  ;;  %v3292_v34 = vld [vmem:[%s3488_s12 + $0x720] ss:$8 sps:$4 sm:$0xff]  }
  0xa9   : > { %2073 = vmatpush1.bf16.msra.mxu0 %v3201_v35  ;;  %v3297_v35 = vld [vmem:[%s3488_s12 + $0x634] ss:$8 sps:$4 sm:$0xff]  }
  0xaa   : > { %2114 = vmatpush1.bf16.msra.mxu1 %v3204_v36  ;;  %2074 = vmatprep.subr.bf16.mxu0 %v3209_v37  ;;  %v3300_v36 = vld [vmem:[%s3488_s12 + $0x734] ss:$8 sps:$4 sm:$0xff]   ;;  %v3295_v37 = vld [vmem:[%s3488_s12 + $0x630] ss:$8 sps:$4 sm:$0xff]  }
  0xab   : > { %2115 = vmatprep.subr.bf16.mxu1 %v3212_v38  ;;  %v3298_v38 = vld [vmem:[%s3488_s12 + $0x730] ss:$8 sps:$4 sm:$0xff]  }
  0xad   : > { %2075 = vmatpush1.bf16.msra.mxu0 %v3207_v39  ;;  %v3303_v39 = vld [vmem:[%s3488_s12 + $0x644] ss:$8 sps:$4 sm:$0xff]  }
  0xae   : > { %2116 = vmatpush1.bf16.msra.mxu1 %v3210_v40  ;;  %2076 = vmatprep.subr.bf16.mxu0 %v3215_v41  ;;  %v3306_v40 = vld [vmem:[%s3488_s12 + $0x744] ss:$8 sps:$4 sm:$0xff]   ;;  %v3301_v41 = vld [vmem:[%s3488_s12 + $0x640] ss:$8 sps:$4 sm:$0xff]  }
  0xaf   : > { %2117 = vmatprep.subr.bf16.mxu1 %v3218_v42  ;;  %v3304_v42 = vld [vmem:[%s3488_s12 + $0x740] ss:$8 sps:$4 sm:$0xff]  }
  0xb1   : > { %2077 = vmatpush1.bf16.msra.mxu0 %v3213_v43  ;;  %v3309_v43 = vld [vmem:[%s3488_s12 + $0x654] ss:$8 sps:$4 sm:$0xff]  }
  0xb2   : > { %2118 = vmatpush1.bf16.msra.mxu1 %v3216_v44  ;;  %2078 = vmatprep.subr.bf16.mxu0 %v3221_v45  ;;  %v3312_v44 = vld [vmem:[%s3488_s12 + $0x754] ss:$8 sps:$4 sm:$0xff]   ;;  %v3307_v45 = vld [vmem:[%s3488_s12 + $0x650] ss:$8 sps:$4 sm:$0xff]  }
  0xb3   : > { %2119 = vmatprep.subr.bf16.mxu1 %v3224_v46  ;;  %v3310_v46 = vld [vmem:[%s3488_s12 + $0x750] ss:$8 sps:$4 sm:$0xff]  }
  0xb5   : > { %2079 = vmatpush1.bf16.msra.mxu0 %v3219_v47  ;;  %v3315_v47 = vld [vmem:[%s3488_s12 + $0x664] ss:$8 sps:$4 sm:$0xff]  }
  0xb6   : > { %2120 = vmatpush1.bf16.msra.mxu1 %v3222_v48  ;;  %2080 = vmatprep.subr.bf16.mxu0 %v3227_v49  ;;  %v3318_v48 = vld [vmem:[%s3488_s12 + $0x764] ss:$8 sps:$4 sm:$0xff]   ;;  %v3313_v49 = vld [vmem:[%s3488_s12 + $0x660] ss:$8 sps:$4 sm:$0xff]  }
  0xb7   : > { %2121 = vmatprep.subr.bf16.mxu1 %v3230_v50  ;;  %v3316_v50 = vld [vmem:[%s3488_s12 + $0x760] ss:$8 sps:$4 sm:$0xff]  }
  0xb9   : > { %2081 = vmatpush1.bf16.msra.mxu0 %v3225_v51  ;;  %v3321_v51 = vld [vmem:[%s3488_s12 + $0x674] ss:$8 sps:$4 sm:$0xff]  }
  0xba   : > { %2122 = vmatpush1.bf16.msra.mxu1 %v3228_v52  ;;  %2082 = vmatprep.subr.bf16.mxu0 %v3233_v53  ;;  %v3324_v52 = vld [vmem:[%s3488_s12 + $0x774] ss:$8 sps:$4 sm:$0xff]   ;;  %v3319_v53 = vld [vmem:[%s3488_s12 + $0x670] ss:$8 sps:$4 sm:$0xff]  }
  0xbb   : > { %2123 = vmatprep.subr.bf16.mxu1 %v3236_v54  ;;  %v3322_v54 = vld [vmem:[%s3488_s12 + $0x770] ss:$8 sps:$4 sm:$0xff]  }
  0xbd   : > { %2083 = vmatpush1.bf16.msra.mxu0 %v3231_v55  ;;  %v3327_v55 = vld [vmem:[%s3488_s12 + $0x684] ss:$8 sps:$4 sm:$0xff]  }
  0xbe   : > { %2124 = vmatpush1.bf16.msra.mxu1 %v3234_v56  ;;  %2084 = vmatprep.subr.bf16.mxu0 %v3239_v57  ;;  %v3330_v56 = vld [vmem:[%s3488_s12 + $0x784] ss:$8 sps:$4 sm:$0xff]   ;;  %v3325_v57 = vld [vmem:[%s3488_s12 + $0x680] ss:$8 sps:$4 sm:$0xff]  }
  0xbf   : > { %2125 = vmatprep.subr.bf16.mxu1 %v3242_v58  ;;  %v3328_v58 = vld [vmem:[%s3488_s12 + $0x780] ss:$8 sps:$4 sm:$0xff]  }
  0xc1   : > { %2085 = vmatpush1.bf16.msra.mxu0 %v3237_v59  ;;  %v3333_v59 = vld [vmem:[%s3488_s12 + $0x694] ss:$8 sps:$4 sm:$0xff]  }
  0xc2   : > { %2126 = vmatpush1.bf16.msra.mxu1 %v3240_v60  ;;  %2086 = vmatprep.subr.bf16.mxu0 %v3245_v61  ;;  %v3336_v60 = vld [vmem:[%s3488_s12 + $0x794] ss:$8 sps:$4 sm:$0xff]   ;;  %v3331_v61 = vld [vmem:[%s3488_s12 + $0x690] ss:$8 sps:$4 sm:$0xff]  }
  0xc3   : > { %2127 = vmatprep.subr.bf16.mxu1 %v3248_v62  ;;  %v3334_v62 = vld [vmem:[%s3488_s12 + $0x790] ss:$8 sps:$4 sm:$0xff]  }
  0xc5   : > { %2087 = vmatpush1.bf16.msra.mxu0 %v3243_v63  ;;  %v3339_v63 = vld [vmem:[%s3488_s12 + $0x6a4] ss:$8 sps:$4 sm:$0xff]  }
  0xc6   : > { %2128 = vmatpush1.bf16.msra.mxu1 %v3246_v0  ;;  %2088 = vmatprep.subr.bf16.mxu0 %v3251_v1  ;;  %v3342_v0 = vld [vmem:[%s3488_s12 + $0x7a4] ss:$8 sps:$4 sm:$0xff]   ;;  %v3337_v1 = vld [vmem:[%s3488_s12 + $0x6a0] ss:$8 sps:$4 sm:$0xff]  }
  0xc7   : > { %2129 = vmatprep.subr.bf16.mxu1 %v3254_v2  ;;  %v3340_v2 = vld [vmem:[%s3488_s12 + $0x7a0] ss:$8 sps:$4 sm:$0xff]  }
  0xc9   : > { %2089 = vmatpush1.bf16.msra.mxu0 %v3249_v3  ;;  %v3345_v3 = vld [vmem:[%s3488_s12 + $0x6b4] ss:$8 sps:$4 sm:$0xff]  }
  0xca   : > { %2130 = vmatpush1.bf16.msra.mxu1 %v3252_v4  ;;  %2090 = vmatprep.subr.bf16.mxu0 %v3257_v5  ;;  %v3348_v4 = vld [vmem:[%s3488_s12 + $0x7b4] ss:$8 sps:$4 sm:$0xff]   ;;  %v3343_v5 = vld [vmem:[%s3488_s12 + $0x6b0] ss:$8 sps:$4 sm:$0xff]  }
  0xcb   : > { %2131 = vmatprep.subr.bf16.mxu1 %v3260_v6  ;;  %v3346_v6 = vld [vmem:[%s3488_s12 + $0x7b0] ss:$8 sps:$4 sm:$0xff]  }
  0xcd   : > { %2091 = vmatpush1.bf16.msra.mxu0 %v3255_v7  ;;  %v3351_v7 = vld [vmem:[%s3488_s12 + $0x6c4] ss:$8 sps:$4 sm:$0xff]  }
  0xce   : > { %2132 = vmatpush1.bf16.msra.mxu1 %v3258_v8  ;;  %2092 = vmatprep.subr.bf16.mxu0 %v3263_v9  ;;  %v3354_v8 = vld [vmem:[%s3488_s12 + $0x7c4] ss:$8 sps:$4 sm:$0xff]   ;;  %v3349_v9 = vld [vmem:[%s3488_s12 + $0x6c0] ss:$8 sps:$4 sm:$0xff]  }
  0xcf   : > { %2133 = vmatprep.subr.bf16.mxu1 %v3266_v10  ;;  %v3352_v10 = vld [vmem:[%s3488_s12 + $0x7c0] ss:$8 sps:$4 sm:$0xff]  }
  0xd1   : > { %2093 = vmatpush1.bf16.msra.mxu0 %v3261_v11  ;;  %v3357_v11 = vld [vmem:[%s3488_s12 + $0x6d4] ss:$8 sps:$4 sm:$0xff]  }
  0xd2   : > { %2134 = vmatpush1.bf16.msra.mxu1 %v3264_v12  ;;  %2094 = vmatprep.subr.bf16.mxu0 %v3269_v13  ;;  %v3360_v12 = vld [vmem:[%s3488_s12 + $0x7d4] ss:$8 sps:$4 sm:$0xff]   ;;  %v3355_v13 = vld [vmem:[%s3488_s12 + $0x6d0] ss:$8 sps:$4 sm:$0xff]  }
  0xd3   : > { %2135 = vmatprep.subr.bf16.mxu1 %v3272_v14  ;;  %v3358_v14 = vld [vmem:[%s3488_s12 + $0x7d0] ss:$8 sps:$4 sm:$0xff]  }
  0xd5   : > { %2095 = vmatpush1.bf16.msra.mxu0 %v3267_v15  ;;  %v3363_v15 = vld [vmem:[%s3488_s12 + $0x6e4] ss:$8 sps:$4 sm:$0xff]  }
  0xd6   : > { %2136 = vmatpush1.bf16.msra.mxu1 %v3270_v16  ;;  %2146 = vmatprep.subr.bf16.mxu0 %v3279_v17  ;;  %v3366_v16 = vld [vmem:[%s3488_s12 + $0x7e4] ss:$8 sps:$4 sm:$0xff]   ;;  %v3361_v17 = vld [vmem:[%s3488_s12 + $0x6e0] ss:$8 sps:$4 sm:$0xff]  }
  0xd7   : > { %2187 = vmatprep.subr.bf16.mxu1 %v3282_v18  ;;  %v3364_v18 = vld [vmem:[%s3488_s12 + $0x7e0] ss:$8 sps:$4 sm:$0xff]  }
  0xd8   : > { %2097 = vmatmul.mubr.bf16.vlgmr.msra.gmra.mrb[8].mxu0 %v2621_v21  ;;  %v3369_v21 = vld [vmem:[%s3488_s12 + $0x6f4] ss:$8 sps:$4 sm:$0xff]  }
  0xd9   : > { %2138 = vmatmul.mubr.bf16.vlgmr.msra.gmra.mrb[8].mxu1 %v2623_v22  ;;  %2147 = vmatpush1.bf16.msra.mxu0 %v3277_v25  ;;  %v3372_v22 = vld [vmem:[%s3488_s12 + $0x7f4] ss:$8 sps:$4 sm:$0xff]   ;;  %v3367_v25 = vld [vmem:[%s3488_s12 + $0x6f0] ss:$8 sps:$4 sm:$0xff]  }
  0xda   : > { %2188 = vmatpush1.bf16.msra.mxu1 %v3280_v26  ;;  %2148 = vmatprep.subr.bf16.mxu0 %v3285_v27  ;;  %v3370_v26 = vld [vmem:[%s3488_s12 + $0x7f0] ss:$8 sps:$4 sm:$0xff]   ;;  %v2625_v27 = vcombine.low %v3716_v23, %v3716_v23 }
  0xdb   : > { %2189 = vmatprep.subr.bf16.mxu1 %v3288_v28  ;;  %2178 = vmatprep.mubr.bf16.mxu0 %v2626_v19  ;;  %v2627_v28 = vcombine.low %v3719_v24, %v3719_v24 }
  0xdc   : > { %2219 = vmatprep.mubr.bf16.mxu1 %v2628_v20 }
  0xdd   : > { %2149 = vmatpush1.bf16.msra.mxu0 %v3283_v29 }
  0xde   : > { %2190 = vmatpush1.bf16.msra.mxu1 %v3286_v30  ;;  %2150 = vmatprep.subr.bf16.mxu0 %v3291_v31 }
  0xdf   : > { %2191 = vmatprep.subr.bf16.mxu1 %v3294_v32 }
  0xe1   : > { %2151 = vmatpush1.bf16.msra.mxu0 %v3289_v33 }
  0xe2   : > { %2192 = vmatpush1.bf16.msra.mxu1 %v3292_v34  ;;  %2152 = vmatprep.subr.bf16.mxu0 %v3297_v35 }
  0xe3   : > { %2193 = vmatprep.subr.bf16.mxu1 %v3300_v36 }
  0xe5   : > { %2153 = vmatpush1.bf16.msra.mxu0 %v3295_v37 }
  0xe6   : > { %2194 = vmatpush1.bf16.msra.mxu1 %v3298_v38  ;;  %2154 = vmatprep.subr.bf16.mxu0 %v3303_v39 }
  0xe7   : > { %2195 = vmatprep.subr.bf16.mxu1 %v3306_v40 }
  0xe9   : > { %2155 = vmatpush1.bf16.msra.mxu0 %v3301_v41 }
  0xea   : > { %2196 = vmatpush1.bf16.msra.mxu1 %v3304_v42  ;;  %2156 = vmatprep.subr.bf16.mxu0 %v3309_v43 }
  0xeb   : > { %2197 = vmatprep.subr.bf16.mxu1 %v3312_v44 }
  0xed   : > { %2157 = vmatpush1.bf16.msra.mxu0 %v3307_v45 }
  0xee   : > { %2198 = vmatpush1.bf16.msra.mxu1 %v3310_v46  ;;  %2158 = vmatprep.subr.bf16.mxu0 %v3315_v47 }
  0xef   : > { %2199 = vmatprep.subr.bf16.mxu1 %v3318_v48 }
  0xf1   : > { %2159 = vmatpush1.bf16.msra.mxu0 %v3313_v49 }
  0xf2   : > { %2200 = vmatpush1.bf16.msra.mxu1 %v3316_v50  ;;  %2160 = vmatprep.subr.bf16.mxu0 %v3321_v51 }
  0xf3   : > { %2201 = vmatprep.subr.bf16.mxu1 %v3324_v52 }
  0xf5   : > { %2161 = vmatpush1.bf16.msra.mxu0 %v3319_v53 }
  0xf6   : > { %2202 = vmatpush1.bf16.msra.mxu1 %v3322_v54  ;;  %2162 = vmatprep.subr.bf16.mxu0 %v3327_v55 }
  0xf7   : > { %2203 = vmatprep.subr.bf16.mxu1 %v3330_v56 }
  0xf9   : > { %2163 = vmatpush1.bf16.msra.mxu0 %v3325_v57 }
  0xfa   : > { %2204 = vmatpush1.bf16.msra.mxu1 %v3328_v58  ;;  %2164 = vmatprep.subr.bf16.mxu0 %v3333_v59 }
  0xfb   : > { %2205 = vmatprep.subr.bf16.mxu1 %v3336_v60 }
  0xfd   : > { %2165 = vmatpush1.bf16.msra.mxu0 %v3331_v61 }
  0xfe   : > { %2206 = vmatpush1.bf16.msra.mxu1 %v3334_v62  ;;  %2166 = vmatprep.subr.bf16.mxu0 %v3339_v63 }
  0xff   : > { %2207 = vmatprep.subr.bf16.mxu1 %v3342_v0  ;;  %v298_v0 = vld [vmem:[#allocation2] sm:$0xff] }
 0x101   : > { %2167 = vmatpush1.bf16.msra.mxu0 %v3337_v1 }
 0x102   : > { %2208 = vmatpush1.bf16.msra.mxu1 %v3340_v2  ;;  %2168 = vmatprep.subr.bf16.mxu0 %v3345_v3 }
 0x103   : > { %2209 = vmatprep.subr.bf16.mxu1 %v3348_v4 }
 0x105   : > { %2169 = vmatpush1.bf16.msra.mxu0 %v3343_v5  ;;  %v299_v5 = vld [vmem:[#allocation2 + $0x8] sm:$0xff] }
 0x106   : > { %2210 = vmatpush1.bf16.msra.mxu1 %v3346_v6  ;;  %2170 = vmatprep.subr.bf16.mxu0 %v3351_v7 }
 0x107   : > { %2211 = vmatprep.subr.bf16.mxu1 %v3354_v8 }
 0x109   : > { %2171 = vmatpush1.bf16.msra.mxu0 %v3349_v9 }
 0x10a   : > { %2212 = vmatpush1.bf16.msra.mxu1 %v3352_v10  ;;  %2172 = vmatprep.subr.bf16.mxu0 %v3357_v11  ;;  %v3377_v11 = vld [vmem:[%s3882_s3 + $0x40] sm:$0xff] (!%p2885_p6)  }
 0x10b   : > { %2213 = vmatprep.subr.bf16.mxu1 %v3360_v12  ;;  %v3378_v12 = vld [vmem:[%s3882_s3] sm:$0xff] (!%p2885_p6)  }
 0x10d   : > { %2173 = vmatpush1.bf16.msra.mxu0 %v3355_v13  ;;  %v3379_v13 = vld [vmem:[%s3882_s3 + $0x48] sm:$0xff] (!%p2885_p6)  }
 0x10e   : > { %2214 = vmatpush1.bf16.msra.mxu1 %v3358_v14  ;;  %2174 = vmatprep.subr.bf16.mxu0 %v3363_v15  ;;  %v3380_v14 = vld [vmem:[%s3882_s3 + $0x8] sm:$0xff] (!%p2885_p6)   ;;  %v3381_v15 = vld [vmem:[%s3882_s3 + $0x50] sm:$0xff] (!%p2885_p6)  }
 0x10f   : > { %2215 = vmatprep.subr.bf16.mxu1 %v3366_v16  ;;  %v2240_v16 = vlaneseq (!%p2885_p6) }
 0x111   : > { %2175 = vmatpush1.bf16.msra.mxu0 %v3361_v17  ;;  %v3382_v17 = vld [vmem:[%s3882_s3 + $0x10] sm:$0xff] (!%p2885_p6)  }
 0x112   : > { %2216 = vmatpush1.bf16.msra.mxu1 %v3364_v18  ;;  %2176 = vmatprep.subr.bf16.mxu0 %v3369_v21  ;;  %v3383_v18 = vld [vmem:[%s3882_s3 + $0x58] sm:$0xff] (!%p2885_p6)   ;;  %v2241_v21 = vshrl.u32 (!%p2885_p6), %v2240_v16, 7 }
 0x113   : > { %2217 = vmatprep.subr.bf16.mxu1 %v3372_v22  ;;  %v3384_v22 = vld [vmem:[%s3882_s3 + $0x18] sm:$0xff] (!%p2885_p6)  }
 0x115   : > { %2177 = vmatpush1.bf16.msra.mxu0 %v3367_v25  ;;  %v3385_v25 = vld [vmem:[%s3882_s3 + $0x60] sm:$0xff] (!%p2885_p6)  }
 0x116   : > { %2218 = vmatpush1.bf16.msra.mxu1 %v3370_v26  ;;  %2915 = vmatprep.subr.bf16.mxu0 (!%p2885_p6), %v3377_v11  ;;  %v2242_v26 = vsub.s32 (!%p2885_p6), 0, %v2241_v21 }
 0x118   : > { %2179 = vmatmul.mubr.bf16.vlgmr.msra.gmra.mrb[12].mxu0 %v2625_v27  ;;  %v2246_v27 = vsub.s32 (!%p2885_p6), 1, %v2241_v21 }
 0x119   : > { %2220 = vmatmul.mubr.bf16.vlgmr.msra.gmra.mrb[12].mxu1 %v2627_v28  ;;  %2916 = vmatpush3.bf16.msra.mxu0 (!%p2885_p6), %v3378_v12  ;;  %v3386_v28 = vld [vmem:[%s3882_s3 + $0x20] sm:$0xff] (!%p2885_p6)  }
 0x11a   : > { %2917 = vmatprep.subr.bf16.mxu0 (!%p2885_p6), %v3379_v13 }
 0x11d   : > { %2918 = vmatpush3.bf16.msra.mxu0 (!%p2885_p6), %v3380_v14 }
 0x11e   : > { %2919 = vmatprep.subr.bf16.mxu0 (!%p2885_p6), %v3381_v15 }
 0x121   : > { %2920 = vmatpush3.bf16.msra.mxu0 (!%p2885_p6), %v3382_v17 }
 0x122   : > { %2921 = vmatprep.subr.bf16.mxu0 (!%p2885_p6), %v3383_v18 }
 0x125   : > { %2922 = vmatpush3.bf16.msra.mxu0 (!%p2885_p6), %v3384_v22 }
 0x126   : > { %2923 = vmatprep.subr.bf16.mxu0 (!%p2885_p6), %v3385_v25 }
 0x129   : > { %2924 = vmatpush3.bf16.msra.mxu0 (!%p2885_p6), %v3386_v28 }
 0x12b   : > { %v1934_v19 = vpop.f32.mrb[0].mxu0 }
 0x12c   : > { %v1975_v20 = vpop.f32.mrb[0].mxu1  ;;  %v1936_v30 = vpop.f32.mrb[1].mxu0 }
 0x12d   : > { %v1976_v29 = vadd.f32 %v1975_v20, %v1934_v19  ;;  %v1977_v31 = vpop.f32.mrb[1].mxu1  ;;  %v1938_v33 = vpop.f32.mrb[2].mxu0  ;;  %v3387_v19 = vld [vmem:[%s3882_s3 + $0x68] sm:$0xff] (!%p2885_p6)  }
 0x12e   : > { %v1978_v32 = vadd.f32 %v1977_v31, %v1936_v30  ;;  %v1979_v34 = vpop.f32.mrb[2].mxu1  ;;  %v1939_v35 = vpop.f32.mrb[3].mxu0  ;;  %v3388_v31 = vld [vmem:[%s3882_s3 + $0x28] sm:$0xff] (!%p2885_p6)   ;;  %2925 = vmatprep.subr.bf16.mxu0 (!%p2885_p6), %v3387_v19 }
 0x12f   : > { %v1980_v36 = vpop.f32.mrb[3].mxu1  ;;  %v3389_v34 = vld [vmem:[%s3882_s3 + $0x70] sm:$0xff] (!%p2885_p6)   ;;  %2926 = vmatpush3.bf16.msra.mxu0 (!%p2885_p6), %v3388_v31 }
 0x130   : > { %2927 = vmatprep.subr.bf16.mxu0 (!%p2885_p6), %v3389_v34 }
 0x16b   : > { %v2016_v37 = vpop.f32.mrb[4].mxu0 }
 0x16c   : > { %v2057_v38 = vpop.f32.mrb[4].mxu1  ;;  %v2017_v23 = vadd.f32 %v2016_v37, %v1976_v29  ;;  %v2018_v39 = vpop.f32.mrb[5].mxu0  ;;  %v2238_v29 = vld [vmem:[%s3881_s2] sm:$0x3] (!%p2885_p6) }
 0x16d   : > { %v2059_v40 = vpop.f32.mrb[5].mxu1  ;;  %v2019_v24 = vadd.f32 %v2018_v39, %v1978_v32  ;;  %v2020_v41 = vpop.f32.mrb[6].mxu0  ;;  %v2243_v32 = vrot.slane (!%p2885_p6), %v2238_v29, %v2242_v26  ;;  %v2247_v33 = vrot.slane (!%p2885_p6), %v2238_v29, %v2246_v27 }
 0x16e   : > { %v2061_v42 = vpop.f32.mrb[6].mxu1  ;;  %v2058_v43 = vadd.f32 %v2057_v38, %v2017_v23  ;;  %v2021_v44 = vpop.f32.mrb[7].mxu0  ;;  %v3390_v23 = vld [vmem:[%s3882_s3 + $0x30] sm:$0xff] (!%p2885_p6)   ;;  %v3392_v41 = vld [vmem:[%s3882_s3 + $0x38] sm:$0xff] (!%p2885_p6)  }
 0x16f   : > { %v2062_v45 = vpop.f32.mrb[7].mxu1  ;;  %v2060_v46 = vadd.f32 %v2059_v40, %v2019_v24  ;;  %v3391_v24 = vld [vmem:[%s3882_s3 + $0x78] sm:$0xff] (!%p2885_p6)   ;;  %2928 = vmatpush3.bf16.msra.mxu0 (!%p2885_p6), %v3390_v23 }
 0x170   : > { %2929 = vmatprep.subr.bf16.mxu0 (!%p2885_p6), %v3391_v24 }
 0x173   : > { %2930 = vmatpush3.bf16.msra.mxu0 (!%p2885_p6), %v3392_v41 }
 0x1ab   : > { %v2098_v47 = vpop.f32.mrb[8].mxu0 }
 0x1ac   : > { %v2139_v48 = vpop.f32.mrb[8].mxu1  ;;  %v2099_v49 = vadd.f32 %v2098_v47, %v2058_v43  ;;  %v2100_v50 = vpop.f32.mrb[9].mxu0 }
 0x1ad   : > { %v2141_v51 = vpop.f32.mrb[9].mxu1  ;;  %v2101_v52 = vadd.f32 %v2100_v50, %v2060_v46  ;;  %v2102_v53 = vpop.f32.mrb[10].mxu0  ;;  %v3393_v50 = vld [vmem:[%s3884_s5] sm:$0xff] (!%p2885_p6)  }
 0x1ae   : > { %v2143_v54 = vpop.f32.mrb[10].mxu1  ;;  %v2140_v55 = vadd.f32 %v2139_v48, %v2099_v49  ;;  %v2103_v56 = vpop.f32.mrb[11].mxu0  ;;  %v3395_v53 = vld [vmem:[%s3884_s5 + $0x10] sm:$0xff] (!%p2885_p6)  }
 0x1af   : > { %v2144_v57 = vpop.f32.mrb[11].mxu1  ;;  %v2142_v58 = vadd.f32 %v2141_v51, %v2101_v52  ;;  %v3426_v51 = vmov (!%p2885_p6), 0.0   ;;  %v3394_v52 = vld [vmem:[%s3884_s5 + $0x8] sm:$0xff] (!%p2885_p6)   ;;  %v3396_v54 = vld [vmem:[%s3884_s5 + $0x18] sm:$0xff] (!%p2885_p6)  }
 0x1b0   : > { %2946 = vmatprep.subr.bf16.mxu1 (!%p2885_p6), %v3426_v51  ;;  %v3398_v56 = vld [vmem:[%s3884_s5 + $0x28] sm:$0xff] (!%p2885_p6)   ;;  %2962 = vmatprep.mubr.msk.bf16.mxu1 (!%p2885_p6), %vm3427_vm0, %v3426_v51  ;;  %v3399_v57 = vld [vmem:[%s3884_s5 + $0x30] sm:$0xff] (!%p2885_p6)  }
 0x1b1   : > { %2947 = vmatpush3.bf16.msra.mxu1 (!%p2885_p6), %v3393_v50 }
 0x1b2   : > { %2948 = vmatprep.subr.bf16.mxu1 (!%p2885_p6), %v3426_v51 }
 0x1b5   : > { %2949 = vmatpush3.bf16.msra.mxu1 (!%p2885_p6), %v3394_v52 }
 0x1b6   : > { %2950 = vmatprep.subr.bf16.mxu1 (!%p2885_p6), %v3426_v51 }
 0x1b9   : > { %2951 = vmatpush3.bf16.msra.mxu1 (!%p2885_p6), %v3395_v53 }
 0x1ba   : > { %2952 = vmatprep.subr.bf16.mxu1 (!%p2885_p6), %v3426_v51 }
 0x1bd   : > { %2953 = vmatpush3.bf16.msra.mxu1 (!%p2885_p6), %v3396_v54 }
 0x1be   : > { %2954 = vmatprep.subr.bf16.mxu1 (!%p2885_p6), %v3426_v51 }
 0x1eb   : > { %v2180_v59 = vpop.f32.mrb[12].mxu0 }
 0x1ec   : > { %v2221_v60 = vpop.f32.mrb[12].mxu1  ;;  %v2181_v61 = vadd.f32 %v2180_v59, %v2140_v55  ;;  %v2182_v62 = vpop.f32.mrb[13].mxu0  ;;  %v3397_v55 = vld [vmem:[%s3884_s5 + $0x20] sm:$0xff] (!%p2885_p6)  }
 0x1ed   : > { %v2223_v63 = vpop.f32.mrb[13].mxu1  ;;  %v2183_v1 = vadd.f32 %v2182_v62, %v2142_v58  ;;  %v2184_v2 = vpop.f32.mrb[14].mxu0  ;;  %2235 = sbr.rel (%p2885_p6) target bundleno = 1030 (0x406), region = 56  ;;  %2955 = vmatpush3.bf16.msra.mxu1 (!%p2885_p6), %v3397_v55  ;;  %v3400_v58 = vld [vmem:[%s3884_s5 + $0x38] sm:$0xff] (!%p2885_p6)  }
 0x1ee   : > { %v2225_v3 = vpop.f32.mrb[14].mxu1  ;;  %v2222_v4 = vadd.f32 %v2221_v60, %v2181_v61  ;;  %v2185_v6 = vpop.f32.mrb[15].mxu0  ;;  %2956 = vmatprep.subr.bf16.mxu1 (!%p2885_p6), %v3426_v51  ;;  %v2886_v60 = vld [vmem:[%s3883_s4] ss:$0 sm:$0xff] (!%p2885_p6) }
 0x1ef   : > { %v2226_v7 = vpop.f32.mrb[15].mxu1  ;;  %v2224_v8 = vadd.f32 %v2223_v63, %v2183_v1 }
 0x1f0   : > { %v2228_v9 = vadd.f32 %v2222_v4, %v298_v0 }
 0x1f1   : > { %v2229_v10 = vadd.f32 %v2224_v8, %v299_v5  ;;  %2957 = vmatpush3.bf16.msra.mxu1 (!%p2885_p6), %v3398_v56  ;;  %v2903_v8 = vld [vmem:[%s3885_s6] ss:$0 sm:$0xff] (!%p2885_p6) }
 0x1f2   : > { %2230 = vst [vmem:[#allocation2] sm:$0xff] %v2228_v9  ;;  %2958 = vmatprep.subr.bf16.mxu1 (!%p2885_p6), %v3426_v51 }
 0x1f3   : > { %2231 = vst [vmem:[#allocation2 + $0x8] sm:$0xff] %v2229_v10 }
 0x1f5   : > { %2959 = vmatpush3.bf16.msra.mxu1 %v3399_v57 }
 0x1f6   : > { %2960 = vmatprep.subr.bf16.mxu1 %v3426_v51 }
 0x1f9   : > { %v2236_v30 = vld [vmem:[#allocation2] sm:$0xff]  ;;  %2961 = vmatpush3.bf16.msra.mxu1 %v3400_v58 }
 0x1fa   : > { %v2237_v20 = vld [vmem:[#allocation2 + $0x8] sm:$0xff]  ;;  %v2250_v36 = vadd.f32 %v2243_v32, %v2236_v30 }
 0x1fb   : > { %v2251_v35 = vadd.f32 %v2247_v33, %v2237_v20 }
 0x1fc   : > { %v2252_v38 = vsub.f32 0.0, %v2250_v36 }
 0x1fd   : > { %v2253_v37 = vsub.f32 0.0, %v2251_v35 }
 0x1fe   : > { %v2254_v40 = vmul.f32 1.442695, %v2252_v38 }
 0x1ff   : > { %v2256_v39 = vmul.f32 1.442695, %v2253_v37 }
 0x201   : > { %3401 = vpow2.f32 %v2256_v39 }
 0x202   : > { %3403 = vpow2.f32 %v2254_v40 }
 0x20b   : > { %v3402_v42 = vpop.eup %3401 }
 0x20c   : > { %v3404_v43 = vpop.eup %3403  ;;  %v2259_v44 = vadd.f32 1.0, %v3402_v42 }
 0x20d   : > { %v2258_v45 = vadd.f32 1.0, %v3404_v43 }
 0x20e   : > { %3405 = vrcp.f32 %v2259_v44 }
 0x20f   : > { %3407 = vrcp.f32 %v2258_v45 }
 0x218   : > { %v3406_v46 = vpop.eup %3405 }
 0x219   : > { %v3408_v47 = vpop.eup %3407  ;;  %v2263_v48 = vpack.c.bf16 %v3406_v46, %v3406_v46 }
 0x21a   : > { %v2262_v49 = vpack.c.bf16 %v3408_v47, %v3408_v47 }
 0x21b   : > { %2431 = vmatprep.mubr.bf16.mxu0 %v2263_v48 }
 0x21c   : > { %2432 = vmatmul.mubr.bf16.vlgmr.msra.gmra.mrb[0].mxu0 %v2262_v49 }
 0x2ef   : > { %v2931_v59 = vpop.f32.mrb[0].mxu0 }
 0x2f0   : > { %v2932_v61 = vpop.f32.mrb[1].mxu0 }
 0x2f1   : > { %v2933_v62 = vadd.f32 %v2932_v61, %v2931_v59  ;;  %v2934_v63 = vpop.f32.mrb[2].mxu0 }
 0x2f2   : > { %v2935_v0 = vpop.f32.mrb[3].mxu0 }
 0x2f3   : > { %v2434_v1 = vadd.f32 %v2933_v62, %v2886_v60 }
 0x2f5   : > { %v2439_v2 = vsub.f32 0.0, %v2434_v1 }
 0x2f7   : > { %v2440_v3 = vmul.f32 1.442695, %v2439_v2 }
 0x2f9   : > { %3409 = vpow2.f32 %v2440_v3 }
 0x303   : > { %v3410_v4 = vpop.eup %3409 }
 0x304   : > { %v2442_v5 = vadd.f32 1.0, %v3410_v4 }
 0x306   : > { %3411 = vrcp.f32 %v2442_v5 }
 0x310   : > { %v3412_v6 = vpop.eup %3411 }
 0x311   : > { %v2444_v7 = vpack.c.bf16 %v3412_v6, %v3412_v6 }
 0x313   : > { %2963 = vmatmul.mubr.bf16.vlgmr.msra.gmra.mrb[0].mxu1 %v2444_v7 }
 0x3e6   : > { %v2550_v9 = vpop.f32.mrb[0].mxu1 }
 0x3e7   : > { %v2551_v10 = vadd.f32 %v2903_v8, %v2550_v9  ;;  %v2964_v11 = vpop.f32.mrb[1].mxu1 }
 0x3e8   : > { %v2553_v12 = vpop.f32.mrb[2].mxu1 }
 0x3e9   : > { %v2556_v13 = vsub.f32 0.0, %v2551_v10  ;;  %v2965_v14 = vpop.f32.mrb[3].mxu1 }
 0x3eb   : > { %v2557_v15 = vmul.f32 1.442695, %v2556_v13 }
 0x3ed   : > { %3413 = vpow2.f32 %v2557_v15 }
 0x3f7   : > { %v3414_v16 = vpop.eup %3413 }
 0x3f8   : > { %v2559_v17 = vadd.f32 1.0, %v3414_v16 }
 0x3fa   : > { %3415 = vrcp.f32 %v2559_v17 }
 0x404   : > { %v3416_v18 = vpop.eup %3415 }
 0x405   : > { %2562 = vst [vmem:[%s3886_s7] sm:$0xff] %v3416_v18 }
 0x406 PF: > { %s17_s24 = sadd.s32 1, %s3423_s24  }
 0x407   : > { %p14_p7 = scmp.ge.s32.totalorder %s17_s24, 6  }
 0x409   :  { %16 = sbr.rel (!%p14_p7) target bundleno = 1 (0x1), region = 85 }

</bundles_post_ra>
